<compile_context>
chip_gen: v6e
topology: v6e:2x2x1
jax: 0.10.0
libtpu: 0.0.40
codegen_flags: <defaults>
</compile_context>

<pallas_src>
from functools import partial

import jax
import jax.numpy as jnp
from jax.experimental import pallas as pl
from jax.experimental.pallas import tpu as pltpu

BN_EPS = 1e-5


def _vmem_limit_bytes():
    # Size the scoped-VMEM limit from the actual chip (v7x: 64 MiB physical,
    # v5e/v6e: 128 MiB); leave headroom for Mosaic-internal scratch.
    try:
        cap = int(pltpu.get_tpu_info().vmem_capacity_bytes)
    except Exception:
        cap = 64 * 1024 * 1024
    return max(32 * 1024 * 1024, min(cap * 3 // 4, 96 * 1024 * 1024))


def _partial_stats(y):
    """Per-image partial BatchNorm sums: rows [sum(y), sum(y*y)], f32."""
    return jnp.concatenate([jnp.sum(y, axis=0, keepdims=True),
                            jnp.sum(y * y, axis=0, keepdims=True)], axis=0)


def _conv_tools(Hi, Wi, Ho, Wo, C, stride, HP, WP):
    """Padded-scratch fill + im2col helpers for a 3x3 conv on ONE image.

    All extents are trace-time constants, so the closures fully specialize.
    """

    def fill_pad(pad_ref, interior):
        # Zero ONLY the halo (plus stride-2 rounding slack), then store the
        # interior once.
        # TODO(synk): production shapes should DMA the image rows straight
        # into the scratch interior (memory_space=pl.ANY + make_async_copy)
        # instead of BlockSpec-copy + this store.
        dt = pad_ref.dtype
        pad_ref[0:1, :, :] = jnp.zeros((1, WP, C), dt)
        pad_ref[Hi + 1:HP, :, :] = jnp.zeros((HP - Hi - 1, WP, C), dt)
        pad_ref[:, 0:1, :] = jnp.zeros((HP, 1, C), dt)
        pad_ref[:, Wi + 1:WP, :] = jnp.zeros((HP, WP - Wi - 1, C), dt)
        pad_ref[1:Hi + 1, 1:Wi + 1, :] = interior

    def taps_of(xpad):
        """Return tap(kh, kw) -> [Ho, Wo, C] window of the padded image."""
        if stride == 1:
            return lambda kh, kw: xpad[kh:kh + Ho, kw:kw + Wo, :]
        # stride 2: hoist the decimation -- build the four (row-phase,
        # col-phase) buffers ONCE; every tap becomes a plain stride-1 slice.
        phases = {}
        xr = xpad.reshape(HP // 2, 2, WP, C)
        for pr in range(2):
            xc = xr[:, pr].reshape(HP // 2, WP // 2, 2, C)
            for pc in range(2):
                phases[(pr, pc)] = xc[:, :, pc, :]

        def tap(kh, kw):
            return phases[(kh % 2, kw % 2)][kh // 2:kh // 2 + Ho,
                                            kw // 2:kw // 2 + Wo, :]
        return tap

    def im2col(tap):
        # [Ho*Wo, 9*C] patch matrix, column order (kh, kw, ci): ONE MXU matmul.
        # TODO(synk): for C >= 128 stages (v7x 64 MiB VMEM) sweep the no-concat
        # variant (9 accumulating K=C matmuls) to drop this 9x buffer.
        cols = [tap(kh, kw) for kh in range(3) for kw in range(3)]
        return jnp.concatenate(cols, axis=-1).reshape(Ho * Wo, 9 * C)

    return fill_pad, taps_of, im2col


# --------------------------- kernel factories ------------------------------
def _make_pass1(H, W, Cin, Cout, stride, has_proj):
    """conv1 (+ projection 1x1 conv) and per-image partial BN sums."""
    Ho = (H - 1) // stride + 1
    Wo = (W - 1) // stride + 1
    P = Ho * Wo
    if stride == 1:
        HP, WP = H + 2, W + 2
    else:  # even extents so the 2x2 phase decimation is a clean reshape
        HP = max(H + 2, 2 * Ho + 2)
        HP += HP % 2
        WP = max(W + 2, 2 * Wo + 2)
        WP += WP % 2
    fill_pad, taps_of, im2col = _conv_tools(H, W, Ho, Wo, Cin, stride, HP, WP)

    def kernel_proj(x_ref, w1_ref, ws_ref, y1_ref, sc_ref, st1_ref, stsc_ref,
                    pad_ref):
        fill_pad(pad_ref, x_ref[...].reshape(H, W, Cin))
        tap = taps_of(pad_ref[...])
        y1 = jnp.dot(im2col(tap), w1_ref[...],
                     preferred_element_type=jnp.float32).astype(jnp.bfloat16)
        y1_ref[...] = y1
        st1_ref[...] = _partial_stats(y1.astype(jnp.float32))
        # shortcut 1x1 conv (stride): strided center tap of the padded input
        xs = tap(1, 1).reshape(P, Cin)
        sc = jnp.dot(xs, ws_ref[...],
                     preferred_element_type=jnp.float32).astype(jnp.bfloat16)
        sc_ref[...] = sc
        stsc_ref[...] = _partial_stats(sc.astype(jnp.float32))

    def kernel_id(x_ref, w1_ref, y1_ref, st1_ref, pad_ref):
        fill_pad(pad_ref, x_ref[...].reshape(H, W, Cin))
        tap = taps_of(pad_ref[...])
        y1 = jnp.dot(im2col(tap), w1_ref[...],
                     preferred_element_type=jnp.float32).astype(jnp.bfloat16)
        y1_ref[...] = y1
        st1_ref[...] = _partial_stats(y1.astype(jnp.float32))

    return (kernel_proj if has_proj else kernel_id), Ho, Wo, HP, WP


def _make_pass2(Ho, Wo, Cout):
    """BN1 (folded scale/shift) + ReLU + conv2; partial BN2 sums."""
    HP, WP = Ho + 2, Wo + 2
    fill_pad, taps_of, im2col = _conv_tools(Ho, Wo, Ho, Wo, Cout, 1, HP, WP)

    def kernel(y1_ref, s1_ref, b1_ref, w2_ref, y2_ref, st2_ref, pad_ref):
        a = y1_ref[...].astype(jnp.float32) * s1_ref[...] + b1_ref[...]
        a = jnp.maximum(a, 0.0)                               # BN1 + ReLU
        fill_pad(pad_ref, a.reshape(Ho, Wo, Cout).astype(pad_ref.dtype))
        tap = taps_of(pad_ref[...])
        y2 = jnp.dot(im2col(tap), w2_ref[...],
                     preferred_element_type=jnp.float32).astype(jnp.bfloat16)
        y2_ref[...] = y2
        st2_ref[...] = _partial_stats(y2.astype(jnp.float32))

    return kernel, HP, WP


def _make_pass3(has_proj):
    """BN2 + shortcut-BN + residual add + ReLU (pure elementwise)."""
    if has_proj:
        def kernel(y2_ref, sc_ref, s2_ref, b2_ref, ss_ref, bs_ref, out_ref):
            y = y2_ref[...].astype(jnp.float32) * s2_ref[...] + b2_ref[...]
            s = sc_ref[...].astype(jnp.float32) * ss_ref[...] + bs_ref[...]
            out_ref[...] = jnp.maximum(y + s, 0.0).astype(out_ref.dtype)
    else:
        def kernel(y2_ref, x_ref, s2_ref, b2_ref, out_ref):
            y = y2_ref[...].astype(jnp.float32) * s2_ref[...] + b2_ref[...]
            out_ref[...] = jnp.maximum(
                y + x_ref[...].astype(jnp.float32), 0.0).astype(out_ref.dtype)
    return kernel


# ------------------------------- wrapper ------------------------------------
@partial(jax.jit, static_argnames=("stride",))
def residual_block_forward(x_nchw, params, stride):
    """NCHW in / NCHW out (bf16); training-mode BN, matches PyTorch forward."""
    N, Cin, H, W = x_nchw.shape
    Cout = params["w1"].shape[0]
    has_proj = (stride != 1) or (Cin != Cout)
    f32, bf16 = jnp.float32, jnp.bfloat16

    # layout plumbing: NCHW -> (N, H*W, Cin) pixels-x-channels, bf16
    x_p = jnp.transpose(x_nchw, (0, 2, 3, 1)).reshape(N, H * W, Cin).astype(bf16)

    def w3x3(w):   # [Cout, Cin, 3, 3] -> [9*Cin, Cout], rows ordered (kh, kw, ci)
        return jnp.transpose(w, (2, 3, 1, 0)).reshape(-1, w.shape[0]).astype(bf16)

    w1, w2 = w3x3(params["w1"]), w3x3(params["w2"])

    kernel1, Ho, Wo, HP1, WP1 = _make_pass1(H, W, Cin, Cout, stride, has_proj)
    P = Ho * Wo
    kernel2, HP2, WP2 = _make_pass2(Ho, Wo, Cout)
    kernel3 = _make_pass3(has_proj)

    cparams = pltpu.CompilerParams(dimension_semantics=("parallel",),
                                   vmem_limit_bytes=_vmem_limit_bytes())

    # per-image block (leading batch dim squeezed) / grid-resident block
    img = lambda p, c: pl.BlockSpec((None, p, c), lambda n: (n, 0, 0))
    res = lambda r, c: pl.BlockSpec((r, c), lambda n: (0, 0))
    stat_spec = pl.BlockSpec((None, 2, Cout), lambda n: (n, 0, 0))

    # ---- pass 1: conv1 (+ projection shortcut), per-image partial BN sums
    if has_proj:
        ws = jnp.transpose(params["ws"][:, :, 0, 0], (1, 0)).astype(bf16)
        in_specs1 = [img(H * W, Cin), res(9 * Cin, Cout), res(Cin, Cout)]
        args1 = (x_p, w1, ws)
        out_shape1 = (jax.ShapeDtypeStruct((N, P, Cout), bf16),
                      jax.ShapeDtypeStruct((N, P, Cout), bf16),
                      jax.ShapeDtypeStruct((N, 2, Cout), f32),
                      jax.ShapeDtypeStruct((N, 2, Cout), f32))
        out_specs1 = (img(P, Cout), img(P, Cout), stat_spec, stat_spec)
        flops1 = 2 * N * P * Cout * (9 * Cin + Cin)
        bytes1 = (N * H * W * Cin * 2 + (9 + 1) * Cin * Cout * 2
                  + 2 * N * P * Cout * 2 + 2 * N * 2 * Cout * 4)
    else:
        in_specs1 = [img(H * W, Cin), res(9 * Cin, Cout)]
        args1 = (x_p, w1)
        out_shape1 = (jax.ShapeDtypeStruct((N, P, Cout), bf16),
                      jax.ShapeDtypeStruct((N, 2, Cout), f32))
        out_specs1 = (img(P, Cout), stat_spec)
        flops1 = 2 * N * P * Cout * 9 * Cin
        bytes1 = (N * H * W * Cin * 2 + 9 * Cin * Cout * 2
                  + N * P * Cout * 2 + N * 2 * Cout * 4)

    outs1 = pl.pallas_call(
        kernel1,
        grid=(N,),
        in_specs=in_specs1,
        out_specs=out_specs1,
        out_shape=out_shape1,
        scratch_shapes=[pltpu.VMEM((HP1, WP1, Cin), bf16)],
        compiler_params=cparams,
        cost_estimate=pl.CostEstimate(flops=int(flops1), transcendentals=0,
                                      bytes_accessed=int(bytes1)),
    )(*args1)
    if has_proj:
        y1, sc, st1, stsc = outs1
    else:
        y1, st1 = outs1

    def bn_affine(stats, gamma, beta):
        # Finalize BN from the per-image partial sums (tiny O(C) reduction);
        # clamp the single-pass variance against cancellation, fold gamma/beta
        # into one scale/shift pair.
        cnt = float(N * P)
        mean = jnp.sum(stats[:, 0, :], axis=0) / cnt
        var = jnp.maximum(jnp.sum(stats[:, 1, :], axis=0) / cnt - mean * mean, 0.0)
        scale = gamma * jax.lax.rsqrt(var + BN_EPS)
        shift = beta - mean * scale
        return scale.reshape(1, Cout).astype(f32), shift.reshape(1, Cout).astype(f32)

    s1_, b1_ = bn_affine(st1, params["g1"], params["bt1"])

    # ---- pass 2: BN1 + ReLU + conv2, per-image partial BN2 sums
    flops2 = 2 * N * P * 9 * Cout * Cout
    bytes2 = 2 * N * P * Cout * 2 + 9 * Cout * Cout * 2 + N * 2 * Cout * 4
    y2, st2 = pl.pallas_call(
        kernel2,
        grid=(N,),
        in_specs=[img(P, Cout), res(1, Cout), res(1, Cout), res(9 * Cout, Cout)],
        out_specs=(img(P, Cout), stat_spec),
        out_shape=(jax.ShapeDtypeStruct((N, P, Cout), bf16),
                   jax.ShapeDtypeStruct((N, 2, Cout), f32)),
        scratch_shapes=[pltpu.VMEM((HP2, WP2, Cout), bf16)],
        compiler_params=cparams,
        cost_estimate=pl.CostEstimate(flops=int(flops2), transcendentals=0,
                                      bytes_accessed=int(bytes2)),
    )(y1, s1_, b1_, w2)

    s2_, b2_ = bn_affine(st2, params["g2"], params["bt2"])

    # ---- pass 3: BN2 + shortcut BN + residual add + ReLU
    if has_proj:
        ss_, bs_ = bn_affine(stsc, params["gs"], params["bts"])
        in_specs3 = [img(P, Cout), img(P, Cout),
                     res(1, Cout), res(1, Cout), res(1, Cout), res(1, Cout)]
        args3 = (y2, sc, s2_, b2_, ss_, bs_)
    else:
        in_specs3 = [img(P, Cout), img(P, Cin), res(1, Cout), res(1, Cout)]
        args3 = (y2, x_p, s2_, b2_)

    out_p = pl.pallas_call(
        kernel3,
        grid=(N,),
        in_specs=in_specs3,
        out_specs=img(P, Cout),
        out_shape=jax.ShapeDtypeStruct((N, P, Cout), bf16),
        compiler_params=cparams,
        cost_estimate=pl.CostEstimate(flops=int(6 * N * P * Cout),
                                      transcendentals=0,
                                      bytes_accessed=int(3 * N * P * Cout * 2)),
    )(*args3)

    out = out_p.reshape(N, Ho, Wo, Cout)      # bf16 output (next layer is bf16)
    return jnp.transpose(out, (0, 3, 1, 2))


# ------------------------------ references ----------------------------------
def _conv_ref(x, w, b, s, pad, dtype=None):
    lhs = x if dtype is None else x.astype(dtype)
    rhs = w if dtype is None else w.astype(dtype)
    y = jax.lax.conv_general_dilated(
        lhs, rhs, window_strides=(s, s), padding=[(pad, pad), (pad, pad)],
        dimension_numbers=("NCHW", "OIHW", "NCHW"),
        preferred_element_type=jnp.float32)
    return y + b[None, :, None, None]


def _bn_ref(x, g, bt):
    mean = jnp.mean(x, axis=(0, 2, 3), keepdims=True)
    var = jnp.mean(jnp.square(x - mean), axis=(0, 2, 3), keepdims=True)
    return ((x - mean) * jax.lax.rsqrt(var + BN_EPS)
            * g[None, :, None, None] + bt[None, :, None, None])


def _reference_f32(x, params, stride):
    """Exact f32 spec of the PyTorch forward (training-mode BN, with biases)."""
    Cin, Cout = x.shape[1], params["w1"].shape[0]
    out = jax.nn.relu(_bn_ref(_conv_ref(x, params["w1"], params["b1"], stride, 1),
                              params["g1"], params["bt1"]))
    out = _bn_ref(_conv_ref(out, params["w2"], params["b2"], 1, 1),
                  params["g2"], params["bt2"])
    if stride != 1 or Cin != Cout:
        sc = _bn_ref(_conv_ref(x, params["ws"], params["bs"], stride, 0),
                     params["gs"], params["bts"])
    else:
        sc = x
    return jax.nn.relu(out + sc)


def _reference_matched(x, params, stride):
    """Mirrors the kernel precision policy: bf16 conv operands, f32 MXU
    accumulation, f32 BN on the bf16-rounded activations, bf16 round-trips of
    the inter-pass activations.  Conv biases dropped (BN cancels them)."""
    r = lambda t: t.astype(jnp.bfloat16).astype(jnp.float32)

    def conv(xx, w, s, pad):
        return jax.lax.conv_general_dilated(
            xx.astype(jnp.bfloat16), w.astype(jnp.bfloat16),
            window_strides=(s, s), padding=[(pad, pad), (pad, pad)],
            dimension_numbers=("NCHW", "OIHW", "NCHW"),
            preferred_element_type=jnp.float32)

    def bn(y, g, b):
        mean = jnp.mean(y, axis=(0, 2, 3), keepdims=True)
        var = jnp.maximum(jnp.mean(y * y, axis=(0, 2, 3), keepdims=True)
                          - mean * mean, 0.0)
        return ((y - mean) * jax.lax.rsqrt(var + BN_EPS)
                * g[None, :, None, None] + b[None, :, None, None])

    Cin, Cout = x.shape[1], params["w1"].shape[0]
    xb = r(x)
    y1 = r(conv(xb, params["w1"], stride, 1))
    a = jax.nn.relu(bn(y1, params["g1"], params["bt1"]))
    y2 = r(conv(r(a), params["w2"], 1, 1))
    out = bn(y2, params["g2"], params["bt2"])
    if stride != 1 or Cin != Cout:
        scv = r(conv(xb, params["ws"], stride, 0))
        scv = bn(scv, params["gs"], params["bts"])
    else:
        scv = xb
    return jax.nn.relu(out + scv)


def _make_params(key, Cin, Cout):
    ks = jax.random.split(key, 12)
    return {
        "w1": 0.1 * jax.random.normal(ks[0], (Cout, Cin, 3, 3), jnp.float32),
        "b1": 0.1 * jax.random.normal(ks[1], (Cout,), jnp.float32),
        "g1": 1.0 + 0.1 * jax.random.normal(ks[2], (Cout,), jnp.float32),
        "bt1": 0.1 * jax.random.normal(ks[3], (Cout,), jnp.float32),
        "w2": 0.1 * jax.random.normal(ks[4], (Cout, Cout, 3, 3), jnp.float32),
        "b2": 0.1 * jax.random.normal(ks[5], (Cout,), jnp.float32),
        "g2": 1.0 + 0.1 * jax.random.normal(ks[6], (Cout,), jnp.float32),
        "bt2": 0.1 * jax.random.normal(ks[7], (Cout,), jnp.float32),
        "ws": 0.1 * jax.random.normal(ks[8], (Cout, Cin, 1, 1), jnp.float32),
        "bs": 0.1 * jax.random.normal(ks[9], (Cout,), jnp.float32),
        "gs": 1.0 + 0.1 * jax.random.normal(ks[10], (Cout,), jnp.float32),
        "bts": 0.1 * jax.random.normal(ks[11], (Cout,), jnp.float32),
    }


if __name__ == "__main__":
    key = jax.random.PRNGKey(0)
    configs = [
        dict(N=2, Cin=4, Cout=8, H=16, W=16, stride=1),   # projection shortcut
        dict(N=2, Cin=4, Cout=8, H=16, W=16, stride=2),   # stride-2 projection
        dict(N=2, Cin=8, Cout=8, H=16, W=16, stride=1),   # identity shortcut
    ]
    for i, cfg in enumerate(configs):
        kp, kx, key = jax.random.split(key, 3)
        params = _make_params(kp, cfg["Cin"], cfg["Cout"])
        x = jax.random.normal(
            kx, (cfg["N"], cfg["Cin"], cfg["H"], cfg["W"]), jnp.float32)

        out = jax.block_until_ready(
            residual_block_forward(x, params, stride=cfg["stride"]))

        Ho = (cfg["H"] - 1) // cfg["stride"] + 1
        Wo = (cfg["W"] - 1) // cfg["stride"] + 1
        assert out.shape == (cfg["N"], cfg["Cout"], Ho, Wo)
        out_f32 = out.astype(jnp.float32)

        # tight check vs a matched-precision reference (bf16 convs / f32 acc /
        # bf16 inter-pass round-trips)
        ref_m = _reference_matched(x, params, cfg["stride"])
        if not jnp.allclose(out_f32, ref_m, atol=1e-2, rtol=1e-2):
            err = float(jnp.max(jnp.abs(out_f32 - ref_m)))
            raise AssertionError(
                f"cfg {i}: mismatch vs matched-precision ref, max err={err}")

        # sanity check vs exact f32 PyTorch semantics (bf16 rounding budget)
        ref_f = _reference_f32(x, params, cfg["stride"])
        if not jnp.allclose(out_f32, ref_f, atol=1.5e-1, rtol=1.5e-1):
            err = float(jnp.max(jnp.abs(out_f32 - ref_f)))
            raise AssertionError(
                f"cfg {i}: mismatch vs f32 reference, max err={err}")

    print("KERNEL_OK")
</pallas_src>

<mosaic_0001>
module attributes {stable_mosaic.version = 11 : i64} {
  func.func @kernel(%arg0: i32, %arg1: memref<1x256x8xbf16, #tpu.memory_space<vmem>>, %arg2: memref<1x8xf32, #tpu.memory_space<vmem>>, %arg3: memref<1x8xf32, #tpu.memory_space<vmem>>, %arg4: memref<72x8xbf16, #tpu.memory_space<vmem>>, %arg5: memref<1x256x8xbf16, #tpu.memory_space<vmem>>, %arg6: memref<1x2x8xf32, #tpu.memory_space<vmem>>, %arg7: memref<18x18x8xbf16, #tpu.memory_space<vmem>>) attributes {dimension_semantics = [#tpu.dimension_semantics<parallel>], iteration_bounds = array<i64: 2>, scalar_prefetch = 0 : i64, scratch_operands = 1 : i64, tpu.core_type = #tpu.core_type<tc>, window_params = [{transform_indices = @transform_0, window_bounds = array<i64: 1, 256, 8>}, {pipeline_mode = #tpu.pipeline_mode<synchronous>, transform_indices = @transform_1, window_bounds = array<i64: 1, 8>}, {pipeline_mode = #tpu.pipeline_mode<synchronous>, transform_indices = @transform_2, window_bounds = array<i64: 1, 8>}, {pipeline_mode = #tpu.pipeline_mode<synchronous>, transform_indices = @transform_3, window_bounds = array<i64: 72, 8>}, {transform_indices = @transform_4, window_bounds = array<i64: 1, 256, 8>}, {transform_indices = @transform_5, window_bounds = array<i64: 1, 2, 8>}]} {
    %c0 = arith.constant 0 : index
    %c0_0 = arith.constant 0 : index
    %c0_1 = arith.constant 0 : index
    %0 = vector.load %arg1[%c0, %c0_0, %c0_1] : memref<1x256x8xbf16, #tpu.memory_space<vmem>>, vector<1x256x8xbf16>
    %1 = vector.shape_cast %0 : vector<1x256x8xbf16> to vector<256x8xbf16>
    %2 = arith.extf %1 : vector<256x8xbf16> to vector<256x8xf32>
    %c0_2 = arith.constant 0 : index
    %c0_3 = arith.constant 0 : index
    %3 = vector.load %arg2[%c0_2, %c0_3] : memref<1x8xf32, #tpu.memory_space<vmem>>, vector<1x8xf32>
    %4 = vector.broadcast %3 : vector<1x8xf32> to vector<256x8xf32>
    %5 = arith.mulf %2, %4 : vector<256x8xf32>
    %c0_4 = arith.constant 0 : index
    %c0_5 = arith.constant 0 : index
    %6 = vector.load %arg3[%c0_4, %c0_5] : memref<1x8xf32, #tpu.memory_space<vmem>>, vector<1x8xf32>
    %7 = vector.broadcast %6 : vector<1x8xf32> to vector<256x8xf32>
    %8 = arith.addf %5, %7 : vector<256x8xf32>
    %cst = arith.constant 0.000000e+00 : f32
    %9 = vector.broadcast %cst : f32 to vector<256x8xf32>
    %10 = arith.maximumf %8, %9 : vector<256x8xf32>
    %11 = vector.shape_cast %10 : vector<256x8xf32> to vector<16x16x8xf32>
    %12 = arith.truncf %11 : vector<16x16x8xf32> to vector<16x16x8xbf16>
    %cst_6 = arith.constant 0.000000e+00 : bf16
    %13 = vector.broadcast %cst_6 : bf16 to vector<1x18x8xbf16>
    %c0_7 = arith.constant 0 : index
    %c0_8 = arith.constant 0 : index
    %c0_9 = arith.constant 0 : index
    %14 = vector.load %arg7[%c0_7, %c0_8, %c0_9] : memref<18x18x8xbf16, #tpu.memory_space<vmem>>, vector<1x18x8xbf16>
    tpu.vector_store %arg7[%c0_7, %c0_8, %c0_9], %13 {strides = array<i32>} : memref<18x18x8xbf16, #tpu.memory_space<vmem>>, vector<1x18x8xbf16>,
    %cst_10 = arith.constant 0.000000e+00 : bf16
    %15 = vector.broadcast %cst_10 : bf16 to vector<1x18x8xbf16>
    %c17 = arith.constant 17 : index
    %c0_11 = arith.constant 0 : index
    %c0_12 = arith.constant 0 : index
    %16 = vector.load %arg7[%c17, %c0_11, %c0_12] : memref<18x18x8xbf16, #tpu.memory_space<vmem>>, vector<1x18x8xbf16>
    tpu.vector_store %arg7[%c17, %c0_11, %c0_12], %15 {strides = array<i32>} : memref<18x18x8xbf16, #tpu.memory_space<vmem>>, vector<1x18x8xbf16>,
    %cst_13 = arith.constant 0.000000e+00 : bf16
    %17 = vector.broadcast %cst_13 : bf16 to vector<18x1x8xbf16>
    %c0_14 = arith.constant 0 : index
    %c0_15 = arith.constant 0 : index
    %c0_16 = arith.constant 0 : index
    %18 = vector.load %arg7[%c0_14, %c0_15, %c0_16] : memref<18x18x8xbf16, #tpu.memory_space<vmem>>, vector<18x1x8xbf16>
    tpu.vector_store %arg7[%c0_14, %c0_15, %c0_16], %17 {strides = array<i32>} : memref<18x18x8xbf16, #tpu.memory_space<vmem>>, vector<18x1x8xbf16>,
    %cst_17 = arith.constant 0.000000e+00 : bf16
    %19 = vector.broadcast %cst_17 : bf16 to vector<18x1x8xbf16>
    %c0_18 = arith.constant 0 : index
    %c17_19 = arith.constant 17 : index
    %c0_20 = arith.constant 0 : index
    %20 = vector.load %arg7[%c0_18, %c17_19, %c0_20] : memref<18x18x8xbf16, #tpu.memory_space<vmem>>, vector<18x1x8xbf16>
    tpu.vector_store %arg7[%c0_18, %c17_19, %c0_20], %19 {strides = array<i32>} : memref<18x18x8xbf16, #tpu.memory_space<vmem>>, vector<18x1x8xbf16>,
    %c1 = arith.constant 1 : index
    %c1_21 = arith.constant 1 : index
    %c0_22 = arith.constant 0 : index
    %21 = vector.load %arg7[%c1, %c1_21, %c0_22] : memref<18x18x8xbf16, #tpu.memory_space<vmem>>, vector<16x16x8xbf16>
    tpu.vector_store %arg7[%c1, %c1_21, %c0_22], %12 {strides = array<i32>} : memref<18x18x8xbf16, #tpu.memory_space<vmem>>, vector<16x16x8xbf16>,
    %c0_23 = arith.constant 0 : index
    %c0_24 = arith.constant 0 : index
    %c0_25 = arith.constant 0 : index
    %22 = vector.load %arg7[%c0_23, %c0_24, %c0_25] : memref<18x18x8xbf16, #tpu.memory_space<vmem>>, vector<18x18x8xbf16>
    %23 = vector.extract_strided_slice %22 {offsets = [0, 0, 0], sizes = [16, 16, 8], strides = [1, 1, 1]} : vector<18x18x8xbf16> to vector<16x16x8xbf16>
    %24 = vector.extract_strided_slice %22 {offsets = [0, 1, 0], sizes = [16, 16, 8], strides = [1, 1, 1]} : vector<18x18x8xbf16> to vector<16x16x8xbf16>
    %25 = vector.extract_strided_slice %22 {offsets = [0, 2, 0], sizes = [16, 16, 8], strides = [1, 1, 1]} : vector<18x18x8xbf16> to vector<16x16x8xbf16>
    %26 = vector.extract_strided_slice %22 {offsets = [1, 0, 0], sizes = [16, 16, 8], strides = [1, 1, 1]} : vector<18x18x8xbf16> to vector<16x16x8xbf16>
    %27 = vector.extract_strided_slice %22 {offsets = [1, 1, 0], sizes = [16, 16, 8], strides = [1, 1, 1]} : vector<18x18x8xbf16> to vector<16x16x8xbf16>
    %28 = vector.extract_strided_slice %22 {offsets = [1, 2, 0], sizes = [16, 16, 8], strides = [1, 1, 1]} : vector<18x18x8xbf16> to vector<16x16x8xbf16>
    %29 = vector.extract_strided_slice %22 {offsets = [2, 0, 0], sizes = [16, 16, 8], strides = [1, 1, 1]} : vector<18x18x8xbf16> to vector<16x16x8xbf16>
    %30 = vector.extract_strided_slice %22 {offsets = [2, 1, 0], sizes = [16, 16, 8], strides = [1, 1, 1]} : vector<18x18x8xbf16> to vector<16x16x8xbf16>
    %31 = vector.extract_strided_slice %22 {offsets = [2, 2, 0], sizes = [16, 16, 8], strides = [1, 1, 1]} : vector<18x18x8xbf16> to vector<16x16x8xbf16>
    %32 = tpu.concatenate %23, %24, %25, %26, %27, %28, %29, %30, %31 in 2 : vector<16x16x8xbf16>, vector<16x16x8xbf16>, vector<16x16x8xbf16>, vector<16x16x8xbf16>, vector<16x16x8xbf16>, vector<16x16x8xbf16>, vector<16x16x8xbf16>, vector<16x16x8xbf16>, vector<16x16x8xbf16> -> vector<16x16x72xbf16>
    %33 = vector.shape_cast %32 : vector<16x16x72xbf16> to vector<256x72xbf16>
    %c0_26 = arith.constant 0 : index
    %c0_27 = arith.constant 0 : index
    %34 = vector.load %arg4[%c0_26, %c0_27] : memref<72x8xbf16, #tpu.memory_space<vmem>>, vector<72x8xbf16>
    %cst_28 = arith.constant dense<0.000000e+00> : vector<256x8xf32>
    %35 = tpu.matmul %33, %34, %cst_28 {dimension_numbers = #tpu.dot_dimension_numbers<[1], [0], [0], [1], [0, 0, 1, 1], [], []>} : vector<256x72xbf16>, vector<72x8xbf16>, vector<256x8xf32> -> vector<256x8xf32>
    %36 = arith.truncf %35 : vector<256x8xf32> to vector<256x8xbf16>
    %c0_29 = arith.constant 0 : index
    %c0_30 = arith.constant 0 : index
    %c0_31 = arith.constant 0 : index
    %37 = vector.load %arg5[%c0_29, %c0_30, %c0_31] : memref<1x256x8xbf16, #tpu.memory_space<vmem>>, vector<1x256x8xbf16>
    %38 = vector.shape_cast %37 : vector<1x256x8xbf16> to vector<256x8xbf16>
    %39 = vector.shape_cast %36 : vector<256x8xbf16> to vector<1x256x8xbf16>
    tpu.vector_store %arg5[%c0_29, %c0_30, %c0_31], %39 {strides = array<i32>} : memref<1x256x8xbf16, #tpu.memory_space<vmem>>, vector<1x256x8xbf16>,
    %40 = arith.extf %36 : vector<256x8xbf16> to vector<256x8xf32>
    %cst_32 = arith.constant dense<0.000000e+00> : vector<8xf32>
    %41 = vector.multi_reduction <add>, %40, %cst_32 [0] : vector<256x8xf32> to vector<8xf32>
    %42 = vector.shape_cast %41 : vector<8xf32> to vector<1x8xf32>
    %43 = arith.mulf %40, %40 : vector<256x8xf32>
    %cst_33 = arith.constant dense<0.000000e+00> : vector<8xf32>
    %44 = vector.multi_reduction <add>, %43, %cst_33 [0] : vector<256x8xf32> to vector<8xf32>
    %45 = vector.shape_cast %44 : vector<8xf32> to vector<1x8xf32>
    %46 = tpu.concatenate %42, %45 in 0 : vector<1x8xf32>, vector<1x8xf32> -> vector<2x8xf32>
    %c0_34 = arith.constant 0 : index
    %c0_35 = arith.constant 0 : index
    %c0_36 = arith.constant 0 : index
    %47 = vector.load %arg6[%c0_34, %c0_35, %c0_36] : memref<1x2x8xf32, #tpu.memory_space<vmem>>, vector<1x2x8xf32>
    %48 = vector.shape_cast %47 : vector<1x2x8xf32> to vector<2x8xf32>
    %49 = vector.shape_cast %46 : vector<2x8xf32> to vector<1x2x8xf32>
    tpu.vector_store %arg6[%c0_34, %c0_35, %c0_36], %49 {strides = array<i32>} : memref<1x2x8xf32, #tpu.memory_space<vmem>>, vector<1x2x8xf32>,
    return
  }
  func.func @transform_0(%arg0: i32) -> (i32, i32, i32) {
    %c0_i32 = arith.constant 0 : i32
    %c0_i32_0 = arith.constant 0 : i32
    %c0_i32_1 = arith.constant 0 : i32
    return %arg0, %c0_i32, %c0_i32_0 : i32, i32, i32
  }
  func.func @transform_1(%arg0: i32) -> (i32, i32) {
    %c0_i32 = arith.constant 0 : i32
    %c0_i32_0 = arith.constant 0 : i32
    %c0_i32_1 = arith.constant 0 : i32
    return %c0_i32, %c0_i32_0 : i32, i32
  }
  func.func @transform_2(%arg0: i32) -> (i32, i32) {
    %c0_i32 = arith.constant 0 : i32
    %c0_i32_0 = arith.constant 0 : i32
    %c0_i32_1 = arith.constant 0 : i32
    return %c0_i32, %c0_i32_0 : i32, i32
  }
  func.func @transform_3(%arg0: i32) -> (i32, i32) {
    %c0_i32 = arith.constant 0 : i32
    %c0_i32_0 = arith.constant 0 : i32
    %c0_i32_1 = arith.constant 0 : i32
    return %c0_i32, %c0_i32_0 : i32, i32
  }
  func.func @transform_4(%arg0: i32) -> (i32, i32, i32) {
    %c0_i32 = arith.constant 0 : i32
    %c0_i32_0 = arith.constant 0 : i32
    %c0_i32_1 = arith.constant 0 : i32
    return %arg0, %c0_i32, %c0_i32_0 : i32, i32, i32
  }
  func.func @transform_5(%arg0: i32) -> (i32, i32, i32) {
    %c0_i32 = arith.constant 0 : i32
    %c0_i32_0 = arith.constant 0 : i32
    %c0_i32_1 = arith.constant 0 : i32
    return %arg0, %c0_i32, %c0_i32_0 : i32, i32, i32
  }
}

module attributes {stable_mosaic.version = 11 : i64} {
  func.func @kernel_proj(%arg0: i32, %arg1: memref<1x256x4xbf16, #tpu.memory_space<vmem>>, %arg2: memref<36x8xbf16, #tpu.memory_space<vmem>>, %arg3: memref<4x8xbf16, #tpu.memory_space<vmem>>, %arg4: memref<1x256x8xbf16, #tpu.memory_space<vmem>>, %arg5: memref<1x256x8xbf16, #tpu.memory_space<vmem>>, %arg6: memref<1x2x8xf32, #tpu.memory_space<vmem>>, %arg7: memref<1x2x8xf32, #tpu.memory_space<vmem>>, %arg8: memref<18x18x4xbf16, #tpu.memory_space<vmem>>) attributes {dimension_semantics = [#tpu.dimension_semantics<parallel>], iteration_bounds = array<i64: 2>, scalar_prefetch = 0 : i64, scratch_operands = 1 : i64, tpu.core_type = #tpu.core_type<tc>, window_params = [{transform_indices = @transform_0, window_bounds = array<i64: 1, 256, 4>}, {pipeline_mode = #tpu.pipeline_mode<synchronous>, transform_indices = @transform_1, window_bounds = array<i64: 36, 8>}, {pipeline_mode = #tpu.pipeline_mode<synchronous>, transform_indices = @transform_2, window_bounds = array<i64: 4, 8>}, {transform_indices = @transform_3, window_bounds = array<i64: 1, 256, 8>}, {transform_indices = @transform_4, window_bounds = array<i64: 1, 256, 8>}, {transform_indices = @transform_5, window_bounds = array<i64: 1, 2, 8>}, {transform_indices = @transform_6, window_bounds = array<i64: 1, 2, 8>}]} {
    %c0 = arith.constant 0 : index
    %c0_0 = arith.constant 0 : index
    %c0_1 = arith.constant 0 : index
    %0 = vector.load %arg1[%c0, %c0_0, %c0_1] : memref<1x256x4xbf16, #tpu.memory_space<vmem>>, vector<1x256x4xbf16>
    %1 = vector.shape_cast %0 : vector<1x256x4xbf16> to vector<256x4xbf16>
    %2 = vector.shape_cast %1 : vector<256x4xbf16> to vector<16x16x4xbf16>
    %cst = arith.constant 0.000000e+00 : bf16
    %3 = vector.broadcast %cst : bf16 to vector<1x18x4xbf16>
    %c0_2 = arith.constant 0 : index
    %c0_3 = arith.constant 0 : index
    %c0_4 = arith.constant 0 : index
    %4 = vector.load %arg8[%c0_2, %c0_3, %c0_4] : memref<18x18x4xbf16, #tpu.memory_space<vmem>>, vector<1x18x4xbf16>
    tpu.vector_store %arg8[%c0_2, %c0_3, %c0_4], %3 {strides = array<i32>} : memref<18x18x4xbf16, #tpu.memory_space<vmem>>, vector<1x18x4xbf16>,
    %cst_5 = arith.constant 0.000000e+00 : bf16
    %5 = vector.broadcast %cst_5 : bf16 to vector<1x18x4xbf16>
    %c17 = arith.constant 17 : index
    %c0_6 = arith.constant 0 : index
    %c0_7 = arith.constant 0 : index
    %6 = vector.load %arg8[%c17, %c0_6, %c0_7] : memref<18x18x4xbf16, #tpu.memory_space<vmem>>, vector<1x18x4xbf16>
    tpu.vector_store %arg8[%c17, %c0_6, %c0_7], %5 {strides = array<i32>} : memref<18x18x4xbf16, #tpu.memory_space<vmem>>, vector<1x18x4xbf16>,
    %cst_8 = arith.constant 0.000000e+00 : bf16
    %7 = vector.broadcast %cst_8 : bf16 to vector<18x1x4xbf16>
    %c0_9 = arith.constant 0 : index
    %c0_10 = arith.constant 0 : index
    %c0_11 = arith.constant 0 : index
    %8 = vector.load %arg8[%c0_9, %c0_10, %c0_11] : memref<18x18x4xbf16, #tpu.memory_space<vmem>>, vector<18x1x4xbf16>
    tpu.vector_store %arg8[%c0_9, %c0_10, %c0_11], %7 {strides = array<i32>} : memref<18x18x4xbf16, #tpu.memory_space<vmem>>, vector<18x1x4xbf16>,
    %cst_12 = arith.constant 0.000000e+00 : bf16
    %9 = vector.broadcast %cst_12 : bf16 to vector<18x1x4xbf16>
    %c0_13 = arith.constant 0 : index
    %c17_14 = arith.constant 17 : index
    %c0_15 = arith.constant 0 : index
    %10 = vector.load %arg8[%c0_13, %c17_14, %c0_15] : memref<18x18x4xbf16, #tpu.memory_space<vmem>>, vector<18x1x4xbf16>
    tpu.vector_store %arg8[%c0_13, %c17_14, %c0_15], %9 {strides = array<i32>} : memref<18x18x4xbf16, #tpu.memory_space<vmem>>, vector<18x1x4xbf16>,
    %c1 = arith.constant 1 : index
    %c1_16 = arith.constant 1 : index
    %c0_17 = arith.constant 0 : index
    %11 = vector.load %arg8[%c1, %c1_16, %c0_17] : memref<18x18x4xbf16, #tpu.memory_space<vmem>>, vector<16x16x4xbf16>
    tpu.vector_store %arg8[%c1, %c1_16, %c0_17], %2 {strides = array<i32>} : memref<18x18x4xbf16, #tpu.memory_space<vmem>>, vector<16x16x4xbf16>,
    %c0_18 = arith.constant 0 : index
    %c0_19 = arith.constant 0 : index
    %c0_20 = arith.constant 0 : index
    %12 = vector.load %arg8[%c0_18, %c0_19, %c0_20] : memref<18x18x4xbf16, #tpu.memory_space<vmem>>, vector<18x18x4xbf16>
    %13 = vector.extract_strided_slice %12 {offsets = [0, 0, 0], sizes = [16, 16, 4], strides = [1, 1, 1]} : vector<18x18x4xbf16> to vector<16x16x4xbf16>
    %14 = vector.extract_strided_slice %12 {offsets = [0, 1, 0], sizes = [16, 16, 4], strides = [1, 1, 1]} : vector<18x18x4xbf16> to vector<16x16x4xbf16>
    %15 = vector.extract_strided_slice %12 {offsets = [0, 2, 0], sizes = [16, 16, 4], strides = [1, 1, 1]} : vector<18x18x4xbf16> to vector<16x16x4xbf16>
    %16 = vector.extract_strided_slice %12 {offsets = [1, 0, 0], sizes = [16, 16, 4], strides = [1, 1, 1]} : vector<18x18x4xbf16> to vector<16x16x4xbf16>
    %17 = vector.extract_strided_slice %12 {offsets = [1, 1, 0], sizes = [16, 16, 4], strides = [1, 1, 1]} : vector<18x18x4xbf16> to vector<16x16x4xbf16>
    %18 = vector.extract_strided_slice %12 {offsets = [1, 2, 0], sizes = [16, 16, 4], strides = [1, 1, 1]} : vector<18x18x4xbf16> to vector<16x16x4xbf16>
    %19 = vector.extract_strided_slice %12 {offsets = [2, 0, 0], sizes = [16, 16, 4], strides = [1, 1, 1]} : vector<18x18x4xbf16> to vector<16x16x4xbf16>
    %20 = vector.extract_strided_slice %12 {offsets = [2, 1, 0], sizes = [16, 16, 4], strides = [1, 1, 1]} : vector<18x18x4xbf16> to vector<16x16x4xbf16>
    %21 = vector.extract_strided_slice %12 {offsets = [2, 2, 0], sizes = [16, 16, 4], strides = [1, 1, 1]} : vector<18x18x4xbf16> to vector<16x16x4xbf16>
    %22 = tpu.concatenate %13, %14, %15, %16, %17, %18, %19, %20, %21 in 2 : vector<16x16x4xbf16>, vector<16x16x4xbf16>, vector<16x16x4xbf16>, vector<16x16x4xbf16>, vector<16x16x4xbf16>, vector<16x16x4xbf16>, vector<16x16x4xbf16>, vector<16x16x4xbf16>, vector<16x16x4xbf16> -> vector<16x16x36xbf16>
    %23 = vector.shape_cast %22 : vector<16x16x36xbf16> to vector<256x36xbf16>
    %c0_21 = arith.constant 0 : index
    %c0_22 = arith.constant 0 : index
    %24 = vector.load %arg2[%c0_21, %c0_22] : memref<36x8xbf16, #tpu.memory_space<vmem>>, vector<36x8xbf16>
    %cst_23 = arith.constant dense<0.000000e+00> : vector<256x8xf32>
    %25 = tpu.matmul %23, %24, %cst_23 {dimension_numbers = #tpu.dot_dimension_numbers<[1], [0], [0], [1], [0, 0, 1, 1], [], []>} : vector<256x36xbf16>, vector<36x8xbf16>, vector<256x8xf32> -> vector<256x8xf32>
    %26 = arith.truncf %25 : vector<256x8xf32> to vector<256x8xbf16>
    %c0_24 = arith.constant 0 : index
    %c0_25 = arith.constant 0 : index
    %c0_26 = arith.constant 0 : index
    %27 = vector.load %arg4[%c0_24, %c0_25, %c0_26] : memref<1x256x8xbf16, #tpu.memory_space<vmem>>, vector<1x256x8xbf16>
    %28 = vector.shape_cast %27 : vector<1x256x8xbf16> to vector<256x8xbf16>
    %29 = vector.shape_cast %26 : vector<256x8xbf16> to vector<1x256x8xbf16>
    tpu.vector_store %arg4[%c0_24, %c0_25, %c0_26], %29 {strides = array<i32>} : memref<1x256x8xbf16, #tpu.memory_space<vmem>>, vector<1x256x8xbf16>,
    %30 = arith.extf %26 : vector<256x8xbf16> to vector<256x8xf32>
    %cst_27 = arith.constant dense<0.000000e+00> : vector<8xf32>
    %31 = vector.multi_reduction <add>, %30, %cst_27 [0] : vector<256x8xf32> to vector<8xf32>
    %32 = vector.shape_cast %31 : vector<8xf32> to vector<1x8xf32>
    %33 = arith.mulf %30, %30 : vector<256x8xf32>
    %cst_28 = arith.constant dense<0.000000e+00> : vector<8xf32>
    %34 = vector.multi_reduction <add>, %33, %cst_28 [0] : vector<256x8xf32> to vector<8xf32>
    %35 = vector.shape_cast %34 : vector<8xf32> to vector<1x8xf32>
    %36 = tpu.concatenate %32, %35 in 0 : vector<1x8xf32>, vector<1x8xf32> -> vector<2x8xf32>
    %c0_29 = arith.constant 0 : index
    %c0_30 = arith.constant 0 : index
    %c0_31 = arith.constant 0 : index
    %37 = vector.load %arg6[%c0_29, %c0_30, %c0_31] : memref<1x2x8xf32, #tpu.memory_space<vmem>>, vector<1x2x8xf32>
    %38 = vector.shape_cast %37 : vector<1x2x8xf32> to vector<2x8xf32>
    %39 = vector.shape_cast %36 : vector<2x8xf32> to vector<1x2x8xf32>
    tpu.vector_store %arg6[%c0_29, %c0_30, %c0_31], %39 {strides = array<i32>} : memref<1x2x8xf32, #tpu.memory_space<vmem>>, vector<1x2x8xf32>,
    %40 = vector.extract_strided_slice %12 {offsets = [1, 1, 0], sizes = [16, 16, 4], strides = [1, 1, 1]} : vector<18x18x4xbf16> to vector<16x16x4xbf16>
    %41 = vector.shape_cast %40 : vector<16x16x4xbf16> to vector<256x4xbf16>
    %c0_32 = arith.constant 0 : index
    %c0_33 = arith.constant 0 : index
    %42 = vector.load %arg3[%c0_32, %c0_33] : memref<4x8xbf16, #tpu.memory_space<vmem>>, vector<4x8xbf16>
    %cst_34 = arith.constant dense<0.000000e+00> : vector<256x8xf32>
    %43 = tpu.matmul %41, %42, %cst_34 {dimension_numbers = #tpu.dot_dimension_numbers<[1], [0], [0], [1], [0, 0, 1, 1], [], []>} : vector<256x4xbf16>, vector<4x8xbf16>, vector<256x8xf32> -> vector<256x8xf32>
    %44 = arith.truncf %43 : vector<256x8xf32> to vector<256x8xbf16>
    %c0_35 = arith.constant 0 : index
    %c0_36 = arith.constant 0 : index
    %c0_37 = arith.constant 0 : index
    %45 = vector.load %arg5[%c0_35, %c0_36, %c0_37] : memref<1x256x8xbf16, #tpu.memory_space<vmem>>, vector<1x256x8xbf16>
    %46 = vector.shape_cast %45 : vector<1x256x8xbf16> to vector<256x8xbf16>
    %47 = vector.shape_cast %44 : vector<256x8xbf16> to vector<1x256x8xbf16>
    tpu.vector_store %arg5[%c0_35, %c0_36, %c0_37], %47 {strides = array<i32>} : memref<1x256x8xbf16, #tpu.memory_space<vmem>>, vector<1x256x8xbf16>,
    %48 = arith.extf %44 : vector<256x8xbf16> to vector<256x8xf32>
    %cst_38 = arith.constant dense<0.000000e+00> : vector<8xf32>
    %49 = vector.multi_reduction <add>, %48, %cst_38 [0] : vector<256x8xf32> to vector<8xf32>
    %50 = vector.shape_cast %49 : vector<8xf32> to vector<1x8xf32>
    %51 = arith.mulf %48, %48 : vector<256x8xf32>
    %cst_39 = arith.constant dense<0.000000e+00> : vector<8xf32>
    %52 = vector.multi_reduction <add>, %51, %cst_39 [0] : vector<256x8xf32> to vector<8xf32>
    %53 = vector.shape_cast %52 : vector<8xf32> to vector<1x8xf32>
    %54 = tpu.concatenate %50, %53 in 0 : vector<1x8xf32>, vector<1x8xf32> -> vector<2x8xf32>
    %c0_40 = arith.constant 0 : index
    %c0_41 = arith.constant 0 : index
    %c0_42 = arith.constant 0 : index
    %55 = vector.load %arg7[%c0_40, %c0_41, %c0_42] : memref<1x2x8xf32, #tpu.memory_space<vmem>>, vector<1x2x8xf32>
    %56 = vector.shape_cast %55 : vector<1x2x8xf32> to vector<2x8xf32>
    %57 = vector.shape_cast %54 : vector<2x8xf32> to vector<1x2x8xf32>
    tpu.vector_store %arg7[%c0_40, %c0_41, %c0_42], %57 {strides = array<i32>} : memref<1x2x8xf32, #tpu.memory_space<vmem>>, vector<1x2x8xf32>,
    return
  }
  func.func @transform_0(%arg0: i32) -> (i32, i32, i32) {
    %c0_i32 = arith.constant 0 : i32
    %c0_i32_0 = arith.constant 0 : i32
    %c0_i32_1 = arith.constant 0 : i32
    return %arg0, %c0_i32, %c0_i32_0 : i32, i32, i32
  }
  func.func @transform_1(%arg0: i32) -> (i32, i32) {
    %c0_i32 = arith.constant 0 : i32
    %c0_i32_0 = arith.constant 0 : i32
    %c0_i32_1 = arith.constant 0 : i32
    return %c0_i32, %c0_i32_0 : i32, i32
  }
  func.func @transform_2(%arg0: i32) -> (i32, i32) {
    %c0_i32 = arith.constant 0 : i32
    %c0_i32_0 = arith.constant 0 : i32
    %c0_i32_1 = arith.constant 0 : i32
    return %c0_i32, %c0_i32_0 : i32, i32
  }
  func.func @transform_3(%arg0: i32) -> (i32, i32, i32) {
    %c0_i32 = arith.constant 0 : i32
    %c0_i32_0 = arith.constant 0 : i32
    %c0_i32_1 = arith.constant 0 : i32
    return %arg0, %c0_i32, %c0_i32_0 : i32, i32, i32
  }
  func.func @transform_4(%arg0: i32) -> (i32, i32, i32) {
    %c0_i32 = arith.constant 0 : i32
    %c0_i32_0 = arith.constant 0 : i32
    %c0_i32_1 = arith.constant 0 : i32
    return %arg0, %c0_i32, %c0_i32_0 : i32, i32, i32
  }
  func.func @transform_5(%arg0: i32) -> (i32, i32, i32) {
    %c0_i32 = arith.constant 0 : i32
    %c0_i32_0 = arith.constant 0 : i32
    %c0_i32_1 = arith.constant 0 : i32
    return %arg0, %c0_i32, %c0_i32_0 : i32, i32, i32
  }
  func.func @transform_6(%arg0: i32) -> (i32, i32, i32) {
    %c0_i32 = arith.constant 0 : i32
    %c0_i32_0 = arith.constant 0 : i32
    %c0_i32_1 = arith.constant 0 : i32
    return %arg0, %c0_i32, %c0_i32_0 : i32, i32, i32
  }
}

module attributes {stable_mosaic.version = 11 : i64} {
  func.func @kernel(%arg0: i32, %arg1: memref<1x256x8xbf16, #tpu.memory_space<vmem>>, %arg2: memref<1x256x8xbf16, #tpu.memory_space<vmem>>, %arg3: memref<1x8xf32, #tpu.memory_space<vmem>>, %arg4: memref<1x8xf32, #tpu.memory_space<vmem>>, %arg5: memref<1x8xf32, #tpu.memory_space<vmem>>, %arg6: memref<1x8xf32, #tpu.memory_space<vmem>>, %arg7: memref<1x256x8xbf16, #tpu.memory_space<vmem>>) attributes {dimension_semantics = [#tpu.dimension_semantics<parallel>], iteration_bounds = array<i64: 2>, scalar_prefetch = 0 : i64, scratch_operands = 0 : i64, tpu.core_type = #tpu.core_type<tc>, window_params = [{transform_indices = @transform_0, window_bounds = array<i64: 1, 256, 8>}, {transform_indices = @transform_1, window_bounds = array<i64: 1, 256, 8>}, {pipeline_mode = #tpu.pipeline_mode<synchronous>, transform_indices = @transform_2, window_bounds = array<i64: 1, 8>}, {pipeline_mode = #tpu.pipeline_mode<synchronous>, transform_indices = @transform_3, window_bounds = array<i64: 1, 8>}, {pipeline_mode = #tpu.pipeline_mode<synchronous>, transform_indices = @transform_4, window_bounds = array<i64: 1, 8>}, {pipeline_mode = #tpu.pipeline_mode<synchronous>, transform_indices = @transform_5, window_bounds = array<i64: 1, 8>}, {transform_indices = @transform_6, window_bounds = array<i64: 1, 256, 8>}]} {
    %c0 = arith.constant 0 : index
    %c0_0 = arith.constant 0 : index
    %c0_1 = arith.constant 0 : index
    %0 = vector.load %arg1[%c0, %c0_0, %c0_1] : memref<1x256x8xbf16, #tpu.memory_space<vmem>>, vector<1x256x8xbf16>
    %1 = vector.shape_cast %0 : vector<1x256x8xbf16> to vector<256x8xbf16>
    %2 = arith.extf %1 : vector<256x8xbf16> to vector<256x8xf32>
    %c0_2 = arith.constant 0 : index
    %c0_3 = arith.constant 0 : index
    %3 = vector.load %arg3[%c0_2, %c0_3] : memref<1x8xf32, #tpu.memory_space<vmem>>, vector<1x8xf32>
    %4 = vector.broadcast %3 : vector<1x8xf32> to vector<256x8xf32>
    %5 = arith.mulf %2, %4 : vector<256x8xf32>
    %c0_4 = arith.constant 0 : index
    %c0_5 = arith.constant 0 : index
    %6 = vector.load %arg4[%c0_4, %c0_5] : memref<1x8xf32, #tpu.memory_space<vmem>>, vector<1x8xf32>
    %7 = vector.broadcast %6 : vector<1x8xf32> to vector<256x8xf32>
    %8 = arith.addf %5, %7 : vector<256x8xf32>
    %c0_6 = arith.constant 0 : index
    %c0_7 = arith.constant 0 : index
    %c0_8 = arith.constant 0 : index
    %9 = vector.load %arg2[%c0_6, %c0_7, %c0_8] : memref<1x256x8xbf16, #tpu.memory_space<vmem>>, vector<1x256x8xbf16>
    %10 = vector.shape_cast %9 : vector<1x256x8xbf16> to vector<256x8xbf16>
    %11 = arith.extf %10 : vector<256x8xbf16> to vector<256x8xf32>
    %c0_9 = arith.constant 0 : index
    %c0_10 = arith.constant 0 : index
    %12 = vector.load %arg5[%c0_9, %c0_10] : memref<1x8xf32, #tpu.memory_space<vmem>>, vector<1x8xf32>
    %13 = vector.broadcast %12 : vector<1x8xf32> to vector<256x8xf32>
    %14 = arith.mulf %11, %13 : vector<256x8xf32>
    %c0_11 = arith.constant 0 : index
    %c0_12 = arith.constant 0 : index
    %15 = vector.load %arg6[%c0_11, %c0_12] : memref<1x8xf32, #tpu.memory_space<vmem>>, vector<1x8xf32>
    %16 = vector.broadcast %15 : vector<1x8xf32> to vector<256x8xf32>
    %17 = arith.addf %14, %16 : vector<256x8xf32>
    %18 = arith.addf %8, %17 : vector<256x8xf32>
    %cst = arith.constant 0.000000e+00 : f32
    %19 = vector.broadcast %cst : f32 to vector<256x8xf32>
    %20 = arith.maximumf %18, %19 : vector<256x8xf32>
    %21 = arith.truncf %20 : vector<256x8xf32> to vector<256x8xbf16>
    %c0_13 = arith.constant 0 : index
    %c0_14 = arith.constant 0 : index
    %c0_15 = arith.constant 0 : index
    %22 = vector.load %arg7[%c0_13, %c0_14, %c0_15] : memref<1x256x8xbf16, #tpu.memory_space<vmem>>, vector<1x256x8xbf16>
    %23 = vector.shape_cast %22 : vector<1x256x8xbf16> to vector<256x8xbf16>
    %24 = vector.shape_cast %21 : vector<256x8xbf16> to vector<1x256x8xbf16>
    tpu.vector_store %arg7[%c0_13, %c0_14, %c0_15], %24 {strides = array<i32>} : memref<1x256x8xbf16, #tpu.memory_space<vmem>>, vector<1x256x8xbf16>,
    return
  }
  func.func @transform_0(%arg0: i32) -> (i32, i32, i32) {
    %c0_i32 = arith.constant 0 : i32
    %c0_i32_0 = arith.constant 0 : i32
    %c0_i32_1 = arith.constant 0 : i32
    return %arg0, %c0_i32, %c0_i32_0 : i32, i32, i32
  }
  func.func @transform_1(%arg0: i32) -> (i32, i32, i32) {
    %c0_i32 = arith.constant 0 : i32
    %c0_i32_0 = arith.constant 0 : i32
    %c0_i32_1 = arith.constant 0 : i32
    return %arg0, %c0_i32, %c0_i32_0 : i32, i32, i32
  }
  func.func @transform_2(%arg0: i32) -> (i32, i32) {
    %c0_i32 = arith.constant 0 : i32
    %c0_i32_0 = arith.constant 0 : i32
    %c0_i32_1 = arith.constant 0 : i32
    return %c0_i32, %c0_i32_0 : i32, i32
  }
  func.func @transform_3(%arg0: i32) -> (i32, i32) {
    %c0_i32 = arith.constant 0 : i32
    %c0_i32_0 = arith.constant 0 : i32
    %c0_i32_1 = arith.constant 0 : i32
    return %c0_i32, %c0_i32_0 : i32, i32
  }
  func.func @transform_4(%arg0: i32) -> (i32, i32) {
    %c0_i32 = arith.constant 0 : i32
    %c0_i32_0 = arith.constant 0 : i32
    %c0_i32_1 = arith.constant 0 : i32
    return %c0_i32, %c0_i32_0 : i32, i32
  }
  func.func @transform_5(%arg0: i32) -> (i32, i32) {
    %c0_i32 = arith.constant 0 : i32
    %c0_i32_0 = arith.constant 0 : i32
    %c0_i32_1 = arith.constant 0 : i32
    return %c0_i32, %c0_i32_0 : i32, i32
  }
  func.func @transform_6(%arg0: i32) -> (i32, i32, i32) {
    %c0_i32 = arith.constant 0 : i32
    %c0_i32_0 = arith.constant 0 : i32
    %c0_i32_1 = arith.constant 0 : i32
    return %arg0, %c0_i32, %c0_i32_0 : i32, i32, i32
  }
}

</mosaic_0001>

<bundles_post_ra>
// kernel: residual_block_forward.5
= control target key start
LH: loop header
LB: loop body
LE: loop exit
PB: predicated region body
PF: predicated region fallthrough
CT: control target
= control target key end

     0   :  { %s1141_s21 = smov 0   ;;  %s1416_s0 = inlined_call_operand.vmem [shape: bf16[2,256,8], index: 0, kind: input, shape index: {}]   ;;  %s1417_s1 = inlined_call_operand.vmem [shape: bf16[2,256,8], index: 1, kind: input, shape index: {}]   ;;  %s1418_s2 = inlined_call_operand.vmem [shape: f32[1,8], index: 2, kind: input, shape index: {}]   ;;  %s1419_s3 = inlined_call_operand.vmem [shape: f32[1,8], index: 3, kind: input, shape index: {}]   ;;  %s1420_s4 = inlined_call_operand.vmem [shape: f32[1,8], index: 4, kind: input, shape index: {}]   ;;  %s1421_s5 = inlined_call_operand.vmem [shape: f32[1,8], index: 5, kind: input, shape index: {}]   ;;  %s1422_s6 = inlined_call_operand.vmem [shape: bf16[2,256,8], index: 6, kind: output, shape index: {}]  }
   0x1 LB: > { %s848_s22 = sadd.s32 4294967295, %s1104_s21   ;;  %p852_p0 = scmp.ge.s32.totalorder %s1104_s21, 1  ;;  %s1104_s21 = sphi %s1141_s21, %s16_s21  }
   0x2   : > { %p222_p1 = scmp.lt.s32.totalorder %s1104_s21, 3 }
   0x4   : > { %p223_p2 = pnand %p852_p0, %p222_p1 }
   0x5   : > { %p257_p3 = scmp.lt.s32.totalorder (!%p223_p2), %s848_s22, 1 }
   0x6   : > { %226 = sbr.rel (%p223_p2) target bundleno = 95 (0x5f), region = 44 }
   0xb   : > { %s1424_s22 = smov (!%p257_p3, %s848_s22), 1  ;;  %v1166_v0 = vld [vmem:[%s1418_s2] ss:$0 sm:$0xff]  ;;  %vm748_vm0 = vcmask 60416  }
   0xc   : > { %s1149_s23 = sshll.u32 %s1424_s22, 7  ;;  %v1171_v1 = vld [vmem:[%s1420_s4] ss:$0 sm:$0xff] }
   0xd   : > { %s1155_s26 = scalar_lea.vmem %s1416_s0, %s1149_s23  ;;  %s1161_s29 = scalar_lea.vmem %s1417_s1, %s1149_s23  ;;  %v1180_v10 = vld [vmem:[%s1419_s3] ss:$0 sm:$0xff] }
   0xe   : > { %v933_v2 = vld [vmem:[%s1155_s26] sm:$0xff]   ;;  %v1060_v4 = vld [vmem:[%s1155_s26 + $0x8] sm:$0xff]   ;;  %v1061_v24 = vld [vmem:[%s1155_s26 + $0x10] sm:$0xff]   ;;  %s1211_s16 = scalar_lea.vmem %s1422_s6, %s1149_s23 }
   0xf   : > { %v997_v3 = vld [vmem:[%s1161_s29] sm:$0xff]   ;;  %v934_v5 = vunpack.c.l.bf16 %v933_v2  ;;  %v935_v7 = vunpack.c.h.bf16 %v933_v2  ;;  %v1075_v9 = vld [vmem:[%s1161_s29 + $0x8] sm:$0xff]   ;;  %v938_v12 = vunpack.c.l.bf16 %v1060_v4  ;;  %v939_v14 = vunpack.c.h.bf16 %v1060_v4  ;;  %v1076_v25 = vld [vmem:[%s1161_s29 + $0x10] sm:$0xff]  }
  0x10   : > { %v998_v6 = vunpack.c.l.bf16 %v997_v3  ;;  %v999_v8 = vunpack.c.h.bf16 %v997_v3  ;;  %v1185_v11 = vld [vmem:[%s1421_s5] ss:$0 sm:$0xff]  ;;  %v1002_v13 = vunpack.c.l.bf16 %v1075_v9  ;;  %v1003_v15 = vunpack.c.h.bf16 %v1075_v9  ;;  %v1062_v50 = vld [vmem:[%s1155_s26 + $0x18] sm:$0xff]  }
  0x11   : > { %v343_v16 = vmul.f32 %v934_v5, %v1166_v0  ;;  %v344_v18 = vmul.f32 %v935_v7, %v1166_v0  ;;  %v345_v20 = vmul.f32 %v938_v12, %v1166_v0  ;;  %v346_v22 = vmul.f32 %v939_v14, %v1166_v0  ;;  %v1077_v51 = vld [vmem:[%s1161_s29 + $0x18] sm:$0xff]   ;;  %v1063_v56 = vld [vmem:[%s1155_s26 + $0x20] sm:$0xff]  }
  0x12   : > { %v485_v17 = vmul.f32 %v998_v6, %v1171_v1  ;;  %v486_v19 = vmul.f32 %v999_v8, %v1171_v1  ;;  %v487_v21 = vmul.f32 %v1002_v13, %v1171_v1  ;;  %v488_v23 = vmul.f32 %v1003_v15, %v1171_v1  ;;  %v1078_v57 = vld [vmem:[%s1161_s29 + $0x20] sm:$0xff]  }
  0x13   : > { %v382_v26 = vadd.f32 %v1180_v10, %v343_v16  ;;  %v383_v28 = vadd.f32 %v1180_v10, %v344_v18  ;;  %v384_v30 = vadd.f32 %v1180_v10, %v345_v20  ;;  %v385_v32 = vadd.f32 %v1180_v10, %v346_v22  ;;  %v1064_v18 = vld [vmem:[%s1155_s26 + $0x28] sm:$0xff]  }
  0x14   : > { %v524_v27 = vadd.f32 %v1185_v11, %v485_v17  ;;  %v525_v29 = vadd.f32 %v1185_v11, %v486_v19  ;;  %v526_v31 = vadd.f32 %v1185_v11, %v487_v21  ;;  %v527_v33 = vadd.f32 %v1185_v11, %v488_v23  ;;  %v1079_v23 = vld [vmem:[%s1161_s29 + $0x28] sm:$0xff]  }
  0x15   : > { %v942_v36 = vunpack.c.l.bf16 %v1061_v24  ;;  %v1006_v37 = vunpack.c.l.bf16 %v1076_v25  ;;  %v943_v40 = vunpack.c.h.bf16 %v1061_v24  ;;  %v1007_v41 = vunpack.c.h.bf16 %v1076_v25 }
  0x16   : > { %v556_v34 = vadd.f32 %v524_v27, %v382_v26  ;;  %v557_v35 = vadd.f32 %v525_v29, %v383_v28  ;;  %v558_v38 = vadd.f32 %v526_v31, %v384_v30  ;;  %v559_v39 = vadd.f32 %v527_v33, %v385_v32 }
  0x17   : > { %v347_v44 = vmul.f32 %v942_v36, %v1166_v0  ;;  %v489_v45 = vmul.f32 %v1006_v37, %v1171_v1  ;;  %v348_v48 = vmul.f32 %v943_v40, %v1166_v0  ;;  %v490_v49 = vmul.f32 %v1007_v41, %v1171_v1 }
  0x18   : > { %v588_v42 = vmax.f32 %v556_v34, 0.0  ;;  %v589_v43 = vmax.f32 %v557_v35, 0.0  ;;  %v590_v46 = vmax.f32 %v558_v38, 0.0  ;;  %v591_v47 = vmax.f32 %v559_v39, 0.0 }
  0x19   : > { %v386_v54 = vadd.f32 %v1180_v10, %v347_v44  ;;  %v528_v55 = vadd.f32 %v1185_v11, %v489_v45  ;;  %v387_v60 = vadd.f32 %v1180_v10, %v348_v48  ;;  %v529_v61 = vadd.f32 %v1185_v11, %v490_v49  ;;  %v1065_v44 = vld [vmem:[%s1155_s26 + $0x30] sm:$0xff]  }
  0x1a   : > { %v900_v52 = vpack.c.bf16 %v588_v42, %v588_v42  ;;  %v901_v53 = vpack.c.bf16 %v589_v43, %v589_v43  ;;  %v902_v58 = vpack.c.bf16 %v590_v46, %v590_v46  ;;  %v903_v59 = vpack.c.bf16 %v591_v47, %v591_v47  ;;  %v1080_v45 = vld [vmem:[%s1161_s29 + $0x30] sm:$0xff]  }
  0x1b   : > { %v560_v62 = vadd.f32 %v528_v55, %v386_v54  ;;  %v946_v63 = vunpack.c.l.bf16 %v1062_v50  ;;  %v1010_v2 = vunpack.c.l.bf16 %v1077_v51  ;;  %v947_v3 = vunpack.c.h.bf16 %v1062_v50  ;;  %v1066_v50 = vld [vmem:[%s1155_s26 + $0x38] sm:$0xff]  }
  0x1c   : > { %749 = vst.msk [vmem:[%s1211_s16] sm:$0xf] %vm748_vm0, %v900_v52  ;;  %750 = vst.msk [vmem:[%s1211_s16 + $0x4] sm:$0xf] %vm748_vm0, %v901_v53  ;;  %v561_v4 = vadd.f32 %v529_v61, %v387_v60  ;;  %v1011_v5 = vunpack.c.h.bf16 %v1077_v51  ;;  %v950_v6 = vunpack.c.l.bf16 %v1063_v56  ;;  %v1014_v7 = vunpack.c.l.bf16 %v1078_v57 }
  0x1d   : > { %751 = vst.msk [vmem:[%s1211_s16 + $0x8] sm:$0xf] %vm748_vm0, %v902_v58  ;;  %752 = vst.msk [vmem:[%s1211_s16 + $0xc] sm:$0xf] %vm748_vm0, %v903_v59  ;;  %v592_v8 = vmax.f32 %v560_v62, 0.0  ;;  %v349_v9 = vmul.f32 %v946_v63, %v1166_v0  ;;  %v491_v12 = vmul.f32 %v1010_v2, %v1171_v1  ;;  %v350_v13 = vmul.f32 %v947_v3, %v1166_v0 }
  0x1e   : > { %v593_v14 = vmax.f32 %v561_v4, 0.0  ;;  %v492_v15 = vmul.f32 %v1011_v5, %v1171_v1  ;;  %v351_v16 = vmul.f32 %v950_v6, %v1166_v0  ;;  %v493_v17 = vmul.f32 %v1014_v7, %v1171_v1 }
  0x1f   : > { %v904_v19 = vpack.c.bf16 %v592_v8, %v592_v8  ;;  %v388_v20 = vadd.f32 %v1180_v10, %v349_v9  ;;  %v530_v21 = vadd.f32 %v1185_v11, %v491_v12  ;;  %v389_v22 = vadd.f32 %v1180_v10, %v350_v13  ;;  %v1081_v9 = vld [vmem:[%s1161_s29 + $0x38] sm:$0xff]  }
  0x20   : > { %v905_v24 = vpack.c.bf16 %v593_v14, %v593_v14  ;;  %v531_v25 = vadd.f32 %v1185_v11, %v492_v15  ;;  %v390_v26 = vadd.f32 %v1180_v10, %v351_v16  ;;  %v532_v27 = vadd.f32 %v1185_v11, %v493_v17  ;;  %v1067_v16 = vld [vmem:[%s1155_s26 + $0x40] sm:$0xff]  }
  0x21   : > { %753 = vst.msk [vmem:[%s1211_s16 + $0x10] sm:$0xf] %vm748_vm0, %v904_v19  ;;  %v562_v28 = vadd.f32 %v530_v21, %v388_v20  ;;  %v951_v29 = vunpack.c.h.bf16 %v1063_v56  ;;  %v1015_v30 = vunpack.c.h.bf16 %v1078_v57  ;;  %v954_v31 = vunpack.c.l.bf16 %v1064_v18  ;;  %v1082_v17 = vld [vmem:[%s1161_s29 + $0x40] sm:$0xff]  }
  0x22   : > { %754 = vst.msk [vmem:[%s1211_s16 + $0x14] sm:$0xf] %vm748_vm0, %v905_v24  ;;  %v563_v32 = vadd.f32 %v531_v25, %v389_v22  ;;  %v564_v33 = vadd.f32 %v532_v27, %v390_v26  ;;  %v1018_v34 = vunpack.c.l.bf16 %v1079_v23  ;;  %v955_v35 = vunpack.c.h.bf16 %v1064_v18 }
  0x23   : > { %v594_v36 = vmax.f32 %v562_v28, 0.0  ;;  %v352_v37 = vmul.f32 %v951_v29, %v1166_v0  ;;  %v494_v38 = vmul.f32 %v1015_v30, %v1171_v1  ;;  %v353_v39 = vmul.f32 %v954_v31, %v1166_v0 }
  0x24   : > { %v595_v40 = vmax.f32 %v563_v32, 0.0  ;;  %v596_v41 = vmax.f32 %v564_v33, 0.0  ;;  %v495_v42 = vmul.f32 %v1018_v34, %v1171_v1  ;;  %v354_v43 = vmul.f32 %v955_v35, %v1166_v0 }
  0x25   : > { %v906_v46 = vpack.c.bf16 %v594_v36, %v594_v36  ;;  %v391_v47 = vadd.f32 %v1180_v10, %v352_v37  ;;  %v533_v48 = vadd.f32 %v1185_v11, %v494_v38  ;;  %v392_v49 = vadd.f32 %v1180_v10, %v353_v39  ;;  %v1068_v38 = vld [vmem:[%s1155_s26 + $0x48] sm:$0xff]  }
  0x26   : > { %v907_v51 = vpack.c.bf16 %v595_v40, %v595_v40  ;;  %v908_v52 = vpack.c.bf16 %v596_v41, %v596_v41  ;;  %v534_v53 = vadd.f32 %v1185_v11, %v495_v42  ;;  %v393_v54 = vadd.f32 %v1180_v10, %v354_v43  ;;  %v1083_v43 = vld [vmem:[%s1161_s29 + $0x48] sm:$0xff]  }
  0x27   : > { %755 = vst.msk [vmem:[%s1211_s16 + $0x18] sm:$0xf] %vm748_vm0, %v906_v46  ;;  %v565_v55 = vadd.f32 %v533_v48, %v391_v47  ;;  %v1019_v56 = vunpack.c.h.bf16 %v1079_v23  ;;  %v958_v57 = vunpack.c.l.bf16 %v1065_v44  ;;  %v1022_v58 = vunpack.c.l.bf16 %v1080_v45 }
  0x28   : > { %756 = vst.msk [vmem:[%s1211_s16 + $0x1c] sm:$0xf] %vm748_vm0, %v907_v51  ;;  %757 = vst.msk [vmem:[%s1211_s16 + $0x20] sm:$0xf] %vm748_vm0, %v908_v52  ;;  %v566_v59 = vadd.f32 %v534_v53, %v392_v49  ;;  %v959_v60 = vunpack.c.h.bf16 %v1065_v44  ;;  %v1023_v61 = vunpack.c.h.bf16 %v1080_v45  ;;  %v962_v62 = vunpack.c.l.bf16 %v1066_v50 }
  0x29   : > { %v597_v63 = vmax.f32 %v565_v55, 0.0  ;;  %v496_v2 = vmul.f32 %v1019_v56, %v1171_v1  ;;  %v355_v3 = vmul.f32 %v958_v57, %v1166_v0  ;;  %v497_v4 = vmul.f32 %v1022_v58, %v1171_v1 }
  0x2a   : > { %v598_v5 = vmax.f32 %v566_v59, 0.0  ;;  %v356_v6 = vmul.f32 %v959_v60, %v1166_v0  ;;  %v498_v7 = vmul.f32 %v1023_v61, %v1171_v1  ;;  %v357_v8 = vmul.f32 %v962_v62, %v1166_v0 }
  0x2b   : > { %v909_v12 = vpack.c.bf16 %v597_v63, %v597_v63  ;;  %v535_v13 = vadd.f32 %v1185_v11, %v496_v2  ;;  %v394_v14 = vadd.f32 %v1180_v10, %v355_v3  ;;  %v536_v15 = vadd.f32 %v1185_v11, %v497_v4  ;;  %v1069_v2 = vld [vmem:[%s1155_s26 + $0x50] sm:$0xff]  }
  0x2c   : > { %v910_v18 = vpack.c.bf16 %v598_v5, %v598_v5  ;;  %v395_v19 = vadd.f32 %v1180_v10, %v356_v6  ;;  %v537_v20 = vadd.f32 %v1185_v11, %v498_v7  ;;  %v396_v21 = vadd.f32 %v1180_v10, %v357_v8  ;;  %v1084_v3 = vld [vmem:[%s1161_s29 + $0x50] sm:$0xff]   ;;  %v1070_v8 = vld [vmem:[%s1155_s26 + $0x58] sm:$0xff]  }
  0x2d   : > { %758 = vst.msk [vmem:[%s1211_s16 + $0x24] sm:$0xf] %vm748_vm0, %v909_v12  ;;  %v567_v22 = vadd.f32 %v535_v13, %v393_v54  ;;  %v568_v23 = vadd.f32 %v536_v15, %v394_v14  ;;  %v1026_v24 = vunpack.c.l.bf16 %v1081_v9  ;;  %v963_v25 = vunpack.c.h.bf16 %v1066_v50 }
  0x2e   : > { %759 = vst.msk [vmem:[%s1211_s16 + $0x28] sm:$0xf] %vm748_vm0, %v910_v18  ;;  %v569_v26 = vadd.f32 %v537_v20, %v395_v19  ;;  %v1027_v27 = vunpack.c.h.bf16 %v1081_v9  ;;  %v966_v28 = vunpack.c.l.bf16 %v1067_v16  ;;  %v1030_v29 = vunpack.c.l.bf16 %v1082_v17 }
  0x2f   : > { %v599_v30 = vmax.f32 %v567_v22, 0.0  ;;  %v600_v31 = vmax.f32 %v568_v23, 0.0  ;;  %v499_v32 = vmul.f32 %v1026_v24, %v1171_v1  ;;  %v358_v33 = vmul.f32 %v963_v25, %v1166_v0 }
  0x30   : > { %v601_v34 = vmax.f32 %v569_v26, 0.0  ;;  %v500_v35 = vmul.f32 %v1027_v27, %v1171_v1  ;;  %v359_v36 = vmul.f32 %v966_v28, %v1166_v0  ;;  %v501_v37 = vmul.f32 %v1030_v29, %v1171_v1 }
  0x31   : > { %v911_v39 = vpack.c.bf16 %v599_v30, %v599_v30  ;;  %v912_v40 = vpack.c.bf16 %v600_v31, %v600_v31  ;;  %v538_v41 = vadd.f32 %v1185_v11, %v499_v32  ;;  %v397_v42 = vadd.f32 %v1180_v10, %v358_v33  ;;  %v1085_v31 = vld [vmem:[%s1161_s29 + $0x58] sm:$0xff]  }
  0x32   : > { %v913_v44 = vpack.c.bf16 %v601_v34, %v601_v34  ;;  %v539_v45 = vadd.f32 %v1185_v11, %v500_v35  ;;  %v398_v46 = vadd.f32 %v1180_v10, %v359_v36  ;;  %v540_v47 = vadd.f32 %v1185_v11, %v501_v37  ;;  %v1071_v36 = vld [vmem:[%s1155_s26 + $0x60] sm:$0xff]  }
  0x33   : > { %760 = vst.msk [vmem:[%s1211_s16 + $0x2c] sm:$0xf] %vm748_vm0, %v911_v39  ;;  %761 = vst.msk [vmem:[%s1211_s16 + $0x30] sm:$0xf] %vm748_vm0, %v912_v40  ;;  %v570_v48 = vadd.f32 %v538_v41, %v396_v21  ;;  %v967_v49 = vunpack.c.h.bf16 %v1067_v16  ;;  %v1031_v50 = vunpack.c.h.bf16 %v1082_v17  ;;  %v970_v51 = vunpack.c.l.bf16 %v1068_v38  ;;  %v1086_v37 = vld [vmem:[%s1161_s29 + $0x60] sm:$0xff]  }
  0x34   : > { %762 = vst.msk [vmem:[%s1211_s16 + $0x34] sm:$0xf] %vm748_vm0, %v913_v44  ;;  %v571_v52 = vadd.f32 %v539_v45, %v397_v42  ;;  %v572_v53 = vadd.f32 %v540_v47, %v398_v46  ;;  %v1034_v54 = vunpack.c.l.bf16 %v1083_v43  ;;  %v971_v55 = vunpack.c.h.bf16 %v1068_v38 }
  0x35   : > { %v602_v56 = vmax.f32 %v570_v48, 0.0  ;;  %v360_v57 = vmul.f32 %v967_v49, %v1166_v0  ;;  %v502_v58 = vmul.f32 %v1031_v50, %v1171_v1  ;;  %v361_v59 = vmul.f32 %v970_v51, %v1166_v0 }
  0x36   : > { %v603_v60 = vmax.f32 %v571_v52, 0.0  ;;  %v604_v61 = vmax.f32 %v572_v53, 0.0  ;;  %v503_v62 = vmul.f32 %v1034_v54, %v1171_v1  ;;  %v362_v63 = vmul.f32 %v971_v55, %v1166_v0 }
  0x37   : > { %v914_v4 = vpack.c.bf16 %v602_v56, %v602_v56  ;;  %v399_v5 = vadd.f32 %v1180_v10, %v360_v57  ;;  %v541_v6 = vadd.f32 %v1185_v11, %v502_v58  ;;  %v400_v7 = vadd.f32 %v1180_v10, %v361_v59  ;;  %v1072_v58 = vld [vmem:[%s1155_s26 + $0x68] sm:$0xff]  }
  0x38   : > { %v915_v9 = vpack.c.bf16 %v603_v60, %v603_v60  ;;  %v916_v12 = vpack.c.bf16 %v604_v61, %v604_v61  ;;  %v542_v13 = vadd.f32 %v1185_v11, %v503_v62  ;;  %v401_v14 = vadd.f32 %v1180_v10, %v362_v63  ;;  %v1087_v63 = vld [vmem:[%s1161_s29 + $0x68] sm:$0xff]  }
  0x39   : > { %763 = vst.msk [vmem:[%s1211_s16 + $0x38] sm:$0xf] %vm748_vm0, %v914_v4  ;;  %v573_v15 = vadd.f32 %v541_v6, %v399_v5  ;;  %v1035_v16 = vunpack.c.h.bf16 %v1083_v43  ;;  %v974_v17 = vunpack.c.l.bf16 %v1069_v2  ;;  %v1038_v18 = vunpack.c.l.bf16 %v1084_v3 }
  0x3a   : > { %764 = vst.msk [vmem:[%s1211_s16 + $0x3c] sm:$0xf] %vm748_vm0, %v915_v9  ;;  %765 = vst.msk [vmem:[%s1211_s16 + $0x40] sm:$0xf] %vm748_vm0, %v916_v12  ;;  %v574_v19 = vadd.f32 %v542_v13, %v400_v7  ;;  %v975_v20 = vunpack.c.h.bf16 %v1069_v2  ;;  %v1039_v21 = vunpack.c.h.bf16 %v1084_v3  ;;  %v978_v22 = vunpack.c.l.bf16 %v1070_v8 }
  0x3b   : > { %v605_v23 = vmax.f32 %v573_v15, 0.0  ;;  %v504_v24 = vmul.f32 %v1035_v16, %v1171_v1  ;;  %v363_v25 = vmul.f32 %v974_v17, %v1166_v0  ;;  %v505_v26 = vmul.f32 %v1038_v18, %v1171_v1 }
  0x3c   : > { %v606_v27 = vmax.f32 %v574_v19, 0.0  ;;  %v364_v28 = vmul.f32 %v975_v20, %v1166_v0  ;;  %v506_v29 = vmul.f32 %v1039_v21, %v1171_v1  ;;  %v365_v30 = vmul.f32 %v978_v22, %v1166_v0 }
  0x3d   : > { %v917_v32 = vpack.c.bf16 %v605_v23, %v605_v23  ;;  %v543_v33 = vadd.f32 %v1185_v11, %v504_v24  ;;  %v402_v34 = vadd.f32 %v1180_v10, %v363_v25  ;;  %v544_v35 = vadd.f32 %v1185_v11, %v505_v26  ;;  %v1073_v24 = vld [vmem:[%s1155_s26 + $0x70] sm:$0xff]  }
  0x3e   : > { %v918_v38 = vpack.c.bf16 %v606_v27, %v606_v27  ;;  %v403_v39 = vadd.f32 %v1180_v10, %v364_v28  ;;  %v545_v40 = vadd.f32 %v1185_v11, %v506_v29  ;;  %v404_v41 = vadd.f32 %v1180_v10, %v365_v30  ;;  %v1088_v25 = vld [vmem:[%s1161_s29 + $0x70] sm:$0xff]   ;;  %v1074_v30 = vld [vmem:[%s1155_s26 + $0x78] sm:$0xff]  }
  0x3f   : > { %766 = vst.msk [vmem:[%s1211_s16 + $0x44] sm:$0xf] %vm748_vm0, %v917_v32  ;;  %v575_v42 = vadd.f32 %v543_v33, %v401_v14  ;;  %v576_v43 = vadd.f32 %v544_v35, %v402_v34  ;;  %v1042_v44 = vunpack.c.l.bf16 %v1085_v31  ;;  %v979_v45 = vunpack.c.h.bf16 %v1070_v8 }
  0x40   : > { %767 = vst.msk [vmem:[%s1211_s16 + $0x48] sm:$0xf] %vm748_vm0, %v918_v38  ;;  %v577_v46 = vadd.f32 %v545_v40, %v403_v39  ;;  %v1043_v47 = vunpack.c.h.bf16 %v1085_v31  ;;  %v982_v48 = vunpack.c.l.bf16 %v1071_v36  ;;  %v1046_v49 = vunpack.c.l.bf16 %v1086_v37 }
  0x41   : > { %v607_v50 = vmax.f32 %v575_v42, 0.0  ;;  %v608_v51 = vmax.f32 %v576_v43, 0.0  ;;  %v507_v52 = vmul.f32 %v1042_v44, %v1171_v1  ;;  %v366_v53 = vmul.f32 %v979_v45, %v1166_v0 }
  0x42   : > { %v609_v54 = vmax.f32 %v577_v46, 0.0  ;;  %v508_v55 = vmul.f32 %v1043_v47, %v1171_v1  ;;  %v367_v56 = vmul.f32 %v982_v48, %v1166_v0  ;;  %v509_v57 = vmul.f32 %v1046_v49, %v1171_v1 }
  0x43   : > { %v919_v59 = vpack.c.bf16 %v607_v50, %v607_v50  ;;  %v920_v60 = vpack.c.bf16 %v608_v51, %v608_v51  ;;  %v546_v61 = vadd.f32 %v1185_v11, %v507_v52  ;;  %v405_v62 = vadd.f32 %v1180_v10, %v366_v53  ;;  %v1089_v51 = vld [vmem:[%s1161_s29 + $0x78] sm:$0xff]  }
  0x44   : > { %v921_v2 = vpack.c.bf16 %v609_v54, %v609_v54  ;;  %v547_v3 = vadd.f32 %v1185_v11, %v508_v55  ;;  %v406_v4 = vadd.f32 %v1180_v10, %v367_v56  ;;  %v548_v5 = vadd.f32 %v1185_v11, %v509_v57 }
  0x45   : > { %768 = vst.msk [vmem:[%s1211_s16 + $0x4c] sm:$0xf] %vm748_vm0, %v919_v59  ;;  %769 = vst.msk [vmem:[%s1211_s16 + $0x50] sm:$0xf] %vm748_vm0, %v920_v60  ;;  %v578_v6 = vadd.f32 %v546_v61, %v404_v41  ;;  %v983_v7 = vunpack.c.h.bf16 %v1071_v36  ;;  %v1047_v8 = vunpack.c.h.bf16 %v1086_v37  ;;  %v986_v9 = vunpack.c.l.bf16 %v1072_v58 }
  0x46   : > { %770 = vst.msk [vmem:[%s1211_s16 + $0x54] sm:$0xf] %vm748_vm0, %v921_v2  ;;  %v579_v12 = vadd.f32 %v547_v3, %v405_v62  ;;  %v580_v13 = vadd.f32 %v548_v5, %v406_v4  ;;  %v1050_v14 = vunpack.c.l.bf16 %v1087_v63  ;;  %v987_v15 = vunpack.c.h.bf16 %v1072_v58 }
  0x47   : > { %v610_v16 = vmax.f32 %v578_v6, 0.0  ;;  %v368_v17 = vmul.f32 %v983_v7, %v1166_v0  ;;  %v510_v18 = vmul.f32 %v1047_v8, %v1171_v1  ;;  %v369_v19 = vmul.f32 %v986_v9, %v1166_v0 }
  0x48   : > { %v611_v20 = vmax.f32 %v579_v12, 0.0  ;;  %v612_v21 = vmax.f32 %v580_v13, 0.0  ;;  %v511_v22 = vmul.f32 %v1050_v14, %v1171_v1  ;;  %v370_v23 = vmul.f32 %v987_v15, %v1166_v0 }
  0x49   : > { %v922_v26 = vpack.c.bf16 %v610_v16, %v610_v16  ;;  %v407_v27 = vadd.f32 %v1180_v10, %v368_v17  ;;  %v549_v28 = vadd.f32 %v1185_v11, %v510_v18  ;;  %v408_v29 = vadd.f32 %v1180_v10, %v369_v19 }
  0x4a   : > { %v923_v31 = vpack.c.bf16 %v611_v20, %v611_v20  ;;  %v924_v32 = vpack.c.bf16 %v612_v21, %v612_v21  ;;  %v550_v33 = vadd.f32 %v1185_v11, %v511_v22  ;;  %v409_v34 = vadd.f32 %v1180_v10, %v370_v23 }
  0x4b   : > { %771 = vst.msk [vmem:[%s1211_s16 + $0x58] sm:$0xf] %vm748_vm0, %v922_v26  ;;  %v581_v35 = vadd.f32 %v549_v28, %v407_v27  ;;  %v1051_v36 = vunpack.c.h.bf16 %v1087_v63  ;;  %v990_v37 = vunpack.c.l.bf16 %v1073_v24  ;;  %v1054_v38 = vunpack.c.l.bf16 %v1088_v25 }
  0x4c   : > { %772 = vst.msk [vmem:[%s1211_s16 + $0x5c] sm:$0xf] %vm748_vm0, %v923_v31  ;;  %773 = vst.msk [vmem:[%s1211_s16 + $0x60] sm:$0xf] %vm748_vm0, %v924_v32  ;;  %v582_v39 = vadd.f32 %v550_v33, %v408_v29  ;;  %v991_v40 = vunpack.c.h.bf16 %v1073_v24  ;;  %v1055_v41 = vunpack.c.h.bf16 %v1088_v25  ;;  %v994_v42 = vunpack.c.l.bf16 %v1074_v30 }
  0x4d   : > { %v613_v43 = vmax.f32 %v581_v35, 0.0  ;;  %v512_v44 = vmul.f32 %v1051_v36, %v1171_v1  ;;  %v371_v45 = vmul.f32 %v990_v37, %v1166_v0  ;;  %v513_v46 = vmul.f32 %v1054_v38, %v1171_v1 }
  0x4e   : > { %v614_v47 = vmax.f32 %v582_v39, 0.0  ;;  %v372_v48 = vmul.f32 %v991_v40, %v1166_v0  ;;  %v514_v49 = vmul.f32 %v1055_v41, %v1171_v1  ;;  %v373_v50 = vmul.f32 %v994_v42, %v1166_v0 }
  0x4f   : > { %v925_v52 = vpack.c.bf16 %v613_v43, %v613_v43  ;;  %v551_v53 = vadd.f32 %v1185_v11, %v512_v44  ;;  %v410_v54 = vadd.f32 %v1180_v10, %v371_v45  ;;  %v552_v55 = vadd.f32 %v1185_v11, %v513_v46 }
  0x50   : > { %v926_v56 = vpack.c.bf16 %v614_v47, %v614_v47  ;;  %v411_v57 = vadd.f32 %v1180_v10, %v372_v48  ;;  %v553_v58 = vadd.f32 %v1185_v11, %v514_v49  ;;  %v1058_v61 = vunpack.c.l.bf16 %v1089_v51 }
  0x51   : > { %774 = vst.msk [vmem:[%s1211_s16 + $0x64] sm:$0xf] %vm748_vm0, %v925_v52  ;;  %v583_v59 = vadd.f32 %v551_v53, %v409_v34  ;;  %v584_v60 = vadd.f32 %v552_v55, %v410_v54  ;;  %v995_v62 = vunpack.c.h.bf16 %v1074_v30  ;;  %v412_v2 = vadd.f32 %v1180_v10, %v373_v50 }
  0x52   : > { %775 = vst.msk [vmem:[%s1211_s16 + $0x68] sm:$0xf] %vm748_vm0, %v926_v56  ;;  %v585_v63 = vadd.f32 %v553_v58, %v411_v57  ;;  %v1059_v3 = vunpack.c.h.bf16 %v1089_v51  ;;  %v515_v6 = vmul.f32 %v1058_v61, %v1171_v1 }
  0x53   : > { %v615_v4 = vmax.f32 %v583_v59, 0.0  ;;  %v616_v5 = vmax.f32 %v584_v60, 0.0  ;;  %v374_v7 = vmul.f32 %v995_v62, %v1166_v0 }
  0x54   : > { %v617_v8 = vmax.f32 %v585_v63, 0.0  ;;  %v516_v9 = vmul.f32 %v1059_v3, %v1171_v1  ;;  %v554_v14 = vadd.f32 %v1185_v11, %v515_v6 }
  0x55   : > { %v927_v12 = vpack.c.bf16 %v615_v4, %v615_v4  ;;  %v928_v13 = vpack.c.bf16 %v616_v5, %v616_v5  ;;  %v413_v15 = vadd.f32 %v1180_v10, %v374_v7 }
  0x56   : > { %v929_v16 = vpack.c.bf16 %v617_v8, %v617_v8  ;;  %v555_v17 = vadd.f32 %v1185_v11, %v516_v9  ;;  %v586_v18 = vadd.f32 %v554_v14, %v412_v2 }
  0x57   : > { %776 = vst.msk [vmem:[%s1211_s16 + $0x6c] sm:$0xf] %vm748_vm0, %v927_v12  ;;  %777 = vst.msk [vmem:[%s1211_s16 + $0x70] sm:$0xf] %vm748_vm0, %v928_v13 }
  0x58   : > { %778 = vst.msk [vmem:[%s1211_s16 + $0x74] sm:$0xf] %vm748_vm0, %v929_v16  ;;  %v587_v0 = vadd.f32 %v555_v17, %v413_v15  ;;  %v618_v1 = vmax.f32 %v586_v18, 0.0 }
  0x5a   : > { %v619_v19 = vmax.f32 %v587_v0, 0.0  ;;  %v930_v20 = vpack.c.bf16 %v618_v1, %v618_v1 }
  0x5c   : > { %v931_v21 = vpack.c.bf16 %v619_v19, %v619_v19  ;;  %779 = vst.msk [vmem:[%s1211_s16 + $0x78] sm:$0xf] %vm748_vm0, %v930_v20 }
  0x5e   : > { %780 = vst.msk [vmem:[%s1211_s16 + $0x7c] sm:$0xf] %vm748_vm0, %v931_v21 }
  0x5f PF: > { %s16_s21 = sadd.s32 1, %s1104_s21  }
  0x60   : > { %p13_p4 = scmp.ge.s32.totalorder %s16_s21, 4  }
  0x62   :  { %15 = sbr.rel (!%p13_p4) target bundleno = 1 (0x1), region = 77 }

// kernel: residual_block_forward.4
= control target key start
LH: loop header
LB: loop body
LE: loop exit
PB: predicated region body
PF: predicated region fallthrough
CT: control target
= control target key end

     0   :  { %s3212_s18 = smov 0   ;;  %s4282_s0 = inlined_call_operand.vmem [shape: bf16[2,256,8], index: 0, kind: input, shape index: {}]   ;;  %s4283_s1 = inlined_call_operand.vmem [shape: f32[1,8], index: 1, kind: input, shape index: {}]   ;;  %s4284_s2 = inlined_call_operand.vmem [shape: f32[1,8], index: 2, kind: input, shape index: {}]   ;;  %s4285_s3 = inlined_call_operand.vmem [shape: bf16[72,8], index: 3, kind: input, shape index: {}]   ;;  %s4286_s4 = inlined_call_operand.vmem [shape: bf16[2,256,8], index: 4, kind: output, shape index: {0}]   ;;  %s4287_s5 = inlined_call_operand.vmem [shape: f32[2,2,8], index: 5, kind: output, shape index: {1}]  }
   0x1 LB: > { %s2742_s19 = sadd.s32 4294967295, %s3171_s18   ;;  %p2746_p0 = scmp.ge.s32.totalorder %s3171_s18, 1  ;;  %s3171_s18 = sphi %s3212_s18, %s16_s18  }
   0x2   : > { %p190_p1 = scmp.lt.s32.totalorder %s3171_s18, 3 }
   0x4   : > { %p191_p2 = pnand %p2746_p0, %p190_p1 }
   0x5   : > { %p222_p3 = scmp.lt.s32.totalorder (!%p191_p2), %s2742_s19, 1  ;;  %s3174_s28 = smov (!%p191_p2), 16  }
   0x6   : > { %194 = sbr.rel (%p191_p2) target bundleno = 644 (0x284), region = 36  ;;  %s3175_s29 = smov (!%p191_p2), 8  }
   0x7   : > { %s3176_s30 = smov (!%p191_p2), 24   ;;  %s3177_s6 = smov (!%p191_p2), 48  }
   0x8   : > { %s3178_s7 = smov (!%p191_p2), 40   ;;  %s3179_s8 = smov (!%p191_p2), 64  }
   0x9   : > { %s3180_s9 = smov (!%p191_p2), 32   ;;  %s3181_s10 = smov (!%p191_p2), 56  }
   0xb   : > { %vm427_vm0 = vcmask 60416   ;;  %vm430_vm1 = vcmask 57344   ;;  %vm437_vm2 = vsmask.f32 256  ;;  %v3173_v0 = vmov 0   ;;  %s4297_s19 = smov (!%p222_p3, %s2742_s19), 1 }
   0xc   : > { %428 = vst.msk [vmem:[#allocation2] sm:$0xf] %vm427_vm0, %v3173_v0  ;;  %429 = vst.msk [vmem:[#allocation2 + $0x4] sm:$0xf] %vm427_vm0, %v3173_v0  ;;  %vm493_vm3 = vsmask.f32 7938 }
   0xd   : > { %431 = vst.msk [vmem:[#allocation2 + $0x8] sm:$0x1] %vm430_vm1, %v3173_v0  ;;  %435 = vst.msk [vmem:[#allocation2 + $0xd4] sm:$0x1] %vm430_vm1, %v3173_v0  ;;  %v445_v2 = vld [vmem:[#allocation2 + $0x18] sm:$0x1] }
   0xe   : > { %433 = vst.msk [vmem:[#allocation2 + $0xcc] sm:$0xf] %vm427_vm0, %v3173_v0  ;;  %434 = vst.msk [vmem:[#allocation2 + $0xd0] sm:$0xf] %vm427_vm0, %v3173_v0  ;;  %v442_v3 = vld [vmem:[#allocation2 + $0xc] sm:$0x1] }
   0xf   : > { %vm3228_vm4 = vmand %vm430_vm1, %vm437_vm2  ;;  %v448_v6 = vld [vmem:[#allocation2 + $0x24] sm:$0x1]  ;;  %v451_v9 = vld [vmem:[#allocation2 + $0x30] sm:$0x1]  ;;  %s2877_s20 = sshll.u32 %s4297_s19, 7  ;;  %vm1473_vm6 = vcmask 1046528  }
  0x10   : > { %v446_v4 = vsel %vm3228_vm4, 0, %v445_v2  ;;  %v443_v5 = vsel %vm3228_vm4, 0, %v442_v3  ;;  %vm3240_vm5 = vmand %vm430_vm1, %vm493_vm3  ;;  %v449_v8 = vsel %vm3228_vm4, 0, %v448_v6  ;;  %v498_v10 = vld [vmem:[#allocation2 + $0x14] sm:$0x1]  ;;  %v452_v11 = vsel %vm3228_vm4, 0, %v451_v9  ;;  %s3256_s23 = scalar_lea.vmem %s4282_s0, %s2877_s20 }
  0x11   : > { %447 = vst [vmem:[#allocation2 + $0x18] sm:$0x1] %v446_v4  ;;  %444 = vst [vmem:[#allocation2 + $0xc] sm:$0x1] %v443_v5  ;;  %v499_v12 = vsel %vm3240_vm5, 0, %v498_v10  ;;  %v3007_v20 = vld [vmem:[%s3256_s23 + $0x8] sm:$0xff]  }
  0x12   : > { %450 = vst [vmem:[#allocation2 + $0x24] sm:$0x1] %v449_v8  ;;  %v501_v13 = vld [vmem:[#allocation2 + $0x20] sm:$0x1]  ;;  %453 = vst [vmem:[#allocation2 + $0x30] sm:$0x1] %v452_v11  ;;  %v2949_v23 = vunpack.c.l.bf16 %v3007_v20  ;;  %v2950_v24 = vunpack.c.h.bf16 %v3007_v20 }
  0x13   : > { %v3261_v14 = vld [vmem:[%s4283_s1] ss:$0 sm:$0xff]  ;;  %500 = vst [vmem:[#allocation2 + $0x14] sm:$0x1] %v499_v12  ;;  %v502_v15 = vsel %vm3240_vm5, 0, %v501_v13  ;;  %v3008_v22 = vld [vmem:[%s3256_s23 + $0x10] sm:$0xff]   ;;  %vm3306_vm9 = vmand %vm427_vm0, %vm493_vm3 }
  0x14   : > { %v439_v16 = vld [vmem:[#allocation2] sm:$0x1]  ;;  %v495_v17 = vld [vmem:[#allocation2 + $0x8] sm:$0x1]  ;;  %503 = vst [vmem:[#allocation2 + $0x20] sm:$0x1] %v502_v15  ;;  %v2953_v29 = vunpack.c.l.bf16 %v3008_v22  ;;  %v2954_v30 = vunpack.c.h.bf16 %v3008_v22  ;;  %v310_v33 = vmul.f32 %v2949_v23, %v3261_v14  ;;  %v311_v34 = vmul.f32 %v2950_v24, %v3261_v14 }
  0x15   : > { %v440_v18 = vsel %vm3228_vm4, 0, %v439_v16  ;;  %v496_v19 = vsel %vm3240_vm5, 0, %v495_v17  ;;  %v2944_v21 = vld [vmem:[%s3256_s23] sm:$0xff]   ;;  %v3009_v27 = vld [vmem:[%s3256_s23 + $0x18] sm:$0xff]   ;;  %vm1248_vm7 = vsmask.f32 7424 }
  0x16   : > { %441 = vst [vmem:[#allocation2] sm:$0x1] %v440_v18  ;;  %497 = vst [vmem:[#allocation2 + $0x8] sm:$0x1] %v496_v19  ;;  %v2945_v25 = vunpack.c.l.bf16 %v2944_v21  ;;  %v2946_v26 = vunpack.c.h.bf16 %v2944_v21  ;;  %v3276_v28 = vld [vmem:[%s4284_s2] ss:$0 sm:$0xff]  ;;  %v2957_v31 = vunpack.c.l.bf16 %v3009_v27  ;;  %v2958_v32 = vunpack.c.h.bf16 %v3009_v27 }
  0x17   : > { %v312_v37 = vmul.f32 %v2953_v29, %v3261_v14  ;;  %v313_v38 = vmul.f32 %v2954_v30, %v3261_v14  ;;  %v349_v41 = vadd.f32 %v3276_v28, %v310_v33  ;;  %v350_v42 = vadd.f32 %v3276_v28, %v311_v34  ;;  %v3291_v45 = vld [vmem:[%s3256_s23 + $0x20] sm:$0xff]  }
  0x18   : > { %v308_v35 = vmul.f32 %v2945_v25, %v3261_v14  ;;  %v309_v36 = vmul.f32 %v2946_v26, %v3261_v14  ;;  %v314_v39 = vmul.f32 %v2957_v31, %v3261_v14  ;;  %v315_v40 = vmul.f32 %v2958_v32, %v3261_v14  ;;  %v961_v12 = vld [vmem:[#allocation2 + $0x18] sm:$0xf]  ;;  %v954_v24 = vld [vmem:[#allocation2 + $0xc] sm:$0xf] }
  0x19   : > { %vm629_vm8 = vsmask.f32 4368  ;;  %v351_v46 = vadd.f32 %v3276_v28, %v312_v37  ;;  %v352_v47 = vadd.f32 %v3276_v28, %v313_v38  ;;  %v381_v49 = vmax.f32 %v349_v41, 0.0 }
  0x1a   : > { %v347_v43 = vadd.f32 %v3276_v28, %v308_v35  ;;  %v348_v44 = vadd.f32 %v3276_v28, %v309_v36  ;;  %v3296_v48 = vadd.f32 %v3276_v28, %v314_v39  ;;  %v382_v50 = vmax.f32 %v350_v42, 0.0  ;;  %vm3313_vm10 = vmor %vm437_vm2, %vm629_vm8  ;;  %v958_v39 = vld [vmem:[#allocation2 + $0x14] sm:$0x1] }
  0x1b   : > { %v383_v54 = vmax.f32 %v351_v46, 0.0  ;;  %v3299_v55 = vadd.f32 %v3276_v28, %v315_v40  ;;  %v2961_v56 = vunpack.c.l.bf16 %v3291_v45  ;;  %v2962_v57 = vunpack.c.h.bf16 %v3291_v45  ;;  %v504_v46 = vld [vmem:[#allocation2 + $0x2c] sm:$0x1] }
  0x1c   : > { %v379_v51 = vmax.f32 %v347_v43, 0.0  ;;  %v380_v52 = vmax.f32 %v348_v44, 0.0  ;;  %v2881_v59 = vpack.c.bf16 %v381_v49, %v381_v49  ;;  %v2882_v60 = vpack.c.bf16 %v382_v50, %v382_v50  ;;  %v968_v43 = vld [vmem:[#allocation2 + $0x24] sm:$0xf] }
  0x1d   : > { %v3114_v53 = vld [vmem:[#allocation2] sm:$0xff]   ;;  %v3115_v58 = vld [vmem:[#allocation2 + $0x8] ss:$0 sps:$4 sm:$0x11]   ;;  %v384_v3 = vmax.f32 %v352_v47, 0.0  ;;  %v2883_v30 = vpack.c.bf16 %v383_v54, %v383_v54  ;;  %v385_v44 = vmax.f32 %v3296_v48, 0.0 }
  0x1e   : > { %v2879_v61 = vpack.c.bf16 %v379_v51, %v379_v51  ;;  %v2880_v62 = vpack.c.bf16 %v380_v52, %v380_v52  ;;  %v1474_v63 = vrot.slane %v3114_v53, 1  ;;  %v1250_v0 = vshrl.u32 %v3114_v53, 16 }
  0x1f   : > { %v1252_v2 = vshll.u32 %v3114_v53, 16  ;;  %v1475_v4 = vrot.slane %v3115_v58, 1  ;;  %v1257_v5 = vshll.u32 %v3115_v58, 16  ;;  %v649_v6 = vshrl.u32 %v2881_v59, 16 }
  0x20   : > { %v652_v8 = vshll.u32 %v2881_v59, 16  ;;  %v657_v10 = vshrl.u32 %v2882_v60, 16  ;;  %v660_v11 = vshll.u32 %v2882_v60, 16  ;;  %v632_v13 = vshrl.u32 %v2879_v61, 16  ;;  %v965_v59 = vld [vmem:[#allocation2 + $0x20] sm:$0x1] }
  0x21   : > { %v1254_v9 = vrot.slane %v1252_v2, 1  ;;  %v1476_v15 = vsel %vm1473_vm6, %v1474_v63, %v1475_v4  ;;  %v1259_v16 = vrot.slane %v1257_v5, 1  ;;  %v651_v17 = vrot.slane %v649_v6, 7 }
  0x22   : > { %v635_v18 = vshll.u32 %v2879_v61, 16  ;;  %1522 = vrot.lane.b32.xlu1 %v1476_v15, %s3174_s28  ;;  %v659_v21 = vrot.slane %v657_v10, 7  ;;  %v634_v22 = vrot.slane %v632_v13, 7  ;;  %v640_v23 = vshrl.u32 %v2880_v62, 16  ;;  %v454_v13 = vld [vmem:[#allocation2 + $0x3c] sm:$0x1] }
  0x23   : > { %v1255_v20 = vor.u32 %v1254_v9, %v1250_v0  ;;  %v654_v26 = vor.u32 %v652_v8, %v651_v17  ;;  %v655_v27 = vrot.slane %v651_v17, 4  ;;  %v643_v29 = vshll.u32 %v2880_v62, 16  ;;  %v3011_v9 = vld [vmem:[%s3256_s23 + $0x28] sm:$0xff]  }
  0x24   : > { %v662_v32 = vor.u32 %v660_v11, %v659_v21  ;;  %v637_v33 = vor.u32 %v635_v18, %v634_v22  ;;  %v638_v34 = vrot.slane %v634_v22, 4  ;;  %v642_v36 = vrot.slane %v640_v23, 7 }
  0x25   : > { %v1260_v31 = vsel %vm1248_vm7, %v1255_v20, %v1259_v16  ;;  %v962_v35 = vsel %vm3306_vm9, %v654_v26, %v961_v12  ;;  %v2884_v37 = vpack.c.bf16 %v384_v3, %v384_v3  ;;  %v666_v38 = vshrl.u32 %v2883_v30, 16  ;;  %v975_v16 = vld [vmem:[#allocation2 + $0x30] sm:$0xf] }
  0x26   : > { %1441 = vrot.lane.b32.xlu0 %v1260_v31, %s3175_s29  ;;  %v663_v40 = vsel %vm3313_vm10, %v655_v27, %v662_v32  ;;  %963 = vst [vmem:[#allocation2 + $0x18] sm:$0xf] %v962_v35  ;;  %v955_v41 = vsel %vm3306_vm9, %v637_v33, %v954_v24  ;;  %v669_v42 = vshll.u32 %v2883_v30, 16  ;;  %v645_v47 = vor.u32 %v643_v29, %v642_v36 }
  0x27   : > { %964 = vst.msk [vmem:[#allocation2 + $0x1c] sm:$0xf] %vm427_vm0, %v663_v40  ;;  %956 = vst [vmem:[#allocation2 + $0xc] sm:$0xf] %v955_v41  ;;  %v668_v49 = vrot.slane %v666_v38, 7  ;;  %v674_v50 = vshrl.u32 %v2884_v37, 16  ;;  %v2885_v53 = vpack.c.bf16 %v385_v44, %v385_v44  ;;  %v316_v18 = vmul.f32 %v2961_v56, %v3261_v14 }
  0x28   : > { %v677_v51 = vshll.u32 %v2884_v37, 16  ;;  %v386_v52 = vmax.f32 %v3299_v55, 0.0  ;;  %v647_v54 = vrot.slane %v642_v36, 4  ;;  %v664_v58 = vrot.slane %v659_v21, 4  ;;  %v507_v55 = vld [vmem:[#allocation2 + $0x38] sm:$0x1] }
  0x29   : > { %v646_v60 = vsel %vm3313_vm10, %v638_v34, %v645_v47  ;;  %v671_v61 = vor.u32 %v669_v42, %v668_v49  ;;  %v672_v48 = vrot.slane %v668_v49, 4  ;;  %v676_v62 = vrot.slane %v674_v50, 7 }
  0x2a   : > { %957 = vst.msk [vmem:[#allocation2 + $0x10] sm:$0xf] %vm427_vm0, %v646_v60  ;;  %v2886_v63 = vpack.c.bf16 %v386_v52, %v386_v52  ;;  %v683_v0 = vshrl.u32 %v2885_v53, 16  ;;  %v686_v2 = vshll.u32 %v2885_v53, 16  ;;  %v959_v3 = vsel %vm3228_vm4, %v647_v54, %v958_v39  ;;  %v3012_v53 = vld [vmem:[%s3256_s23 + $0x30] sm:$0xff]  }
  0x2b   : > { %v679_v4 = vor.u32 %v677_v51, %v676_v62  ;;  %v969_v5 = vsel %vm3306_vm9, %v671_v61, %v968_v43  ;;  %960 = vst [vmem:[#allocation2 + $0x14] sm:$0x1] %v959_v3  ;;  %v966_v6 = vsel %vm3228_vm4, %v664_v58, %v965_v59  ;;  %v505_v8 = vsel %vm3240_vm5, 0, %v504_v46  ;;  %v510_v51 = vld [vmem:[#allocation2 + $0x44] sm:$0x1] }
  0x2c   : > { %970 = vst [vmem:[#allocation2 + $0x24] sm:$0xf] %v969_v5  ;;  %v685_v10 = vrot.slane %v683_v0, 7  ;;  %v691_v11 = vshrl.u32 %v2886_v63, 16  ;;  %v694_v12 = vshll.u32 %v2886_v63, 16  ;;  %v508_v17 = vsel %vm3240_vm5, 0, %v507_v55 }
  0x2d   : > { %967 = vst [vmem:[#allocation2 + $0x20] sm:$0x1] %v966_v6  ;;  %506 = vst [vmem:[#allocation2 + $0x2c] sm:$0x1] %v505_v8  ;;  %v680_v15 = vsel %vm3313_vm10, %v672_v48, %v679_v4  ;;  %v317_v20 = vmul.f32 %v2962_v57, %v3261_v14  ;;  %v2965_v24 = vunpack.c.l.bf16 %v3011_v9  ;;  %v355_v27 = vadd.f32 %v3276_v28, %v316_v18  ;;  %v457_v55 = vld [vmem:[#allocation2 + $0x48] sm:$0x1] }
  0x2e   : > { %v3350_v21 = vld [vmem:[#allocation2 + $0x18] sm:$0xff]   ;;  %971 = vst.msk [vmem:[#allocation2 + $0x28] sm:$0xf] %vm427_vm0, %v680_v15  ;;  %v688_v22 = vor.u32 %v686_v2, %v685_v10  ;;  %v689_v23 = vrot.slane %v685_v10, 4  ;;  %509 = vst [vmem:[#allocation2 + $0x38] sm:$0x1] %v508_v17  ;;  %v2966_v57 = vunpack.c.h.bf16 %v3011_v9  ;;  %v2969_v4 = vunpack.c.l.bf16 %v3012_v53 }
  0x2f   : > { %v693_v26 = vrot.slane %v691_v11, 7  ;;  %v356_v29 = vadd.f32 %v3276_v28, %v317_v20  ;;  %v455_v56 = vsel %vm3228_vm4, 0, %v454_v13  ;;  %1561 = vrot.lane.b32.xlu1 %v3350_v21, %s3176_s30  ;;  %v681_v32 = vrot.slane %v676_v62, 4 }
  0x30   : > { %v976_v45 = vsel %vm3306_vm9, %v688_v22, %v975_v16  ;;  %456 = vst [vmem:[#allocation2 + $0x3c] sm:$0x1] %v455_v56  ;;  %v387_v33 = vmax.f32 %v355_v27, 0.0  ;;  %v318_v36 = vmul.f32 %v2965_v24, %v3261_v14  ;;  %v1276_v40 = vshll.u32 %v3350_v21, 16 }
  0x31   : > { %v3361_v30 = vld [vmem:[#allocation2 + $0xc] sm:$0xff]   ;;  %v696_v31 = vor.u32 %v694_v12, %v693_v26  ;;  %977 = vst [vmem:[#allocation2 + $0x30] sm:$0xf] %v976_v45  ;;  %v388_v34 = vmax.f32 %v356_v29, 0.0  ;;  %v698_v41 = vrot.slane %v693_v26, 4  ;;  %v319_v42 = vmul.f32 %v2966_v57, %v3261_v14 }
  0x32   : > { %v3363_v35 = vld [vmem:[#allocation2 + $0x14] ss:$0 sps:$4 sm:$0x11]   ;;  %1559 = vrot.lane.b32.xlu0 %v3361_v30, %s3176_s30  ;;  %v2887_v38 = vpack.c.bf16 %v387_v33, %v387_v33  ;;  %v1480_v49 = vrot.slane %v3350_v21, 1  ;;  %v357_v52 = vadd.f32 %v3276_v28, %v318_v36  ;;  %v1477_v54 = vrot.slane %v3361_v30, 1 }
  0x33   : > { %v697_v37 = vsel %vm3313_vm10, %v689_v23, %v696_v31  ;;  %v2888_v46 = vpack.c.bf16 %v388_v34, %v388_v34  ;;  %v1478_v58 = vrot.slane %v3363_v35, 1  ;;  %v1274_v61 = vshrl.u32 %v3350_v21, 16 }
  0x34   : > { %978 = vst.msk [vmem:[#allocation2 + $0x34] sm:$0xf] %vm427_vm0, %v697_v37  ;;  %v972_v39 = vld [vmem:[#allocation2 + $0x2c] sm:$0x1]  ;;  %v700_v47 = vshrl.u32 %v2887_v38, 16  ;;  %v703_v60 = vshll.u32 %v2887_v38, 16  ;;  %v358_v63 = vadd.f32 %v3276_v28, %v319_v42  ;;  %v2970_v26 = vunpack.c.h.bf16 %v3012_v53 }
  0x35   : > { %v3373_v43 = vld [vmem:[#allocation2 + $0x24] sm:$0xff]   ;;  %v973_v44 = vsel %vm3228_vm4, %v681_v32, %v972_v39  ;;  %v979_v50 = vld [vmem:[#allocation2 + $0x38] sm:$0x1]  ;;  %v3121_v59 = vld [vmem:[#allocation2 + $0x20] ss:$0 sps:$4 sm:$0x11]   ;;  %v1479_v12 = vsel %vm1473_vm6, %v1477_v54, %v1478_v58  ;;  %v320_v27 = vmul.f32 %v2969_v4, %v3261_v14 }
  0x36   : > { %974 = vst [vmem:[#allocation2 + $0x2c] sm:$0x1] %v973_v44  ;;  %1680 = vrot.lane.b32.xlu1 %v3373_v43, %s3177_s6  ;;  %1678 = vrot.lane.b32.xlu0 %v3350_v21, %s3177_s6  ;;  %v1278_v48 = vrot.slane %v1276_v40, 1  ;;  %v980_v62 = vsel %vm3228_vm4, %v698_v41, %v979_v50  ;;  %v1262_v0 = vshrl.u32 %v3361_v30, 16  ;;  %v702_v2 = vrot.slane %v700_v47, 7 }
  0x37   : > { %981 = vst [vmem:[#allocation2 + $0x38] sm:$0x1] %v980_v62  ;;  %v708_v3 = vshrl.u32 %v2888_v46, 16  ;;  %v1264_v5 = vshll.u32 %v3361_v30, 16  ;;  %v711_v6 = vshll.u32 %v2888_v46, 16  ;;  %v511_v9 = vsel %vm3240_vm5, 0, %v510_v51 }
  0x38   : > { %v982_v8 = vld [vmem:[#allocation2 + $0x3c] sm:$0xf]  ;;  %v389_v10 = vmax.f32 %v357_v52, 0.0  ;;  %v1481_v13 = vrot.slane %v3121_v59, 1  ;;  %v705_v15 = vor.u32 %v703_v60, %v702_v2  ;;  %v706_v16 = vrot.slane %v702_v2, 4 }
  0x39   : > { %512 = vst [vmem:[#allocation2 + $0x44] sm:$0x1] %v511_v9  ;;  %v710_v17 = vrot.slane %v708_v3, 7  ;;  %v390_v18 = vmax.f32 %v358_v63, 0.0  ;;  %v458_v20 = vsel %vm3228_vm4, 0, %v457_v55  ;;  %v1279_v23 = vor.u32 %v1278_v48, %v1274_v61  ;;  %v3013_v2 = vld [vmem:[%s3256_s23 + $0x38] sm:$0xff]  }
  0x3a   : > { %1563 = vrot.lane.b32.xlu0 %v3373_v43, %s3176_s30  ;;  %v2889_v21 = vpack.c.bf16 %v389_v10, %v389_v10  ;;  %v983_v24 = vsel %vm3306_vm9, %v705_v15, %v982_v8  ;;  %459 = vst [vmem:[#allocation2 + $0x48] sm:$0x1] %v458_v20  ;;  %v1281_v29 = vshll.u32 %v3121_v59, 16  ;;  %v1288_v56 = vshll.u32 %v3373_v43, 16  ;;  %v513_v40 = vld [vmem:[#allocation2 + $0x50] sm:$0x1] }
  0x3b   : > { %v3394_v11 = vld [vmem:[#allocation2 + $0x30] sm:$0xff]   ;;  %v1269_v45 = vshll.u32 %v3363_v35, 16  ;;  %v713_v57 = vor.u32 %v711_v6, %v710_v17  ;;  %984 = vst [vmem:[#allocation2 + $0x3c] sm:$0xf] %v983_v24  ;;  %v1266_v30 = vrot.slane %v1264_v5, 1  ;;  %v715_v31 = vrot.slane %v710_v17, 4 }
  0x3c   : > { %1565 = vrot.lane.b32.xlu1 %v3394_v11, %s3176_s30  ;;  %v2890_v32 = vpack.c.bf16 %v390_v18, %v390_v18  ;;  %v717_v33 = vshrl.u32 %v2889_v21, 16  ;;  %v3412_v34 = vsel %vm1473_vm6, %v1480_v49, %v1481_v13  ;;  %v1483_v36 = vrot.slane %v3373_v43, 1  ;;  %v460_v44 = vld [vmem:[#allocation2 + $0x54] sm:$0x1]  ;;  %v516_v59 = vld [vmem:[#allocation2 + $0x5c] sm:$0x1] }
  0x3d   : > { %v3403_v22 = vld [vmem:[#allocation2 + $0x2c] ss:$0 sps:$4 sm:$0x11]   ;;  %v714_v38 = vsel %vm3313_vm10, %v706_v16, %v713_v57  ;;  %v720_v39 = vshll.u32 %v2889_v21, 16  ;;  %v321_v41 = vmul.f32 %v2970_v26, %v3261_v14  ;;  %v359_v42 = vadd.f32 %v3276_v28, %v320_v27  ;;  %v463_v60 = vld [vmem:[#allocation2 + $0x60] sm:$0x1] }
  0x3e   : > { %1641 = vrot.lane.b32.xlu0 %v1479_v12, %s3178_s7  ;;  %v1484_v37 = vrot.slane %v3403_v22, 1  ;;  %985 = vst.msk [vmem:[#allocation2 + $0x40] sm:$0xf] %vm427_vm0, %v714_v38  ;;  %v719_v35 = vrot.slane %v717_v33, 7  ;;  %v1283_v46 = vrot.slane %v1281_v29, 1  ;;  %v1286_v47 = vshrl.u32 %v3373_v43, 16 }
  0x3f   : > { %v1271_v49 = vrot.slane %v1269_v45, 1  ;;  %v725_v51 = vshrl.u32 %v2890_v32, 16  ;;  %v1290_v52 = vrot.slane %v1288_v56, 1  ;;  %v1267_v53 = vor.u32 %v1266_v30, %v1262_v0  ;;  %v519_v5 = vld [vmem:[#allocation2 + $0x68] sm:$0x1] }
  0x40   : > { %1524 = vrot.lane.b32.xlu1 %v1479_v12, %s3174_s28  ;;  %v986_v50 = vld [vmem:[#allocation2 + $0x44] sm:$0x1]  ;;  %v722_v58 = vor.u32 %v720_v39, %v719_v35  ;;  %v3428_v61 = vsel %vm1473_vm6, %v1483_v36, %v1484_v37  ;;  %v723_v43 = vrot.slane %v719_v35, 4  ;;  %v728_v62 = vshll.u32 %v2890_v32, 16 }
  0x41   : > { %v987_v54 = vsel %vm3228_vm4, %v715_v31, %v986_v50  ;;  %v727_v48 = vrot.slane %v725_v51, 7  ;;  %v989_v63 = vld [vmem:[#allocation2 + $0x48] sm:$0xf]  ;;  %v514_v3 = vsel %vm3240_vm5, 0, %v513_v40  ;;  %v360_v55 = vadd.f32 %v3276_v28, %v321_v41 }
  0x42   : > { %1760 = vrot.lane.b32.xlu0 %v3412_v34, %s3179_s8  ;;  %988 = vst [vmem:[#allocation2 + $0x44] sm:$0x1] %v987_v54  ;;  %v990_v0 = vsel %vm3306_vm9, %v722_v58, %v989_v63  ;;  %v391_v4 = vmax.f32 %v359_v42, 0.0  ;;  %v3439_v6 = vsel %vm1248_vm7, %v1279_v23, %v1283_v46  ;;  %v1293_v8 = vshll.u32 %v3403_v22, 16  ;;  %515 = vst [vmem:[#allocation2 + $0x50] sm:$0x1] %v514_v3 }
  0x43   : > { %v730_v9 = vor.u32 %v728_v62, %v727_v48  ;;  %991 = vst [vmem:[#allocation2 + $0x48] sm:$0xf] %v990_v0  ;;  %v461_v10 = vsel %vm3228_vm4, 0, %v460_v44  ;;  %v392_v12 = vmax.f32 %v360_v55, 0.0  ;;  %v517_v15 = vsel %vm3240_vm5, 0, %v516_v59  ;;  %v3014_v22 = vld [vmem:[%s3256_s23 + $0x40] sm:$0xff]  }
  0x44   : > { %1643 = vrot.lane.b32.xlu1 %v3412_v34, %s3178_s7  ;;  %462 = vst [vmem:[#allocation2 + $0x54] sm:$0x1] %v461_v10  ;;  %v2891_v13 = vpack.c.bf16 %v391_v4, %v391_v4  ;;  %v2973_v16 = vunpack.c.l.bf16 %v3013_v2  ;;  %518 = vst [vmem:[#allocation2 + $0x5c] sm:$0x1] %v517_v15  ;;  %v2974_v18 = vunpack.c.h.bf16 %v3013_v2  ;;  %v464_v20 = vsel %vm3228_vm4, 0, %v463_v60 }
  0x45   : > { %v731_v17 = vsel %vm3313_vm10, %v723_v43, %v730_v9  ;;  %v520_v21 = vsel %vm3240_vm5, 0, %v519_v5  ;;  %v2892_v23 = vpack.c.bf16 %v392_v12, %v392_v12  ;;  %465 = vst [vmem:[#allocation2 + $0x60] sm:$0x1] %v464_v20  ;;  %v1291_v29 = vor.u32 %v1290_v52, %v1286_v47  ;;  %v3464_v36 = vld [vmem:[#allocation2 + $0x38] ss:$0 sps:$4 sm:$0x11]  }
  0x46   : > { %1762 = vrot.lane.b32.xlu0 %v3428_v61, %s3179_s8  ;;  %992 = vst.msk [vmem:[#allocation2 + $0x4c] sm:$0xf] %vm427_vm0, %v731_v17  ;;  %v734_v24 = vshrl.u32 %v2891_v13, 16  ;;  %v737_v26 = vshll.u32 %v2891_v13, 16  ;;  %v322_v27 = vmul.f32 %v2973_v16, %v3261_v14  ;;  %521 = vst [vmem:[#allocation2 + $0x68] sm:$0x1] %v520_v21  ;;  %v323_v57 = vmul.f32 %v2974_v18, %v3261_v14 }
  0x47   : > { %v1295_v56 = vrot.slane %v1293_v8, 1  ;;  %v732_v45 = vrot.slane %v727_v48, 4  ;;  %v2977_v32 = vunpack.c.l.bf16 %v3014_v22  ;;  %v1272_v33 = vsel %vm1248_vm7, %v1267_v53, %v1271_v49  ;;  %v466_v62 = vld [vmem:[#allocation2 + $0x6c] sm:$0x1]  ;;  %v3491_v9 = vld [vmem:[#allocation2 + $0x3c] sm:$0xff]  }
  0x48   : > { %1528 = vrot.lane.b32.xlu1 %v3428_v61, %s3174_s28  ;;  %v736_v30 = vrot.slane %v734_v24, 7  ;;  %v361_v31 = vadd.f32 %v3276_v28, %v322_v27  ;;  %v742_v37 = vshrl.u32 %v2892_v23, 16  ;;  %v745_v38 = vshll.u32 %v2892_v23, 16 }
  0x49   : > { %v362_v35 = vadd.f32 %v3276_v28, %v323_v57  ;;  %v1300_v39 = vshll.u32 %v3394_v11, 16  ;;  %v993_v40 = vld [vmem:[#allocation2 + $0x50] sm:$0x1]  ;;  %v2978_v41 = vunpack.c.h.bf16 %v3014_v22  ;;  %v324_v42 = vmul.f32 %v2977_v32, %v3261_v14 }
  0x4a   : > { %1526 = vrot.lane.b32.xlu0 %v3412_v34, %s3174_s28  ;;  %v739_v34 = vor.u32 %v737_v26, %v736_v30  ;;  %v3472_v44 = vsel %vm1248_vm7, %v1291_v29, %v1295_v56  ;;  %v994_v46 = vsel %vm3228_vm4, %v732_v45, %v993_v40  ;;  %v740_v47 = vrot.slane %v736_v30, 4  ;;  %v3015_v56 = vld [vmem:[%s3256_s23 + $0x48] sm:$0xff]  }
  0x4b   : > { %v744_v49 = vrot.slane %v742_v37, 7  ;;  %v996_v50 = vld [vmem:[#allocation2 + $0x54] sm:$0xf]  ;;  %995 = vst [vmem:[#allocation2 + $0x50] sm:$0x1] %v994_v46  ;;  %v393_v52 = vmax.f32 %v361_v31, 0.0  ;;  %v325_v43 = vmul.f32 %v2978_v41, %v3261_v14  ;;  %v363_v48 = vadd.f32 %v3276_v28, %v324_v42 }
  0x4c   : > { %1608 = vrot.lane.b32.xlu1 %v3439_v6, %s3180_s9  ;;  %v997_v51 = vsel %vm3306_vm9, %v739_v34, %v996_v50  ;;  %v1000_v58 = vld [vmem:[#allocation2 + $0x5c] sm:$0x1]  ;;  %v394_v59 = vmax.f32 %v362_v35, 0.0  ;;  %v1298_v63 = vshrl.u32 %v3394_v11, 16  ;;  %v1302_v2 = vrot.slane %v1300_v39, 1 }
  0x4d   : > { %v747_v53 = vor.u32 %v745_v38, %v744_v49  ;;  %998 = vst [vmem:[#allocation2 + $0x54] sm:$0xf] %v997_v51  ;;  %v749_v54 = vrot.slane %v744_v49, 4  ;;  %v2893_v60 = vpack.c.bf16 %v393_v52, %v393_v52  ;;  %v1305_v0 = vshll.u32 %v3464_v36, 16  ;;  %v1003_v21 = vld [vmem:[#allocation2 + $0x60] sm:$0xf] }
  0x4e   : > { %1443 = vrot.lane.b32.xlu0 %v1272_v33, %s3175_s29  ;;  %v2894_v4 = vpack.c.bf16 %v394_v59, %v394_v59  ;;  %v364_v10 = vadd.f32 %v3276_v28, %v325_v43  ;;  %v395_v12 = vmax.f32 %v363_v48, 0.0  ;;  %v467_v13 = vsel %vm3228_vm4, 0, %v466_v62  ;;  %v1007_v30 = vld [vmem:[#allocation2 + $0x68] sm:$0x1]  ;;  %v522_v46 = vld [vmem:[#allocation2 + $0x74] sm:$0x1] }
  0x4f   : > { %v748_v3 = vsel %vm3313_vm10, %v740_v47, %v747_v53  ;;  %v1001_v55 = vsel %vm3228_vm4, %v749_v54, %v1000_v58  ;;  %v751_v5 = vshrl.u32 %v2893_v60, 16  ;;  %v754_v8 = vshll.u32 %v2893_v60, 16  ;;  %468 = vst [vmem:[#allocation2 + $0x6c] sm:$0x1] %v467_v13  ;;  %v469_v58 = vld [vmem:[#allocation2 + $0x78] sm:$0x1] }
  0x50   : > { %1727 = vrot.lane.b32.xlu1 %v3472_v44, %s3181_s10  ;;  %999 = vst.msk [vmem:[#allocation2 + $0x58] sm:$0xf] %vm427_vm0, %v748_v3  ;;  %1002 = vst [vmem:[#allocation2 + $0x5c] sm:$0x1] %v1001_v55  ;;  %v759_v16 = vshrl.u32 %v2894_v4, 16  ;;  %v762_v17 = vshll.u32 %v2894_v4, 16  ;;  %v1303_v18 = vor.u32 %v1302_v2, %v1298_v63  ;;  %v2895_v23 = vpack.c.bf16 %v395_v12, %v395_v12 }
  0x51   : > { %v753_v15 = vrot.slane %v751_v5, 7  ;;  %v1307_v20 = vrot.slane %v1305_v0, 1  ;;  %v396_v22 = vmax.f32 %v364_v10, 0.0  ;;  %v1486_v24 = vrot.slane %v3394_v11, 1  ;;  %v525_v59 = vld [vmem:[#allocation2 + $0x80] sm:$0x1] }
  0x52   : > { %1606 = vrot.lane.b32.xlu0 %v1272_v33, %s3180_s9  ;;  %v761_v29 = vrot.slane %v759_v16, 7  ;;  %v1487_v45 = vrot.slane %v3464_v36, 1  ;;  %v1312_v57 = vshll.u32 %v3491_v9, 16  ;;  %v768_v32 = vshrl.u32 %v2895_v23, 16  ;;  %v3135_v63 = vld [vmem:[%s4285_s3 + $0x20] ss:$0 sps:$4 sm:$0xff]  }
  0x53   : > { %v756_v26 = vor.u32 %v754_v8, %v753_v15  ;;  %v757_v27 = vrot.slane %v753_v15, 4  ;;  %v2896_v31 = vpack.c.bf16 %v396_v22, %v396_v22  ;;  %v3506_v33 = vld [vmem:[#allocation2 + $0x44] ss:$0 sps:$4 sm:$0x11]   ;;  %v771_v35 = vshll.u32 %v2895_v23, 16  ;;  %v3137_v5 = vld [vmem:[%s4285_s3 + $0x18] sm:$0xff]  }
  0x54   : > { %1445 = vrot.lane.b32.xlu1 %v3439_v6, %s3175_s29  ;;  %v764_v37 = vor.u32 %v762_v17, %v761_v29  ;;  %v766_v38 = vrot.slane %v761_v29, 4  ;;  %v3511_v39 = vsel %vm1248_vm7, %v1303_v18, %v1307_v20  ;;  %v770_v36 = vrot.slane %v768_v32, 7  ;;  %v472_v8 = vld [vmem:[#allocation2 + $0x84] sm:$0x1]  ;;  %v3016_v13 = vld [vmem:[%s3256_s23 + $0x50] sm:$0xff]  }
  0x55   : > { %v776_v40 = vshrl.u32 %v2896_v31, 16  ;;  %v2981_v34 = vunpack.c.l.bf16 %v3015_v56  ;;  %v2982_v47 = vunpack.c.h.bf16 %v3015_v56  ;;  %v1310_v49 = vshrl.u32 %v3491_v9, 16  ;;  %v3138_v23 = vld [vmem:[%s4285_s3 + $0x10] sm:$0xff]   ;;  %v528_v29 = vld [vmem:[#allocation2 + $0x8c] sm:$0x1] }
  0x56   : > { %1725 = vrot.lane.b32.xlu0 %v3439_v6, %s3181_s10  ;;  %v1004_v6 = vsel %vm3306_vm9, %v756_v26, %v1003_v21  ;;  %v765_v41 = vsel %vm3313_vm10, %v757_v27, %v764_v37  ;;  %v1008_v42 = vsel %vm3228_vm4, %v766_v38, %v1007_v30  ;;  %v1314_v50 = vrot.slane %v1312_v57, 1  ;;  %v1010_v52 = vld [vmem:[#allocation2 + $0x6c] sm:$0xf] }
  0x57   : > { %1005 = vst [vmem:[#allocation2 + $0x60] sm:$0xf] %v1004_v6  ;;  %1006 = vst.msk [vmem:[#allocation2 + $0x64] sm:$0xf] %vm427_vm0, %v765_v41  ;;  %v779_v51 = vshll.u32 %v2896_v31, 16  ;;  %v1317_v53 = vshll.u32 %v3506_v33, 16  ;;  %v773_v54 = vor.u32 %v771_v35, %v770_v36  ;;  %v326_v62 = vmul.f32 %v2981_v34, %v3261_v14 }
  0x58   : > { %1447 = vrot.lane.b32.xlu1 %v3472_v44, %s3175_s29  ;;  %1009 = vst [vmem:[#allocation2 + $0x68] sm:$0x1] %v1008_v42  ;;  %v774_v60 = vrot.slane %v770_v36, 4  ;;  %v778_v43 = vrot.slane %v776_v40, 7  ;;  %v523_v48 = vsel %vm3240_vm5, 0, %v522_v46  ;;  %v327_v0 = vmul.f32 %v2982_v47, %v3261_v14  ;;  %v3566_v31 = vld [vmem:[%s3256_s23 + $0x58] sm:$0xff]  }
  0x59   : > { %v1011_v2 = vsel %vm3306_vm9, %v773_v54, %v1010_v52  ;;  %524 = vst [vmem:[#allocation2 + $0x74] sm:$0x1] %v523_v48  ;;  %v1315_v3 = vor.u32 %v1314_v50, %v1310_v49  ;;  %v365_v4 = vadd.f32 %v3276_v28, %v326_v62  ;;  %v470_v10 = vsel %vm3228_vm4, 0, %v469_v58  ;;  %v3140_v35 = vld [vmem:[%s4285_s3 + $0x8] sm:$0xff]   ;;  %v3142_v62 = vld [vmem:[%s4285_s3] sm:$0xff]  }
  0x5a   : > { %1610 = vrot.lane.b32.xlu0 %v3472_v44, %s3180_s9  ;;  %v3524_v44 = vsel %vm1473_vm6, %v1486_v24, %v1487_v45  ;;  %v781_v55 = vor.u32 %v779_v51, %v778_v43  ;;  %1012 = vst [vmem:[#allocation2 + $0x6c] sm:$0xf] %v1011_v2  ;;  %vm2125_vm11 = vcmask 1043456   ;;  %v526_v12 = vsel %vm3240_vm5, 0, %v525_v59  ;;  %471 = vst [vmem:[#allocation2 + $0x78] sm:$0x1] %v470_v10 }
  0x5b   : > { %v1319_v15 = vrot.slane %v1317_v53, 1  ;;  %v397_v17 = vmax.f32 %v365_v4, 0.0  ;;  %3095 = vmatprep.subr.msk.bf16.mxu0 %vm2125_vm11, %v3135_v63  ;;  %v2127_v18 = vsel %vm2125_vm11, %v3135_v63, 0  ;;  %527 = vst [vmem:[#allocation2 + $0x80] sm:$0x1] %v526_v12  ;;  %3096 = vmatprep.subr.msk.bf16.mxu1 %vm2125_vm11, %v3135_v63  ;;  %v783_v20 = vrot.slane %v778_v43, 4 }
  0x5c   : > { %1612 = vrot.lane.b32.xlu1 %v3511_v39, %s3180_s9  ;;  %v782_v16 = vsel %vm3313_vm10, %v774_v60, %v781_v55  ;;  %3044 = vmatpush3.bf16.msra.mxu0 %v2127_v18  ;;  %v2985_v24 = vunpack.c.l.bf16 %v3016_v13  ;;  %v473_v26 = vsel %vm3228_vm4, 0, %v472_v8  ;;  %v2986_v27 = vunpack.c.h.bf16 %v3016_v13  ;;  %v3577_v40 = vld [vmem:[#allocation2 + $0x48] sm:$0xff]   ;;  %v3579_v34 = vld [vmem:[#allocation2 + $0x50] ss:$0 sps:$4 sm:$0x11]  }
  0x5d   : > { %1013 = vst.msk [vmem:[#allocation2 + $0x70] sm:$0xf] %vm427_vm0, %v782_v16  ;;  %v2897_v22 = vpack.c.bf16 %v397_v17, %v397_v17  ;;  %3045 = vmatprep.subr.bf16.mxu0 %v3137_v5  ;;  %3090 = vmatpush3.bf16.msra.mxu1 %v2127_v18  ;;  %474 = vst [vmem:[#allocation2 + $0x84] sm:$0x1] %v473_v26  ;;  %v3563_v56 = vsel %vm1248_vm7, %v1315_v3, %v1319_v15  ;;  %v1489_v32 = vrot.slane %v3491_v9, 1  ;;  %vm1792_vm12 = vcmask 64512  }
  0x5e   : > { %1645 = vrot.lane.b32.xlu0 %v3428_v61, %s3178_s7  ;;  %v366_v61 = vadd.f32 %v3276_v28, %v327_v0  ;;  %3086 = vmatprep.subr.bf16.mxu1 %v3137_v5  ;;  %v1490_v36 = vrot.slane %v3506_v33, 1  ;;  %v328_v42 = vmul.f32 %v2985_v24, %v3261_v14  ;;  %v329_v49 = vmul.f32 %v2986_v27, %v3261_v14  ;;  %v475_v3 = vld [vmem:[#allocation2 + $0x90] sm:$0x1]  ;;  %v531_v55 = vld [vmem:[#allocation2 + $0x98] sm:$0x1] }
  0x5f   : > { %v785_v57 = vshrl.u32 %v2897_v22, 16  ;;  %v788_v30 = vshll.u32 %v2897_v22, 16  ;;  %v529_v33 = vsel %vm3240_vm5, 0, %v528_v29  ;;  %v2989_v14 = vunpack.c.l.bf16 %v3566_v31  ;;  %v3616_v10 = vld [vmem:[%s4283_s1] ss:$0 sm:$0xff] }
  0x60   : > { %1647 = vrot.lane.b32.xlu1 %v3524_v44, %s3178_s7  ;;  %v398_v21 = vmax.f32 %v366_v61, 0.0  ;;  %v1014_v45 = vld [vmem:[#allocation2 + $0x74] sm:$0x1]  ;;  %3046 = vmatpush3.bf16.msra.mxu0 %v3137_v5  ;;  %v367_v53 = vadd.f32 %v3276_v28, %v328_v42  ;;  %530 = vst [vmem:[#allocation2 + $0x8c] sm:$0x1] %v529_v33  ;;  %v368_v59 = vadd.f32 %v3276_v28, %v329_v49  ;;  %v1324_v43 = vshll.u32 %v3577_v40, 16 }
  0x61   : > { %v1015_v37 = vsel %vm3228_vm4, %v783_v20, %v1014_v45  ;;  %v787_v41 = vrot.slane %v785_v57, 7  ;;  %3047 = vmatprep.subr.bf16.mxu0 %v3138_v23  ;;  %3091 = vmatpush3.bf16.msra.mxu1 %v3137_v5  ;;  %v1017_v47 = vld [vmem:[#allocation2 + $0x78] sm:$0xf]  ;;  %v3593_v60 = vsel %vm1473_vm6, %v1489_v32, %v1490_v36  ;;  %v1329_v4 = vshll.u32 %v3579_v34, 16  ;;  %v3018_v5 = vld [vmem:[%s3256_s23 + $0x60] sm:$0xff]  }
  0x62   : > { %1682 = vrot.lane.b32.xlu0 %v3394_v11, %s3177_s6  ;;  %v2898_v11 = vpack.c.bf16 %v398_v21, %v398_v21  ;;  %1016 = vst [vmem:[#allocation2 + $0x74] sm:$0x1] %v1015_v37  ;;  %3087 = vmatprep.subr.bf16.mxu1 %v3138_v23  ;;  %v1021_v52 = vld [vmem:[#allocation2 + $0x80] sm:$0x1]  ;;  %v399_v2 = vmax.f32 %v367_v53, 0.0  ;;  %v400_v0 = vmax.f32 %v368_v59, 0.0  ;;  %v2990_v61 = vunpack.c.h.bf16 %v3566_v31 }
  0x63   : > { %v790_v50 = vor.u32 %v788_v30, %v787_v41  ;;  %v791_v51 = vrot.slane %v787_v41, 4  ;;  %v330_v12 = vmul.f32 %v3616_v10, %v2989_v14  ;;  %v1322_v13 = vshrl.u32 %v3577_v40, 16  ;;  %v3640_v36 = vld [vmem:[#allocation2 + $0x54] sm:$0xff]  }
  0x64   : > { %1684 = vrot.lane.b32.xlu1 %v3491_v9, %s3177_s6  ;;  %v793_v6 = vshrl.u32 %v2898_v11, 16  ;;  %v796_v38 = vshll.u32 %v2898_v11, 16  ;;  %3048 = vmatpush3.bf16.msra.mxu0 %v3138_v23  ;;  %v2900_v8 = vpack.c.bf16 %v400_v0, %v400_v0  ;;  %v1326_v15 = vrot.slane %v1324_v43, 1  ;;  %v3631_v11 = vld [vmem:[%s4284_s2] ss:$0 sm:$0xff]  ;;  %v3019_v0 = vld [vmem:[%s3256_s23 + $0x68] sm:$0xff]  }
  0x65   : > { %v1018_v48 = vsel %vm3306_vm9, %v790_v50, %v1017_v47  ;;  %3049 = vmatprep.subr.bf16.mxu0 %v3140_v35  ;;  %3092 = vmatpush3.bf16.msra.mxu1 %v3138_v23  ;;  %v476_v16 = vsel %vm3228_vm4, 0, %v475_v3  ;;  %v532_v17 = vsel %vm3240_vm5, 0, %v531_v55  ;;  %v1492_v18 = vrot.slane %v3577_v40, 1  ;;  %v1024_v30 = vld [vmem:[#allocation2 + $0x84] sm:$0xf] }
  0x66   : > { %1729 = vrot.lane.b32.xlu0 %v3511_v39, %s3181_s10  ;;  %v795_v46 = vrot.slane %v793_v6, 7  ;;  %1019 = vst [vmem:[#allocation2 + $0x78] sm:$0xf] %v1018_v48  ;;  %3088 = vmatprep.subr.bf16.mxu1 %v3140_v35  ;;  %477 = vst [vmem:[#allocation2 + $0x90] sm:$0x1] %v476_v16  ;;  %v2993_v22 = vunpack.c.l.bf16 %v3018_v5  ;;  %v810_v23 = vshrl.u32 %v2900_v8, 16  ;;  %v331_v26 = vmul.f32 %v3616_v10, %v2990_v61 }
  0x67   : > { %533 = vst [vmem:[#allocation2 + $0x98] sm:$0x1] %v532_v17  ;;  %v813_v24 = vshll.u32 %v2900_v8, 16  ;;  %v369_v27 = vadd.f32 %v3631_v11, %v330_v12  ;;  %v1331_v29 = vrot.slane %v1329_v4, 1  ;;  %v1493_v45 = vrot.slane %v3579_v34, 1 }
  0x68   : > { %1731 = vrot.lane.b32.xlu1 %v3563_v56, %s3181_s10  ;;  %v798_v54 = vor.u32 %v796_v38, %v795_v46  ;;  %v800_v58 = vrot.slane %v795_v46, 4  ;;  %3050 = vmatpush3.bf16.msra.mxu0 %v3140_v35  ;;  %v2994_v31 = vunpack.c.h.bf16 %v3018_v5  ;;  %v1327_v32 = vor.u32 %v1326_v15, %v1322_v13  ;;  %v1028_v6 = vld [vmem:[#allocation2 + $0x8c] sm:$0x1]  ;;  %v3646_v50 = vld [vmem:[#allocation2 + $0x5c] ss:$0 sps:$4 sm:$0x11]  }
  0x69   : > { %3051 = vmatprep.subr.bf16.mxu0 %v3142_v62  ;;  %3093 = vmatpush3.bf16.msra.mxu1 %v3140_v35  ;;  %v812_v37 = vrot.slane %v810_v23, 7  ;;  %v370_v38 = vadd.f32 %v3631_v11, %v331_v26  ;;  %v401_v35 = vmax.f32 %v369_v27, 0.0  ;;  %v332_v34 = vmul.f32 %v3616_v10, %v2993_v22  ;;  %v534_v48 = vld [vmem:[#allocation2 + $0xa4] sm:$0x1] }
  0x6a   : > { %1764 = vrot.lane.b32.xlu0 %v3524_v44, %s3179_s8  ;;  %v799_v28 = vsel %vm3313_vm10, %v791_v51, %v798_v54  ;;  %v1022_v63 = vsel %vm3228_vm4, %v800_v58, %v1021_v52  ;;  %3089 = vmatprep.subr.bf16.mxu1 %v3142_v62  ;;  %v333_v42 = vmul.f32 %v3616_v10, %v2994_v31  ;;  %v478_v58 = vld [vmem:[#allocation2 + $0x9c] sm:$0x1]  ;;  %v1341_v3 = vshll.u32 %v3646_v50, 16 }
  0x6b   : > { %1020 = vst.msk [vmem:[#allocation2 + $0x7c] sm:$0xf] %vm427_vm0, %v799_v28  ;;  %1023 = vst [vmem:[#allocation2 + $0x80] sm:$0x1] %v1022_v63  ;;  %v815_v46 = vor.u32 %v813_v24, %v812_v37  ;;  %v817_v47 = vrot.slane %v812_v37, 4  ;;  %v402_v49 = vmax.f32 %v370_v38, 0.0  ;;  %v2901_v33 = vpack.c.bf16 %v401_v35, %v401_v35 }
  0x6c   : > { %1449 = vrot.lane.b32.xlu1 %v3511_v39, %s3175_s29  ;;  %v2899_v39 = vpack.c.bf16 %v399_v2, %v399_v2  ;;  %3052 = vmatpush3.bf16.msra.mxu0 %v3142_v62  ;;  %v3651_v52 = vsel %vm1473_vm6, %v1492_v18, %v1493_v45  ;;  %v1334_v28 = vshrl.u32 %v3640_v36, 16  ;;  %v371_v63 = vadd.f32 %v3631_v11, %v332_v34 }
  0x6d   : > { %3094 = vmatpush3.bf16.msra.mxu1 %v3142_v62  ;;  %v1029_v54 = vsel %vm3228_vm4, %v817_v47, %v1028_v6  ;;  %v2902_v59 = vpack.c.bf16 %v402_v49, %v402_v49  ;;  %v819_v14 = vshrl.u32 %v2901_v33, 16  ;;  %v822_v43 = vshll.u32 %v2901_v33, 16  ;;  %v1031_v8 = vld [vmem:[#allocation2 + $0x90] sm:$0xf] }
  0x6e   : > { %1766 = vrot.lane.b32.xlu0 %v3593_v60, %s3179_s8  ;;  %v802_v20 = vshrl.u32 %v2899_v39, 16  ;;  %v805_v21 = vshll.u32 %v2899_v39, 16  ;;  %1030 = vst [vmem:[#allocation2 + $0x8c] sm:$0x1] %v1029_v54  ;;  %v3662_v62 = vsel %vm1248_vm7, %v1327_v32, %v1331_v29  ;;  %v372_v2 = vadd.f32 %v3631_v11, %v333_v42  ;;  %v481_v39 = vld [vmem:[#allocation2 + $0xa8] sm:$0x1] }
  0x6f   : > { %v821_v55 = vrot.slane %v819_v14, 7  ;;  %v827_v4 = vshrl.u32 %v2902_v59, 16  ;;  %v830_v5 = vshll.u32 %v2902_v59, 16  ;;  %v403_v61 = vmax.f32 %v371_v63, 0.0  ;;  %v3020_v6 = vld [vmem:[%s3256_s23 + $0x70] sm:$0xff]  }
  0x70   : > { %1451 = vrot.lane.b32.xlu1 %v3563_v56, %s3175_s29  ;;  %v804_v57 = vrot.slane %v802_v20, 7  ;;  %v404_v12 = vmax.f32 %v372_v2, 0.0  ;;  %v479_v13 = vsel %vm3228_vm4, 0, %v478_v58  ;;  %v535_v15 = vsel %vm3240_vm5, 0, %v534_v48  ;;  %v1035_v20 = vld [vmem:[#allocation2 + $0x98] sm:$0x1] }
  0x71   : > { %v825_v17 = vrot.slane %v821_v55, 4  ;;  %v829_v18 = vrot.slane %v827_v4, 7  ;;  %480 = vst [vmem:[#allocation2 + $0x9c] sm:$0x1] %v479_v13  ;;  %536 = vst [vmem:[#allocation2 + $0xa4] sm:$0x1] %v535_v15  ;;  %v2997_v23 = vunpack.c.l.bf16 %v3019_v0  ;;  %v2998_v24 = vunpack.c.h.bf16 %v3019_v0 }
  0x72   : > { %1530 = vrot.lane.b32.xlu0 %v3524_v44, %s3174_s28  ;;  %v807_v44 = vor.u32 %v805_v21, %v804_v57  ;;  %v808_v41 = vrot.slane %v804_v57, 4  ;;  %v2903_v21 = vpack.c.bf16 %v403_v61, %v403_v61  ;;  %v2904_v22 = vpack.c.bf16 %v404_v12, %v404_v12  ;;  %v484_v63 = vld [vmem:[#allocation2 + $0xb4] sm:$0x1] }
  0x73   : > { %v832_v26 = vor.u32 %v830_v5, %v829_v18  ;;  %v834_v29 = vrot.slane %v829_v18, 4  ;;  %v482_v45 = vsel %vm3228_vm4, 0, %v481_v39  ;;  %v1343_v35 = vrot.slane %v1341_v3, 1 }
  0x74   : > { %1532 = vrot.lane.b32.xlu1 %v3593_v60, %s3174_s28  ;;  %v1025_v51 = vsel %vm3306_vm9, %v807_v44, %v1024_v30  ;;  %v816_v53 = vsel %vm3313_vm10, %v808_v41, %v815_v46  ;;  %v836_v57 = vshrl.u32 %v2903_v21, 16  ;;  %v334_v30 = vmul.f32 %v3616_v10, %v2997_v23  ;;  %483 = vst [vmem:[#allocation2 + $0xa8] sm:$0x1] %v482_v45  ;;  %v537_v46 = vld [vmem:[#allocation2 + $0xb0] sm:$0x1] }
  0x75   : > { %1026 = vst [vmem:[#allocation2 + $0x84] sm:$0xf] %v1025_v51  ;;  %1027 = vst.msk [vmem:[#allocation2 + $0x88] sm:$0xf] %vm427_vm0, %v816_v53  ;;  %v833_v31 = vsel %vm3313_vm10, %v825_v17, %v832_v26  ;;  %v839_v32 = vshll.u32 %v2903_v21, 16  ;;  %v844_v37 = vshrl.u32 %v2904_v22, 16  ;;  %v335_v41 = vmul.f32 %v3616_v10, %v2998_v24 }
  0x76   : > { %1567 = vrot.lane.b32.xlu0 %v3491_v9, %s3176_s30  ;;  %v1336_v9 = vshll.u32 %v3640_v36, 16  ;;  %1034 = vst.msk [vmem:[#allocation2 + $0x94] sm:$0xf] %vm427_vm0, %v833_v31  ;;  %v838_v44 = vrot.slane %v836_v57, 7  ;;  %v847_v42 = vshll.u32 %v2904_v22, 16  ;;  %v373_v53 = vadd.f32 %v3631_v11, %v334_v30 }
  0x77   : > { %v846_v34 = vrot.slane %v844_v37, 7  ;;  %v3001_v54 = vunpack.c.l.bf16 %v3020_v6  ;;  %v1495_v58 = vrot.slane %v3640_v36, 1  ;;  %v374_v48 = vadd.f32 %v3631_v11, %v335_v41  ;;  %v3729_v17 = vld [vmem:[#allocation2 + $0x68] ss:$0 sps:$4 sm:$0x11]  }
  0x78   : > { %1569 = vrot.lane.b32.xlu1 %v3577_v40, %s3176_s30  ;;  %v1338_v16 = vrot.slane %v1336_v9, 1  ;;  %v841_v47 = vor.u32 %v839_v32, %v838_v44  ;;  %v842_v49 = vrot.slane %v838_v44, 4  ;;  %v1038_v33 = vld [vmem:[#allocation2 + $0x9c] sm:$0xf]  ;;  %v1042_v51 = vld [vmem:[#allocation2 + $0xa4] sm:$0x1]  ;;  %v3002_v3 = vunpack.c.h.bf16 %v3020_v6 }
  0x79   : > { %v1496_v9 = vrot.slane %v3646_v50, 1  ;;  %v849_v59 = vor.u32 %v847_v42, %v846_v34  ;;  %v851_v14 = vrot.slane %v846_v34, 4  ;;  %v538_v0 = vsel %vm3240_vm5, 0, %v537_v46  ;;  %v540_v45 = vld [vmem:[#allocation2 + $0xbc] sm:$0x1] }
  0x7a   : > { %1614 = vrot.lane.b32.xlu0 %v3563_v56, %s3180_s9  ;;  %v824_v56 = vor.u32 %v822_v43, %v821_v55  ;;  %v1339_v38 = vor.u32 %v1338_v16, %v1334_v28  ;;  %v1039_v43 = vsel %vm3306_vm9, %v841_v47, %v1038_v33  ;;  %v405_v28 = vmax.f32 %v373_v53, 0.0  ;;  %v3714_v55 = vld [vmem:[#allocation2 + $0x60] sm:$0xff]   ;;  %539 = vst [vmem:[#allocation2 + $0xb0] sm:$0x1] %v538_v0 }
  0x7b   : > { %v850_v2 = vsel %vm3313_vm10, %v842_v49, %v849_v59  ;;  %1040 = vst [vmem:[#allocation2 + $0x9c] sm:$0xf] %v1039_v43  ;;  %v1043_v50 = vsel %vm3228_vm4, %v851_v14, %v1042_v51  ;;  %v406_v4 = vmax.f32 %v374_v48, 0.0  ;;  %v336_v39 = vmul.f32 %v3616_v10, %v3001_v54  ;;  %v1045_v26 = vld [vmem:[#allocation2 + $0xa8] sm:$0xf]  ;;  %v3757_v48 = vld [vmem:[#allocation2 + $0x6c] sm:$0xff]  }
  0x7c   : > { %1616 = vrot.lane.b32.xlu1 %v3662_v62, %s3180_s9  ;;  %v1032_v27 = vsel %vm3306_vm9, %v824_v56, %v1031_v8  ;;  %1041 = vst.msk [vmem:[#allocation2 + $0xa0] sm:$0xf] %vm427_vm0, %v850_v2  ;;  %1044 = vst [vmem:[#allocation2 + $0xa4] sm:$0x1] %v1043_v50  ;;  %v2905_v5 = vpack.c.bf16 %v405_v28, %v405_v28  ;;  %v337_v8 = vmul.f32 %v3616_v10, %v3002_v3  ;;  %v487_v33 = vld [vmem:[#allocation2 + $0xc0] sm:$0x1] }
  0x7d   : > { %1033 = vst [vmem:[#allocation2 + $0x90] sm:$0xf] %v1032_v27  ;;  %v485_v61 = vsel %vm3228_vm4, 0, %v484_v63  ;;  %v2906_v12 = vpack.c.bf16 %v406_v4, %v406_v4  ;;  %v375_v16 = vadd.f32 %v3631_v11, %v336_v39  ;;  %v3727_v56 = vsel %vm1473_vm6, %v1495_v58, %v1496_v9  ;;  %v543_v58 = vld [vmem:[#allocation2 + $0xc8] sm:$0x1] }
  0x7e   : > { %1649 = vrot.lane.b32.xlu0 %v3593_v60, %s3178_s7  ;;  %v1036_v60 = vsel %vm3228_vm4, %v834_v29, %v1035_v20  ;;  %v853_v13 = vshrl.u32 %v2905_v5, 16  ;;  %v856_v15 = vshll.u32 %v2905_v5, 16  ;;  %486 = vst [vmem:[#allocation2 + $0xb4] sm:$0x1] %v485_v61  ;;  %v376_v18 = vadd.f32 %v3631_v11, %v337_v8  ;;  %v3021_v20 = vld [vmem:[%s3256_s23 + $0x78] sm:$0xff]  }
  0x7f   : > { %1037 = vst [vmem:[#allocation2 + $0x98] sm:$0x1] %v1036_v60  ;;  %v1346_v21 = vshrl.u32 %v3714_v55, 16  ;;  %v1348_v22 = vshll.u32 %v3714_v55, 16  ;;  %v861_v24 = vshrl.u32 %v2906_v12, 16  ;;  %v407_v27 = vmax.f32 %v375_v16, 0.0 }
  0x80   : > { %1651 = vrot.lane.b32.xlu1 %v3651_v52, %s3178_s7  ;;  %v855_v23 = vrot.slane %v853_v13, 7  ;;  %v408_v29 = vmax.f32 %v376_v18, 0.0  ;;  %v864_v30 = vshll.u32 %v2906_v12, 16  ;;  %v3005_v31 = vunpack.c.l.bf16 %v3021_v20  ;;  %v490_v12 = vld [vmem:[#allocation2 + $0xcc] sm:$0x1] }
  0x81   : > { %v3006_v60 = vunpack.c.h.bf16 %v3021_v20  ;;  %v1353_v32 = vshll.u32 %v3729_v17, 16  ;;  %v863_v37 = vrot.slane %v861_v24, 7  ;;  %v2907_v6 = vpack.c.bf16 %v407_v27, %v407_v27  ;;  %v1049_v34 = vld [vmem:[#allocation2 + $0xb0] sm:$0x1] }
  0x82   : > { %1686 = vrot.lane.b32.xlu0 %v3577_v40, %s3177_s6  ;;  %v3701_v40 = vsel %vm1248_vm7, %v1339_v38, %v1343_v35  ;;  %v858_v57 = vor.u32 %v856_v15, %v855_v23  ;;  %v2908_v38 = vpack.c.bf16 %v408_v29, %v408_v29  ;;  %v1350_v35 = vrot.slane %v1348_v22, 1  ;;  %v3133_v22 = vld [vmem:[#allocation2 + $0x74] ss:$0 sps:$4 sm:$0x11]  }
  0x83   : > { %v859_v44 = vrot.slane %v855_v23, 4  ;;  %v541_v41 = vsel %vm3240_vm5, 0, %v540_v45  ;;  %v866_v42 = vor.u32 %v864_v30, %v863_v37  ;;  %v868_v46 = vrot.slane %v863_v37, 4 }
  0x84   : > { %1688 = vrot.lane.b32.xlu1 %v3640_v36, %s3177_s6  ;;  %542 = vst [vmem:[#allocation2 + $0xbc] sm:$0x1] %v541_v41  ;;  %v338_v47 = vmul.f32 %v3616_v10, %v3005_v31  ;;  %v339_v49 = vmul.f32 %v3616_v10, %v3006_v60  ;;  %v870_v51 = vshrl.u32 %v2907_v6, 16  ;;  %v873_v53 = vshll.u32 %v2907_v6, 16 }
  0x85   : > { %v878_v54 = vshrl.u32 %v2908_v38, 16  ;;  %v1351_v9 = vor.u32 %v1350_v35, %v1346_v21  ;;  %v1355_v59 = vrot.slane %v1353_v32, 1  ;;  %v867_v14 = vsel %vm3313_vm10, %v859_v44, %v866_v42  ;;  %v1052_v2 = vld [vmem:[#allocation2 + $0xb4] sm:$0xf] }
  0x86   : > { %1733 = vrot.lane.b32.xlu0 %v3662_v62, %s3181_s10  ;;  %v1050_v43 = vsel %vm3228_vm4, %v868_v46, %v1049_v34  ;;  %v1498_v10 = vrot.slane %v3714_v55, 1  ;;  %1048 = vst.msk [vmem:[#allocation2 + $0xac] sm:$0xf] %vm427_vm0, %v867_v14  ;;  %v881_v63 = vshll.u32 %v2908_v38, 16  ;;  %v377_v50 = vadd.f32 %v3631_v11, %v338_v47  ;;  %v546_v21 = vld [vmem:[#allocation2 + $0xd4] sm:$0x1] }
  0x87   : > { %1051 = vst [vmem:[#allocation2 + $0xb0] sm:$0x1] %v1050_v43  ;;  %v880_v28 = vrot.slane %v878_v54, 7  ;;  %v378_v0 = vadd.f32 %v3631_v11, %v339_v49  ;;  %v488_v3 = vsel %vm3228_vm4, 0, %v487_v33  ;;  %v544_v4 = vsel %vm3240_vm5, 0, %v543_v58 }
  0x88   : > { %1735 = vrot.lane.b32.xlu1 %v3701_v40, %s3181_s10  ;;  %v1499_v5 = vrot.slane %v3729_v17, 1  ;;  %489 = vst [vmem:[#allocation2 + $0xc0] sm:$0x1] %v488_v3  ;;  %545 = vst [vmem:[#allocation2 + $0xc8] sm:$0x1] %v544_v4  ;;  %v3770_v13 = vsel %vm1248_vm7, %v1351_v9, %v1355_v59  ;;  %v409_v16 = vmax.f32 %v377_v50, 0.0 }
  0x89   : > { %v883_v61 = vor.u32 %v881_v63, %v880_v28  ;;  %v885_v11 = vrot.slane %v880_v28, 4  ;;  %v1360_v18 = vshll.u32 %v3757_v48, 16  ;;  %v410_v20 = vmax.f32 %v378_v0, 0.0  ;;  %v3823_v59 = vld [vmem:[#allocation2 + $0x78] sm:$0xff]  }
  0x8a   : > { %1768 = vrot.lane.b32.xlu0 %v3651_v52, %s3179_s8  ;;  %v2909_v24 = vpack.c.bf16 %v409_v16, %v409_v16  ;;  %v547_v27 = vsel %vm3240_vm5, 0, %v546_v21  ;;  %v1358_v7 = vshrl.u32 %v3757_v48, 16  ;;  %v1365_v6 = vshll.u32 %v3133_v22, 16  ;;  %v3141_v16 = vld [vmem:[#allocation2 + $0x8c] ss:$0 sps:$4 sm:$0x11]  }
  0x8b   : > { %v1056_v15 = vld [vmem:[#allocation2 + $0xbc] sm:$0x1]  ;;  %v2910_v29 = vpack.c.bf16 %v410_v20, %v410_v20  ;;  %548 = vst [vmem:[#allocation2 + $0xd4] sm:$0x1] %v547_v27  ;;  %v1362_v37 = vrot.slane %v1360_v18, 1  ;;  %v1501_v25 = vrot.slane %v3757_v48, 1 }
  0x8c   : > { %1453 = vrot.lane.b32.xlu1 %v3662_v62, %s3175_s29  ;;  %v1046_v62 = vsel %vm3306_vm9, %v858_v57, %v1045_v26  ;;  %v1057_v23 = vsel %vm3228_vm4, %v885_v11, %v1056_v15  ;;  %v491_v26 = vsel %vm3228_vm4, 0, %v490_v12  ;;  %v887_v45 = vshrl.u32 %v2909_v24, 16 }
  0x8d   : > { %1047 = vst [vmem:[#allocation2 + $0xa8] sm:$0xf] %v1046_v62  ;;  %1058 = vst [vmem:[#allocation2 + $0xbc] sm:$0x1] %v1057_v23  ;;  %v1500_v57 = vsel %vm1473_vm6, %v1498_v10, %v1499_v5  ;;  %v890_v31 = vshll.u32 %v2909_v24, 16  ;;  %v895_v60 = vshrl.u32 %v2910_v29, 16  ;;  %v1363_v46 = vor.u32 %v1362_v37, %v1358_v7 }
  0x8e   : > { %1770 = vrot.lane.b32.xlu0 %v3727_v56, %s3179_s8  ;;  %492 = vst [vmem:[#allocation2 + $0xcc] sm:$0x1] %v491_v26  ;;  %v898_v32 = vshll.u32 %v2910_v29, 16  ;;  %v1367_v47 = vrot.slane %v1365_v6, 1  ;;  %v1502_v58 = vrot.slane %v3133_v22, 1  ;;  %v1504_v11 = vrot.slane %v3823_v59, 1 }
  0x8f   : > { %v897_v35 = vrot.slane %v895_v60, 7  ;;  %v1059_v44 = vld [vmem:[#allocation2 + $0xc0] sm:$0xf]  ;;  %v1063_v42 = vld [vmem:[#allocation2 + $0xc8] sm:$0x1]  ;;  %v1389_v23 = vshll.u32 %v3141_v16, 16 }
  0x90   : > { %1455 = vrot.lane.b32.xlu1 %v3701_v40, %s3175_s29  ;;  %v1368_v54 = vsel %vm1248_vm7, %v1363_v46, %v1367_v47  ;;  %v1503_v14 = vsel %vm1473_vm6, %v1501_v25, %v1502_v58  ;;  %v3136_v10 = vld [vmem:[#allocation2 + $0x80] ss:$0 sps:$4 sm:$0x11]   ;;  %vm1825_vm13 = vcmask 130048   ;;  %vm1858_vm14 = vcmask 195584  }
  0x91   : > { %v900_v34 = vor.u32 %v898_v32, %v897_v35  ;;  %v902_v33 = vrot.slane %v897_v35, 4  ;;  %v1377_v0 = vshll.u32 %v3136_v10, 16  ;;  %v1505_v15 = vrot.slane %v3136_v10, 1  ;;  %v3157_v26 = vld [vmem:[#allocation2] sm:$0xff]  }
  0x92   : > { %1534 = vrot.lane.b32.xlu0 %v3651_v52, %s3174_s28  ;;  %v872_v52 = vrot.slane %v870_v51, 7  ;;  %vm1891_vm15 = vcmask 261120   ;;  %v1391_v60 = vrot.slane %v1389_v23, 1  ;;  %vm1924_vm1 = vcmask 326656  }
  0x93   : > { %v3860_v20 = vsel %vm1473_vm6, %v1504_v11, %v1505_v15  ;;  %vm1957_vm2 = vcmask 392192   ;;  %vm1990_vm3 = vcmask 457728   ;;  %vm2092_vm5 = vcmask 588800   ;;  %v3918_v15 = vld [vmem:[#allocation2 + $0x9c] sm:$0xff]  }
  0x94   : > { %1536 = vrot.lane.b32.xlu1 %v3727_v56, %s3174_s28  ;;  %v875_v39 = vor.u32 %v873_v53, %v872_v52  ;;  %v876_v8 = vrot.slane %v872_v52, 4  ;;  %v3791_v30 = vpop.permute.xlu1 %1522  ;;  %v1064_v53 = vsel %vm3228_vm4, %v902_v33, %v1063_v42  ;;  %v1372_v52 = vshll.u32 %v3823_v59, 16 }
  0x95   : > { %1065 = vst [vmem:[#allocation2 + $0xc8] sm:$0x1] %v1064_v53  ;;  %vm2023_vm4 = vcmask 523264   ;;  %v3895_v53 = vld [vmem:[#allocation2 + $0x90] sm:$0xff]  }
  0x96   : > { %1571 = vrot.lane.b32.xlu0 %v3640_v36, %s3176_s30  ;;  %v884_v36 = vsel %vm3313_vm10, %v876_v8, %v883_v61  ;;  %v1053_v17 = vsel %vm3306_vm9, %v875_v39, %v1052_v2  ;;  %v1370_v2 = vshrl.u32 %v3823_v59, 16  ;;  %v1374_v50 = vrot.slane %v1372_v52, 1  ;;  %v3841_v8 = vld [vmem:[#allocation2 + $0x84] sm:$0xff]  }
  0x97   : > { %1054 = vst [vmem:[#allocation2 + $0xb4] sm:$0xf] %v1053_v17  ;;  %1055 = vst.msk [vmem:[#allocation2 + $0xb8] sm:$0xf] %vm427_vm0, %v884_v36  ;;  %v1379_v39 = vrot.slane %v1377_v0, 1  ;;  %v1384_v18 = vshll.u32 %v3841_v8, 16 }
  0x98   : > { %1573 = vrot.lane.b32.xlu1 %v3714_v55, %s3176_s30  ;;  %v3796_v38 = vpop.permute.xlu0 %1441  ;;  %v1375_v5 = vor.u32 %v1374_v50, %v1370_v2  ;;  %v1382_v21 = vshrl.u32 %v3841_v8, 16  ;;  %v1507_v47 = vrot.slane %v3841_v8, 1  ;;  %v3159_v0 = vld [vmem:[#allocation2 + $0x18] sm:$0xff]  }
  0x99   : > { %v1386_v22 = vrot.slane %v1384_v18, 1  ;;  %v1794_v27 = vsel %vm1792_vm12, %v3157_v26, %v3796_v38  ;;  %v3146_v26 = vld [vmem:[#allocation2 + $0xa4] ss:$0 sps:$4 sm:$0x11]  }
  0x9a   : > { %1618 = vrot.lane.b32.xlu0 %v3701_v40, %s3180_s9  ;;  %v889_v40 = vrot.slane %v887_v45, 7  ;;  %v3158_v45 = vld [vmem:[#allocation2 + $0xc] sm:$0xff]   ;;  %v1827_v37 = vsel %vm1825_vm13, %v1794_v27, %v3791_v30  ;;  %v1408_v27 = vshll.u32 %v3918_v15, 16 }
  0x9c   : > { %1620 = vrot.lane.b32.xlu1 %v3770_v13, %s3180_s9  ;;  %v892_v62 = vor.u32 %v890_v31, %v889_v40  ;;  %v893_v41 = vrot.slane %v889_v40, 4  ;;  %v1387_v31 = vor.u32 %v1386_v22, %v1382_v21 }
  0x9e   : > { %1653 = vrot.lane.b32.xlu0 %v3727_v56, %s3178_s7  ;;  %v1060_v49 = vsel %vm3306_vm9, %v892_v62, %v1059_v44  ;;  %v901_v51 = vsel %vm3313_vm10, %v893_v41, %v900_v34  ;;  %v1392_v62 = vsel %vm1248_vm7, %v1387_v31, %v1391_v60 }
  0x9f   : > { %1061 = vst [vmem:[#allocation2 + $0xc0] sm:$0xf] %v1060_v49  ;;  %1062 = vst.msk [vmem:[#allocation2 + $0xc4] sm:$0xf] %vm427_vm0, %v901_v51  ;;  %v1508_v49 = vrot.slane %v3141_v16, 1 }
  0xa0   : > { %1655 = vrot.lane.b32.xlu1 %v1500_v57, %s3178_s7 }
  0xa1   : > { %v3803_v56 = vpop.permute.xlu1 %1561  ;;  %v1509_v58 = vsel %vm1473_vm6, %v1507_v47, %v1508_v49 }
  0xa2   : > { %1690 = vrot.lane.b32.xlu0 %v3714_v55, %s3177_s6 }
  0xa4   : > { %1692 = vrot.lane.b32.xlu1 %v3757_v48, %s3177_s6  ;;  %v3812_v19 = vpop.permute.xlu0 %1559 }
  0xa5   : > { %v1860_v40 = vsel %vm1858_vm14, %v1827_v37, %v3812_v19  ;;  %v1410_v37 = vrot.slane %v1408_v27, 1 }
  0xa6   : > { %1737 = vrot.lane.b32.xlu0 %v3770_v13, %s3181_s10 }
  0xa8   : > { %1739 = vrot.lane.b32.xlu1 %v1368_v54, %s3181_s10  ;;  %v3819_v9 = vpop.permute.xlu1 %1680  ;;  %v3821_v1 = vpop.permute.xlu0 %1678 }
  0xaa   : > { %1772 = vrot.lane.b32.xlu0 %v1500_v57, %s3179_s8 }
  0xac   : > { %1457 = vrot.lane.b32.xlu1 %v3770_v13, %s3175_s29  ;;  %v3829_v43 = vpop.permute.xlu0 %1563  ;;  %v3848_v13 = vsel %vm1248_vm7, %v1375_v5, %v1379_v39  ;;  %v3160_v5 = vld [vmem:[#allocation2 + $0x24] sm:$0xff]  }
  0xae   : > { %v3832_v28 = vpop.permute.xlu1 %1565  ;;  %1774 = vrot.lane.b32.xlu0 %v1503_v14, %s3179_s8 }
  0xb0   : > { %1459 = vrot.lane.b32.xlu1 %v1368_v54, %s3175_s29  ;;  %v1642_v63 = vpop.permute.xlu0 %1641 }
  0xb2   : > { %v1525_v3 = vpop.permute.xlu1 %1524  ;;  %1538 = vrot.lane.b32.xlu0 %v1500_v57, %s3174_s28 }
  0xb4   : > { %1540 = vrot.lane.b32.xlu1 %v1503_v14, %s3174_s28  ;;  %v3839_v4 = vpop.permute.xlu0 %1760 }
  0xb6   : > { %v1644_v61 = vpop.permute.xlu1 %1643  ;;  %1575 = vrot.lane.b32.xlu0 %v3757_v48, %s3176_s30 }
  0xb8   : > { %1577 = vrot.lane.b32.xlu1 %v3823_v59, %s3176_s30  ;;  %v1763_v12 = vpop.permute.xlu0 %1762 }
  0xba   : > { %v3852_v36 = vpop.permute.xlu1 %1528  ;;  %1622 = vrot.lane.b32.xlu0 %v1368_v54, %s3180_s9 }
  0xbc   : > { %1624 = vrot.lane.b32.xlu1 %v3848_v13, %s3180_s9  ;;  %v3857_v17 = vpop.permute.xlu0 %1526 }
  0xbe   : > { %v1609_v24 = vpop.permute.xlu1 %1608  ;;  %1657 = vrot.lane.b32.xlu0 %v1503_v14, %s3178_s7  ;;  %v1396_v14 = vshll.u32 %v3895_v53, 16 }
  0xc0   : > { %1659 = vrot.lane.b32.xlu1 %v3860_v20, %s3178_s7  ;;  %v1444_v29 = vpop.permute.xlu0 %1443  ;;  %v1398_v2 = vrot.slane %v1396_v14, 1 }
  0xc1   : > { %v1796_v57 = vsel %vm1792_vm12, %v3158_v45, %v1444_v29 }
  0xc2   : > { %v1728_v32 = vpop.permute.xlu1 %1727  ;;  %v1829_v7 = vsel %vm1825_vm13, %v1796_v57, %v1525_v3  ;;  %1694 = vrot.lane.b32.xlu0 %v3823_v59, %s3177_s6 }
  0xc3   : > { %v1862_v6 = vsel %vm1858_vm14, %v1829_v7, %v3803_v56 }
  0xc4   : > { %v1895_v38 = vsel %vm1891_vm15, %v1862_v6, %v1609_v24  ;;  %1696 = vrot.lane.b32.xlu1 %v3841_v8, %s3177_s6  ;;  %v1607_v35 = vpop.permute.xlu0 %1606  ;;  %v1413_v6 = vshll.u32 %v3146_v26, 16 }
  0xc5   : > { %v1893_v44 = vsel %vm1891_vm15, %v1860_v40, %v1607_v35  ;;  %v1928_v30 = vsel %vm1924_vm1, %v1895_v38, %v1644_v61 }
  0xc6   : > { %v1446_v41 = vpop.permute.xlu1 %1445  ;;  %v1926_v34 = vsel %vm1924_vm1, %v1893_v44, %v1642_v63  ;;  %1741 = vrot.lane.b32.xlu0 %v3848_v13, %s3181_s10  ;;  %v1961_v42 = vsel %vm1957_vm2, %v1928_v30, %v3819_v9  ;;  %v1394_v63 = vshrl.u32 %v3895_v53, 16 }
  0xc7   : > { %v1959_v46 = vsel %vm1957_vm2, %v1926_v34, %v3821_v1  ;;  %v1994_v56 = vsel %vm1990_vm3, %v1961_v42, %v1728_v32  ;;  %v3144_v1 = vld [vmem:[#allocation2 + $0x98] ss:$0 sps:$4 sm:$0x11]   ;;  %v1798_v3 = vsel %vm1792_vm12, %v3159_v0, %v1446_v41  ;;  %v1406_v32 = vshrl.u32 %v3918_v15, 16 }
  0xc8   : > { %1743 = vrot.lane.b32.xlu1 %v1392_v62, %s3181_s10  ;;  %v1726_v33 = vpop.permute.xlu0 %1725  ;;  %v2027_v25 = vsel %vm2023_vm4, %v1994_v56, %v1763_v12  ;;  %v1401_v50 = vshll.u32 %v3144_v1, 16  ;;  %v1831_v12 = vsel %vm1825_vm13, %v1798_v3, %v3857_v17  ;;  %v1510_v17 = vrot.slane %v3895_v53, 1 }
  0xc9   : > { %v1992_v51 = vsel %vm1990_vm3, %v1959_v46, %v1726_v33  ;;  %v1511_v22 = vrot.slane %v3144_v1, 1  ;;  %v1411_v41 = vor.u32 %v1410_v37, %v1406_v32  ;;  %v1415_v34 = vrot.slane %v1413_v6, 1 }
  0xca   : > { %v1448_v19 = vpop.permute.xlu1 %1447  ;;  %1776 = vrot.lane.b32.xlu0 %v3860_v20, %s3179_s8  ;;  %v2025_v54 = vsel %vm2023_vm4, %v1992_v51, %v3839_v4  ;;  %v1403_v11 = vrot.slane %v1401_v50, 1  ;;  %v1513_v33 = vrot.slane %v3918_v15, 1  ;;  %v1514_v56 = vrot.slane %v3146_v26, 1 }
  0xcb   : > { %3053 = vmatprep.mubr.msk.bf16.mxu0 %vm2092_vm5, %v2025_v54  ;;  %v1800_v39 = vsel %vm1792_vm12, %v3160_v5, %v1448_v19  ;;  %v1512_v60 = vsel %vm1473_vm6, %v1510_v17, %v1511_v22  ;;  %v1416_v47 = vsel %vm1248_vm7, %v1411_v41, %v1415_v34  ;;  %v3959_v19 = vld [vmem:[#allocation2 + $0xa8] sm:$0xff]   ;;  %v3970_v5 = vld [vmem:[#allocation2 + $0xb4] sm:$0xff]   ;;  %v3150_v22 = vld [vmem:[#allocation2 + $0xbc] ss:$0 sps:$4 sm:$0x11]  }
  0xcc   : > { %1461 = vrot.lane.b32.xlu1 %v3848_v13, %s3175_s29  ;;  %3054 = vmatmul.mubr.msk.bf16.vlgmr.msra.gmra.mxu0 %vm2092_vm5, %v2027_v25  ;;  %v1611_v9 = vpop.permute.xlu0 %1610  ;;  %v1399_v13 = vor.u32 %v1398_v2, %v1394_v63  ;;  %v1833_v18 = vsel %vm1825_vm13, %v1800_v39, %v3852_v36  ;;  %v1515_v25 = vsel %vm1473_vm6, %v1513_v33, %v1514_v56  ;;  %v1420_v1 = vshll.u32 %v3959_v19, 16  ;;  %v3161_v39 = vld [vmem:[#allocation2 + $0x30] sm:$0xff]  }
  0xcd   : > { %v1866_v36 = vsel %vm1858_vm14, %v1833_v18, %v3832_v28  ;;  %v1516_v18 = vrot.slane %v3959_v19, 1  ;;  %v1430_v32 = vshrl.u32 %v3970_v5, 16  ;;  %v1437_v6 = vshll.u32 %v3150_v22, 16 }
  0xce   : > { %v1613_v10 = vpop.permute.xlu1 %1612  ;;  %1778 = vrot.lane.b32.xlu0 %v1509_v58, %s3179_s8  ;;  %v1404_v24 = vsel %vm1248_vm7, %v1399_v13, %v1403_v11  ;;  %v1422_v63 = vrot.slane %v1420_v1, 1  ;;  %v1519_v33 = vrot.slane %v3970_v5, 1  ;;  %v1520_v56 = vrot.slane %v3150_v22, 1  ;;  %v3152_v1 = vld [vmem:[#allocation2 + $0xc8] ss:$0 sps:$4 sm:$0x11]  }
  0xcf   : > { %v1899_v7 = vsel %vm1891_vm15, %v1866_v36, %v1613_v10  ;;  %v1439_v34 = vrot.slane %v1437_v6, 1 }
  0xd0   : > { %1463 = vrot.lane.b32.xlu1 %v1392_v62, %s3175_s29  ;;  %v1646_v52 = vpop.permute.xlu0 %1645 }
  0xd2   : > { %v1648_v4 = vpop.permute.xlu1 %1647  ;;  %1542 = vrot.lane.b32.xlu0 %v3860_v20, %s3174_s28  ;;  %v1864_v20 = vsel %vm1858_vm14, %v1831_v12, %v3829_v43 }
  0xd3   : > { %v1897_v23 = vsel %vm1891_vm15, %v1864_v20, %v1611_v9  ;;  %v1932_v40 = vsel %vm1924_vm1, %v1899_v7, %v1648_v4  ;;  %v3148_v9 = vld [vmem:[#allocation2 + $0xb0] ss:$0 sps:$4 sm:$0x11]  }
  0xd4   : > { %1544 = vrot.lane.b32.xlu1 %v1509_v58, %s3174_s28  ;;  %v1683_v61 = vpop.permute.xlu0 %1682  ;;  %v1930_v29 = vsel %vm1924_vm1, %v1897_v23, %v1646_v52  ;;  %v1418_v52 = vshrl.u32 %v3959_v19, 16  ;;  %v1425_v2 = vshll.u32 %v3148_v9, 16  ;;  %v1517_v20 = vrot.slane %v3148_v9, 1 }
  0xd5   : > { %v1963_v45 = vsel %vm1957_vm2, %v1930_v29, %v1683_v61  ;;  %v1432_v23 = vshll.u32 %v3970_v5, 16 }
  0xd6   : > { %v1685_v16 = vpop.permute.xlu1 %1684  ;;  %1579 = vrot.lane.b32.xlu0 %v3841_v8, %s3176_s30  ;;  %v1423_v3 = vor.u32 %v1422_v63, %v1418_v52  ;;  %v1427_v4 = vrot.slane %v1425_v2, 1 }
  0xd7   : > { %v1965_v35 = vsel %vm1957_vm2, %v1932_v40, %v1685_v16  ;;  %v1434_v37 = vrot.slane %v1432_v23, 1 }
  0xd8   : > { %1581 = vrot.lane.b32.xlu1 %v3895_v53, %s3176_s30  ;;  %v1730_v21 = vpop.permute.xlu0 %1729  ;;  %v1428_v17 = vsel %vm1248_vm7, %v1423_v3, %v1427_v4  ;;  %v3153_v4 = vld [vmem:[#allocation2 + $0xcc] sm:$0xff]  }
  0xd9   : > { %v1996_v57 = vsel %vm1990_vm3, %v1963_v45, %v1730_v21  ;;  %v1435_v41 = vor.u32 %v1434_v37, %v1430_v32 }
  0xda   : > { %v1732_v43 = vpop.permute.xlu1 %1731  ;;  %1626 = vrot.lane.b32.xlu0 %v1392_v62, %s3180_s9 }
  0xdb   : > { %v1998_v44 = vsel %vm1990_vm3, %v1965_v35, %v1732_v43 }
  0xdc   : > { %1628 = vrot.lane.b32.xlu1 %v1404_v24, %s3180_s9  ;;  %v1765_v31 = vpop.permute.xlu0 %1764 }
  0xdd   : > { %v2029_v28 = vsel %vm2023_vm4, %v1996_v57, %v1765_v31 }
  0xde   : > { %v1450_v38 = vpop.permute.xlu1 %1449  ;;  %1661 = vrot.lane.b32.xlu0 %v1509_v58, %s3178_s7  ;;  %3057 = vmatprep.mubr.msk.bf16.mxu0 %vm2092_vm5, %v2029_v28 }
  0xdf   : > { %v1802_v61 = vsel %vm1792_vm12, %v3161_v39, %v1450_v38 }
  0xe0   : > { %1663 = vrot.lane.b32.xlu1 %v1512_v60, %s3178_s7  ;;  %v1767_v62 = vpop.permute.xlu0 %1766 }
  0xe1   : > { %v2031_v30 = vsel %vm2023_vm4, %v1998_v44, %v1767_v62 }
  0xe2   : > { %v1452_v42 = vpop.permute.xlu1 %1451  ;;  %1698 = vrot.lane.b32.xlu0 %v3895_v53, %s3177_s6  ;;  %3058 = vmatmul.mubr.msk.bf16.gmra.mxu0 %vm2092_vm5, %v2031_v30 }
  0xe4   : > { %1700 = vrot.lane.b32.xlu1 %v3918_v15, %s3177_s6  ;;  %v1531_v46 = vpop.permute.xlu0 %1530 }
  0xe5   : > { %v1835_v13 = vsel %vm1825_vm13, %v1802_v61, %v1531_v46 }
  0xe6   : > { %v1533_v49 = vpop.permute.xlu1 %1532  ;;  %1745 = vrot.lane.b32.xlu0 %v1404_v24, %s3181_s10 }
  0xe8   : > { %1747 = vrot.lane.b32.xlu1 %v1416_v47, %s3181_s10  ;;  %v1568_v51 = vpop.permute.xlu0 %1567 }
  0xe9   : > { %v1868_v11 = vsel %vm1858_vm14, %v1835_v13, %v1568_v51 }
  0xea   : > { %v1570_v54 = vpop.permute.xlu1 %1569  ;;  %1780 = vrot.lane.b32.xlu0 %v1512_v60, %s3179_s8 }
  0xec   : > { %1465 = vrot.lane.b32.xlu1 %v1404_v24, %s3175_s29  ;;  %v1615_v58 = vpop.permute.xlu0 %1614  ;;  %v3162_v24 = vld [vmem:[#allocation2 + $0x3c] sm:$0xff]  }
  0xed   : > { %v1901_v21 = vsel %vm1891_vm15, %v1868_v11, %v1615_v58  ;;  %v1804_v26 = vsel %vm1792_vm12, %v3162_v24, %v1452_v42  ;;  %v1521_v58 = vsel %vm1473_vm6, %v1519_v33, %v1520_v56  ;;  %v1639_v24 = vrot.slane %v3152_v1, 1 }
  0xee   : > { %v1617_v14 = vpop.permute.xlu1 %1616  ;;  %1782 = vrot.lane.b32.xlu0 %v1515_v25, %s3179_s8  ;;  %v1837_v29 = vsel %vm1825_vm13, %v1804_v26, %v1533_v49  ;;  %v3154_v26 = vld [vmem:[#allocation2 + $0xd4] ss:$0 sps:$4 sm:$0x11]   ;;  %v1757_v56 = vrot.slane %v3153_v4, 1 }
  0xef   : > { %v1870_v45 = vsel %vm1858_vm14, %v1837_v29, %v1570_v54  ;;  %v4011_v54 = vld [vmem:[#allocation2 + $0xc0] sm:$0xff]  }
  0xf0   : > { %1467 = vrot.lane.b32.xlu1 %v1416_v47, %s3175_s29  ;;  %v1650_v10 = vpop.permute.xlu0 %1649  ;;  %v1903_v7 = vsel %vm1891_vm15, %v1870_v45, %v1617_v14  ;;  %v1597_v14 = vshll.u32 %v4011_v54, 16  ;;  %v1595_v63 = vshrl.u32 %v4011_v54, 16  ;;  %v1638_v23 = vrot.slane %v4011_v54, 1 }
  0xf1   : > { %v1934_v27 = vsel %vm1924_vm1, %v1901_v21, %v1650_v10  ;;  %v1716_v21 = vshll.u32 %v3153_v4, 16 }
  0xf2   : > { %v1652_v50 = vpop.permute.xlu1 %1651  ;;  %1546 = vrot.lane.b32.xlu0 %v1512_v60, %s3174_s28  ;;  %v1518_v60 = vsel %vm1473_vm6, %v1516_v18, %v1517_v20  ;;  %v1599_v2 = vrot.slane %v1597_v14, 1 }
  0xf3   : > { %v1936_v40 = vsel %vm1924_vm1, %v1903_v7, %v1652_v50  ;;  %v1602_v50 = vshll.u32 %v3152_v1, 16  ;;  %v1714_v7 = vshrl.u32 %v3153_v4, 16 }
  0xf4   : > { %1548 = vrot.lane.b32.xlu1 %v1515_v25, %s3174_s28  ;;  %v1687_v0 = vpop.permute.xlu0 %1686  ;;  %v1600_v39 = vor.u32 %v1599_v2, %v1595_v63 }
  0xf5   : > { %v1967_v43 = vsel %vm1957_vm2, %v1934_v27, %v1687_v0  ;;  %v1604_v61 = vrot.slane %v1602_v50, 1  ;;  %v3164_v27 = vld [vmem:[#allocation2 + $0x54] sm:$0xff]  }
  0xf6   : > { %v1689_v12 = vpop.permute.xlu1 %1688  ;;  %1583 = vrot.lane.b32.xlu0 %v3918_v15, %s3176_s30 }
  0xf7   : > { %v1969_v35 = vsel %vm1957_vm2, %v1936_v40, %v1689_v12  ;;  %v3163_v12 = vld [vmem:[#allocation2 + $0x48] sm:$0xff]   ;;  %v1605_v22 = vsel %vm1248_vm7, %v1600_v39, %v1604_v61  ;;  %v1640_v40 = vsel %vm1473_vm6, %v1638_v23, %v1639_v24 }
  0xf8   : > { %1585 = vrot.lane.b32.xlu1 %v3959_v19, %s3176_s30  ;;  %v1734_v16 = vpop.permute.xlu0 %1733 }
  0xf9   : > { %v2000_v57 = vsel %vm1990_vm3, %v1967_v43, %v1734_v16 }
  0xfa   : > { %v1736_v36 = vpop.permute.xlu1 %1735  ;;  %1630 = vrot.lane.b32.xlu0 %v1416_v47, %s3180_s9  ;;  %v1440_v47 = vsel %vm1248_vm7, %v1435_v41, %v1439_v34 }
  0xfb   : > { %v2002_v44 = vsel %vm1990_vm3, %v1969_v35, %v1736_v36 }
  0xfc   : > { %1632 = vrot.lane.b32.xlu1 %v1428_v17, %s3180_s9  ;;  %v1769_v31 = vpop.permute.xlu0 %1768 }
  0xfd   : > { %v2033_v28 = vsel %vm2023_vm4, %v2000_v57, %v1769_v31 }
  0xfe   : > { %v1454_v38 = vpop.permute.xlu1 %1453  ;;  %1665 = vrot.lane.b32.xlu0 %v1515_v25, %s3178_s7  ;;  %3061 = vmatprep.mubr.msk.bf16.mxu0 %vm2092_vm5, %v2033_v28  ;;  %v1718_v28 = vrot.slane %v1716_v21, 1 }
  0xff   : > { %v1806_v13 = vsel %vm1792_vm12, %v3163_v12, %v1454_v38  ;;  %v1721_v38 = vshll.u32 %v3154_v26, 16 }
 0x100   : > { %1667 = vrot.lane.b32.xlu1 %v1518_v60, %s3178_s7  ;;  %v1771_v62 = vpop.permute.xlu0 %1770 }
 0x101   : > { %v2035_v30 = vsel %vm2023_vm4, %v2002_v44, %v1771_v62 }
 0x102   : > { %v1456_v42 = vpop.permute.xlu1 %1455  ;;  %1702 = vrot.lane.b32.xlu0 %v3959_v19, %s3177_s6  ;;  %3062 = vmatmul.mubr.msk.bf16.gmra.mxu0 %vm2092_vm5, %v2035_v30 }
 0x103   : > { %v1808_v36 = vsel %vm1792_vm12, %v3164_v27, %v1456_v42  ;;  %v1719_v42 = vor.u32 %v1718_v28, %v1714_v7 }
 0x104   : > { %1704 = vrot.lane.b32.xlu1 %v3970_v5, %s3177_s6  ;;  %v1535_v46 = vpop.permute.xlu0 %1534 }
 0x105   : > { %v1839_v16 = vsel %vm1825_vm13, %v1806_v13, %v1535_v46  ;;  %v1723_v46 = vrot.slane %v1721_v38, 1 }
 0x106   : > { %v1537_v49 = vpop.permute.xlu1 %1536  ;;  %1749 = vrot.lane.b32.xlu0 %v1428_v17, %s3181_s10 }
 0x107   : > { %v1841_v45 = vsel %vm1825_vm13, %v1808_v36, %v1537_v49  ;;  %v1724_v33 = vsel %vm1248_vm7, %v1719_v42, %v1723_v46 }
 0x108   : > { %1751 = vrot.lane.b32.xlu1 %v1440_v47, %s3181_s10  ;;  %v1572_v51 = vpop.permute.xlu0 %1571 }
 0x109   : > { %v1872_v18 = vsel %vm1858_vm14, %v1839_v16, %v1572_v51  ;;  %v1758_v51 = vrot.slane %v3154_v26, 1 }
 0x10a   : > { %v1574_v25 = vpop.permute.xlu1 %1573  ;;  %1784 = vrot.lane.b32.xlu0 %v1518_v60, %s3179_s8 }
 0x10b   : > { %v1874_v31 = vsel %vm1858_vm14, %v1841_v45, %v1574_v25 }
 0x10c   : > { %1469 = vrot.lane.b32.xlu1 %v1428_v17, %s3175_s29  ;;  %v1619_v9 = vpop.permute.xlu0 %1618 }
 0x10d   : > { %v1905_v17 = vsel %vm1891_vm15, %v1872_v18, %v1619_v9  ;;  %v1759_v9 = vsel %vm1473_vm6, %v1757_v56, %v1758_v51  ;;  %vm2654_vm6 = vcmask 58368  }
 0x10e   : > { %v1621_v10 = vpop.permute.xlu1 %1620  ;;  %1786 = vrot.lane.b32.xlu0 %v1521_v58, %s3179_s8 }
 0x10f   : > { %v1907_v37 = vsel %vm1891_vm15, %v1874_v31, %v1621_v10 }
 0x110   : > { %1471 = vrot.lane.b32.xlu1 %v1440_v47, %s3175_s29  ;;  %v1654_v52 = vpop.permute.xlu0 %1653  ;;  %s4125_s29 = scalar_lea.vmem %s4286_s4, %s2877_s20  ;;  %s2751_s20 = sshll.u32 %s4297_s19, 1 }
 0x111   : > { %v1938_v29 = vsel %vm1924_vm1, %v1905_v17, %v1654_v52 }
 0x112   : > { %v1656_v0 = vpop.permute.xlu1 %1655  ;;  %1550 = vrot.lane.b32.xlu0 %v1518_v60, %s3174_s28 }
 0x113   : > { %v1940_v35 = vsel %vm1924_vm1, %v1907_v37, %v1656_v0 }
 0x114   : > { %1552 = vrot.lane.b32.xlu1 %v1521_v58, %s3174_s28  ;;  %v1691_v3 = vpop.permute.xlu0 %1690 }
 0x115   : > { %v1971_v57 = vsel %vm1957_vm2, %v1938_v29, %v1691_v3 }
 0x116   : > { %v1693_v11 = vpop.permute.xlu1 %1692  ;;  %1587 = vrot.lane.b32.xlu0 %v3970_v5, %s3176_s30 }
 0x117   : > { %v1973_v62 = vsel %vm1957_vm2, %v1940_v35, %v1693_v11 }
 0x118   : > { %1589 = vrot.lane.b32.xlu1 %v4011_v54, %s3176_s30  ;;  %v1738_v20 = vpop.permute.xlu0 %1737 }
 0x119   : > { %v2004_v60 = vsel %vm1990_vm3, %v1971_v57, %v1738_v20 }
 0x11a   : > { %v1740_v43 = vpop.permute.xlu1 %1739  ;;  %1634 = vrot.lane.b32.xlu0 %v1440_v47, %s3180_s9 }
 0x11b   : > { %v2006_v30 = vsel %vm1990_vm3, %v1973_v62, %v1740_v43 }
 0x11c   : > { %1636 = vrot.lane.b32.xlu1 %v1605_v22, %s3180_s9  ;;  %v1773_v32 = vpop.permute.xlu0 %1772 }
 0x11d   : > { %v2037_v6 = vsel %vm2023_vm4, %v2004_v60, %v1773_v32 }
 0x11e   : > { %v1458_v44 = vpop.permute.xlu1 %1457  ;;  %1669 = vrot.lane.b32.xlu0 %v1521_v58, %s3178_s7  ;;  %3065 = vmatprep.mubr.msk.bf16.mxu0 %vm2092_vm5, %v2037_v6 }
 0x11f   : > { %v1810_v2 = vsel %vm1792_vm12, %v3714_v55, %v1458_v44 }
 0x120   : > { %1671 = vrot.lane.b32.xlu1 %v1640_v40, %s3178_s7  ;;  %v1775_v41 = vpop.permute.xlu0 %1774  ;;  %s235_s7 = scalar_lea.vmem %s4287_s5, %s2751_s20 }
 0x121   : > { %v2039_v34 = vsel %vm2023_vm4, %v2006_v30, %v1775_v41 }
 0x122   : > { %v1460_v47 = vpop.permute.xlu1 %1459  ;;  %1706 = vrot.lane.b32.xlu0 %v4011_v54, %s3177_s6  ;;  %3066 = vmatmul.mubr.msk.bf16.gmra.mxu0 %vm2092_vm5, %v2039_v34 }
 0x123   : > { %v1812_v61 = vsel %vm1792_vm12, %v3757_v48, %v1460_v47 }
 0x124   : > { %1708 = vrot.lane.b32.xlu1 %v3153_v4, %s3177_s6  ;;  %v1539_v49 = vpop.permute.xlu0 %1538 }
 0x125   : > { %v1843_v0 = vsel %vm1825_vm13, %v1810_v2, %v1539_v49 }
 0x126   : > { %v1541_v25 = vpop.permute.xlu1 %1540  ;;  %1753 = vrot.lane.b32.xlu0 %v1605_v22, %s3181_s10 }
 0x127   : > { %v1845_v11 = vsel %vm1825_vm13, %v1812_v61, %v1541_v25 }
 0x128   : > { %1755 = vrot.lane.b32.xlu1 %v1724_v33, %s3181_s10  ;;  %v1576_v58 = vpop.permute.xlu0 %1575 }
 0x129   : > { %v1876_v3 = vsel %vm1858_vm14, %v1843_v0, %v1576_v58 }
 0x12a   : > { %v1578_v1 = vpop.permute.xlu1 %1577  ;;  %1788 = vrot.lane.b32.xlu0 %v1640_v40, %s3179_s8 }
 0x12b   : > { %v1878_v55 = vsel %vm1858_vm14, %v1845_v11, %v1578_v1 }
 0x12c   : > { %1790 = vrot.lane.b32.xlu1 %v1759_v9, %s3179_s8  ;;  %v1623_v54 = vpop.permute.xlu0 %1622 }
 0x12d   : > { %v1909_v39 = vsel %vm1891_vm15, %v1876_v3, %v1623_v54 }
 0x12e   : > { %v1625_v14 = vpop.permute.xlu1 %1624 }
 0x12f   : > { %v1911_v21 = vsel %vm1891_vm15, %v1878_v55, %v1625_v14 }
 0x130   : > { %v1658_v10 = vpop.permute.xlu0 %1657 }
 0x131   : > { %v1942_v12 = vsel %vm1924_vm1, %v1909_v39, %v1658_v10 }
 0x132   : > { %v1660_v52 = vpop.permute.xlu1 %1659 }
 0x133   : > { %v1944_v22 = vsel %vm1924_vm1, %v1911_v21, %v1660_v52 }
 0x134   : > { %v1695_v63 = vpop.permute.xlu0 %1694 }
 0x135   : > { %v1975_v16 = vsel %vm1957_vm2, %v1942_v12, %v1695_v63 }
 0x136   : > { %v1697_v50 = vpop.permute.xlu1 %1696 }
 0x137   : > { %v1977_v48 = vsel %vm1957_vm2, %v1944_v22, %v1697_v50 }
 0x138   : > { %v1742_v4 = vpop.permute.xlu0 %1741 }
 0x139   : > { %v2008_v18 = vsel %vm1990_vm3, %v1975_v16, %v1742_v4 }
 0x13a   : > { %v1744_v13 = vpop.permute.xlu1 %1743 }
 0x13b   : > { %v2010_v24 = vsel %vm1990_vm3, %v1977_v48, %v1744_v13 }
 0x13c   : > { %v1777_v20 = vpop.permute.xlu0 %1776 }
 0x13d   : > { %v2041_v17 = vsel %vm2023_vm4, %v2008_v18, %v1777_v20 }
 0x13e   : > { %v1462_v23 = vpop.permute.xlu1 %1461  ;;  %3069 = vmatprep.mubr.msk.bf16.mxu1 %vm2092_vm5, %v2041_v17 }
 0x13f   : > { %v1814_v37 = vsel %vm1792_vm12, %v3823_v59, %v1462_v23 }
 0x140   : > { %v1779_v26 = vpop.permute.xlu0 %1778 }
 0x141   : > { %v2043_v27 = vsel %vm2023_vm4, %v2010_v24, %v1779_v26 }
 0x142   : > { %v1464_v36 = vpop.permute.xlu1 %1463  ;;  %3070 = vmatmul.mubr.msk.bf16.vlgmr.msra.gmra.mxu1 %vm2092_vm5, %v2043_v27 }
 0x143   : > { %v1816_v62 = vsel %vm1792_vm12, %v3841_v8, %v1464_v36 }
 0x144   : > { %v1543_v29 = vpop.permute.xlu0 %1542 }
 0x145   : > { %v1847_v40 = vsel %vm1825_vm13, %v1814_v37, %v1543_v29 }
 0x146   : > { %v1545_v43 = vpop.permute.xlu1 %1544 }
 0x147   : > { %v1849_v34 = vsel %vm1825_vm13, %v1816_v62, %v1545_v43 }
 0x148   : > { %v1580_v45 = vpop.permute.xlu0 %1579 }
 0x149   : > { %v1880_v38 = vsel %vm1858_vm14, %v1847_v40, %v1580_v45 }
 0x14a   : > { %v1582_v57 = vpop.permute.xlu1 %1581 }
 0x14b   : > { %v1882_v59 = vsel %vm1858_vm14, %v1849_v34, %v1582_v57 }
 0x14c   : > { %v1627_v31 = vpop.permute.xlu0 %1626 }
 0x14d   : > { %v1913_v44 = vsel %vm1891_vm15, %v1880_v38, %v1627_v31 }
 0x14e   : > { %v1629_v60 = vpop.permute.xlu1 %1628 }
 0x14f   : > { %v1915_v49 = vsel %vm1891_vm15, %v1882_v59, %v1629_v60 }
 0x150   : > { %v1662_v32 = vpop.permute.xlu0 %1661 }
 0x151   : > { %v1946_v30 = vsel %vm1924_vm1, %v1913_v44, %v1662_v32 }
 0x152   : > { %v1664_v7 = vpop.permute.xlu1 %1663 }
 0x153   : > { %v1948_v56 = vsel %vm1924_vm1, %v1915_v49, %v1664_v7 }
 0x154   : > { %v1699_v28 = vpop.permute.xlu0 %1698 }
 0x155   : > { %v1979_v42 = vsel %vm1957_vm2, %v1946_v30, %v1699_v28 }
 0x156   : > { %v1701_v6 = vpop.permute.xlu1 %1700 }
 0x157   : > { %v1981_v8 = vsel %vm1957_vm2, %v1948_v56, %v1701_v6 }
 0x158   : > { %v1746_v35 = vpop.permute.xlu0 %1745 }
 0x159   : > { %v2012_v46 = vsel %vm1990_vm3, %v1979_v42, %v1746_v35 }
 0x15a   : > { %v1748_v41 = vpop.permute.xlu1 %1747 }
 0x15b   : > { %v2014_v25 = vsel %vm1990_vm3, %v1981_v8, %v1748_v41 }
 0x15c   : > { %v1781_v47 = vpop.permute.xlu0 %1780 }
 0x15d   : > { %v2045_v33 = vsel %vm2023_vm4, %v2012_v46, %v1781_v47 }
 0x15e   : > { %v1466_v51 = vpop.permute.xlu1 %1465  ;;  %3073 = vmatprep.mubr.msk.bf16.mxu1 %vm2092_vm5, %v2045_v33 }
 0x15f   : > { %v1818_v4 = vsel %vm1792_vm12, %v3895_v53, %v1466_v51 }
 0x160   : > { %v1783_v58 = vpop.permute.xlu0 %1782 }
 0x161   : > { %v2047_v9 = vsel %vm2023_vm4, %v2014_v25, %v1783_v58 }
 0x162   : > { %v1468_v1 = vpop.permute.xlu1 %1467  ;;  %3074 = vmatmul.mubr.msk.bf16.gmra.mxu1 %vm2092_vm5, %v2047_v9 }
 0x163   : > { %v1820_v16 = vsel %vm1792_vm12, %v3918_v15, %v1468_v1 }
 0x164   : > { %v1547_v54 = vpop.permute.xlu0 %1546 }
 0x165   : > { %v1851_v61 = vsel %vm1825_vm13, %v1818_v4, %v1547_v54 }
 0x166   : > { %v1549_v14 = vpop.permute.xlu1 %1548 }
 0x167   : > { %v1853_v20 = vsel %vm1825_vm13, %v1820_v16, %v1549_v14 }
 0x168   : > { %v1584_v10 = vpop.permute.xlu0 %1583 }
 0x169   : > { %v1884_v12 = vsel %vm1858_vm14, %v1851_v61, %v1584_v10 }
 0x16a   : > { %v1586_v52 = vpop.permute.xlu1 %1585 }
 0x16b   : > { %v1886_v53 = vsel %vm1858_vm14, %v1853_v20, %v1586_v52 }
 0x16c   : > { %v1631_v63 = vpop.permute.xlu0 %1630 }
 0x16d   : > { %v1917_v11 = vsel %vm1891_vm15, %v1884_v12, %v1631_v63 }
 0x16e   : > { %v1633_v2 = vpop.permute.xlu1 %1632 }
 0x16f   : > { %v1919_v23 = vsel %vm1891_vm15, %v1886_v53, %v1633_v2 }
 0x170   : > { %v1666_v50 = vpop.permute.xlu0 %1665 }
 0x171   : > { %v1950_v55 = vsel %vm1924_vm1, %v1917_v11, %v1666_v50 }
 0x172   : > { %v1668_v0 = vpop.permute.xlu1 %1667 }
 0x173   : > { %v1952_v24 = vsel %vm1924_vm1, %v1919_v23, %v1668_v0 }
 0x174   : > { %v1703_v3 = vpop.permute.xlu0 %1702 }
 0x175   : > { %v1983_v21 = vsel %vm1957_vm2, %v1950_v55, %v1703_v3 }
 0x176   : > { %v1705_v39 = vpop.permute.xlu1 %1704 }
 0x177   : > { %v1985_v26 = vsel %vm1957_vm2, %v1952_v24, %v1705_v39 }
 0x178   : > { %v1750_v13 = vpop.permute.xlu0 %1749 }
 0x179   : > { %v2016_v17 = vsel %vm1990_vm3, %v1983_v21, %v1750_v13 }
 0x17a   : > { %v1752_v18 = vpop.permute.xlu1 %1751 }
 0x17b   : > { %v2018_v27 = vsel %vm1990_vm3, %v1985_v26, %v1752_v18 }
 0x17c   : > { %v1785_v22 = vpop.permute.xlu0 %1784 }
 0x17d   : > { %v2049_v48 = vsel %vm2023_vm4, %v2016_v17, %v1785_v22 }
 0x17e   : > { %v1470_v15 = vpop.permute.xlu1 %1469  ;;  %3077 = vmatprep.mubr.msk.bf16.mxu1 %vm2092_vm5, %v2049_v48 }
 0x17f   : > { %v1822_v59 = vsel %vm1792_vm12, %v3959_v19, %v1470_v15 }
 0x180   : > { %v1787_v36 = vpop.permute.xlu0 %1786 }
 0x181   : > { %v2051_v29 = vsel %vm2023_vm4, %v2018_v27, %v1787_v36 }
 0x182   : > { %v1472_v43 = vpop.permute.xlu1 %1471  ;;  %3078 = vmatmul.mubr.msk.bf16.gmra.mxu1 %vm2092_vm5, %v2051_v29 }
 0x183   : > { %v1824_v49 = vsel %vm1792_vm12, %v3970_v5, %v1472_v43 }
 0x184   : > { %v1551_v45 = vpop.permute.xlu0 %1550 }
 0x185   : > { %v1855_v33 = vsel %vm1825_vm13, %v1822_v59, %v1551_v45 }
 0x186   : > { %v1553_v57 = vpop.permute.xlu1 %1552 }
 0x187   : > { %v1857_v9 = vsel %vm1825_vm13, %v1824_v49, %v1553_v57 }
 0x188   : > { %v1588_v31 = vpop.permute.xlu0 %1587 }
 0x189   : > { %v1888_v56 = vsel %vm1858_vm14, %v1855_v33, %v1588_v31 }
 0x18a   : > { %v1590_v60 = vpop.permute.xlu1 %1589 }
 0x18b   : > { %v1890_v63 = vsel %vm1858_vm14, %v1857_v9, %v1590_v60 }
 0x18c   : > { %v3055_v32 = vpop.f32.mrf.mxu0  ;;  %v1635_v7 = vpop.permute.xlu0 %1634 }
 0x18d   : > { %v2913_v28 = vpack.c.bf16 %v3055_v32, %v3055_v32  ;;  %v1921_v1 = vsel %vm1891_vm15, %v1888_v56, %v1635_v7 }
 0x18e   : > { %v1637_v37 = vpop.permute.xlu1 %1636  ;;  %v2163_v6 = vpop.f32.mrf.mxu0 }
 0x18f   : > { %2420 = vst.msk [vmem:[%s4125_s29 + $0x8] sm:$0xf] %vm427_vm0, %v2913_v28  ;;  %v2911_v40 = vpack.c.bf16 %v2163_v6, %v2163_v6  ;;  %v1923_v12 = vsel %vm1891_vm15, %v1890_v63, %v1637_v37 }
 0x190   : > { %v3056_v38 = vpop.f32.mrf.mxu0  ;;  %v1670_v35 = vpop.permute.xlu0 %1669 }
 0x191   : > { %2418 = vst.msk [vmem:[%s4125_s29] sm:$0xf] %vm427_vm0, %v2911_v40  ;;  %v2291_v44 = vpack.c.bf16 %v3056_v38, %v3055_v32  ;;  %v2914_v62 = vpack.c.bf16 %v3056_v38, %v3056_v38  ;;  %v1954_v2 = vsel %vm1924_vm1, %v1921_v1, %v1670_v35 }
 0x192   : > { %v1672_v30 = vpop.permute.xlu1 %1671  ;;  %v2166_v41 = vpop.f32.mrf.mxu0 }
 0x193   : > { %2421 = vst.msk [vmem:[%s4125_s29 + $0xc] sm:$0xf] %vm427_vm0, %v2914_v62  ;;  %v2452_v34 = vunpack.c.l.bf16 %v2291_v44  ;;  %v2290_v42 = vpack.c.bf16 %v2166_v41, %v2163_v6  ;;  %v2912_v46 = vpack.c.bf16 %v2166_v41, %v2166_v41  ;;  %v2453_v51 = vunpack.c.h.bf16 %v2291_v44 }
 0x194   : > { %v1707_v47 = vpop.permute.xlu0 %1706  ;;  %v1956_v55 = vsel %vm1924_vm1, %v1923_v12, %v1672_v30 }
 0x195   : > { %2419 = vst.msk [vmem:[%s4125_s29 + $0x4] sm:$0xf] %vm427_vm0, %v2912_v46  ;;  %v2450_v8 = vunpack.c.l.bf16 %v2290_v42  ;;  %v2451_v25 = vunpack.c.h.bf16 %v2290_v42  ;;  %v2553_v19 = vmul.f32 %v2452_v34, %v2452_v34  ;;  %v2485_v0 = vsel %vm1792_vm12, %v2452_v34, 0.0 }
 0x196   : > { %v1709_v58 = vpop.permute.xlu1 %1708  ;;  %v2554_v3 = vmul.f32 %v2453_v51, %v2453_v51  ;;  %v1987_v16 = vsel %vm1957_vm2, %v1954_v2, %v1707_v47  ;;  %v2487_v18 = vsel %vm1792_vm12, %v2453_v51, 0.0 }
 0x197   : > { %v2482_v54 = vsel %vm1792_vm12, %v2450_v8, 0.0  ;;  %v2483_v14 = vsel %vm1792_vm12, %v2451_v25, 0.0  ;;  %v2551_v5 = vmul.f32 %v2450_v8, %v2450_v8  ;;  %v2552_v10 = vmul.f32 %v2451_v25, %v2451_v25 }
 0x198   : > { %v1754_v52 = vpop.permute.xlu0 %1753  ;;  %v2484_v50 = vadd.f32 %v2483_v14, %v2482_v54  ;;  %v2586_v20 = vsel %vm1792_vm12, %v2553_v19, 0.0  ;;  %v1989_v22 = vsel %vm1957_vm2, %v1956_v55, %v1709_v58  ;;  %v2588_v24 = vsel %vm1792_vm12, %v2554_v3, 0.0 }
 0x199   : > { %v2583_v4 = vsel %vm1792_vm12, %v2551_v5, 0.0  ;;  %v2584_v39 = vsel %vm1792_vm12, %v2552_v10, 0.0  ;;  %v2020_v21 = vsel %vm1990_vm3, %v1987_v16, %v1754_v52 }
 0x19a   : > { %v1756_v61 = vpop.permute.xlu1 %1755  ;;  %v2486_v13 = vadd.f32 %v2485_v0, %v2484_v50  ;;  %v2585_v11 = vadd.f32 %v2584_v39, %v2583_v4 }
 0x19b   : > { %v2022_v15 = vsel %vm1990_vm3, %v1989_v22, %v1756_v61 }
 0x19c   : > { %v1789_v53 = vpop.permute.xlu0 %1788  ;;  %v2587_v17 = vadd.f32 %v2586_v20, %v2585_v11  ;;  %v2488_v48 = vadd.f32 %v2487_v18, %v2486_v13 }
 0x19d   : > { %v2053_v23 = vsel %vm2023_vm4, %v2020_v21, %v1789_v53 }
 0x19e   : > { %v1791_v26 = vpop.permute.xlu1 %1790  ;;  %3081 = vmatprep.mubr.msk.bf16.mxu1 %vm2092_vm5, %v2053_v23  ;;  %v2589_v36 = vadd.f32 %v2588_v24, %v2587_v17 }
 0x19f   : > { %v2055_v27 = vsel %vm2023_vm4, %v2022_v15, %v1791_v26 }
 0x1a0   : > { %3082 = vmatmul.mubr.msk.bf16.gmra.mxu1 %vm2092_vm5, %v2055_v27 }
 0x1a2   : > { %v3059_v29 = vpop.f32.mrf.mxu0 }
 0x1a3   : > { %v2917_v43 = vpack.c.bf16 %v3059_v29, %v3059_v29 }
 0x1a4   : > { %v2179_v45 = vpop.f32.mrf.mxu0 }
 0x1a5   : > { %2424 = vst.msk [vmem:[%s4125_s29 + $0x18] sm:$0xf] %vm427_vm0, %v2917_v43  ;;  %v2915_v57 = vpack.c.bf16 %v2179_v45, %v2179_v45 }
 0x1a6   : > { %v3060_v31 = vpop.f32.mrf.mxu0 }
 0x1a7   : > { %2422 = vst.msk [vmem:[%s4125_s29 + $0x10] sm:$0xf] %vm427_vm0, %v2915_v57  ;;  %v2293_v60 = vpack.c.bf16 %v3060_v31, %v3059_v29  ;;  %v2918_v32 = vpack.c.bf16 %v3060_v31, %v3060_v31 }
 0x1a8   : > { %v2182_v7 = vpop.f32.mrf.mxu0 }
 0x1a9   : > { %2425 = vst.msk [vmem:[%s4125_s29 + $0x1c] sm:$0xf] %vm427_vm0, %v2918_v32  ;;  %v2292_v28 = vpack.c.bf16 %v2182_v7, %v2179_v45  ;;  %v2916_v37 = vpack.c.bf16 %v2182_v7, %v2182_v7  ;;  %v2456_v6 = vunpack.c.l.bf16 %v2293_v60  ;;  %v2457_v35 = vunpack.c.h.bf16 %v2293_v60 }
 0x1ab   : > { %2423 = vst.msk [vmem:[%s4125_s29 + $0x14] sm:$0xf] %vm427_vm0, %v2916_v37  ;;  %v2454_v40 = vunpack.c.l.bf16 %v2292_v28  ;;  %v2455_v38 = vunpack.c.h.bf16 %v2292_v28  ;;  %v2557_v34 = vmul.f32 %v2456_v6, %v2456_v6  ;;  %v2493_v49 = vsel %vm1792_vm12, %v2456_v6, 0.0 }
 0x1ac   : > { %v2558_v33 = vmul.f32 %v2457_v35, %v2457_v35  ;;  %v2495_v25 = vsel %vm1792_vm12, %v2457_v35, 0.0 }
 0x1ad   : > { %v2489_v44 = vsel %vm1792_vm12, %v2454_v40, 0.0  ;;  %v2555_v62 = vmul.f32 %v2454_v40, %v2454_v40  ;;  %v2556_v30 = vmul.f32 %v2455_v38, %v2455_v38  ;;  %v2491_v42 = vsel %vm1792_vm12, %v2455_v38, 0.0 }
 0x1ae   : > { %v2490_v41 = vadd.f32 %v2489_v44, %v2488_v48  ;;  %v2594_v58 = vsel %vm1792_vm12, %v2557_v34, 0.0  ;;  %v2596_v19 = vsel %vm1792_vm12, %v2558_v33, 0.0 }
 0x1af   : > { %v2590_v59 = vsel %vm1792_vm12, %v2555_v62, 0.0  ;;  %v2592_v56 = vsel %vm1792_vm12, %v2556_v30, 0.0 }
 0x1b0   : > { %v2492_v46 = vadd.f32 %v2491_v42, %v2490_v41  ;;  %v2591_v47 = vadd.f32 %v2590_v59, %v2589_v36 }
 0x1b2   : > { %v2494_v51 = vadd.f32 %v2493_v49, %v2492_v46  ;;  %v2593_v8 = vadd.f32 %v2592_v56, %v2591_v47 }
 0x1b4   : > { %v2595_v9 = vadd.f32 %v2594_v58, %v2593_v8  ;;  %v2496_v1 = vadd.f32 %v2495_v25, %v2494_v51 }
 0x1b6   : > { %v2597_v54 = vadd.f32 %v2596_v19, %v2595_v9 }
 0x1c2   : > { %v3063_v14 = vpop.f32.mrf.mxu0 }
 0x1c3   : > { %v2921_v5 = vpack.c.bf16 %v3063_v14, %v3063_v14 }
 0x1c4   : > { %v2195_v10 = vpop.f32.mrf.mxu0 }
 0x1c5   : > { %2428 = vst.msk [vmem:[%s4125_s29 + $0x28] sm:$0xf] %vm427_vm0, %v2921_v5  ;;  %v2919_v52 = vpack.c.bf16 %v2195_v10, %v2195_v10 }
 0x1c6   : > { %v3064_v63 = vpop.f32.mrf.mxu0 }
 0x1c7   : > { %2426 = vst.msk [vmem:[%s4125_s29 + $0x20] sm:$0xf] %vm427_vm0, %v2919_v52  ;;  %v2295_v2 = vpack.c.bf16 %v3064_v63, %v3063_v14  ;;  %v2922_v50 = vpack.c.bf16 %v3064_v63, %v3064_v63 }
 0x1c8   : > { %v2198_v0 = vpop.f32.mrf.mxu0 }
 0x1c9   : > { %2429 = vst.msk [vmem:[%s4125_s29 + $0x2c] sm:$0xf] %vm427_vm0, %v2922_v50  ;;  %v2294_v3 = vpack.c.bf16 %v2198_v0, %v2195_v10  ;;  %v2920_v4 = vpack.c.bf16 %v2198_v0, %v2198_v0  ;;  %v2460_v39 = vunpack.c.l.bf16 %v2295_v2  ;;  %v2461_v13 = vunpack.c.h.bf16 %v2295_v2 }
 0x1cb   : > { %2427 = vst.msk [vmem:[%s4125_s29 + $0x24] sm:$0xf] %vm427_vm0, %v2920_v4  ;;  %v2458_v61 = vunpack.c.l.bf16 %v2294_v3  ;;  %v2459_v12 = vunpack.c.h.bf16 %v2294_v3  ;;  %v2561_v20 = vmul.f32 %v2460_v39, %v2460_v39  ;;  %v2501_v23 = vsel %vm1792_vm12, %v2460_v39, 0.0 }
 0x1cc   : > { %v2562_v48 = vmul.f32 %v2461_v13, %v2461_v13  ;;  %v2503_v27 = vsel %vm1792_vm12, %v2461_v13, 0.0 }
 0x1cd   : > { %v2497_v11 = vsel %vm1792_vm12, %v2458_v61, 0.0  ;;  %v2559_v16 = vmul.f32 %v2458_v61, %v2458_v61  ;;  %v2560_v55 = vmul.f32 %v2459_v12, %v2459_v12  ;;  %v2499_v21 = vsel %vm1792_vm12, %v2459_v12, 0.0 }
 0x1ce   : > { %v2498_v18 = vadd.f32 %v2497_v11, %v2496_v1  ;;  %v2602_v36 = vsel %vm1792_vm12, %v2561_v20, 0.0  ;;  %v2604_v45 = vsel %vm1792_vm12, %v2562_v48, 0.0 }
 0x1cf   : > { %v2598_v53 = vsel %vm1792_vm12, %v2559_v16, 0.0  ;;  %v2600_v24 = vsel %vm1792_vm12, %v2560_v55, 0.0 }
 0x1d0   : > { %v2500_v17 = vadd.f32 %v2499_v21, %v2498_v18  ;;  %v2599_v22 = vadd.f32 %v2598_v53, %v2597_v54 }
 0x1d2   : > { %v2502_v15 = vadd.f32 %v2501_v23, %v2500_v17  ;;  %v2601_v26 = vadd.f32 %v2600_v24, %v2599_v22 }
 0x1d4   : > { %v2603_v29 = vadd.f32 %v2602_v36, %v2601_v26  ;;  %v2504_v43 = vadd.f32 %v2503_v27, %v2502_v15 }
 0x1d6   : > { %v2605_v57 = vadd.f32 %v2604_v45, %v2603_v29 }
 0x1e2   : > { %v3067_v31 = vpop.f32.mrf.mxu0 }
 0x1e3   : > { %v2925_v60 = vpack.c.bf16 %v3067_v31, %v3067_v31 }
 0x1e4   : > { %v2211_v32 = vpop.f32.mrf.mxu0 }
 0x1e5   : > { %2432 = vst.msk [vmem:[%s4125_s29 + $0x38] sm:$0xf] %vm427_vm0, %v2925_v60  ;;  %v2923_v7 = vpack.c.bf16 %v2211_v32, %v2211_v32 }
 0x1e6   : > { %v3068_v28 = vpop.f32.mrf.mxu0 }
 0x1e7   : > { %2430 = vst.msk [vmem:[%s4125_s29 + $0x30] sm:$0xf] %vm427_vm0, %v2923_v7  ;;  %v2297_v37 = vpack.c.bf16 %v3068_v28, %v3067_v31  ;;  %v2926_v6 = vpack.c.bf16 %v3068_v28, %v3068_v28 }
 0x1e8   : > { %v2214_v40 = vpop.f32.mrf.mxu0 }
 0x1e9   : > { %2433 = vst.msk [vmem:[%s4125_s29 + $0x3c] sm:$0xf] %vm427_vm0, %v2926_v6  ;;  %v2296_v38 = vpack.c.bf16 %v2214_v40, %v2211_v32  ;;  %v2924_v35 = vpack.c.bf16 %v2214_v40, %v2214_v40  ;;  %v2464_v44 = vunpack.c.l.bf16 %v2297_v37  ;;  %v2465_v41 = vunpack.c.h.bf16 %v2297_v37 }
 0x1eb   : > { %2431 = vst.msk [vmem:[%s4125_s29 + $0x34] sm:$0xf] %vm427_vm0, %v2924_v35  ;;  %v2462_v62 = vunpack.c.l.bf16 %v2296_v38  ;;  %v2463_v30 = vunpack.c.h.bf16 %v2296_v38  ;;  %v2565_v47 = vmul.f32 %v2464_v44, %v2464_v44  ;;  %v2509_v8 = vsel %vm1792_vm12, %v2464_v44, 0.0 }
 0x1ec   : > { %v2566_v25 = vmul.f32 %v2465_v41, %v2465_v41  ;;  %v2511_v19 = vsel %vm1792_vm12, %v2465_v41, 0.0 }
 0x1ed   : > { %v2505_v34 = vsel %vm1792_vm12, %v2462_v62, 0.0  ;;  %v2563_v42 = vmul.f32 %v2462_v62, %v2462_v62  ;;  %v2564_v59 = vmul.f32 %v2463_v30, %v2463_v30  ;;  %v2507_v49 = vsel %vm1792_vm12, %v2463_v30, 0.0 }
 0x1ee   : > { %v2506_v46 = vadd.f32 %v2505_v34, %v2504_v43  ;;  %v2610_v54 = vsel %vm1792_vm12, %v2565_v47, 0.0  ;;  %v2612_v10 = vsel %vm1792_vm12, %v2566_v25, 0.0 }
 0x1ef   : > { %v2606_v33 = vsel %vm1792_vm12, %v2563_v42, 0.0  ;;  %v2608_v58 = vsel %vm1792_vm12, %v2564_v59, 0.0 }
 0x1f0   : > { %v2508_v56 = vadd.f32 %v2507_v49, %v2506_v46  ;;  %v2607_v51 = vadd.f32 %v2606_v33, %v2605_v57 }
 0x1f2   : > { %v2510_v9 = vadd.f32 %v2509_v8, %v2508_v56  ;;  %v2609_v1 = vadd.f32 %v2608_v58, %v2607_v51 }
 0x1f4   : > { %v2611_v14 = vadd.f32 %v2610_v54, %v2609_v1  ;;  %v2512_v5 = vadd.f32 %v2511_v19, %v2510_v9 }
 0x1f6   : > { %v2613_v52 = vadd.f32 %v2612_v10, %v2611_v14 }
 0x202   : > { %v3071_v63 = vpop.f32.mrf.mxu1 }
 0x203   : > { %v2929_v2 = vpack.c.bf16 %v3071_v63, %v3071_v63 }
 0x204   : > { %v2227_v50 = vpop.f32.mrf.mxu1 }
 0x205   : > { %2436 = vst.msk [vmem:[%s4125_s29 + $0x48] sm:$0xf] %vm427_vm0, %v2929_v2  ;;  %v2927_v0 = vpack.c.bf16 %v2227_v50, %v2227_v50 }
 0x206   : > { %v3072_v3 = vpop.f32.mrf.mxu1 }
 0x207   : > { %2434 = vst.msk [vmem:[%s4125_s29 + $0x40] sm:$0xf] %vm427_vm0, %v2927_v0  ;;  %v2299_v4 = vpack.c.bf16 %v3072_v3, %v3071_v63  ;;  %v2930_v39 = vpack.c.bf16 %v3072_v3, %v3072_v3 }
 0x208   : > { %v2230_v61 = vpop.f32.mrf.mxu1 }
 0x209   : > { %2437 = vst.msk [vmem:[%s4125_s29 + $0x4c] sm:$0xf] %vm427_vm0, %v2930_v39  ;;  %v2298_v12 = vpack.c.bf16 %v2230_v61, %v2227_v50  ;;  %v2928_v13 = vpack.c.bf16 %v2230_v61, %v2230_v61  ;;  %v2468_v11 = vunpack.c.l.bf16 %v2299_v4  ;;  %v2469_v18 = vunpack.c.h.bf16 %v2299_v4 }
 0x20b   : > { %2435 = vst.msk [vmem:[%s4125_s29 + $0x44] sm:$0xf] %vm427_vm0, %v2928_v13  ;;  %v2466_v16 = vunpack.c.l.bf16 %v2298_v12  ;;  %v2467_v55 = vunpack.c.h.bf16 %v2298_v12  ;;  %v2569_v22 = vmul.f32 %v2468_v11, %v2468_v11  ;;  %v2517_v26 = vsel %vm1792_vm12, %v2468_v11, 0.0 }
 0x20c   : > { %v2570_v27 = vmul.f32 %v2469_v18, %v2469_v18  ;;  %v2519_v45 = vsel %vm1792_vm12, %v2469_v18, 0.0 }
 0x20d   : > { %v2513_v20 = vsel %vm1792_vm12, %v2466_v16, 0.0  ;;  %v2567_v21 = vmul.f32 %v2466_v16, %v2466_v16  ;;  %v2568_v53 = vmul.f32 %v2467_v55, %v2467_v55  ;;  %v2515_v23 = vsel %vm1792_vm12, %v2467_v55, 0.0 }
 0x20e   : > { %v2514_v17 = vadd.f32 %v2513_v20, %v2512_v5  ;;  %v2618_v57 = vsel %vm1792_vm12, %v2569_v22, 0.0  ;;  %v2620_v32 = vsel %vm1792_vm12, %v2570_v27, 0.0 }
 0x20f   : > { %v2614_v48 = vsel %vm1792_vm12, %v2567_v21, 0.0  ;;  %v2616_v36 = vsel %vm1792_vm12, %v2568_v53, 0.0 }
 0x210   : > { %v2516_v24 = vadd.f32 %v2515_v23, %v2514_v17  ;;  %v2615_v15 = vadd.f32 %v2614_v48, %v2613_v52 }
 0x212   : > { %v2518_v29 = vadd.f32 %v2517_v26, %v2516_v24  ;;  %v2617_v43 = vadd.f32 %v2616_v36, %v2615_v15 }
 0x214   : > { %v2619_v31 = vadd.f32 %v2618_v57, %v2617_v43  ;;  %v2520_v60 = vadd.f32 %v2519_v45, %v2518_v29 }
 0x216   : > { %v2621_v7 = vadd.f32 %v2620_v32, %v2619_v31 }
 0x222   : > { %v3075_v28 = vpop.f32.mrf.mxu1 }
 0x223   : > { %v2933_v37 = vpack.c.bf16 %v3075_v28, %v3075_v28 }
 0x224   : > { %v2243_v6 = vpop.f32.mrf.mxu1 }
 0x225   : > { %2440 = vst.msk [vmem:[%s4125_s29 + $0x58] sm:$0xf] %vm427_vm0, %v2933_v37  ;;  %v2931_v40 = vpack.c.bf16 %v2243_v6, %v2243_v6 }
 0x226   : > { %v3076_v38 = vpop.f32.mrf.mxu1 }
 0x227   : > { %2438 = vst.msk [vmem:[%s4125_s29 + $0x50] sm:$0xf] %vm427_vm0, %v2931_v40  ;;  %v2934_v35 = vpack.c.bf16 %v3076_v38, %v3076_v38  ;;  %v2301_v8 = vpack.c.bf16 %v3076_v38, %v3075_v28 }
 0x228   : > { %v2246_v44 = vpop.f32.mrf.mxu1 }
 0x229   : > { %2441 = vst.msk [vmem:[%s4125_s29 + $0x5c] sm:$0xf] %vm427_vm0, %v2934_v35  ;;  %v2932_v62 = vpack.c.bf16 %v2246_v44, %v2246_v44  ;;  %v2300_v34 = vpack.c.bf16 %v2246_v44, %v2243_v6  ;;  %v2472_v19 = vunpack.c.l.bf16 %v2301_v8  ;;  %v2473_v63 = vunpack.c.h.bf16 %v2301_v8 }
 0x22b   : > { %2439 = vst.msk [vmem:[%s4125_s29 + $0x54] sm:$0xf] %vm427_vm0, %v2932_v62  ;;  %v2470_v49 = vunpack.c.l.bf16 %v2300_v34  ;;  %v2471_v25 = vunpack.c.h.bf16 %v2300_v34  ;;  %v2573_v2 = vmul.f32 %v2472_v19, %v2472_v19  ;;  %v2525_v4 = vsel %vm1792_vm12, %v2472_v19, 0.0 }
 0x22c   : > { %v2574_v61 = vmul.f32 %v2473_v63, %v2473_v63  ;;  %v2527_v16 = vsel %vm1792_vm12, %v2473_v63, 0.0 }
 0x22d   : > { %v2571_v51 = vmul.f32 %v2470_v49, %v2470_v49  ;;  %v2521_v58 = vsel %vm1792_vm12, %v2470_v49, 0.0  ;;  %v2572_v54 = vmul.f32 %v2471_v25, %v2471_v25  ;;  %v2523_v10 = vsel %vm1792_vm12, %v2471_v25, 0.0 }
 0x22e   : > { %v2522_v1 = vadd.f32 %v2521_v58, %v2520_v60  ;;  %v2626_v12 = vsel %vm1792_vm12, %v2573_v2, 0.0  ;;  %v2628_v53 = vsel %vm1792_vm12, %v2574_v61, 0.0 }
 0x22f   : > { %v2622_v9 = vsel %vm1792_vm12, %v2571_v51, 0.0  ;;  %v2624_v50 = vsel %vm1792_vm12, %v2572_v54, 0.0 }
 0x230   : > { %v2623_v5 = vadd.f32 %v2622_v9, %v2621_v7  ;;  %v2524_v52 = vadd.f32 %v2523_v10, %v2522_v1 }
 0x232   : > { %v2625_v3 = vadd.f32 %v2624_v50, %v2623_v5  ;;  %v2526_v39 = vadd.f32 %v2525_v4, %v2524_v52 }
 0x234   : > { %v2627_v11 = vadd.f32 %v2626_v12, %v2625_v3  ;;  %v2528_v21 = vadd.f32 %v2527_v16, %v2526_v39 }
 0x236   : > { %v2629_v23 = vadd.f32 %v2628_v53, %v2627_v11 }
 0x242   : > { %v3079_v30 = vpop.f32.mrf.mxu1 }
 0x243   : > { %v2937_v41 = vpack.c.bf16 %v3079_v30, %v3079_v30 }
 0x244   : > { %v2259_v42 = vpop.f32.mrf.mxu1 }
 0x245   : > { %2444 = vst.msk [vmem:[%s4125_s29 + $0x68] sm:$0xf] %vm427_vm0, %v2937_v41  ;;  %v2935_v59 = vpack.c.bf16 %v2259_v42, %v2259_v42 }
 0x246   : > { %v3080_v46 = vpop.f32.mrf.mxu1 }
 0x247   : > { %2442 = vst.msk [vmem:[%s4125_s29 + $0x60] sm:$0xf] %vm427_vm0, %v2935_v59  ;;  %v2938_v47 = vpack.c.bf16 %v3080_v46, %v3080_v46  ;;  %v2303_v55 = vpack.c.bf16 %v3080_v46, %v3079_v30 }
 0x248   : > { %v2262_v33 = vpop.f32.mrf.mxu1 }
 0x249   : > { %2445 = vst.msk [vmem:[%s4125_s29 + $0x6c] sm:$0xf] %vm427_vm0, %v2938_v47  ;;  %v2936_v56 = vpack.c.bf16 %v2262_v33, %v2262_v33  ;;  %v2302_v14 = vpack.c.bf16 %v2262_v33, %v2259_v42  ;;  %v2476_v48 = vunpack.c.l.bf16 %v2303_v55  ;;  %v2477_v43 = vunpack.c.h.bf16 %v2303_v55 }
 0x24b   : > { %2443 = vst.msk [vmem:[%s4125_s29 + $0x64] sm:$0xf] %vm427_vm0, %v2936_v56  ;;  %v2474_v0 = vunpack.c.l.bf16 %v2302_v14  ;;  %v2475_v18 = vunpack.c.h.bf16 %v2302_v14  ;;  %v2577_v31 = vmul.f32 %v2476_v48, %v2476_v48  ;;  %v2533_v37 = vsel %vm1792_vm12, %v2476_v48, 0.0 }
 0x24c   : > { %v2578_v38 = vmul.f32 %v2477_v43, %v2477_v43  ;;  %v2535_v34 = vsel %vm1792_vm12, %v2477_v43, 0.0 }
 0x24d   : > { %v2575_v13 = vmul.f32 %v2474_v0, %v2474_v0  ;;  %v2529_v20 = vsel %vm1792_vm12, %v2474_v0, 0.0  ;;  %v2576_v24 = vmul.f32 %v2475_v18, %v2475_v18  ;;  %v2531_v36 = vsel %vm1792_vm12, %v2475_v18, 0.0 }
 0x24e   : > { %v2530_v22 = vadd.f32 %v2529_v20, %v2528_v21  ;;  %v2634_v30 = vsel %vm1792_vm12, %v2577_v31, 0.0  ;;  %v2636_v47 = vsel %vm1792_vm12, %v2578_v38, 0.0 }
 0x24f   : > { %v2630_v17 = vsel %vm1792_vm12, %v2575_v13, 0.0  ;;  %v2632_v60 = vsel %vm1792_vm12, %v2576_v24, 0.0 }
 0x250   : > { %v2631_v26 = vadd.f32 %v2630_v17, %v2629_v23  ;;  %v2532_v45 = vadd.f32 %v2531_v36, %v2530_v22 }
 0x252   : > { %v2633_v7 = vadd.f32 %v2632_v60, %v2631_v26  ;;  %v2534_v35 = vadd.f32 %v2533_v37, %v2532_v45 }
 0x254   : > { %v2635_v41 = vadd.f32 %v2634_v30, %v2633_v7  ;;  %v2536_v49 = vadd.f32 %v2535_v34, %v2534_v35 }
 0x256   : > { %v2637_v58 = vadd.f32 %v2636_v47, %v2635_v41 }
 0x260   : > { %v3083_v15 = vpop.f32.mrf.mxu1 }
 0x261   : > { %v2941_v27 = vpack.c.bf16 %v3083_v15, %v3083_v15 }
 0x262   : > { %v2275_v29 = vpop.f32.mrf.mxu1 }
 0x263   : > { %2448 = vst.msk [vmem:[%s4125_s29 + $0x78] sm:$0xf] %vm427_vm0, %v2941_v27  ;;  %v2939_v57 = vpack.c.bf16 %v2275_v29, %v2275_v29 }
 0x264   : > { %v3084_v32 = vpop.f32.mrf.mxu1 }
 0x265   : > { %2446 = vst.msk [vmem:[%s4125_s29 + $0x70] sm:$0xf] %vm427_vm0, %v2939_v57  ;;  %v2942_v28 = vpack.c.bf16 %v3084_v32, %v3084_v32  ;;  %v2305_v6 = vpack.c.bf16 %v3084_v32, %v3083_v15 }
 0x266   : > { %v2278_v40 = vpop.f32.mrf.mxu1 }
 0x267   : > { %2449 = vst.msk [vmem:[%s4125_s29 + $0x7c] sm:$0xf] %vm427_vm0, %v2942_v28  ;;  %v2304_v44 = vpack.c.bf16 %v2278_v40, %v2275_v29  ;;  %v2940_v62 = vpack.c.bf16 %v2278_v40, %v2278_v40  ;;  %v2480_v42 = vunpack.c.l.bf16 %v2305_v6  ;;  %v2481_v33 = vunpack.c.h.bf16 %v2305_v6 }
 0x269   : > { %2447 = vst.msk [vmem:[%s4125_s29 + $0x74] sm:$0xf] %vm427_vm0, %v2940_v62  ;;  %v2478_v59 = vunpack.c.l.bf16 %v2304_v44  ;;  %v2479_v46 = vunpack.c.h.bf16 %v2304_v44  ;;  %v2581_v9 = vmul.f32 %v2480_v42, %v2480_v42  ;;  %v2541_v5 = vsel %vm1792_vm12, %v2480_v42, 0.0 }
 0x26a   : > { %v2582_v10 = vmul.f32 %v2481_v33, %v2481_v33  ;;  %v2543_v50 = vsel %vm1792_vm12, %v2481_v33, 0.0  ;;  %vm2652_vm0 = vcmask 1040384  }
 0x26b   : > { %v2537_v56 = vsel %vm1792_vm12, %v2478_v59, 0.0  ;;  %v2579_v51 = vmul.f32 %v2478_v59, %v2478_v59  ;;  %v2580_v8 = vmul.f32 %v2479_v46, %v2479_v46  ;;  %v2539_v1 = vsel %vm1792_vm12, %v2479_v46, 0.0 }
 0x26c   : > { %v2538_v25 = vadd.f32 %v2537_v56, %v2536_v49  ;;  %v2642_v0 = vsel %vm1792_vm12, %v2581_v9, 0.0  ;;  %v2644_v39 = vsel %vm1792_vm12, %v2582_v10, 0.0 }
 0x26d   : > { %v2638_v19 = vsel %vm1792_vm12, %v2579_v51, 0.0  ;;  %v2640_v52 = vsel %vm1792_vm12, %v2580_v8, 0.0 }
 0x26e   : > { %v2540_v54 = vadd.f32 %v2539_v1, %v2538_v25  ;;  %v2639_v14 = vadd.f32 %v2638_v19, %v2637_v58 }
 0x270   : > { %v2542_v63 = vadd.f32 %v2541_v5, %v2540_v54  ;;  %v2641_v2 = vadd.f32 %v2640_v52, %v2639_v14 }
 0x272   : > { %v2544_v3 = vadd.f32 %v2543_v50, %v2542_v63  ;;  %v2643_v4 = vadd.f32 %v2642_v0, %v2641_v2 }
 0x274   : > { %v2545_v61 = vrot.slane %v2544_v3, 4  ;;  %v2645_v12 = vadd.f32 %v2644_v39, %v2643_v4 }
 0x276   : > { %v2546_v13 = vadd.f32 %v2545_v61, %v2544_v3  ;;  %v2646_v11 = vrot.slane %v2645_v12, 4 }
 0x278   : > { %v2547_v16 = vrot.slane %v2546_v13, 2  ;;  %v2647_v55 = vadd.f32 %v2646_v11, %v2645_v12 }
 0x27a   : > { %v2548_v18 = vadd.f32 %v2547_v16, %v2546_v13  ;;  %v2648_v20 = vrot.slane %v2647_v55, 2 }
 0x27c   : > { %v2549_v21 = vrot.slane %v2548_v18, 1  ;;  %v2649_v53 = vadd.f32 %v2648_v20, %v2647_v55 }
 0x27e   : > { %v2650_v17 = vrot.slane %v2649_v53, 1  ;;  %v2550_v22 = vadd.f32 %v2549_v21, %v2548_v18 }
 0x280   : > { %v2651_v23 = vadd.f32 %v2650_v17, %v2649_v53 }
 0x282   : > { %v2653_v48 = vsel %vm2652_vm0, %v2550_v22, %v2651_v23 }
 0x283   : > { %2655 = vst.msk [vmem:[%s235_s7] sm:$0x3] %vm2654_vm6, %v2653_v48 }
 0x284 PF: > { %s16_s18 = sadd.s32 1, %s3171_s18  }
 0x285   : > { %p13_p4 = scmp.ge.s32.totalorder %s16_s18, 4  }
 0x287   :  { %15 = sbr.rel (!%p13_p4) target bundleno = 1 (0x1), region = 80 }

// kernel: residual_block_forward.3
= control target key start
LH: loop header
LB: loop body
LE: loop exit
PB: predicated region body
PF: predicated region fallthrough
CT: control target
= control target key end

     0   :  { %s4082_s21 = smov 0   ;;  %s5680_s0 = inlined_call_operand.vmem [shape: bf16[2,256,4], index: 0, kind: input, shape index: {}]   ;;  %s5681_s1 = inlined_call_operand.vmem [shape: bf16[36,8], index: 1, kind: input, shape index: {}]   ;;  %s5682_s2 = inlined_call_operand.vmem [shape: bf16[4,8], index: 2, kind: input, shape index: {}]   ;;  %s5683_s3 = inlined_call_operand.vmem [shape: bf16[2,256,8], index: 3, kind: output, shape index: {0}]   ;;  %s5684_s4 = inlined_call_operand.vmem [shape: bf16[2,256,8], index: 4, kind: output, shape index: {1}]   ;;  %s5685_s5 = inlined_call_operand.vmem [shape: f32[2,2,8], index: 5, kind: output, shape index: {2}]   ;;  %s5686_s6 = inlined_call_operand.vmem [shape: f32[2,2,8], index: 6, kind: output, shape index: {3}]  }
   0x1 LB: > { %s3614_s22 = sadd.s32 4294967295, %s4036_s21   ;;  %p3618_p0 = scmp.ge.s32.totalorder %s4036_s21, 1  ;;  %s4036_s21 = sphi %s4082_s21, %s17_s21  }
   0x2   : > { %p219_p1 = scmp.lt.s32.totalorder %s4036_s21, 3 }
   0x4   : > { %p220_p2 = pnand %p3618_p0, %p219_p1 }
   0x6   : > { %223 = sbr.rel (%p220_p2) target bundleno = 638 (0x27e), region = 32 }
   0xb   : > { %vm318_vm0 = vcmask 27648   ;;  %vm321_vm1 = vcmask 24576   ;;  %vm328_vm2 = vsmask.f32 256  ;;  %v4038_v0 = vmov 0   ;;  %p262_p3 = scmp.lt.s32.totalorder %s3614_s22, 1 }
   0xc   : > { %319 = vst.msk [vmem:[#allocation2] sm:$0xf] %vm318_vm0, %v4038_v0  ;;  %320 = vst.msk [vmem:[#allocation2 + $0x4] sm:$0xf] %vm318_vm0, %v4038_v0  ;;  %vm384_vm4 = vsmask.f32 7938 }
   0xd   : > { %322 = vst.msk [vmem:[#allocation2 + $0x8] sm:$0x1] %vm321_vm1, %v4038_v0  ;;  %vm4095_vm3 = vmand %vm321_vm1, %vm328_vm2  ;;  %v333_v2 = vld [vmem:[#allocation2 + $0xc] sm:$0x1]  ;;  %v336_v4 = vld [vmem:[#allocation2 + $0x18] sm:$0x1] }
   0xe   : > { %324 = vst.msk [vmem:[#allocation2 + $0xcc] sm:$0xf] %vm318_vm0, %v4038_v0  ;;  %325 = vst.msk [vmem:[#allocation2 + $0xd0] sm:$0xf] %vm318_vm0, %v4038_v0  ;;  %v334_v3 = vsel %vm4095_vm3, 0, %v333_v2  ;;  %s5779_s22 = smov (!%p262_p3, %s3614_s22), 1 }
   0xf   : > { %326 = vst.msk [vmem:[#allocation2 + $0xd4] sm:$0x1] %vm321_vm1, %v4038_v0  ;;  %335 = vst [vmem:[#allocation2 + $0xc] sm:$0x1] %v334_v3  ;;  %v337_v5 = vsel %vm4095_vm3, 0, %v336_v4  ;;  %s4117_s23 = sshll.u32 %s5779_s22, 7 }
  0x10   : > { %v339_v6 = vld [vmem:[#allocation2 + $0x24] sm:$0x1]  ;;  %vm4110_vm5 = vmand %vm321_vm1, %vm384_vm4  ;;  %338 = vst [vmem:[#allocation2 + $0x18] sm:$0x1] %v337_v5  ;;  %v389_v9 = vld [vmem:[#allocation2 + $0x14] sm:$0x1]  ;;  %s4125_s26 = scalar_lea.vmem %s5680_s0, %s4117_s23  ;;  %s5326_s24 = scalar_lea.vmem %s5683_s3, %s4117_s23 }
  0x11   : > { %v340_v8 = vsel %vm4095_vm3, 0, %v339_v6  ;;  %v390_v10 = vsel %vm4110_vm5, 0, %v389_v9  ;;  %v392_v11 = vld [vmem:[#allocation2 + $0x20] sm:$0x1]  ;;  %vm440_vm6 = vsmask.f32 4368  ;;  %vm4139_vm7 = vmand %vm318_vm0, %vm384_vm4 }
  0x12   : > { %341 = vst [vmem:[#allocation2 + $0x24] sm:$0x1] %v340_v8  ;;  %391 = vst [vmem:[#allocation2 + $0x14] sm:$0x1] %v390_v10  ;;  %v393_v12 = vsel %vm4110_vm5, 0, %v392_v11  ;;  %vm1284_vm9 = vcmask 1046528  }
  0x13   : > { %v286_v13 = vld [vmem:[%s4125_s26] sm:$0xf]  ;;  %v287_v14 = vld [vmem:[%s4125_s26 + $0x4] sm:$0xf]  ;;  %v288_v15 = vld [vmem:[%s4125_s26 + $0x8] sm:$0xf] }
  0x14   : > { %394 = vst [vmem:[#allocation2 + $0x20] sm:$0x1] %v393_v12  ;;  %v330_v16 = vld [vmem:[#allocation2] sm:$0x1]  ;;  %v386_v17 = vld [vmem:[#allocation2 + $0x8] sm:$0x1]  ;;  %vm4147_vm8 = vmor %vm328_vm2, %vm440_vm6 }
  0x15   : > { %v331_v18 = vsel %vm4095_vm3, 0, %v330_v16  ;;  %v387_v19 = vsel %vm4110_vm5, 0, %v386_v17  ;;  %v443_v20 = vshrl.u32 %v286_v13, 16  ;;  %v446_v21 = vshll.u32 %v286_v13, 16  ;;  %v289_v22 = vld [vmem:[%s4125_s26 + $0xc] sm:$0xf] }
  0x16   : > { %332 = vst [vmem:[#allocation2] sm:$0x1] %v331_v18  ;;  %388 = vst [vmem:[#allocation2 + $0x8] sm:$0x1] %v387_v19  ;;  %v451_v23 = vshrl.u32 %v287_v14, 16  ;;  %v454_v24 = vshll.u32 %v287_v14, 16 }
  0x17   : > { %v460_v25 = vshrl.u32 %v288_v15, 16  ;;  %v463_v26 = vshll.u32 %v288_v15, 16  ;;  %v445_v27 = vrot.slane %v443_v20, 7  ;;  %v765_v28 = vld [vmem:[#allocation2 + $0xc] sm:$0xf]  ;;  %v468_v29 = vshrl.u32 %v289_v22, 16 }
  0x18   : > { %v471_v30 = vshll.u32 %v289_v22, 16  ;;  %v453_v32 = vrot.slane %v451_v23, 7  ;;  %v290_v34 = vld [vmem:[%s4125_s26 + $0x10] sm:$0xf]  ;;  %v291_v35 = vld [vmem:[%s4125_s26 + $0x14] sm:$0xf] }
  0x19   : > { %v462_v33 = vrot.slane %v460_v25, 7  ;;  %v448_v37 = vor.u32 %v446_v21, %v445_v27  ;;  %v449_v38 = vrot.slane %v445_v27, 4  ;;  %v470_v39 = vrot.slane %v468_v29, 7  ;;  %v772_v40 = vld [vmem:[#allocation2 + $0x18] sm:$0xf]  ;;  %s4039_s27 = smov 8  }
  0x1a   : > { %v477_v41 = vshrl.u32 %v290_v34, 16  ;;  %v456_v42 = vor.u32 %v454_v24, %v453_v32  ;;  %v480_v45 = vshll.u32 %v290_v34, 16  ;;  %v395_v46 = vld [vmem:[#allocation2 + $0x2c] sm:$0x1]  ;;  %v485_v50 = vshrl.u32 %v291_v35, 16  ;;  %s4040_s28 = smov 12  }
  0x1b   : > { %v465_v43 = vor.u32 %v463_v26, %v462_v33  ;;  %v466_v44 = vrot.slane %v462_v33, 4  ;;  %v766_v47 = vsel %vm4139_vm7, %v448_v37, %v765_v28  ;;  %v473_v48 = vor.u32 %v471_v30, %v470_v39  ;;  %v779_v51 = vld [vmem:[#allocation2 + $0x24] sm:$0xf]  ;;  %v769_v52 = vld [vmem:[#allocation2 + $0x14] sm:$0x1]  ;;  %s4041_s29 = smov 24  }
  0x1c   : > { %v479_v49 = vrot.slane %v477_v41, 7  ;;  %v457_v53 = vsel %vm4147_vm8, %v449_v38, %v456_v42  ;;  %767 = vst [vmem:[#allocation2 + $0xc] sm:$0xf] %v766_v47  ;;  %v488_v55 = vshll.u32 %v291_v35, 16  ;;  %v458_v56 = vrot.slane %v453_v32, 4  ;;  %s4042_s30 = smov 4  }
  0x1d   : > { %v773_v54 = vsel %vm4139_vm7, %v465_v43, %v772_v40  ;;  %v776_v57 = vld [vmem:[#allocation2 + $0x20] sm:$0x1]  ;;  %v292_v58 = vld [vmem:[%s4125_s26 + $0x18] sm:$0xf]  ;;  %v342_v59 = vld [vmem:[#allocation2 + $0x30] sm:$0x1]  ;;  %v474_v61 = vsel %vm4147_vm8, %v466_v44, %v473_v48 }
  0x1e   : > { %v4158_v60 = vld [vmem:[#allocation2] sm:$0xff]   ;;  %768 = vst.msk [vmem:[#allocation2 + $0x10] sm:$0xf] %vm318_vm0, %v457_v53  ;;  %774 = vst [vmem:[#allocation2 + $0x18] sm:$0xf] %v773_v54  ;;  %v482_v62 = vor.u32 %v480_v45, %v479_v49  ;;  %v483_v63 = vrot.slane %v479_v49, 4  ;;  %v770_v3 = vsel %vm4095_vm3, %v458_v56, %v769_v52 }
  0x1f   : > { %v3975_v0 = vld [vmem:[#allocation2 + $0x8] ss:$0 sps:$4 sm:$0x11]   ;;  %775 = vst.msk [vmem:[#allocation2 + $0x1c] sm:$0xf] %vm318_vm0, %v474_v61  ;;  %v487_v2 = vrot.slane %v485_v50, 7 }
  0x20   : > { %v475_v4 = vrot.slane %v470_v39, 4  ;;  %v396_v5 = vsel %vm4110_vm5, 0, %v395_v46  ;;  %v1285_v6 = vrot.slane %v4158_v60, 1  ;;  %v780_v8 = vsel %vm4139_vm7, %v482_v62, %v779_v51  ;;  %771 = vst [vmem:[#allocation2 + $0x14] sm:$0x1] %v770_v3  ;;  %s4043_s7 = smov 20  }
  0x21   : > { %v1063_v9 = vshll.u32 %v4158_v60, 16  ;;  %397 = vst [vmem:[#allocation2 + $0x2c] sm:$0x1] %v396_v5  ;;  %v1286_v10 = vrot.slane %v3975_v0, 1  ;;  %v490_v11 = vor.u32 %v488_v55, %v487_v2  ;;  %781 = vst [vmem:[#allocation2 + $0x24] sm:$0xf] %v780_v8 }
  0x22   : > { %v777_v12 = vsel %vm4095_vm3, %v475_v4, %v776_v57  ;;  %v293_v13 = vld [vmem:[%s4125_s26 + $0x1c] sm:$0xf]  ;;  %v398_v14 = vld [vmem:[#allocation2 + $0x38] sm:$0x1]  ;;  %v1061_v15 = vshrl.u32 %v4158_v60, 16  ;;  %v343_v16 = vsel %vm4095_vm3, 0, %v342_v59 }
  0x23   : > { %778 = vst [vmem:[#allocation2 + $0x20] sm:$0x1] %v777_v12  ;;  %v494_v17 = vshrl.u32 %v292_v58, 16  ;;  %v345_v18 = vld [vmem:[#allocation2 + $0x3c] sm:$0x1]  ;;  %v1287_v19 = vsel %vm1284_vm9, %v1285_v6, %v1286_v10  ;;  %v491_v20 = vsel %vm4147_vm8, %v483_v63, %v490_v11  ;;  %v1068_v21 = vshll.u32 %v3975_v0, 16 }
  0x24   : > { %344 = vst [vmem:[#allocation2 + $0x30] sm:$0x1] %v343_v16  ;;  %v497_v22 = vshll.u32 %v292_v58, 16  ;;  %1333 = vrot.lane.b32.xlu1 %v1287_v19, %s4039_s27  ;;  %v880_v23 = vld [vmem:[#allocation2 + $0xc] sm:$0xf]  ;;  %v1065_v24 = vrot.slane %v1063_v9, 1 }
  0x25   : > { %782 = vst.msk [vmem:[#allocation2 + $0x28] sm:$0xf] %vm318_vm0, %v491_v20  ;;  %v492_v25 = vrot.slane %v487_v2, 4  ;;  %v496_v26 = vrot.slane %v494_v17, 7  ;;  %v502_v27 = vshrl.u32 %v293_v13, 16  ;;  %v399_v30 = vsel %vm4110_vm5, 0, %v398_v14 }
  0x26   : > { %v881_v28 = vld [vmem:[#allocation2 + $0x10] sm:$0xf]  ;;  %v883_v29 = vld [vmem:[#allocation2 + $0x18] sm:$0xf]  ;;  %v346_v32 = vsel %vm4095_vm3, 0, %v345_v18  ;;  %v505_v41 = vshll.u32 %v293_v13, 16  ;;  %v1066_v46 = vor.u32 %v1065_v24, %v1061_v15 }
  0x27   : > { %v4187_v33 = vcombine.low %v880_v23, %v881_v28  ;;  %v884_v34 = vld [vmem:[#allocation2 + $0x1c] sm:$0xf]  ;;  %400 = vst [vmem:[#allocation2 + $0x38] sm:$0x1] %v399_v30  ;;  %347 = vst [vmem:[#allocation2 + $0x3c] sm:$0x1] %v346_v32  ;;  %v499_v39 = vor.u32 %v497_v22, %v496_v26 }
  0x28   : > { %v4189_v35 = vcombine.low %v883_v29, %v884_v34  ;;  %v882_v37 = vld [vmem:[#allocation2 + $0x14] sm:$0x1]  ;;  %v783_v38 = vld [vmem:[#allocation2 + $0x2c] sm:$0x1]  ;;  %v504_v40 = vrot.slane %v502_v27, 7  ;;  %v1070_v42 = vrot.slane %v1068_v21, 1 }
  0x29   : > { %1370 = vrot.lane.b32.xlu0 %v4187_v33, %s4040_s28  ;;  %vm1059_vm10 = vsmask.f32 7424  ;;  %v4193_v43 = vcombine.low %v882_v37, %v882_v37  ;;  %v294_v44 = vld [vmem:[%s4125_s26 + $0x20] sm:$0xf]  ;;  %v886_v45 = vld [vmem:[#allocation2 + $0x24] sm:$0xf]  ;;  %v784_v49 = vsel %vm4095_vm3, %v492_v25, %v783_v38 }
  0x2a   : > { %1372 = vrot.lane.b32.xlu1 %v4189_v35, %s4040_s28  ;;  %v885_v47 = vld [vmem:[#allocation2 + $0x20] sm:$0x1]  ;;  %v1087_v48 = vshll.u32 %v4189_v35, 16  ;;  %v500_v50 = vrot.slane %v496_v26, 4  ;;  %v1288_v51 = vrot.slane %v4187_v33, 1  ;;  %v1085_v53 = vshrl.u32 %v4189_v35, 16 }
  0x2b   : > { %v3645_v52 = vcombine.low %v885_v47, %v885_v47  ;;  %v1075_v54 = vshll.u32 %v4187_v33, 16  ;;  %785 = vst [vmem:[#allocation2 + $0x2c] sm:$0x1] %v784_v49  ;;  %v786_v55 = vld [vmem:[#allocation2 + $0x30] sm:$0xf]  ;;  %v1289_v57 = vrot.slane %v4193_v43, 1  ;;  %v507_v59 = vor.u32 %v505_v41, %v504_v40 }
  0x2c   : > { %v887_v56 = vld [vmem:[#allocation2 + $0x28] sm:$0xf]  ;;  %v1089_v58 = vrot.slane %v1087_v48, 1  ;;  %v787_v60 = vsel %vm4139_vm7, %v499_v39, %v786_v55  ;;  %v1291_v62 = vrot.slane %v4189_v35, 1  ;;  %v511_v0 = vshrl.u32 %v294_v44, 16  ;;  %s4044_s8 = smov 32  }
  0x2d   : > { %1489 = vrot.lane.b32.xlu0 %v4189_v35, %s4041_s29  ;;  %v4209_v61 = vcombine.low %v886_v45, %v887_v56  ;;  %v1292_v63 = vrot.slane %v3645_v52, 1  ;;  %788 = vst [vmem:[#allocation2 + $0x30] sm:$0xf] %v787_v60  ;;  %v1071_v2 = vsel %vm1059_vm10, %v1066_v46, %v1070_v42  ;;  %v1073_v3 = vshrl.u32 %v4187_v33, 16  ;;  %v295_v4 = vld [vmem:[%s4125_s26 + $0x24] sm:$0xf] }
  0x2e   : > { %v401_v5 = vld [vmem:[#allocation2 + $0x44] sm:$0x1]  ;;  %v1092_v6 = vshll.u32 %v3645_v52, 16  ;;  %v1077_v8 = vrot.slane %v1075_v54, 1  ;;  %v1080_v9 = vshll.u32 %v4193_v43, 16  ;;  %v1290_v12 = vsel %vm1284_vm9, %v1288_v51, %v1289_v57  ;;  %s4045_s9 = smov 16  }
  0x2f   : > { %1491 = vrot.lane.b32.xlu1 %v4209_v61, %s4041_s29  ;;  %v1099_v10 = vshll.u32 %v4209_v61, 16  ;;  %v790_v11 = vld [vmem:[#allocation2 + $0x38] sm:$0x1]  ;;  %v1090_v13 = vor.u32 %v1089_v58, %v1085_v53  ;;  %v508_v14 = vsel %vm4147_vm8, %v500_v50, %v507_v59  ;;  %v509_v15 = vrot.slane %v504_v40, 4  ;;  %v296_v16 = vld [vmem:[%s4125_s26 + $0x28] sm:$0xf] }
  0x30   : > { %v348_v17 = vld [vmem:[#allocation2 + $0x48] sm:$0x1]  ;;  %v4225_v18 = vsel %vm1284_vm9, %v1291_v62, %v1292_v63  ;;  %789 = vst.msk [vmem:[#allocation2 + $0x34] sm:$0xf] %vm318_vm0, %v508_v14  ;;  %v513_v19 = vrot.slane %v511_v0, 7  ;;  %v514_v20 = vshll.u32 %v294_v44, 16  ;;  %v1078_v41 = vor.u32 %v1077_v8, %v1073_v3 }
  0x31   : > { %1252 = vrot.lane.b32.xlu0 %v1071_v2, %s4042_s30  ;;  %v519_v21 = vshrl.u32 %v295_v4, 16  ;;  %v793_v22 = vld [vmem:[#allocation2 + $0x3c] sm:$0xf]  ;;  %v1097_v24 = vshrl.u32 %v4209_v61, 16  ;;  %v791_v25 = vsel %vm4095_vm3, %v509_v15, %v790_v11  ;;  %v522_v26 = vshll.u32 %v295_v4, 16  ;;  %s4046_s10 = smov 28  }
  0x32   : > { %v4228_v23 = vld [vmem:[#allocation2 + $0x2c] sm:$0x1]  ;;  %v402_v27 = vsel %vm4110_vm5, 0, %v401_v5  ;;  %v1094_v28 = vrot.slane %v1092_v6, 1  ;;  %v1101_v30 = vrot.slane %v1099_v10, 1  ;;  %v516_v32 = vor.u32 %v514_v20, %v513_v19 }
  0x33   : > { %1335 = vrot.lane.b32.xlu1 %v1290_v12, %s4039_s27  ;;  %v4238_v29 = vcombine.low %v4228_v23, %v4228_v23  ;;  %792 = vst [vmem:[#allocation2 + $0x38] sm:$0x1] %v791_v25  ;;  %403 = vst [vmem:[#allocation2 + $0x44] sm:$0x1] %v402_v27  ;;  %v517_v34 = vrot.slane %v513_v19, 4  ;;  %v521_v37 = vrot.slane %v519_v21, 7 }
  0x34   : > { %v297_v38 = vld [vmem:[%s4125_s26 + $0x2c] sm:$0xf]  ;;  %v349_v39 = vsel %vm4095_vm3, 0, %v348_v17  ;;  %v528_v40 = vshrl.u32 %v296_v16, 16  ;;  %v794_v43 = vsel %vm4139_vm7, %v516_v32, %v793_v22  ;;  %v404_v44 = vld [vmem:[#allocation2 + $0x50] sm:$0x1]  ;;  %v4250_v50 = vsel %vm1059_vm10, %v1090_v13, %v1094_v28 }
  0x35   : > { %1452 = vrot.lane.b32.xlu0 %v1290_v12, %s4043_s7  ;;  %v1104_v42 = vshll.u32 %v4238_v29, 16  ;;  %350 = vst [vmem:[#allocation2 + $0x48] sm:$0x1] %v349_v39  ;;  %v1082_v45 = vrot.slane %v1080_v9, 1  ;;  %v524_v46 = vor.u32 %v522_v26, %v521_v37  ;;  %795 = vst [vmem:[#allocation2 + $0x3c] sm:$0xf] %v794_v43  ;;  %v1102_v51 = vor.u32 %v1101_v30, %v1097_v24 }
  0x36   : > { %v530_v47 = vrot.slane %v528_v40, 7  ;;  %v531_v48 = vshll.u32 %v296_v16, 16  ;;  %v351_v49 = vld [vmem:[#allocation2 + $0x54] sm:$0x1]  ;;  %v526_v52 = vrot.slane %v521_v37, 4  ;;  %v536_v53 = vshrl.u32 %v297_v38, 16 }
  0x37   : > { %1454 = vrot.lane.b32.xlu1 %v4225_v18, %s4043_s7  ;;  %v298_v54 = vld [vmem:[%s4125_s26 + $0x30] sm:$0xf]  ;;  %v1106_v55 = vrot.slane %v1104_v42, 1  ;;  %v525_v56 = vsel %vm4147_vm8, %v517_v34, %v524_v46  ;;  %v539_v57 = vshll.u32 %v297_v38, 16  ;;  %v405_v58 = vsel %vm4110_vm5, 0, %v404_v44 }
  0x38   : > { %v889_v59 = vld [vmem:[#allocation2 + $0x30] sm:$0xf]  ;;  %796 = vst.msk [vmem:[#allocation2 + $0x40] sm:$0xf] %vm318_vm0, %v525_v56  ;;  %v538_v60 = vrot.slane %v536_v53, 7  ;;  %v352_v62 = vsel %vm4095_vm3, 0, %v351_v49  ;;  %v1083_v63 = vsel %vm1059_vm10, %v1078_v41, %v1082_v45  ;;  %v533_v3 = vor.u32 %v531_v48, %v530_v47 }
  0x39   : > { %1571 = vrot.lane.b32.xlu0 %v4225_v18, %s4044_s8  ;;  %406 = vst [vmem:[#allocation2 + $0x50] sm:$0x1] %v405_v58  ;;  %v890_v0 = vld [vmem:[#allocation2 + $0x34] sm:$0xf]  ;;  %v534_v4 = vrot.slane %v530_v47, 4  ;;  %v545_v5 = vshrl.u32 %v298_v54, 16  ;;  %v4267_v8 = vsel %vm1059_vm10, %v1102_v51, %v1106_v55 }
  0x3a   : > { %v797_v2 = vld [vmem:[#allocation2 + $0x44] sm:$0x1]  ;;  %353 = vst [vmem:[#allocation2 + $0x54] sm:$0x1] %v352_v62  ;;  %v299_v6 = vld [vmem:[%s4125_s26 + $0x34] sm:$0xf]  ;;  %v541_v10 = vor.u32 %v539_v57, %v538_v60  ;;  %v4272_v14 = vcombine.low %v889_v59, %v890_v0 }
  0x3b   : > { %1419 = vrot.lane.b32.xlu1 %v4250_v50, %s4045_s9  ;;  %v798_v9 = vsel %vm4095_vm3, %v526_v52, %v797_v2  ;;  %v548_v12 = vshll.u32 %v298_v54, 16  ;;  %v407_v13 = vld [vmem:[#allocation2 + $0x5c] sm:$0x1]  ;;  %v4274_v15 = vld [vmem:[#allocation2 + $0x38] sm:$0x1]  ;;  %v543_v16 = vrot.slane %v538_v60, 4 }
  0x3c   : > { %v800_v11 = vld [vmem:[#allocation2 + $0x48] sm:$0xf]  ;;  %799 = vst [vmem:[#allocation2 + $0x44] sm:$0x1] %v798_v9  ;;  %v354_v17 = vld [vmem:[#allocation2 + $0x60] sm:$0x1]  ;;  %v542_v19 = vsel %vm4147_vm8, %v534_v4, %v541_v10  ;;  %v4289_v37 = vcombine.low %v4274_v15, %v4274_v15 }
  0x3d   : > { %1254 = vrot.lane.b32.xlu0 %v1083_v63, %s4042_s30  ;;  %v801_v20 = vsel %vm4139_vm7, %v533_v3, %v800_v11  ;;  %v547_v21 = vrot.slane %v545_v5, 7  ;;  %v553_v22 = vshrl.u32 %v299_v6, 16  ;;  %v1294_v24 = vrot.slane %v4209_v61, 1  ;;  %803 = vst.msk [vmem:[#allocation2 + $0x4c] sm:$0xf] %vm318_vm0, %v542_v19 }
  0x3e   : > { %802 = vst [vmem:[#allocation2 + $0x48] sm:$0xf] %v801_v20  ;;  %v556_v25 = vshll.u32 %v299_v6, 16  ;;  %v300_v32 = vld [vmem:[%s4125_s26 + $0x38] sm:$0xf]  ;;  %v1295_v34 = vrot.slane %v4238_v29, 1 }
  0x3f   : > { %1538 = vrot.lane.b32.xlu1 %v4267_v8, %s4046_s10  ;;  %v550_v27 = vor.u32 %v548_v12, %v547_v21  ;;  %v551_v28 = vrot.slane %v547_v21, 4  ;;  %v555_v30 = vrot.slane %v553_v22, 7  ;;  %v408_v40 = vsel %vm4110_vm5, 0, %v407_v13  ;;  %v301_v41 = vld [vmem:[%s4125_s26 + $0x3c] sm:$0xf] }
  0x40   : > { %v804_v26 = vld [vmem:[#allocation2 + $0x50] sm:$0x1]  ;;  %v1111_v42 = vshll.u32 %v4272_v14, 16  ;;  %409 = vst [vmem:[#allocation2 + $0x5c] sm:$0x1] %v408_v40  ;;  %v355_v29 = vsel %vm4095_vm3, 0, %v354_v17  ;;  %v4308_v51 = vsel %vm1284_vm9, %v1294_v24, %v1295_v34 }
  0x41   : > { %1417 = vrot.lane.b32.xlu0 %v1083_v63, %s4045_s9  ;;  %v805_v38 = vsel %vm4095_vm3, %v543_v16, %v804_v26  ;;  %v807_v39 = vld [vmem:[#allocation2 + $0x54] sm:$0xf]  ;;  %v558_v43 = vor.u32 %v556_v25, %v555_v30  ;;  %356 = vst [vmem:[#allocation2 + $0x60] sm:$0x1] %v355_v29  ;;  %v562_v45 = vshrl.u32 %v300_v32, 16  ;;  %v570_v48 = vshrl.u32 %v301_v41, 16 }
  0x42   : > { %806 = vst [vmem:[#allocation2 + $0x50] sm:$0x1] %v805_v38  ;;  %v808_v44 = vsel %vm4139_vm7, %v550_v27, %v807_v39  ;;  %v410_v46 = vld [vmem:[#allocation2 + $0x68] sm:$0x1]  ;;  %v573_v49 = vshll.u32 %v301_v41, 16  ;;  %v1109_v52 = vshrl.u32 %v4272_v14, 16 }
  0x43   : > { %1256 = vrot.lane.b32.xlu1 %v4250_v50, %s4042_s30  ;;  %809 = vst [vmem:[#allocation2 + $0x54] sm:$0xf] %v808_v44  ;;  %v559_v47 = vsel %vm4147_vm8, %v551_v28, %v558_v43  ;;  %v564_v53 = vrot.slane %v562_v45, 7  ;;  %v565_v54 = vshll.u32 %v300_v32, 16  ;;  %v1113_v55 = vrot.slane %v1111_v42, 1 }
  0x44   : > { %810 = vst.msk [vmem:[#allocation2 + $0x58] sm:$0xf] %vm318_vm0, %v559_v47  ;;  %v1116_v56 = vshll.u32 %v4289_v37, 16  ;;  %v572_v57 = vrot.slane %v570_v48, 7  ;;  %v411_v58 = vsel %vm4110_vm5, 0, %v410_v46  ;;  %v1297_v22 = vrot.slane %v4272_v14, 1 }
  0x45   : > { %1536 = vrot.lane.b32.xlu0 %v4250_v50, %s4046_s10  ;;  %v560_v50 = vrot.slane %v555_v30, 4  ;;  %412 = vst [vmem:[#allocation2 + $0x68] sm:$0x1] %v411_v58  ;;  %v892_v59 = vld [vmem:[#allocation2 + $0x3c] sm:$0xf]  ;;  %v568_v62 = vrot.slane %v564_v53, 4  ;;  %v567_v2 = vor.u32 %v565_v54, %v564_v53  ;;  %v1114_v3 = vor.u32 %v1113_v55, %v1109_v52 }
  0x46   : > { %v893_v60 = vld [vmem:[#allocation2 + $0x40] sm:$0xf]  ;;  %v575_v63 = vor.u32 %v573_v49, %v572_v57  ;;  %v1118_v4 = vrot.slane %v1116_v56, 1  ;;  %v357_v6 = vld [vmem:[#allocation2 + $0x6c] sm:$0x1]  ;;  %v577_v13 = vrot.slane %v572_v57, 4 }
  0x47   : > { %1258 = vrot.lane.b32.xlu1 %v4267_v8, %s4042_s30  ;;  %v811_v0 = vld [vmem:[#allocation2 + $0x5c] sm:$0x1]  ;;  %v302_v5 = vld [vmem:[%s4125_s26 + $0x40] sm:$0xf]  ;;  %v4322_v9 = vcombine.low %v892_v59, %v893_v60  ;;  %v4331_v16 = vld [vmem:[#allocation2 + $0x44] sm:$0x1] }
  0x48   : > { %v812_v10 = vsel %vm4095_vm3, %v560_v50, %v811_v0  ;;  %v576_v11 = vsel %vm4147_vm8, %v568_v62, %v575_v63  ;;  %v814_v12 = vld [vmem:[#allocation2 + $0x60] sm:$0xf]  ;;  %v303_v19 = vld [vmem:[%s4125_s26 + $0x44] sm:$0xf]  ;;  %v358_v20 = vsel %vm4095_vm3, 0, %v357_v6  ;;  %v579_v21 = vshrl.u32 %v302_v5, 16 }
  0x49   : > { %1573 = vrot.lane.b32.xlu0 %v4308_v51, %s4044_s8  ;;  %813 = vst [vmem:[#allocation2 + $0x5c] sm:$0x1] %v812_v10  ;;  %817 = vst.msk [vmem:[#allocation2 + $0x64] sm:$0xf] %vm318_vm0, %v576_v11  ;;  %v815_v17 = vsel %vm4139_vm7, %v567_v2, %v814_v12  ;;  %v1298_v24 = vrot.slane %v4289_v37, 1  ;;  %v1123_v27 = vshll.u32 %v4322_v9, 16  ;;  %v4351_v34 = vcombine.low %v4331_v16, %v4331_v16 }
  0x4a   : > { %816 = vst [vmem:[#allocation2 + $0x60] sm:$0xf] %v815_v17  ;;  %359 = vst [vmem:[#allocation2 + $0x6c] sm:$0x1] %v358_v20  ;;  %v413_v26 = vld [vmem:[#allocation2 + $0x74] sm:$0x1] }
  0x4b   : > { %1339 = vrot.lane.b32.xlu1 %v4308_v51, %s4039_s27  ;;  %v582_v30 = vshll.u32 %v302_v5, 16  ;;  %v304_v32 = vld [vmem:[%s4125_s26 + $0x48] sm:$0xf]  ;;  %v581_v37 = vrot.slane %v579_v21, 7  ;;  %v587_v38 = vshrl.u32 %v303_v19, 16  ;;  %v590_v39 = vshll.u32 %v303_v19, 16 }
  0x4c   : > { %v818_v25 = vld [vmem:[#allocation2 + $0x68] sm:$0x1]  ;;  %v360_v40 = vld [vmem:[#allocation2 + $0x78] sm:$0x1]  ;;  %v414_v41 = vsel %vm4110_vm5, 0, %v413_v26  ;;  %v4358_v42 = vsel %vm1284_vm9, %v1297_v22, %v1298_v24  ;;  %v596_v46 = vshrl.u32 %v304_v32, 16 }
  0x4d   : > { %1337 = vrot.lane.b32.xlu0 %v4225_v18, %s4039_s27  ;;  %v4343_v18 = vsel %vm1059_vm10, %v1114_v3, %v1118_v4  ;;  %v819_v28 = vsel %vm4095_vm3, %v577_v13, %v818_v25  ;;  %v589_v43 = vrot.slane %v587_v38, 7  ;;  %415 = vst [vmem:[#allocation2 + $0x74] sm:$0x1] %v414_v41  ;;  %v584_v44 = vor.u32 %v582_v30, %v581_v37  ;;  %v305_v57 = vld [vmem:[%s4125_s26 + $0x4c] sm:$0xf]  ;;  %v3998_v30 = vld [vmem:[%s5681_s1] sm:$0xff]  }
  0x4e   : > { %820 = vst [vmem:[#allocation2 + $0x68] sm:$0x1] %v819_v28  ;;  %v585_v29 = vrot.slane %v581_v37, 4  ;;  %v361_v45 = vsel %vm4095_vm3, 0, %v360_v40  ;;  %v1121_v47 = vshrl.u32 %v4322_v9, 16  ;;  %v1125_v48 = vrot.slane %v1123_v27, 1 }
  0x4f   : > { %1376 = vrot.lane.b32.xlu1 %v4272_v14, %s4040_s28  ;;  %v1128_v49 = vshll.u32 %v4351_v34, 16  ;;  %v592_v52 = vor.u32 %v590_v39, %v589_v43  ;;  %362 = vst [vmem:[#allocation2 + $0x78] sm:$0x1] %v361_v45  ;;  %v598_v54 = vrot.slane %v596_v46, 7  ;;  %v599_v55 = vshll.u32 %v304_v32, 16  ;;  %v3997_v12 = vld [vmem:[%s5681_s1 + $0x8] sm:$0xff]  }
  0x50   : > { %v594_v56 = vrot.slane %v589_v43, 4  ;;  %v1126_v59 = vor.u32 %v1125_v48, %v1121_v47  ;;  %v604_v63 = vshrl.u32 %v305_v57, 16  ;;  %v3995_v0 = vld [vmem:[%s5681_s1 + $0x10] ss:$0 sps:$4 sm:$0x33]   ;;  %vm1920_vm11 = vcmask 1041408  }
  0x51   : > { %1374 = vrot.lane.b32.xlu0 %v4209_v61, %s4040_s28  ;;  %v821_v53 = vld [vmem:[#allocation2 + $0x6c] sm:$0xf]  ;;  %v593_v58 = vsel %vm4147_vm8, %v585_v29, %v592_v52  ;;  %v1130_v60 = vrot.slane %v1128_v49, 1  ;;  %v895_v2 = vld [vmem:[#allocation2 + $0x48] sm:$0xf]  ;;  %v602_v6 = vrot.slane %v598_v54, 4  ;;  %3955 = vmatprep.subr.msk.bf16.mxu0 %vm1920_vm11, %v3995_v0 }
  0x52   : > { %v822_v50 = vsel %vm4139_vm7, %v584_v44, %v821_v53  ;;  %824 = vst.msk [vmem:[#allocation2 + $0x70] sm:$0xf] %vm318_vm0, %v593_v58  ;;  %v896_v3 = vld [vmem:[#allocation2 + $0x4c] sm:$0xf]  ;;  %v416_v5 = vld [vmem:[#allocation2 + $0x80] sm:$0x1] }
  0x53   : > { %1423 = vrot.lane.b32.xlu1 %v4343_v18, %s4045_s9  ;;  %823 = vst [vmem:[#allocation2 + $0x6c] sm:$0xf] %v822_v50  ;;  %v4385_v10 = vrot.slane %v604_v63, 7  ;;  %v4391_v13 = vsel %vm1059_vm10, %v1126_v59, %v1130_v60  ;;  %v1922_v20 = vsel %vm1920_vm11, %v3995_v0, 0  ;;  %v306_v21 = vld [vmem:[%s4125_s26 + $0x50] sm:$0xf]  ;;  %v4401_v24 = vcombine.low %v895_v2, %v896_v3 }
  0x54   : > { %v825_v62 = vld [vmem:[#allocation2 + $0x74] sm:$0x1]  ;;  %v363_v22 = vld [vmem:[#allocation2 + $0x84] sm:$0x1]  ;;  %3884 = vmatpush3.bf16.msra.mxu0 %v1922_v20  ;;  %v417_v25 = vsel %vm4110_vm5, 0, %v416_v5  ;;  %v1300_v37 = vrot.slane %v4322_v9, 1 }
  0x55   : > { %1421 = vrot.lane.b32.xlu0 %v4267_v8, %s4045_s9  ;;  %v601_v8 = vor.u32 %v599_v55, %v598_v54  ;;  %v826_v4 = vsel %vm4095_vm3, %v594_v56, %v825_v62  ;;  %5726 = vst [vmem:[#allocation3_spill] sm:$0xff] %v4401_v24  ;;  %v307_v26 = vld [vmem:[%s4125_s26 + $0x54] sm:$0xf]  ;;  %v419_v27 = vld [vmem:[#allocation2 + $0x8c] sm:$0x1]  ;;  %3885 = vmatprep.subr.bf16.mxu0 %v3997_v12  ;;  %v1301_v38 = vrot.slane %v4351_v34, 1 }
  0x56   : > { %827 = vst [vmem:[#allocation2 + $0x74] sm:$0x1] %v826_v4  ;;  %v828_v11 = vld [vmem:[#allocation2 + $0x78] sm:$0xf]  ;;  %418 = vst [vmem:[#allocation2 + $0x80] sm:$0x1] %v417_v25 }
  0x57   : > { %1458 = vrot.lane.b32.xlu1 %v4358_v42, %s4043_s7  ;;  %v829_v17 = vsel %vm4139_vm7, %v601_v8, %v828_v11  ;;  %v308_v32 = vld [vmem:[%s4125_s26 + $0x58] sm:$0xf]  ;;  %v364_v39 = vsel %vm4095_vm3, 0, %v363_v22  ;;  %v613_v40 = vshrl.u32 %v306_v21, 16  ;;  %v366_v41 = vld [vmem:[#allocation2 + $0x90] sm:$0x1]  ;;  %v4438_v56 = vsel %vm1284_vm9, %v1300_v37, %v1301_v38 }
  0x58   : > { %830 = vst [vmem:[#allocation2 + $0x78] sm:$0xf] %v829_v17  ;;  %v4421_v43 = vld [vmem:[#allocation2 + $0x50] sm:$0x1]  ;;  %365 = vst [vmem:[#allocation2 + $0x84] sm:$0x1] %v364_v39  ;;  %3886 = vmatpush3.bf16.msra.mxu0 %v3997_v12 }
  0x59   : > { %1456 = vrot.lane.b32.xlu0 %v4308_v51, %s4043_s7  ;;  %v607_v51 = vshll.u32 %v305_v57, 16  ;;  %v616_v44 = vshll.u32 %v306_v21, 16  ;;  %v621_v29 = vshrl.u32 %v307_v26, 16  ;;  %v624_v45 = vshll.u32 %v307_v26, 16  ;;  %3887 = vmatprep.subr.bf16.mxu0 %v3998_v30  ;;  %v309_v50 = vld [vmem:[%s4125_s26 + $0x5c] sm:$0xf] }
  0x5a   : > { %v420_v46 = vsel %vm4110_vm5, 0, %v419_v27  ;;  %v1135_v34 = vshll.u32 %v4401_v24, 16  ;;  %v615_v47 = vrot.slane %v613_v40, 7  ;;  %v611_v48 = vrot.slane %v4385_v10, 4  ;;  %v422_v59 = vld [vmem:[#allocation2 + $0x98] sm:$0x1] }
  0x5b   : > { %1495 = vrot.lane.b32.xlu1 %v4322_v9, %s4041_s29  ;;  %v609_v19 = vor.u32 %v607_v51, %v4385_v10  ;;  %421 = vst [vmem:[#allocation2 + $0x8c] sm:$0x1] %v420_v46  ;;  %v623_v49 = vrot.slane %v621_v29, 7  ;;  %v367_v52 = vsel %vm4095_vm3, 0, %v366_v41  ;;  %v4433_v53 = vcombine.low %v4421_v43, %v4421_v43  ;;  %v898_v2 = vld [vmem:[#allocation2 + $0x54] sm:$0xf] }
  0x5c   : > { %v619_v54 = vrot.slane %v615_v47, 4  ;;  %368 = vst [vmem:[#allocation2 + $0x90] sm:$0x1] %v367_v52  ;;  %v630_v55 = vshrl.u32 %v308_v32, 16  ;;  %v618_v57 = vor.u32 %v616_v44, %v615_v47  ;;  %v1137_v60 = vrot.slane %v1135_v34, 1  ;;  %3888 = vmatpush3.bf16.msra.mxu0 %v3998_v30 }
  0x5d   : > { %1493 = vrot.lane.b32.xlu0 %v4272_v14, %s4041_s29  ;;  %v610_v28 = vsel %vm4147_vm8, %v602_v6, %v609_v19  ;;  %v626_v58 = vor.u32 %v624_v45, %v623_v49  ;;  %v832_v8 = vld [vmem:[#allocation2 + $0x80] sm:$0x1]  ;;  %v628_v62 = vrot.slane %v623_v49, 4  ;;  %v633_v0 = vshll.u32 %v308_v32, 16  ;;  %v899_v3 = vld [vmem:[#allocation2 + $0x58] sm:$0xf] }
  0x5e   : > { %831 = vst.msk [vmem:[#allocation2 + $0x7c] sm:$0xf] %vm318_vm0, %v610_v28  ;;  %v632_v63 = vrot.slane %v630_v55, 7  ;;  %v833_v4 = vsel %vm4095_vm3, %v611_v48, %v832_v8  ;;  %v4449_v6 = vld [vmem:[%s4125_s26 + $0x60] sm:$0xf]  ;;  %v1140_v10 = vshll.u32 %v4433_v53, 16  ;;  %v4460_v27 = vcombine.low %v898_v2, %v899_v3 }
  0x5f   : > { %1542 = vrot.lane.b32.xlu1 %v4391_v13, %s4046_s10  ;;  %v627_v5 = vsel %vm4147_vm8, %v619_v54, %v626_v58  ;;  %834 = vst [vmem:[#allocation2 + $0x80] sm:$0x1] %v833_v4  ;;  %v835_v51 = vld [vmem:[#allocation2 + $0x84] sm:$0xf]  ;;  %v638_v12 = vshrl.u32 %v309_v50, 16  ;;  %v641_v21 = vshll.u32 %v309_v50, 16 }
  0x60   : > { %838 = vst.msk [vmem:[#allocation2 + $0x88] sm:$0xf] %vm318_vm0, %v627_v5  ;;  %v635_v11 = vor.u32 %v633_v0, %v632_v63  ;;  %v369_v17 = vld [vmem:[#allocation2 + $0x9c] sm:$0x1]  ;;  %v836_v19 = vsel %vm4139_vm7, %v618_v57, %v835_v51  ;;  %v423_v22 = vsel %vm4110_vm5, 0, %v422_v59  ;;  %5727 = vst [vmem:[#allocation4_spill] sm:$0xff] %v4460_v27 }
  0x61   : > { %1540 = vrot.lane.b32.xlu0 %v4343_v18, %s4046_s10  ;;  %v311_v25 = vld [vmem:[%s4125_s26 + $0x64] sm:$0xf]  ;;  %837 = vst [vmem:[#allocation2 + $0x84] sm:$0xf] %v836_v19  ;;  %424 = vst [vmem:[#allocation2 + $0x98] sm:$0x1] %v423_v22 }
  0x62   : > { %v839_v20 = vld [vmem:[#allocation2 + $0x8c] sm:$0x1]  ;;  %v425_v30 = vld [vmem:[#allocation2 + $0xa4] sm:$0x1]  ;;  %v372_v32 = vld [vmem:[#allocation2 + $0xa8] sm:$0x1] }
  0x63   : > { %1260 = vrot.lane.b32.xlu1 %v4343_v18, %s4042_s30  ;;  %v1133_v18 = vshrl.u32 %v4401_v24, 16  ;;  %v840_v28 = vsel %vm4095_vm3, %v628_v62, %v839_v20  ;;  %v636_v37 = vrot.slane %v632_v63, 4  ;;  %v640_v38 = vrot.slane %v638_v12, 7  ;;  %v842_v39 = vld [vmem:[#allocation2 + $0x90] sm:$0xf] }
  0x64   : > { %841 = vst [vmem:[#allocation2 + $0x8c] sm:$0x1] %v840_v28  ;;  %v370_v40 = vsel %vm4095_vm3, 0, %v369_v17  ;;  %v647_v41 = vshrl.u32 %v4449_v6, 16  ;;  %v1142_v44 = vrot.slane %v1140_v10, 1  ;;  %v843_v29 = vsel %vm4139_vm7, %v635_v11, %v842_v39 }
  0x65   : > { %1575 = vrot.lane.b32.xlu0 %v4358_v42, %s4044_s8  ;;  %v1138_v26 = vor.u32 %v1137_v60, %v1133_v18  ;;  %371 = vst [vmem:[#allocation2 + $0x9c] sm:$0x1] %v370_v40  ;;  %v655_v45 = vshrl.u32 %v311_v25, 16  ;;  %v658_v46 = vshll.u32 %v311_v25, 16  ;;  %v312_v34 = vld [vmem:[%s4125_s26 + $0x68] sm:$0xf]  ;;  %v643_v49 = vor.u32 %v641_v21, %v640_v38 }
  0x66   : > { %v1303_v47 = vrot.slane %v4401_v24, 1  ;;  %v4475_v48 = vld [vmem:[#allocation2 + $0x5c] sm:$0x1]  ;;  %844 = vst [vmem:[#allocation2 + $0x90] sm:$0xf] %v843_v29  ;;  %v649_v52 = vrot.slane %v647_v41, 7 }
  0x67   : > { %1262 = vrot.lane.b32.xlu1 %v4391_v13, %s4042_s30  ;;  %v426_v54 = vsel %vm4110_vm5, 0, %v425_v30  ;;  %v1147_v55 = vshll.u32 %v4460_v27, 16  ;;  %v650_v18 = vshll.u32 %v4449_v6, 16  ;;  %v657_v57 = vrot.slane %v655_v45, 7  ;;  %v313_v3 = vld [vmem:[%s4125_s26 + $0x6c] sm:$0xf] }
  0x68   : > { %427 = vst [vmem:[#allocation2 + $0xa4] sm:$0x1] %v426_v54  ;;  %v644_v58 = vsel %vm4147_vm8, %v636_v37, %v643_v49  ;;  %v645_v50 = vrot.slane %v640_v38, 4  ;;  %v653_v59 = vrot.slane %v649_v52, 4  ;;  %v664_v60 = vshrl.u32 %v312_v34, 16 }
  0x69   : > { %1577 = vrot.lane.b32.xlu0 %v4438_v56, %s4044_s8  ;;  %v4488_v8 = vsel %vm1059_vm10, %v1138_v26, %v1142_v44  ;;  %v1304_v62 = vrot.slane %v4433_v53, 1  ;;  %v4493_v63 = vcombine.low %v4475_v48, %v4475_v48  ;;  %845 = vst.msk [vmem:[#allocation2 + $0x94] sm:$0xf] %vm318_vm0, %v644_v58  ;;  %v660_v0 = vor.u32 %v658_v46, %v657_v57  ;;  %v846_v2 = vld [vmem:[#allocation2 + $0x98] sm:$0x1] }
  0x6a   : > { %v1145_v4 = vshrl.u32 %v4460_v27, 16  ;;  %v1149_v5 = vrot.slane %v1147_v55, 1  ;;  %v652_v6 = vor.u32 %v650_v18, %v649_v52  ;;  %v662_v10 = vrot.slane %v657_v57, 4  ;;  %v428_v25 = vld [vmem:[#allocation2 + $0xb0] sm:$0x1] }
  0x6b   : > { %1343 = vrot.lane.b32.xlu1 %v4438_v56, %s4039_s27  ;;  %v847_v53 = vsel %vm4095_vm3, %v645_v50, %v846_v2  ;;  %v661_v51 = vsel %vm4147_vm8, %v653_v59, %v660_v0  ;;  %v666_v12 = vrot.slane %v664_v60, 7  ;;  %v667_v17 = vshll.u32 %v312_v34, 16  ;;  %v375_v37 = vld [vmem:[#allocation2 + $0xb4] sm:$0x1]  ;;  %v431_v55 = vld [vmem:[#allocation2 + $0xbc] sm:$0x1] }
  0x6c   : > { %v849_v11 = vld [vmem:[#allocation2 + $0x9c] sm:$0xf]  ;;  %v4507_v19 = vsel %vm1284_vm9, %v1303_v47, %v1304_v62  ;;  %v1152_v20 = vshll.u32 %v4493_v63, 16  ;;  %848 = vst [vmem:[#allocation2 + $0x98] sm:$0x1] %v847_v53  ;;  %v672_v21 = vshrl.u32 %v313_v3, 16  ;;  %v1150_v38 = vor.u32 %v1149_v5, %v1145_v4 }
  0x6d   : > { %1341 = vrot.lane.b32.xlu0 %v4358_v42, %s4039_s27  ;;  %v373_v42 = vsel %vm4095_vm3, 0, %v372_v32  ;;  %852 = vst.msk [vmem:[#allocation2 + $0xa0] sm:$0xf] %vm318_vm0, %v661_v51  ;;  %v850_v26 = vsel %vm4139_vm7, %v652_v6, %v849_v11  ;;  %v314_v32 = vld [vmem:[%s4125_s26 + $0x70] sm:$0xf]  ;;  %v669_v39 = vor.u32 %v667_v17, %v666_v12  ;;  %v670_v40 = vrot.slane %v666_v12, 4 }
  0x6e   : > { %374 = vst [vmem:[#allocation2 + $0xa8] sm:$0x1] %v373_v42  ;;  %851 = vst [vmem:[#allocation2 + $0x9c] sm:$0xf] %v850_v26  ;;  %v674_v41 = vrot.slane %v672_v21, 7  ;;  %v675_v44 = vshll.u32 %v313_v3, 16 }
  0x6f   : > { %1380 = vrot.lane.b32.xlu1 %v4401_v24, %s4040_s28  ;;  %v853_v22 = vld [vmem:[#allocation2 + $0xa4] sm:$0x1]  ;;  %v429_v45 = vsel %vm4110_vm5, 0, %v428_v25  ;;  %v376_v46 = vsel %vm4095_vm3, 0, %v375_v37  ;;  %v681_v34 = vshrl.u32 %v314_v32, 16  ;;  %v684_v54 = vshll.u32 %v314_v32, 16 }
  0x70   : > { %v854_v28 = vsel %vm4095_vm3, %v662_v10, %v853_v22  ;;  %430 = vst [vmem:[#allocation2 + $0xb0] sm:$0x1] %v429_v45  ;;  %v315_v47 = vld [vmem:[%s4125_s26 + $0x74] sm:$0xf]  ;;  %377 = vst [vmem:[#allocation2 + $0xb4] sm:$0x1] %v376_v46  ;;  %v677_v49 = vor.u32 %v675_v44, %v674_v41 }
  0x71   : > { %1378 = vrot.lane.b32.xlu0 %v4322_v9, %s4040_s28  ;;  %855 = vst [vmem:[#allocation2 + $0xa4] sm:$0x1] %v854_v28  ;;  %v683_v52 = vrot.slane %v681_v34, 7  ;;  %v4536_v18 = vld [vmem:[#allocation2 + $0x60] sm:$0xf]  ;;  %v689_v58 = vshrl.u32 %v315_v47, 16 }
  0x72   : > { %v4538_v57 = vld [vmem:[#allocation2 + $0x64] sm:$0xf]  ;;  %v678_v42 = vsel %vm4147_vm8, %v670_v40, %v677_v49  ;;  %v692_v50 = vshll.u32 %v315_v47, 16  ;;  %v679_v59 = vrot.slane %v674_v41, 4  ;;  %v432_v0 = vsel %vm4110_vm5, 0, %v431_v55 }
  0x73   : > { %1427 = vrot.lane.b32.xlu1 %v4488_v8, %s4045_s9  ;;  %859 = vst.msk [vmem:[#allocation2 + $0xac] sm:$0xf] %vm318_vm0, %v678_v42  ;;  %v687_v60 = vrot.slane %v683_v52, 4  ;;  %v691_v62 = vrot.slane %v689_v58, 7  ;;  %v4549_v2 = vcombine.low %v4536_v18, %v4538_v57  ;;  %v4551_v3 = vld [vmem:[#allocation2 + $0x68] sm:$0x1]  ;;  %v686_v4 = vor.u32 %v684_v54, %v683_v52 }
  0x74   : > { %433 = vst [vmem:[#allocation2 + $0xbc] sm:$0x1] %v432_v0  ;;  %v1306_v5 = vrot.slane %v4460_v27, 1  ;;  %v1307_v6 = vrot.slane %v4493_v63, 1  ;;  %v378_v53 = vld [vmem:[#allocation2 + $0xc0] sm:$0x1]  ;;  %v4563_v17 = vcombine.low %v4551_v3, %v4551_v3 }
  0x75   : > { %1425 = vrot.lane.b32.xlu0 %v4391_v13, %s4045_s9  ;;  %v856_v30 = vld [vmem:[#allocation2 + $0xa8] sm:$0xf]  ;;  %v1154_v13 = vrot.slane %v1152_v20, 1  ;;  %5728 = vst [vmem:[#allocation5_spill] sm:$0xff] %v4549_v2  ;;  %v694_v10 = vor.u32 %v692_v50, %v691_v62  ;;  %v316_v11 = vld [vmem:[%s4125_s26 + $0x78] sm:$0xf] }
  0x76   : > { %v857_v29 = vsel %vm4139_vm7, %v669_v39, %v856_v30  ;;  %v317_v12 = vld [vmem:[%s4125_s26 + $0x7c] sm:$0xf]  ;;  %v434_v63 = vld [vmem:[#allocation2 + $0xc8] sm:$0x1]  ;;  %v1159_v25 = vshll.u32 %v4549_v2, 16  ;;  %v379_v28 = vsel %vm4095_vm3, 0, %v378_v53 }
  0x77   : > { %1462 = vrot.lane.b32.xlu1 %v4507_v19, %s4043_s7  ;;  %858 = vst [vmem:[#allocation2 + $0xa8] sm:$0xf] %v857_v29  ;;  %v860_v51 = vld [vmem:[#allocation2 + $0xb0] sm:$0x1]  ;;  %v695_v21 = vsel %vm4147_vm8, %v687_v60, %v694_v10  ;;  %v863_v22 = vld [vmem:[#allocation2 + $0xb4] sm:$0xf] }
  0x78   : > { %v861_v20 = vsel %vm4095_vm3, %v679_v59, %v860_v51  ;;  %v864_v26 = vsel %vm4139_vm7, %v686_v4, %v863_v22  ;;  %866 = vst.msk [vmem:[#allocation2 + $0xb8] sm:$0xf] %vm318_vm0, %v695_v21  ;;  %380 = vst [vmem:[#allocation2 + $0xc0] sm:$0x1] %v379_v28  ;;  %v698_v30 = vshrl.u32 %v316_v11, 16  ;;  %v701_v32 = vshll.u32 %v316_v11, 16 }
  0x79   : > { %1460 = vrot.lane.b32.xlu0 %v4438_v56, %s4043_s7  ;;  %v4532_v56 = vsel %vm1059_vm10, %v1150_v38, %v1154_v13  ;;  %862 = vst [vmem:[#allocation2 + $0xb0] sm:$0x1] %v861_v20  ;;  %865 = vst [vmem:[#allocation2 + $0xb4] sm:$0xf] %v864_v26  ;;  %v706_v37 = vshrl.u32 %v317_v12, 16  ;;  %v1308_v38 = vsel %vm1284_vm9, %v1306_v5, %v1307_v6  ;;  %v709_v39 = vshll.u32 %v317_v12, 16 }
  0x7a   : > { %v435_v13 = vsel %vm4110_vm5, 0, %v434_v63  ;;  %v700_v41 = vrot.slane %v698_v30, 7  ;;  %v1157_v29 = vshrl.u32 %v4549_v2, 16  ;;  %v1161_v45 = vrot.slane %v1159_v25, 1  ;;  %v4587_v47 = vld [vmem:[#allocation2 + $0x6c] sm:$0xf] }
  0x7b   : > { %1499 = vrot.lane.b32.xlu1 %v4460_v27, %s4041_s29  ;;  %v867_v40 = vld [vmem:[#allocation2 + $0xbc] sm:$0x1]  ;;  %v708_v44 = vrot.slane %v706_v37, 7  ;;  %436 = vst [vmem:[#allocation2 + $0xc8] sm:$0x1] %v435_v13  ;;  %v1164_v46 = vshll.u32 %v4563_v17, 16 }
  0x7c   : > { %v4589_v49 = vld [vmem:[#allocation2 + $0x70] sm:$0xf]  ;;  %v703_v52 = vor.u32 %v701_v32, %v700_v41  ;;  %v704_v54 = vrot.slane %v700_v41, 4  ;;  %v1162_v50 = vor.u32 %v1161_v45, %v1157_v29  ;;  %v4601_v0 = vld [vmem:[#allocation2 + $0x74] sm:$0x1]  ;;  %v1309_v10 = vrot.slane %v4549_v2, 1 }
  0x7d   : > { %1497 = vrot.lane.b32.xlu0 %v4401_v24, %s4041_s29  ;;  %v711_v55 = vor.u32 %v709_v39, %v708_v44  ;;  %v713_v58 = vrot.slane %v708_v44, 4  ;;  %v1166_v59 = vrot.slane %v1164_v46, 1  ;;  %v4596_v60 = vcombine.low %v4587_v47, %v4589_v49  ;;  %v381_v36 = vld [vmem:[#allocation2 + $0xcc] sm:$0x1]  ;;  %v437_v51 = vld [vmem:[#allocation2 + $0xd4] sm:$0x1] }
  0x7e   : > { %v382_v6 = vsel %vm4095_vm3, 0, %v381_v36  ;;  %v1310_v53 = vrot.slane %v4563_v17, 1  ;;  %v3652_v11 = vcombine.low %v4601_v0, %v4601_v0  ;;  %v438_v20 = vsel %vm4110_vm5, 0, %v437_v51  ;;  %v4644_v30 = vld [vmem:[#allocation2 + $0x7c] sm:$0xf] }
  0x7f   : > { %1546 = vrot.lane.b32.xlu1 %v4532_v56, %s4046_s10  ;;  %v712_v42 = vsel %vm4147_vm8, %v704_v54, %v711_v55  ;;  %5729 = vst [vmem:[#allocation6_spill] sm:$0xff] %v4596_v60  ;;  %383 = vst [vmem:[#allocation2 + $0xcc] sm:$0x1] %v382_v6  ;;  %v1167_v31 = vsel %vm1059_vm10, %v1162_v50, %v1166_v59  ;;  %v1171_v12 = vshll.u32 %v4596_v60, 16  ;;  %v1169_v17 = vshrl.u32 %v4596_v60, 16 }
  0x80   : > { %873 = vst.msk [vmem:[#allocation2 + $0xc4] sm:$0xf] %vm318_vm0, %v712_v42  ;;  %439 = vst [vmem:[#allocation2 + $0xd4] sm:$0x1] %v438_v20  ;;  %v4623_v1 = vsel %vm1284_vm9, %v1309_v10, %v1310_v53  ;;  %v1176_v22 = vshll.u32 %v3652_v11, 16  ;;  %v1312_v45 = vrot.slane %v4596_v60, 1 }
  0x81   : > { %1544 = vrot.lane.b32.xlu0 %v4488_v8, %s4046_s10  ;;  %v1173_v21 = vrot.slane %v1171_v12, 1  ;;  %v4013_v39 = vld [vmem:[#allocation2 + $0x20] sm:$0x1]  ;;  %v4662_v44 = vld [vmem:[#allocation2 + $0x84] sm:$0xf]  ;;  %v1313_v46 = vrot.slane %v3652_v11, 1 }
  0x82   : > { %v874_v5 = vld [vmem:[#allocation2 + $0xc8] sm:$0x1]  ;;  %v1178_v25 = vrot.slane %v1176_v22, 1  ;;  %v2499_v13 = vshll.u32 %v4013_v39, 16  ;;  %v2547_v54 = vshll.u32 %v4274_v15, 16  ;;  %v2571_v55 = vshll.u32 %v4331_v16, 16 }
  0x83   : > { %1264 = vrot.lane.b32.xlu1 %v4488_v8, %s4042_s30  ;;  %v696_v8 = vrot.slane %v691_v62, 4  ;;  %v870_v62 = vld [vmem:[#allocation2 + $0xc0] sm:$0xf]  ;;  %v1174_v63 = vor.u32 %v1173_v21, %v1169_v17  ;;  %v4664_v29 = vld [vmem:[#allocation2 + $0x88] sm:$0xf]  ;;  %v2595_v42 = vshll.u32 %v4421_v43, 16  ;;  %v4693_v43 = vsel %vm1284_vm9, %v1312_v45, %v1313_v46 }
  0x84   : > { %v871_v4 = vsel %vm4139_vm7, %v703_v52, %v870_v62  ;;  %5731 = vst [vmem:[#allocation8_spill] sm:$0xff] %v4664_v29  ;;  %v4680_v50 = vld [vmem:[#allocation2 + $0x8c] sm:$0x1]  ;;  %v4682_v59 = vrot.slane %v2499_v13, 5  ;;  %v2619_v15 = vshll.u32 %v4475_v48, 16  ;;  %v2643_v16 = vshll.u32 %v4551_v3, 16 }
  0x85   : > { %1579 = vrot.lane.b32.xlu0 %v4507_v19, %s4044_s8  ;;  %v868_v34 = vsel %vm4095_vm3, %v696_v8, %v867_v40  ;;  %872 = vst [vmem:[#allocation2 + $0xc0] sm:$0xf] %v871_v4  ;;  %v4640_v28 = vsel %vm1059_vm10, %v1174_v63, %v1178_v25  ;;  %v2523_v40 = vshll.u32 %v4228_v23, 16  ;;  %v4695_v36 = vld [vmem:[#allocation2 + $0x90] sm:$0xf]  ;;  %v4707_v48 = vcombine.low %v4680_v50, %v4680_v50 }
  0x86   : > { %869 = vst [vmem:[#allocation2 + $0xbc] sm:$0x1] %v868_v34  ;;  %5732 = vst [vmem:[#allocation9_spill] sm:$0xff] %v4695_v36  ;;  %v4709_v3 = vrot.slane %v2547_v54, 5  ;;  %v4711_v51 = vrot.slane %v2571_v55, 5  ;;  %vm1603_vm12 = vcmask 31744  }
  0x87   : > { %1266 = vrot.lane.b32.xlu1 %v4532_v56, %s4042_s30  ;;  %v4684_v62 = vrot.slane %v2523_v40, 5  ;;  %vm1636_vm13 = vcmask 64512   ;;  %vm1669_vm14 = vcmask 97280   ;;  %v4724_v17 = vrot.slane %v2619_v15, 5  ;;  %v4735_v46 = vld [vmem:[#allocation2 + $0x9c] sm:$0xf] }
  0x88   : > { %v4726_v21 = vrot.slane %v2643_v16, 5  ;;  %v2667_v22 = vshll.u32 %v4601_v0, 16  ;;  %vm1702_vm15 = vcmask 130048   ;;  %vm1735_vm0 = vcmask 162816   ;;  %5734 = vst [vmem:[#allocation11_spill] sm:$0xff] %v4735_v46  ;;  %v4014_v54 = vld [vmem:[#allocation2] sm:$0xff]  }
  0x89   : > { %1581 = vrot.lane.b32.xlu0 %v1308_v38, %s4044_s8  ;;  %v1200_v13 = vshll.u32 %v4707_v48, 16  ;;  %vm1768_vm1 = vcmask 195584   ;;  %v4743_v15 = vld [vmem:[#allocation2 + $0xa8] sm:$0xf]  ;;  %v4745_v16 = vld [vmem:[#allocation2 + $0xac] sm:$0xf] }
  0x8a   : > { %5736 = vst [vmem:[#allocation13_spill] sm:$0xff] %v4743_v15  ;;  %5737 = vst [vmem:[#allocation14_spill] sm:$0xff] %v4745_v16  ;;  %vm1834_vm2 = vcmask 261120   ;;  %vm1887_vm4 = vcmask 293888   ;;  %vm2452_vm5 = vsmask.f32 3328 }
  0x8b   : > { %1347 = vrot.lane.b32.xlu1 %v1308_v38, %s4039_s27  ;;  %vm2453_vm6 = vsmask.f32 7440  ;;  %vm2213_vm8 = vcmask 60416  }
  0x8c   : > { %vm4940_vm7 = vmor %vm2452_vm5, %vm2453_vm6 }
  0x8d   : > { %1345 = vrot.lane.b32.xlu0 %v4507_v19, %s4039_s27  ;;  %v875_v19 = vsel %vm4095_vm3, %v713_v58, %v874_v5  ;;  %v4678_v58 = vcombine.low %v4662_v44, %v4664_v29  ;;  %v4697_v5 = vld [vmem:[#allocation2 + $0x94] sm:$0xf]  ;;  %vm1801_vm3 = vcmask 228352  }
  0x8e   : > { %876 = vst [vmem:[#allocation2 + $0xc8] sm:$0x1] %v875_v19  ;;  %5733 = vst [vmem:[#allocation10_spill] sm:$0xff] %v4697_v5  ;;  %v4722_v20 = vcombine.low %v4695_v36, %v4697_v5  ;;  %v4768_v5 = vld [vmem:[#allocation2 + $0xa4] sm:$0x1] }
  0x8f   : > { %1384 = vrot.lane.b32.xlu1 %v4549_v2, %s4040_s28  ;;  %v1195_v11 = vshll.u32 %v4678_v58, 16  ;;  %v1193_v40 = vshrl.u32 %v4678_v58, 16 }
  0x91   : > { %1382 = vrot.lane.b32.xlu0 %v4460_v27, %s4040_s28  ;;  %v1197_v45 = vrot.slane %v1195_v11, 1 }
  0x93   : > { %1431 = vrot.lane.b32.xlu1 %v1167_v31, %s4045_s9  ;;  %v1198_v24 = vor.u32 %v1197_v45, %v1193_v40 }
  0x95   : > { %1429 = vrot.lane.b32.xlu0 %v4532_v56, %s4045_s9  ;;  %v4642_v56 = vld [vmem:[#allocation2 + $0x78] sm:$0xf] }
  0x96   : > { %v4630_v7 = vpop.permute.xlu1 %1333  ;;  %v4654_v37 = vcombine.low %v4642_v56, %v4644_v30 }
  0x97   : > { %1466 = vrot.lane.b32.xlu1 %v4623_v1, %s4043_s7 }
  0x98   : > { %5730 = vst [vmem:[#allocation7_spill] sm:$0xff] %v4654_v37  ;;  %v1183_v23 = vshll.u32 %v4654_v37, 16  ;;  %v1181_v10 = vshrl.u32 %v4654_v37, 16 }
  0x99   : > { %1464 = vrot.lane.b32.xlu0 %v1308_v38, %s4043_s7  ;;  %v4656_v38 = vld [vmem:[#allocation2 + $0x80] sm:$0x1] }
  0x9a   : > { %v4670_v52 = vcombine.low %v4656_v38, %v4656_v38  ;;  %v1185_v53 = vrot.slane %v1183_v23, 1  ;;  %v4737_v23 = vld [vmem:[#allocation2 + $0xa0] sm:$0xf] }
  0x9b   : > { %v4633_v26 = vpop.permute.xlu0 %1370  ;;  %1503 = vrot.lane.b32.xlu1 %v4596_v60, %s4041_s29  ;;  %5735 = vst [vmem:[#allocation12_spill] sm:$0xff] %v4737_v23 }
  0x9c   : > { %v4637_v8 = vpop.permute.xlu1 %1372  ;;  %v1188_v19 = vshll.u32 %v4670_v52, 16  ;;  %v1186_v25 = vor.u32 %v1185_v53, %v1181_v10  ;;  %v4747_v10 = vrot.slane %v2667_v22, 5  ;;  %v1316_v11 = vrot.slane %v4670_v52, 1 }
  0x9d   : > { %1501 = vrot.lane.b32.xlu0 %v4549_v2, %s4041_s29  ;;  %v4758_v2 = vld [vmem:[#allocation2 + $0x98] sm:$0x1]  ;;  %v4762_v53 = vcombine.low %v4735_v46, %v4737_v23 }
  0x9e   : > { %v1190_v39 = vrot.slane %v1188_v19, 1  ;;  %5738 = vst [vmem:[#allocation15_spill] sm:$0xff] %v4747_v10  ;;  %v1315_v19 = vrot.slane %v4654_v37, 1  ;;  %v4787_v45 = vcombine.low %v4758_v2, %v4758_v2 }
  0x9f   : > { %v4648_v32 = vpop.permute.xlu0 %1489  ;;  %1550 = vrot.lane.b32.xlu1 %v4640_v28, %s4046_s10 }
  0xa0   : > { %v4783_v40 = vsel %vm1284_vm9, %v1315_v19, %v1316_v11  ;;  %v1219_v19 = vshll.u32 %v4762_v53, 16 }
  0xa1   : > { %1548 = vrot.lane.b32.xlu0 %v1167_v31, %s4046_s10  ;;  %v4660_v41 = vpop.permute.xlu1 %1491 }
  0xa3   : > { %v1253_v34 = vpop.permute.xlu0 %1252  ;;  %1268 = vrot.lane.b32.xlu1 %v1167_v31, %s4042_s30  ;;  %v4713_v31 = vrot.slane %v2595_v42, 5  ;;  %v1207_v42 = vshll.u32 %v4722_v20, 16 }
  0xa4   : > { %v1605_v0 = vsel %vm1603_vm12, %v4014_v54, %v1253_v34  ;;  %v1202_v54 = vrot.slane %v1200_v13, 1 }
  0xa5   : > { %1583 = vrot.lane.b32.xlu0 %v4623_v1, %s4044_s8  ;;  %v4688_v4 = vpop.permute.xlu1 %1335  ;;  %v1638_v52 = vsel %vm1636_vm13, %v1605_v0, %v4630_v7  ;;  %v1205_v7 = vshrl.u32 %v4722_v20, 16  ;;  %v1209_v0 = vrot.slane %v1207_v42, 1 }
  0xa6   : > { %v1671_v42 = vsel %vm1669_vm14, %v1638_v52, %v4633_v26 }
  0xa7   : > { %v4699_v6 = vpop.permute.xlu0 %1452  ;;  %1270 = vrot.lane.b32.xlu1 %v4640_v28, %s4042_s30 }
  0xa9   : > { %1585 = vrot.lane.b32.xlu0 %v4693_v43, %s4044_s8  ;;  %v4718_v12 = vpop.permute.xlu1 %1454 }
  0xab   : > { %v4729_v63 = vpop.permute.xlu0 %1571  ;;  %1351 = vrot.lane.b32.xlu1 %v4693_v43, %s4039_s27 }
  0xad   : > { %1349 = vrot.lane.b32.xlu0 %v4623_v1, %s4039_s27  ;;  %v1420_v55 = vpop.permute.xlu1 %1419  ;;  %v4755_v1 = vsel %vm1059_vm10, %v1186_v25, %v1190_v39  ;;  %v4772_v25 = vcombine.low %v4743_v15, %v4745_v16 }
  0xaf   : > { %v1255_v34 = vpop.permute.xlu0 %1254  ;;  %1388 = vrot.lane.b32.xlu1 %v4654_v37, %s4040_s28 }
  0xb0   : > { %v1607_v27 = vsel %vm1603_vm12, %v4187_v33, %v1255_v34  ;;  %v4793_v34 = vld [vmem:[#allocation2 + $0xb8] sm:$0xf] }
  0xb1   : > { %v1640_v39 = vsel %vm1636_vm13, %v1607_v27, %v4688_v4  ;;  %1386 = vrot.lane.b32.xlu0 %v4596_v60, %s4040_s28  ;;  %v1539_v13 = vpop.permute.xlu1 %1538  ;;  %v4789_v27 = vld [vmem:[#allocation2 + $0xb0] sm:$0x1]  ;;  %v4791_v4 = vld [vmem:[#allocation2 + $0xb4] sm:$0xf]  ;;  %5741 = vst [vmem:[#allocation18_spill] sm:$0xff] %v4793_v34 }
  0xb2   : > { %v1673_v33 = vsel %vm1669_vm14, %v1640_v39, %v4637_v8  ;;  %5739 = vst [vmem:[#allocation16_spill] sm:$0xff] %v4789_v27  ;;  %5740 = vst [vmem:[#allocation17_spill] sm:$0xff] %v4791_v4  ;;  %v4802_v8 = vcombine.low %v4768_v5, %v4768_v5  ;;  %v4807_v39 = vsel %vm1059_vm10, %v1198_v24, %v1202_v54  ;;  %v2739_v54 = vshll.u32 %v4758_v2, 16 }
  0xb3   : > { %v1706_v22 = vsel %vm1702_vm15, %v1673_v33, %v1420_v55  ;;  %v1418_v60 = vpop.permute.xlu0 %1417  ;;  %1435 = vrot.lane.b32.xlu1 %v4755_v1, %s4045_s9  ;;  %v1319_v55 = vrot.slane %v4707_v48, 1  ;;  %v1231_v33 = vshll.u32 %v4772_v25, 16  ;;  %v4823_v24 = vcombine.low %v4791_v4, %v4793_v34 }
  0xb4   : > { %v1704_v11 = vsel %vm1702_vm15, %v1671_v42, %v1418_v60  ;;  %v1739_v26 = vsel %vm1735_vm0, %v1706_v22, %v4718_v12  ;;  %v3657_v60 = vcombine.low %v4789_v27, %v4789_v27  ;;  %v1212_v12 = vshll.u32 %v4787_v45, 16  ;;  %v4830_v22 = vld [vmem:[#allocation2 + $0xbc] sm:$0x1] }
  0xb5   : > { %v1737_v52 = vsel %vm1735_vm0, %v1704_v11, %v4699_v6  ;;  %1433 = vrot.lane.b32.xlu0 %v4640_v28, %s4045_s9  ;;  %v4817_v16 = vpop.permute.xlu1 %1256  ;;  %v1321_v6 = vrot.slane %v4722_v20, 1  ;;  %5742 = vst [vmem:[#allocation19_spill] sm:$0xff] %v4830_v22  ;;  %v1210_v42 = vor.u32 %v1209_v0, %v1205_v7  ;;  %v1217_v11 = vshrl.u32 %v4762_v53, 16 }
  0xb6   : > { %v1770_v48 = vsel %vm1768_vm1, %v1737_v52, %v4648_v32  ;;  %v1221_v34 = vrot.slane %v1219_v19, 1  ;;  %v1224_v4 = vshll.u32 %v4802_v8, 16  ;;  %v1772_v32 = vsel %vm1768_vm1, %v1739_v26, %v4660_v41 }
  0xb7   : > { %v1537_v28 = vpop.permute.xlu0 %1536  ;;  %1470 = vrot.lane.b32.xlu1 %v4783_v40, %s4043_s7  ;;  %v1229_v2 = vshrl.u32 %v4772_v25, 16  ;;  %v1233_v15 = vrot.slane %v1231_v33, 1  ;;  %v1236_v0 = vshll.u32 %v3657_v60, 16  ;;  %v4846_v19 = vcombine.low %v4830_v22, %v4830_v22 }
  0xb8   : > { %v1803_v52 = vsel %vm1801_vm3, %v1770_v48, %v1537_v28  ;;  %v1243_v46 = vshll.u32 %v4823_v24, 16  ;;  %v1214_v41 = vrot.slane %v1212_v12, 1  ;;  %v1322_v26 = vrot.slane %v4787_v45, 1 }
  0xb9   : > { %1468 = vrot.lane.b32.xlu0 %v4693_v43, %s4043_s7  ;;  %v1259_v23 = vpop.permute.xlu1 %1258  ;;  %v1836_v7 = vsel %vm1834_vm2, %v1803_v52, %v4729_v63  ;;  %5743 = vst [vmem:[#allocation20_spill] sm:$0xff] %v4846_v19  ;;  %v2763_v33 = vshll.u32 %v4768_v5, 16  ;;  %v1324_v43 = vrot.slane %v4762_v53, 1  ;;  %v1805_v48 = vsel %vm1801_vm3, %v1772_v32, %v1539_v13 }
  0xba   : > { %3889 = vmatprep.mubr.msk.bf16.mxu0 %vm1887_vm4, %v1836_v7  ;;  %v1222_v63 = vor.u32 %v1221_v34, %v1217_v11  ;;  %v1226_v52 = vrot.slane %v1224_v4, 1  ;;  %v1325_v36 = vrot.slane %v4802_v8, 1  ;;  %v1234_v7 = vor.u32 %v1233_v15, %v1229_v2 }
  0xbb   : > { %v1574_v28 = vpop.permute.xlu0 %1573  ;;  %1507 = vrot.lane.b32.xlu1 %v4678_v58, %s4041_s29  ;;  %v1327_v12 = vrot.slane %v4772_v25, 1  ;;  %v1328_v45 = vrot.slane %v3657_v60, 1  ;;  %v1238_v13 = vrot.slane %v1236_v0, 1  ;;  %v1241_v32 = vshrl.u32 %v4823_v24, 16 }
  0xbc   : > { %v1838_v10 = vsel %vm1834_vm2, %v1805_v48, %v1574_v28  ;;  %v1245_v29 = vrot.slane %v1243_v46, 1  ;;  %v1248_v4 = vshll.u32 %v4846_v19, 16  ;;  %v5744_v34 = vshll.u32 %v4656_v38, 16  ;;  %v4019_v19 = vld [vmem:[#allocation2 + $0x14] sm:$0x1] }
  0xbd   : > { %1505 = vrot.lane.b32.xlu0 %v4654_v37, %s4041_s29  ;;  %3890 = vmatmul.mubr.msk.bf16.vlgmr.msra.gmra.mxu0 %vm1887_vm4, %v1838_v10  ;;  %v1340_v5 = vpop.permute.xlu1 %1339  ;;  %v5745_v15 = vshll.u32 %v4680_v50, 16  ;;  %v5746_v60 = vrot.slane %v4678_v58, 1  ;;  %v4877_v10 = vrot.slane %v2739_v54, 5  ;;  %v4882_v46 = vsel %vm1059_vm10, %v1210_v42, %v1214_v41 }
  0xbe   : > { %v4866_v8 = vrot.slane %v5744_v34, 5  ;;  %v4885_v38 = vsel %vm1284_vm9, %v1321_v6, %v1322_v26  ;;  %v4887_v50 = vrot.slane %v2763_v33, 5  ;;  %v4890_v48 = vsel %vm1284_vm9, %v1324_v43, %v1325_v36  ;;  %v4910_v33 = vld [vmem:[#allocation2 + $0xc0] sm:$0xf]  ;;  %v4912_v43 = vld [vmem:[#allocation2 + $0xc4] sm:$0xf] }
  0xbf   : > { %v4870_v11 = vrot.slane %v5745_v15, 5  ;;  %v4875_v2 = vsel %vm1284_vm9, %v5746_v60, %v1319_v55  ;;  %v1338_v0 = vpop.permute.xlu0 %1337  ;;  %1554 = vrot.lane.b32.xlu1 %v4807_v39, %s4046_s10  ;;  %v4893_v55 = vsel %vm1059_vm10, %v1222_v63, %v1226_v52  ;;  %v4897_v28 = vsel %vm1284_vm9, %v1327_v12, %v1328_v45  ;;  %5748 = vst [vmem:[#allocation22_spill] sm:$0xff] %v4910_v33  ;;  %v4015_v52 = vld [vmem:[#allocation2 + $0xc] sm:$0xf]  ;;  %v4016_v15 = vld [vmem:[#allocation2 + $0x10] sm:$0xf] }
  0xc0   : > { %5747 = vst [vmem:[#allocation21_spill] sm:$0xff] %v4887_v50  ;;  %v4903_v42 = vsel %vm1059_vm10, %v1234_v7, %v1238_v13  ;;  %v4905_v41 = vor.u32 %v1245_v29, %v1241_v32  ;;  %v4907_v36 = vrot.slane %v1248_v4, 1  ;;  %5749 = vst [vmem:[#allocation23_spill] sm:$0xff] %v4912_v43  ;;  %v1611_v63 = vsel %vm1603_vm12, %v4209_v61, %v1259_v23  ;;  %v4017_v13 = vld [vmem:[#allocation2 + $0x18] sm:$0xf] }
  0xc1   : > { %1552 = vrot.lane.b32.xlu0 %v4755_v1, %s4046_s10  ;;  %v1377_v6 = vpop.permute.xlu1 %1376  ;;  %v2456_v12 = vshrl.u32 %v4015_v52, 16  ;;  %v2459_v45 = vshll.u32 %v4015_v52, 16  ;;  %v2465_v60 = vshll.u32 %v4016_v15, 16  ;;  %v2469_v29 = vshrl.u32 %v4016_v15, 16  ;;  %v4018_v34 = vld [vmem:[#allocation2 + $0x1c] sm:$0xf] }
  0xc2   : > { %v2480_v32 = vshrl.u32 %v4017_v13, 16  ;;  %v2483_v4 = vshll.u32 %v4017_v13, 16  ;;  %v2489_v26 = vshll.u32 %v4018_v34, 16  ;;  %v4920_v54 = vcombine.low %v4910_v33, %v4912_v43 }
  0xc3   : > { %v1375_v7 = vpop.permute.xlu0 %1374  ;;  %1272 = vrot.lane.b32.xlu1 %v4755_v1, %s4042_s30  ;;  %v2458_v61 = vrot.slane %v2456_v12, 4  ;;  %v2461_v23 = vrot.slane %v2459_v45, 5  ;;  %v2467_v37 = vrot.slane %v2465_v60, 5  ;;  %v1609_v52 = vsel %vm1603_vm12, %v4189_v35, %v4817_v16 }
  0xc4   : > { %5750 = vst [vmem:[#allocation24_spill] sm:$0xff] %v4920_v54  ;;  %v2471_v15 = vrot.slane %v2469_v29, 4  ;;  %v2482_v22 = vrot.slane %v2480_v32, 4  ;;  %v2485_v13 = vrot.slane %v2483_v4, 5  ;;  %v1644_v50 = vsel %vm1636_vm13, %v1611_v63, %v1340_v5  ;;  %v2839_v5 = vld [vmem:[%s5682_s2] sm:$0x3] }
  0xc5   : > { %1587 = vrot.lane.b32.xlu0 %v4783_v40, %s4044_s8  ;;  %v1424_v1 = vpop.permute.xlu1 %1423  ;;  %v2462_v27 = vor.u32 %v2461_v23, %v2458_v61  ;;  %v2475_v43 = vshll.u32 %v4019_v19, 16  ;;  %v2493_v33 = vshrl.u32 %v4018_v34, 16  ;;  %v1642_v12 = vsel %vm1636_vm13, %v1609_v52, %v1338_v0  ;;  %3956 = vmatprep.subr.msk.bf16.mxu1 %vm1920_vm11, %v2839_v5  ;;  %v4020_v32 = vld [vmem:[#allocation2 + $0x24] sm:$0xf] }
  0xc6   : > { %v2472_v35 = vor.u32 %v2471_v15, %v2467_v37  ;;  %v2486_v16 = vor.u32 %v2485_v13, %v2482_v22  ;;  %v2491_v60 = vrot.slane %v2489_v26, 5  ;;  %v1677_v54 = vsel %vm1669_vm14, %v1644_v50, %v1377_v6 }
  0xc7   : > { %v1422_v45 = vpop.permute.xlu0 %1421  ;;  %1274 = vrot.lane.b32.xlu1 %v4807_v39, %s4042_s30  ;;  %v1675_v29 = vsel %vm1669_vm14, %v1642_v12, %v1375_v7  ;;  %v1710_v19 = vsel %vm1702_vm15, %v1677_v54, %v1424_v1  ;;  %v2463_v50 = vrot.slane %v2462_v27, 4  ;;  %v2477_v6 = vrot.slane %v2475_v43, 5 }
  0xc8   : > { %v2473_v34 = vrot.slane %v2472_v35, 4  ;;  %v2937_v26 = vsel %vm1920_vm11, %v2839_v5, 0  ;;  %v2487_v63 = vrot.slane %v2486_v16, 4  ;;  %v2495_v7 = vrot.slane %v2493_v33, 4 }
  0xc9   : > { %1589 = vrot.lane.b32.xlu0 %v4875_v2, %s4044_s8  ;;  %v1459_v0 = vpop.permute.xlu1 %1458  ;;  %v2504_v4 = vshrl.u32 %v4020_v32, 16  ;;  %v1708_v54 = vsel %vm1702_vm15, %v1675_v29, %v1422_v45  ;;  %3922 = vmatpush3.bf16.msra.mxu1 %v2937_v26  ;;  %v2468_v23 = vsel %vm4940_vm7, %v2463_v50, %v2467_v37  ;;  %v2507_v43 = vshll.u32 %v4020_v32, 16  ;;  %v4021_v45 = vld [vmem:[#allocation2 + $0x28] sm:$0xf]  ;;  %v4022_v29 = vld [vmem:[#allocation2 + $0x30] sm:$0xf] }
  0xca   : > { %v2478_v27 = vsel %vm4940_vm7, %v2473_v34, %v2477_v6  ;;  %v1743_v52 = vsel %vm1735_vm0, %v1710_v19, %v1459_v0  ;;  %v2496_v33 = vor.u32 %v2495_v7, %v2491_v60  ;;  %v2513_v35 = vshll.u32 %v4021_v45, 16  ;;  %v4023_v0 = vld [vmem:[#allocation2 + $0x34] sm:$0xf] }
  0xcb   : > { %v1457_v61 = vpop.permute.xlu0 %1456  ;;  %1355 = vrot.lane.b32.xlu1 %v4875_v2, %s4039_s27  ;;  %v3714_v1 = vcombine.low %v2468_v23, %v2478_v27  ;;  %v2506_v15 = vrot.slane %v2504_v4, 4  ;;  %v2509_v12 = vrot.slane %v2507_v43, 5  ;;  %v2517_v16 = vshrl.u32 %v4021_v45, 16 }
  0xcc   : > { %v2528_v5 = vshrl.u32 %v4022_v29, 16  ;;  %v2492_v37 = vsel %vm4940_vm7, %v2487_v63, %v2491_v60  ;;  %v2497_v50 = vrot.slane %v2496_v33, 4  ;;  %v2531_v19 = vshll.u32 %v4022_v29, 16 }
  0xcd   : > { %1353 = vrot.lane.b32.xlu0 %v4783_v40, %s4039_s27  ;;  %v1496_v13 = vpop.permute.xlu1 %1495  ;;  %3923 = vmatprep.mubr.msk.bf16.mxu1 %vm1603_vm12, %v3714_v1  ;;  %v2537_v34 = vshll.u32 %v4023_v0, 16  ;;  %v2510_v40 = vor.u32 %v2509_v12, %v2506_v15  ;;  %v2515_v26 = vrot.slane %v2513_v35, 5  ;;  %v2519_v7 = vrot.slane %v2517_v16, 4  ;;  %v4024_v35 = vld [vmem:[#allocation2 + $0x3c] sm:$0xf] }
  0xce   : > { %v2530_v32 = vrot.slane %v2528_v5, 4  ;;  %v1741_v4 = vsel %vm1735_vm0, %v1708_v54, %v1457_v61  ;;  %v2502_v23 = vsel %vm4940_vm7, %v2497_v50, %v4682_v59  ;;  %v2533_v27 = vrot.slane %v2531_v19, 5 }
  0xcf   : > { %v1494_v6 = vpop.permute.xlu0 %1493  ;;  %1392 = vrot.lane.b32.xlu1 %v4722_v20, %s4040_s28  ;;  %v2539_v60 = vrot.slane %v2537_v34, 5  ;;  %v3715_v43 = vcombine.low %v2492_v37, %v2502_v23  ;;  %v2511_v1 = vrot.slane %v2510_v40, 4  ;;  %v2520_v33 = vor.u32 %v2519_v7, %v2515_v26  ;;  %v4025_v37 = vld [vmem:[#allocation2 + $0x40] sm:$0xf] }
  0xd0   : > { %v2541_v45 = vshrl.u32 %v4023_v0, 16  ;;  %v1776_v15 = vsel %vm1768_vm1, %v1743_v52, %v1496_v13  ;;  %v2534_v12 = vor.u32 %v2533_v27, %v2530_v32  ;;  %v2552_v16 = vshrl.u32 %v4024_v35, 16 }
  0xd1   : > { %1390 = vrot.lane.b32.xlu0 %v4678_v58, %s4040_s28  ;;  %v1543_v63 = vpop.permute.xlu1 %1542  ;;  %v2555_v54 = vshll.u32 %v4024_v35, 16  ;;  %3924 = vmatmul.mubr.msk.bf16.vlgmr.msra.gmra.mxu1 %vm1603_vm12, %v3715_v43  ;;  %v2516_v59 = vsel %vm4940_vm7, %v2511_v1, %v2515_v26  ;;  %v2521_v29 = vrot.slane %v2520_v33, 4  ;;  %v2561_v50 = vshll.u32 %v4025_v37, 16  ;;  %v4026_v33 = vld [vmem:[#allocation2 + $0x48] sm:$0xf] }
  0xd2   : > { %v2543_v5 = vrot.slane %v2541_v45, 4  ;;  %v1774_v19 = vsel %vm1768_vm1, %v1741_v4, %v1494_v6  ;;  %v2535_v52 = vrot.slane %v2534_v12, 4  ;;  %v2554_v13 = vrot.slane %v2552_v16, 4  ;;  %v4027_v16 = vld [vmem:[#allocation2 + $0x4c] sm:$0xf] }
  0xd3   : > { %v1541_v61 = vpop.permute.xlu0 %1540  ;;  %1439 = vrot.lane.b32.xlu1 %v4882_v46, %s4045_s9  ;;  %v2557_v0 = vrot.slane %v2555_v54, 5  ;;  %v2526_v40 = vsel %vm4940_vm7, %v2521_v29, %v4684_v62  ;;  %v2563_v26 = vrot.slane %v2561_v50, 5  ;;  %v2565_v32 = vshrl.u32 %v4025_v37, 16 }
  0xd4   : > { %v2544_v7 = vor.u32 %v2543_v5, %v2539_v60  ;;  %v1807_v23 = vsel %vm1801_vm3, %v1774_v19, %v1541_v61  ;;  %v3716_v27 = vcombine.low %v2516_v59, %v2526_v40  ;;  %v2540_v6 = vsel %vm4940_vm7, %v2535_v52, %v2539_v60 }
  0xd5   : > { %1437 = vrot.lane.b32.xlu0 %v4807_v39, %s4045_s9  ;;  %v4975_v34 = vpop.permute.xlu1 %1260  ;;  %v2558_v4 = vor.u32 %v2557_v0, %v2554_v13  ;;  %v2567_v1 = vrot.slane %v2565_v32, 4  ;;  %v2576_v45 = vshrl.u32 %v4026_v33, 16  ;;  %v2579_v12 = vshll.u32 %v4026_v33, 16  ;;  %v4028_v32 = vld [vmem:[#allocation2 + $0x54] sm:$0xf] }
  0xd6   : > { %v2545_v39 = vrot.slane %v2544_v7, 4  ;;  %3927 = vmatprep.mubr.msk.bf16.mxu1 %vm1603_vm12, %v3716_v27  ;;  %v2585_v54 = vshll.u32 %v4027_v16, 16  ;;  %v2589_v61 = vshrl.u32 %v4027_v16, 16  ;;  %v1809_v50 = vsel %vm1801_vm3, %v1776_v15, %v1543_v63  ;;  %v4029_v63 = vld [vmem:[#allocation2 + $0x58] sm:$0xf] }
  0xd7   : > { %v1576_v43 = vpop.permute.xlu0 %1575  ;;  %1474 = vrot.lane.b32.xlu1 %v4885_v38, %s4043_s7  ;;  %v2559_v35 = vrot.slane %v2558_v4, 4  ;;  %v2568_v29 = vor.u32 %v2567_v1, %v2563_v26  ;;  %v2578_v5 = vrot.slane %v2576_v45, 4  ;;  %v2581_v37 = vrot.slane %v2579_v12, 5 }
  0xd8   : > { %v1840_v62 = vsel %vm1834_vm2, %v1807_v23, %v1576_v43  ;;  %v2550_v59 = vsel %vm4940_vm7, %v2545_v39, %v4709_v3  ;;  %v2587_v13 = vrot.slane %v2585_v54, 5  ;;  %v2591_v7 = vrot.slane %v2589_v61, 4 }
  0xd9   : > { %1472 = vrot.lane.b32.xlu0 %v4875_v2, %s4043_s7  ;;  %3893 = vmatprep.mubr.msk.bf16.mxu0 %vm1887_vm4, %v1840_v62  ;;  %v1263_v60 = vpop.permute.xlu1 %1262  ;;  %v3717_v19 = vcombine.low %v2540_v6, %v2550_v59  ;;  %v2564_v52 = vsel %vm4940_vm7, %v2559_v35, %v2563_v26  ;;  %v2569_v2 = vrot.slane %v2568_v29, 4  ;;  %v2582_v40 = vor.u32 %v2581_v37, %v2578_v5 }
  0xda   : > { %v2600_v23 = vshrl.u32 %v4028_v32, 16  ;;  %v2603_v27 = vshll.u32 %v4028_v32, 16  ;;  %v2609_v15 = vshll.u32 %v4029_v63, 16  ;;  %v2613_v6 = vshrl.u32 %v4029_v63, 16 }
  0xdb   : > { %v1578_v0 = vpop.permute.xlu0 %1577  ;;  %1511 = vrot.lane.b32.xlu1 %v4762_v53, %s4041_s29  ;;  %3928 = vmatmul.mubr.msk.bf16.gmra.mxu1 %vm1603_vm12, %v3717_v19  ;;  %v2574_v4 = vsel %vm4940_vm7, %v2569_v2, %v4711_v51  ;;  %v2583_v43 = vrot.slane %v2582_v40, 4  ;;  %v2592_v39 = vor.u32 %v2591_v7, %v2587_v13  ;;  %v5009_v33 = vsel %vm1059_vm10, %v4905_v41, %v4907_v36 }
  0xdc   : > { %v1842_v3 = vsel %vm1834_vm2, %v1809_v50, %v1578_v0  ;;  %v2602_v1 = vrot.slane %v2600_v23, 4  ;;  %v3718_v45 = vcombine.low %v2564_v52, %v2574_v4  ;;  %v2605_v12 = vrot.slane %v2603_v27, 5 }
  0xdd   : > { %1509 = vrot.lane.b32.xlu0 %v4722_v20, %s4041_s29  ;;  %3894 = vmatmul.mubr.msk.bf16.gmra.mxu0 %vm1887_vm4, %v1842_v3  ;;  %v1344_v26 = vpop.permute.xlu1 %1343  ;;  %v2611_v62 = vrot.slane %v2609_v15, 5  ;;  %v2588_v16 = vsel %vm4940_vm7, %v2583_v43, %v2587_v13  ;;  %v2593_v54 = vrot.slane %v2592_v39, 4  ;;  %v2615_v51 = vrot.slane %v2613_v6, 4 }
  0xde   : > { %v2624_v61 = vshrl.u32 %v4536_v18, 16  ;;  %v1615_v59 = vsel %vm1603_vm12, %v4322_v9, %v1263_v60  ;;  %3931 = vmatprep.mubr.msk.bf16.mxu1 %vm1603_vm12, %v3718_v45  ;;  %v2606_v41 = vor.u32 %v2605_v12, %v2602_v1  ;;  %v2627_v36 = vshll.u32 %v4536_v18, 16 }
  0xdf   : > { %v1342_v35 = vpop.permute.xlu0 %1341  ;;  %1558 = vrot.lane.b32.xlu1 %v4893_v55, %s4046_s10  ;;  %v2633_v29 = vshll.u32 %v4538_v57, 16  ;;  %v2598_v37 = vsel %vm4940_vm7, %v2593_v54, %v4713_v31  ;;  %v2616_v50 = vor.u32 %v2615_v51, %v2611_v62  ;;  %v2637_v52 = vshrl.u32 %v4538_v57, 16 }
  0xe0   : > { %v2626_v19 = vrot.slane %v2624_v61, 4  ;;  %v1613_v9 = vsel %vm1603_vm12, %v4272_v14, %v4975_v34  ;;  %v3719_v60 = vcombine.low %v2588_v16, %v2598_v37  ;;  %v2607_v18 = vrot.slane %v2606_v41, 4 }
  0xe1   : > { %1556 = vrot.lane.b32.xlu0 %v4882_v46, %s4046_s10  ;;  %v1381_v5 = vpop.permute.xlu1 %1380  ;;  %v2629_v13 = vrot.slane %v2627_v36, 5  ;;  %v2617_v2 = vrot.slane %v2616_v50, 4  ;;  %v2635_v40 = vrot.slane %v2633_v29, 5  ;;  %v2639_v7 = vrot.slane %v2637_v52, 4 }
  0xe2   : > { %v2648_v31 = vshrl.u32 %v4587_v47, 16  ;;  %v1648_v32 = vsel %vm1636_vm13, %v1615_v59, %v1344_v26  ;;  %v2612_v57 = vsel %vm4940_vm7, %v2607_v18, %v2611_v62  ;;  %v2651_v34 = vshll.u32 %v4587_v47, 16 }
  0xe3   : > { %v1379_v0 = vpop.permute.xlu0 %1378  ;;  %1276 = vrot.lane.b32.xlu1 %v4882_v46, %s4042_s30  ;;  %3932 = vmatmul.mubr.msk.bf16.gmra.mxu1 %vm1603_vm12, %v3719_v60  ;;  %v2630_v14 = vor.u32 %v2629_v13, %v2626_v19  ;;  %v2622_v46 = vsel %vm4940_vm7, %v2617_v2, %v4724_v17  ;;  %v2640_v3 = vor.u32 %v2639_v7, %v2635_v40  ;;  %v2657_v63 = vshll.u32 %v4589_v49, 16 }
  0xe4   : > { %v2650_v27 = vrot.slane %v2648_v31, 4  ;;  %v1646_v15 = vsel %vm1636_vm13, %v1613_v9, %v1342_v35  ;;  %v3720_v6 = vcombine.low %v2612_v57, %v2622_v46  ;;  %v2653_v4 = vrot.slane %v2651_v34, 5  ;;  %v5755_v46 = vld [vmem:[#allocation9_spill] sm:$0xff] }
  0xe5   : > { %1591 = vrot.lane.b32.xlu0 %v4885_v38, %s4044_s8  ;;  %v1428_v23 = vpop.permute.xlu1 %1427  ;;  %v2631_v26 = vrot.slane %v2630_v14, 4  ;;  %v2641_v47 = vrot.slane %v2640_v3, 4  ;;  %v2659_v39 = vrot.slane %v2657_v63, 5  ;;  %v2661_v1 = vshrl.u32 %v4589_v49, 16 }
  0xe6   : > { %v2672_v45 = vshrl.u32 %v4642_v56, 16  ;;  %v1681_v17 = vsel %vm1669_vm14, %v1648_v32, %v1381_v5  ;;  %3935 = vmatprep.mubr.msk.bf16.mxu1 %vm1603_vm12, %v3720_v6  ;;  %v2654_v62 = vor.u32 %v2653_v4, %v2650_v27  ;;  %v2675_v35 = vshll.u32 %v4642_v56, 16 }
  0xe7   : > { %v1426_v43 = vpop.permute.xlu0 %1425  ;;  %1278 = vrot.lane.b32.xlu1 %v4893_v55, %s4042_s30  ;;  %v2636_v12 = vsel %vm4940_vm7, %v2631_v26, %v2635_v40  ;;  %v2646_v49 = vsel %vm4940_vm7, %v2641_v47, %v4726_v21  ;;  %v2663_v54 = vrot.slane %v2661_v1, 4  ;;  %v2681_v61 = vshll.u32 %v4644_v30, 16 }
  0xe8   : > { %v2674_v51 = vrot.slane %v2672_v45, 4  ;;  %v1679_v59 = vsel %vm1669_vm14, %v1646_v15, %v1379_v0  ;;  %v3721_v41 = vcombine.low %v2636_v12, %v2646_v49  ;;  %v2655_v36 = vrot.slane %v2654_v62, 4 }
  0xe9   : > { %1593 = vrot.lane.b32.xlu0 %v4890_v48, %s4044_s8  ;;  %v1463_v16 = vpop.permute.xlu1 %1462  ;;  %v2677_v29 = vrot.slane %v2675_v35, 5  ;;  %v2664_v56 = vor.u32 %v2663_v54, %v2659_v39  ;;  %v2683_v37 = vrot.slane %v2681_v61, 5  ;;  %v2685_v50 = vshrl.u32 %v4644_v30, 16  ;;  %v5753_v30 = vld [vmem:[#allocation8_spill] sm:$0xff]  ;;  %v5757_v61 = vld [vmem:[#allocation11_spill] sm:$0xff] }
  0xea   : > { %v2696_v19 = vshrl.u32 %v4662_v44, 16  ;;  %v1714_v21 = vsel %vm1702_vm15, %v1681_v17, %v1428_v23  ;;  %v2660_v52 = vsel %vm4940_vm7, %v2655_v36, %v2659_v39  ;;  %v2699_v60 = vshll.u32 %v4662_v44, 16  ;;  %v5754_v44 = vld [vmem:[#allocation15_spill] sm:$0xff]  ;;  %v5756_v17 = vld [vmem:[#allocation10_spill] sm:$0xff] }
  0xeb   : > { %v1461_v5 = vpop.permute.xlu0 %1460  ;;  %1359 = vrot.lane.b32.xlu1 %v4890_v48, %s4039_s27  ;;  %3936 = vmatmul.mubr.msk.bf16.gmra.mxu1 %vm1603_vm12, %v3721_v41  ;;  %v2678_v9 = vor.u32 %v2677_v29, %v2674_v51  ;;  %v2665_v13 = vrot.slane %v2664_v56, 4  ;;  %v2687_v0 = vrot.slane %v2685_v50, 4  ;;  %v2705_v40 = vshll.u32 %v5753_v30, 16 }
  0xec   : > { %v2698_v2 = vrot.slane %v2696_v19, 4  ;;  %v1712_v7 = vsel %vm1702_vm15, %v1679_v59, %v1426_v43  ;;  %v2701_v32 = vrot.slane %v2699_v60, 5  ;;  %v2709_v57 = vshrl.u32 %v5753_v30, 16  ;;  %v5759_v30 = vld [vmem:[#allocation13_spill] sm:$0xff] }
  0xed   : > { %1357 = vrot.lane.b32.xlu0 %v4885_v38, %s4039_s27  ;;  %v1500_v18 = vpop.permute.xlu1 %1499  ;;  %v2679_v31 = vrot.slane %v2678_v9, 4  ;;  %v2670_v38 = vsel %vm4940_vm7, %v2665_v13, %v5754_v44  ;;  %v2688_v34 = vor.u32 %v2687_v0, %v2683_v37  ;;  %v2707_v23 = vrot.slane %v2705_v40, 5 }
  0xee   : > { %v2720_v3 = vshrl.u32 %v5755_v46, 16  ;;  %v1745_v27 = vsel %vm1735_vm0, %v1712_v7, %v1461_v5  ;;  %v3722_v63 = vcombine.low %v2660_v52, %v2670_v38  ;;  %v2702_v6 = vor.u32 %v2701_v32, %v2698_v2 }
  0xef   : > { %v1498_v14 = vpop.permute.xlu0 %1497  ;;  %1396 = vrot.lane.b32.xlu1 %v4772_v25, %s4040_s28  ;;  %v2684_v15 = vsel %vm4940_vm7, %v2679_v31, %v2683_v37  ;;  %v2689_v4 = vrot.slane %v2688_v34, 4  ;;  %v2711_v43 = vrot.slane %v2709_v57, 4  ;;  %v2723_v39 = vshll.u32 %v5755_v46, 16 }
  0xf0   : > { %v2722_v47 = vrot.slane %v2720_v3, 4  ;;  %v1778_v1 = vsel %vm1768_vm1, %v1745_v27, %v1498_v14  ;;  %3939 = vmatprep.mubr.msk.bf16.mxu1 %vm1603_vm12, %v3722_v63  ;;  %v2703_v45 = vrot.slane %v2702_v6, 4  ;;  %v2729_v12 = vshll.u32 %v5756_v17, 16  ;;  %v5760_v27 = vld [vmem:[#allocation14_spill] sm:$0xff] }
  0xf1   : > { %1394 = vrot.lane.b32.xlu0 %v4762_v53, %s4040_s28  ;;  %v1547_v26 = vpop.permute.xlu1 %1546  ;;  %v2733_v62 = vshrl.u32 %v5756_v17, 16  ;;  %v2694_v49 = vsel %vm4940_vm7, %v2689_v4, %v4866_v8  ;;  %v2712_v54 = vor.u32 %v2711_v43, %v2707_v23  ;;  %v2725_v51 = vrot.slane %v2723_v39, 5 }
  0xf2   : > { %v2744_v59 = vshrl.u32 %v5757_v61, 16  ;;  %v1747_v41 = vsel %vm1735_vm0, %v1714_v21, %v1463_v16  ;;  %v3723_v29 = vcombine.low %v2684_v15, %v2694_v49  ;;  %v2731_v5 = vrot.slane %v2729_v12, 5  ;;  %v5758_v21 = vld [vmem:[#allocation12_spill] sm:$0xff] }
  0xf3   : > { %v1545_v35 = vpop.permute.xlu0 %1544  ;;  %1443 = vrot.lane.b32.xlu1 %v4903_v42, %s4045_s9  ;;  %v2708_v37 = vsel %vm4940_vm7, %v2703_v45, %v2707_v23  ;;  %v2713_v50 = vrot.slane %v2712_v54, 4  ;;  %v2726_v8 = vor.u32 %v2725_v51, %v2722_v47  ;;  %v2735_v19 = vrot.slane %v2733_v62, 4  ;;  %v5140_v45 = vld [vmem:[#allocation2 + $0xc8] sm:$0x1]  ;;  %v5762_v49 = vld [vmem:[#allocation20_spill] sm:$0xff] }
  0xf4   : > { %v1811_v36 = vsel %vm1801_vm3, %v1778_v1, %v1545_v35  ;;  %3940 = vmatmul.mubr.msk.bf16.gmra.mxu1 %vm1603_vm12, %v3723_v29  ;;  %v2746_v52 = vrot.slane %v2744_v59, 4  ;;  %v2747_v16 = vshll.u32 %v5757_v61, 16  ;;  %v2753_v9 = vshll.u32 %v5758_v21, 16  ;;  %v5761_v62 = vld [vmem:[#allocation17_spill] sm:$0xff]  ;;  %v5763_v59 = vld [vmem:[#allocation16_spill] sm:$0xff] }
  0xf5   : > { %1441 = vrot.lane.b32.xlu0 %v4893_v55, %s4045_s9  ;;  %v5101_v56 = vpop.permute.xlu1 %1264  ;;  %v2757_v60 = vshrl.u32 %v5758_v21, 16  ;;  %v2718_v55 = vsel %vm4940_vm7, %v2713_v50, %v4870_v11  ;;  %v2727_v0 = vrot.slane %v2726_v8, 4  ;;  %v2736_v2 = vor.u32 %v2735_v19, %v2731_v5 }
  0xf6   : > { %v2768_v40 = vshrl.u32 %v5759_v30, 16  ;;  %v3724_v31 = vcombine.low %v2708_v37, %v2718_v55  ;;  %v2749_v32 = vrot.slane %v2747_v16, 5  ;;  %v2755_v57 = vrot.slane %v2753_v9, 5  ;;  %v5766_v9 = vld [vmem:[#allocation18_spill] sm:$0xff]  ;;  %v5767_v55 = vld [vmem:[#allocation24_spill] sm:$0xff] }
  0xf7   : > { %v1580_v13 = vpop.permute.xlu0 %1579  ;;  %1478 = vrot.lane.b32.xlu1 %v4897_v28, %s4043_s7  ;;  %v1780_v14 = vsel %vm1768_vm1, %v1747_v41, %v1500_v18  ;;  %v2732_v11 = vsel %vm4940_vm7, %v2727_v0, %v2731_v5  ;;  %v2737_v38 = vrot.slane %v2736_v2, 4  ;;  %v2759_v34 = vrot.slane %v2757_v60, 4  ;;  %v5765_v5 = vld [vmem:[#allocation21_spill] sm:$0xff] }
  0xf8   : > { %v1844_v7 = vsel %vm1834_vm2, %v1811_v36, %v1580_v13  ;;  %3943 = vmatprep.mubr.msk.bf16.mxu1 %vm1603_vm12, %v3724_v31  ;;  %v2750_v23 = vor.u32 %v2749_v32, %v2746_v52  ;;  %v2770_v46 = vrot.slane %v2768_v40, 4  ;;  %v2771_v3 = vshll.u32 %v5759_v30, 16 }
  0xf9   : > { %1476 = vrot.lane.b32.xlu0 %v4890_v48, %s4043_s7  ;;  %3897 = vmatprep.mubr.msk.bf16.mxu0 %vm1887_vm4, %v1844_v7  ;;  %v5120_v44 = vpop.permute.xlu1 %1266  ;;  %v2777_v18 = vshll.u32 %v5760_v27, 16  ;;  %v1813_v63 = vsel %vm1801_vm3, %v1780_v14, %v1547_v26  ;;  %v2742_v15 = vsel %vm4940_vm7, %v2737_v38, %v4877_v10  ;;  %v2760_v6 = vor.u32 %v2759_v34, %v2755_v57 }
  0xfa   : > { %v2781_v4 = vshrl.u32 %v5760_v27, 16  ;;  %v3725_v47 = vcombine.low %v2732_v11, %v2742_v15  ;;  %v2751_v39 = vrot.slane %v2750_v23, 4  ;;  %v2773_v1 = vrot.slane %v2771_v3, 5  ;;  %v5769_v27 = vld [vmem:[#allocation19_spill] sm:$0xff] }
  0xfb   : > { %v1582_v48 = vpop.permute.xlu0 %1581  ;;  %1515 = vrot.lane.b32.xlu1 %v4823_v24, %s4041_s29  ;;  %v2761_v17 = vrot.slane %v2760_v6, 4  ;;  %v2779_v12 = vrot.slane %v2777_v18, 5  ;;  %v2792_v35 = vshrl.u32 %v5761_v62, 16  ;;  %v1331_v54 = vrot.slane %v5762_v49, 1  ;;  %v5771_v15 = vld [vmem:[#allocation23_spill] sm:$0xff] }
  0xfc   : > { %v1846_v43 = vsel %vm1834_vm2, %v1813_v63, %v1582_v48  ;;  %v2783_v10 = vrot.slane %v2781_v4, 4  ;;  %3944 = vmatmul.mubr.msk.bf16.gmra.mxu1 %vm1603_vm12, %v3725_v47  ;;  %v2756_v51 = vsel %vm4940_vm7, %v2751_v39, %v2755_v57  ;;  %v2774_v61 = vor.u32 %v2773_v1, %v2770_v46  ;;  %v5768_v57 = vld [vmem:[#allocation22_spill] sm:$0xff] }
  0xfd   : > { %1513 = vrot.lane.b32.xlu0 %v4772_v25, %s4041_s29  ;;  %3898 = vmatmul.mubr.msk.bf16.gmra.mxu0 %vm1887_vm4, %v1846_v43  ;;  %v5138_v26 = vpop.permute.xlu1 %1347  ;;  %v5764_v41 = vshll.u32 %v5763_v59, 16  ;;  %v2766_v37 = vsel %vm4940_vm7, %v2761_v17, %v5765_v5  ;;  %v2794_v8 = vrot.slane %v2792_v35, 4  ;;  %v2795_v19 = vshll.u32 %v5761_v62, 16 }
  0xfe   : > { %v2784_v50 = vor.u32 %v2783_v10, %v2779_v12  ;;  %v5159_v52 = vcombine.low %v5140_v45, %v5140_v45  ;;  %v3726_v16 = vcombine.low %v2756_v51, %v2766_v37  ;;  %v2775_v21 = vrot.slane %v2774_v61, 4 }
  0xff   : > { %v2789_v36 = vrot.slane %v5764_v41, 5  ;;  %v5149_v29 = vpop.permute.xlu0 %1345  ;;  %1562 = vrot.lane.b32.xlu1 %v5009_v33, %s4046_s10  ;;  %v2801_v60 = vshll.u32 %v5766_v9, 16  ;;  %v1408_v0 = vshll.u32 %v5767_v55, 16  ;;  %v2797_v30 = vrot.slane %v2795_v19, 5 }
 0x100   : > { %v2785_v2 = vrot.slane %v2784_v50, 4  ;;  %v2805_v40 = vshrl.u32 %v5766_v9, 16  ;;  %v2835_v7 = vshll.u32 %v5140_v45, 16  ;;  %3947 = vmatprep.mubr.msk.bf16.mxu1 %vm1603_vm12, %v3726_v16  ;;  %v2780_v31 = vsel %vm4940_vm7, %v2775_v21, %v2779_v12 }
 0x101   : > { %1560 = vrot.lane.b32.xlu0 %v4903_v42, %s4046_s10  ;;  %v5164_v13 = vpop.permute.xlu1 %1384  ;;  %v2803_v32 = vrot.slane %v2801_v60, 5  ;;  %v2816_v14 = vshrl.u32 %v5768_v57, 16  ;;  %v2798_v34 = vor.u32 %v2797_v30, %v2794_v8  ;;  %v2819_v46 = vshll.u32 %v5768_v57, 16  ;;  %v4011_v60 = vld [vmem:[#allocation2 + $0xcc] sm:$0xff]  }
 0x102   : > { %v2790_v38 = vsel %vm4940_vm7, %v2785_v2, %v2789_v36  ;;  %v2807_v23 = vrot.slane %v2805_v40, 4  ;;  %v5770_v18 = vshll.u32 %v5769_v27, 16  ;;  %v2825_v6 = vshll.u32 %v5771_v15, 16  ;;  %v4012_v57 = vld [vmem:[#allocation2 + $0xd4] ss:$0 sps:$4 sm:$0x11]  }
 0x103   : > { %v1383_v11 = vpop.permute.xlu0 %1382  ;;  %1280 = vrot.lane.b32.xlu1 %v4903_v42, %s4042_s30  ;;  %v3727_v3 = vcombine.low %v2780_v31, %v2790_v38  ;;  %v2818_v48 = vrot.slane %v2816_v14, 4  ;;  %v2799_v42 = vrot.slane %v2798_v34, 4  ;;  %v2821_v47 = vrot.slane %v2819_v46, 5 }
 0x104   : > { %v2813_v63 = vrot.slane %v5770_v18, 5  ;;  %v2808_v43 = vor.u32 %v2807_v23, %v2803_v32  ;;  %v2829_v39 = vshrl.u32 %v5771_v15, 16  ;;  %v5772_v1 = vrot.slane %v4823_v24, 1  ;;  %v5774_v23 = vld [vmem:[#allocation4_spill] sm:$0xff] }
 0x105   : > { %1595 = vrot.lane.b32.xlu0 %v4897_v28, %s4044_s8  ;;  %v5183_v4 = vpop.permute.xlu1 %1431  ;;  %3948 = vmatmul.mubr.msk.bf16.gmra.mxu1 %vm1603_vm12, %v3727_v3  ;;  %v2827_v17 = vrot.slane %v2825_v6, 5  ;;  %v2804_v10 = vsel %vm4940_vm7, %v2799_v42, %v2803_v32  ;;  %v2822_v35 = vor.u32 %v2821_v47, %v2818_v48  ;;  %v1406_v51 = vshrl.u32 %v5767_v55, 16 }
 0x106   : > { %v5189_v45 = vsel %vm1284_vm9, %v5772_v1, %v1331_v54  ;;  %v2809_v62 = vrot.slane %v2808_v43, 4  ;;  %v2831_v49 = vrot.slane %v2829_v39, 4  ;;  %v1410_v61 = vrot.slane %v1408_v0, 1 }
 0x107   : > { %v1430_v12 = vpop.permute.xlu0 %1429  ;;  %1282 = vrot.lane.b32.xlu1 %v5009_v33, %s4042_s30  ;;  %v1413_v59 = vshll.u32 %v5159_v52, 16  ;;  %v2823_v36 = vrot.slane %v2822_v35, 4  ;;  %v2837_v37 = vrot.slane %v2835_v7, 5  ;;  %v1449_v31 = vrot.slane %v5767_v55, 1 }
 0x108   : > { %v2814_v41 = vsel %vm4940_vm7, %v2809_v62, %v2813_v63  ;;  %v2832_v5 = vor.u32 %v2831_v49, %v2827_v17  ;;  %v1411_v21 = vor.u32 %v1410_v61, %v1406_v51  ;;  %v1450_v32 = vrot.slane %v5159_v52, 1 }
 0x109   : > { %1597 = vrot.lane.b32.xlu0 %v5189_v45, %s4044_s8  ;;  %v1467_v54 = vpop.permute.xlu1 %1466  ;;  %v3728_v50 = vcombine.low %v2804_v10, %v2814_v41  ;;  %v2828_v19 = vsel %vm4940_vm7, %v2823_v36, %v2827_v17  ;;  %v1415_v9 = vrot.slane %v1413_v59, 1  ;;  %v1527_v14 = vshll.u32 %v4011_v60, 16 }
 0x10a   : > { %v2833_v16 = vrot.slane %v2832_v5, 4  ;;  %v1619_v46 = vsel %vm1603_vm12, %v5774_v23, %v5120_v44  ;;  %v1525_v27 = vshrl.u32 %v4011_v60, 16  ;;  %v1532_v48 = vshll.u32 %v4012_v57, 16 }
 0x10b   : > { %v1465_v8 = vpop.permute.xlu0 %1464  ;;  %1363 = vrot.lane.b32.xlu1 %v5189_v45, %s4039_s27  ;;  %3951 = vmatprep.mubr.msk.bf16.mxu1 %vm1603_vm12, %v3728_v50  ;;  %v1416_v7 = vsel %vm1059_vm10, %v1411_v21, %v1415_v9  ;;  %v1529_v63 = vrot.slane %v1527_v14, 1  ;;  %v1652_v44 = vsel %vm1636_vm13, %v1619_v46, %v5138_v26  ;;  %v1568_v35 = vrot.slane %v4011_v60, 1  ;;  %v5776_v9 = vld [vmem:[#allocation6_spill] sm:$0xff] }
 0x10c   : > { %v2838_v2 = vsel %vm4940_vm7, %v2833_v16, %v2837_v37  ;;  %v1685_v6 = vsel %vm1669_vm14, %v1652_v44, %v5164_v13  ;;  %v1534_v1 = vrot.slane %v1532_v48, 1  ;;  %v1569_v49 = vrot.slane %v4012_v57, 1 }
 0x10d   : > { %1361 = vrot.lane.b32.xlu0 %v4897_v28, %s4039_s27  ;;  %v1504_v0 = vpop.permute.xlu1 %1503  ;;  %v3729_v30 = vcombine.low %v2828_v19, %v2838_v2  ;;  %v5773_v28 = vld [vmem:[#allocation3_spill] sm:$0xff]  ;;  %v1718_v47 = vsel %vm1702_vm15, %v1685_v6, %v5183_v4  ;;  %s5361_s27 = scalar_lea.vmem %s5684_s4, %s4117_s23  ;;  %s3625_s23 = sshll.u32 %s5779_s22, 1 }
 0x10e   : > { %v1617_v22 = vsel %vm1603_vm12, %v5773_v28, %v5101_v56  ;;  %v1451_v56 = vsel %vm1284_vm9, %v1449_v31, %v1450_v32  ;;  %v1751_v17 = vsel %vm1735_vm0, %v1718_v47, %v1467_v54  ;;  %v1570_v61 = vsel %vm1284_vm9, %v1568_v35, %v1569_v49  ;;  %s284_s30 = scalar_lea.vmem %s5686_s6, %s3625_s23 }
 0x10f   : > { %v1502_v40 = vpop.permute.xlu0 %1501  ;;  %1400 = vrot.lane.b32.xlu1 %v5767_v55, %s4040_s28  ;;  %3952 = vmatmul.mubr.msk.bf16.gmra.mxu1 %vm1603_vm12, %v3729_v30  ;;  %v1650_v34 = vsel %vm1636_vm13, %v1617_v22, %v5149_v29  ;;  %v1784_v13 = vsel %vm1768_vm1, %v1751_v17, %v1504_v0  ;;  %vm2448_vm9 = vcmask 1040384  }
 0x110   : > { %v1683_v52 = vsel %vm1669_vm14, %v1650_v34, %v1383_v11 }
 0x111   : > { %1398 = vrot.lane.b32.xlu0 %v4823_v24, %s4040_s28  ;;  %v1551_v38 = vpop.permute.xlu1 %1550  ;;  %v1716_v18 = vsel %vm1702_vm15, %v1683_v52, %v1430_v12 }
 0x112   : > { %v1749_v15 = vsel %vm1735_vm0, %v1716_v18, %v1465_v8  ;;  %v1817_v12 = vsel %vm1801_vm3, %v1784_v13, %v1551_v38  ;;  %v5775_v8 = vld [vmem:[#allocation5_spill] sm:$0xff] }
 0x113   : > { %v1549_v3 = vpop.permute.xlu0 %1548  ;;  %1447 = vrot.lane.b32.xlu1 %v1416_v7, %s4045_s9  ;;  %v1782_v11 = vsel %vm1768_vm1, %v1749_v15, %v1502_v40 }
 0x114   : > { %v1815_v42 = vsel %vm1801_vm3, %v1782_v11, %v1549_v3 }
 0x115   : > { %1445 = vrot.lane.b32.xlu0 %v5009_v33, %s4045_s9  ;;  %v1269_v29 = vpop.permute.xlu1 %1268  ;;  %v1530_v33 = vor.u32 %v1529_v63, %v1525_v27  ;;  %s280_s9 = scalar_lea.vmem %s5685_s5, %s3625_s23 }
 0x116   : > { %v1621_v19 = vsel %vm1603_vm12, %v5775_v8, %v1269_v29 }
 0x117   : > { %v1584_v43 = vpop.permute.xlu0 %1583  ;;  %1482 = vrot.lane.b32.xlu1 %v1451_v56, %s4043_s7  ;;  %v1535_v62 = vsel %vm1059_vm10, %v1530_v33, %v1534_v1  ;;  %vm2450_vm10 = vcmask 58368  }
 0x118   : > { %v1848_v39 = vsel %vm1834_vm2, %v1815_v42, %v1584_v43  ;;  %v5777_v43 = vld [vmem:[#allocation7_spill] sm:$0xff] }
 0x119   : > { %1480 = vrot.lane.b32.xlu0 %v5189_v45, %s4043_s7  ;;  %3901 = vmatprep.mubr.msk.bf16.mxu0 %vm1887_vm4, %v1848_v39  ;;  %v1271_v26 = vpop.permute.xlu1 %1270 }
 0x11b   : > { %v1586_v10 = vpop.permute.xlu0 %1585  ;;  %1519 = vrot.lane.b32.xlu1 %v4011_v60, %s4041_s29  ;;  %v1623_v60 = vsel %vm1603_vm12, %v5776_v9, %v1271_v26 }
 0x11c   : > { %v1850_v4 = vsel %vm1834_vm2, %v1817_v12, %v1586_v10 }
 0x11d   : > { %1517 = vrot.lane.b32.xlu0 %v5767_v55, %s4041_s29  ;;  %3902 = vmatmul.mubr.msk.bf16.gmra.mxu0 %vm1887_vm4, %v1850_v4  ;;  %v1352_v45 = vpop.permute.xlu1 %1351 }
 0x11e   : > { %v1656_v31 = vsel %vm1636_vm13, %v1623_v60, %v1352_v45 }
 0x11f   : > { %v1350_v51 = vpop.permute.xlu0 %1349  ;;  %1566 = vrot.lane.b32.xlu1 %v1535_v62, %s4046_s10 }
 0x120   : > { %v1654_v21 = vsel %vm1636_vm13, %v1621_v19, %v1350_v51 }
 0x121   : > { %1564 = vrot.lane.b32.xlu0 %v1416_v7, %s4046_s10  ;;  %v1389_v59 = vpop.permute.xlu1 %1388 }
 0x122   : > { %v1689_v57 = vsel %vm1669_vm14, %v1656_v31, %v1389_v59 }
 0x123   : > { %v1387_v54 = vpop.permute.xlu0 %1386  ;;  %1601 = vrot.lane.b32.xlu1 %v1570_v61, %s4044_s8 }
 0x124   : > { %v1687_v0 = vsel %vm1669_vm14, %v1654_v21, %v1387_v54 }
 0x125   : > { %1599 = vrot.lane.b32.xlu0 %v1451_v56, %s4044_s8  ;;  %v1436_v41 = vpop.permute.xlu1 %1435 }
 0x126   : > { %v1722_v22 = vsel %vm1702_vm15, %v1689_v57, %v1436_v41 }
 0x127   : > { %v1434_v36 = vpop.permute.xlu0 %1433 }
 0x128   : > { %v1720_v30 = vsel %vm1702_vm15, %v1687_v0, %v1434_v36 }
 0x129   : > { %v1471_v5 = vpop.permute.xlu1 %1470 }
 0x12a   : > { %v1755_v34 = vsel %vm1735_vm0, %v1722_v22, %v1471_v5 }
 0x12b   : > { %v1469_v55 = vpop.permute.xlu0 %1468 }
 0x12c   : > { %v1753_v40 = vsel %vm1735_vm0, %v1720_v30, %v1469_v55 }
 0x12d   : > { %v1508_v37 = vpop.permute.xlu1 %1507 }
 0x12e   : > { %v1788_v46 = vsel %vm1768_vm1, %v1755_v34, %v1508_v37 }
 0x12f   : > { %v1506_v50 = vpop.permute.xlu0 %1505 }
 0x130   : > { %v1786_v32 = vsel %vm1768_vm1, %v1753_v40, %v1506_v50 }
 0x131   : > { %v1555_v16 = vpop.permute.xlu1 %1554 }
 0x132   : > { %v1821_v52 = vsel %vm1801_vm3, %v1788_v46, %v1555_v16 }
 0x133   : > { %v1553_v2 = vpop.permute.xlu0 %1552 }
 0x134   : > { %v1819_v14 = vsel %vm1801_vm3, %v1786_v32, %v1553_v2 }
 0x135   : > { %v1273_v7 = vpop.permute.xlu1 %1272 }
 0x136   : > { %v1625_v47 = vsel %vm1603_vm12, %v5777_v43, %v1273_v7 }
 0x137   : > { %v1588_v28 = vpop.permute.xlu0 %1587 }
 0x138   : > { %v1852_v38 = vsel %vm1834_vm2, %v1819_v14, %v1588_v28 }
 0x139   : > { %3905 = vmatprep.mubr.msk.bf16.mxu0 %vm1887_vm4, %v1852_v38  ;;  %v1275_v23 = vpop.permute.xlu1 %1274 }
 0x13a   : > { %v1627_v1 = vsel %vm1603_vm12, %v4678_v58, %v1275_v23 }
 0x13b   : > { %v1590_v3 = vpop.permute.xlu0 %1589 }
 0x13c   : > { %v1854_v27 = vsel %vm1834_vm2, %v1821_v52, %v1590_v3 }
 0x13d   : > { %3906 = vmatmul.mubr.msk.bf16.gmra.mxu0 %vm1887_vm4, %v1854_v27  ;;  %v1356_v18 = vpop.permute.xlu1 %1355 }
 0x13e   : > { %v1660_v4 = vsel %vm1636_vm13, %v1627_v1, %v1356_v18 }
 0x13f   : > { %v1354_v56 = vpop.permute.xlu0 %1353 }
 0x140   : > { %v1658_v33 = vsel %vm1636_vm13, %v1625_v47, %v1354_v56 }
 0x141   : > { %v1393_v63 = vpop.permute.xlu1 %1392 }
 0x142   : > { %v1693_v35 = vsel %vm1669_vm14, %v1660_v4, %v1393_v63 }
 0x143   : > { %v1391_v48 = vpop.permute.xlu0 %1390 }
 0x144   : > { %v1691_v17 = vsel %vm1669_vm14, %v1658_v33, %v1391_v48 }
 0x145   : > { %v1440_v15 = vpop.permute.xlu1 %1439 }
 0x146   : > { %v1726_v51 = vsel %vm1702_vm15, %v1693_v35, %v1440_v15 }
 0x147   : > { %v1438_v29 = vpop.permute.xlu0 %1437 }
 0x148   : > { %v1724_v13 = vsel %vm1702_vm15, %v1691_v17, %v1438_v29 }
 0x149   : > { %v1475_v44 = vpop.permute.xlu1 %1474 }
 0x14a   : > { %v1759_v61 = vsel %vm1735_vm0, %v1726_v51, %v1475_v44 }
 0x14b   : > { %v1473_v11 = vpop.permute.xlu0 %1472 }
 0x14c   : > { %v1757_v12 = vsel %vm1735_vm0, %v1724_v13, %v1473_v11 }
 0x14d   : > { %v1512_v6 = vpop.permute.xlu1 %1511 }
 0x14e   : > { %v1792_v54 = vsel %vm1768_vm1, %v1759_v61, %v1512_v6 }
 0x14f   : > { %v1510_v42 = vpop.permute.xlu0 %1509 }
 0x150   : > { %v1790_v62 = vsel %vm1768_vm1, %v1757_v12, %v1510_v42 }
 0x151   : > { %v1559_v39 = vpop.permute.xlu1 %1558 }
 0x152   : > { %v1825_v41 = vsel %vm1801_vm3, %v1792_v54, %v1559_v39 }
 0x153   : > { %v1557_v26 = vpop.permute.xlu0 %1556 }
 0x154   : > { %v1823_v49 = vsel %vm1801_vm3, %v1790_v62, %v1557_v26 }
 0x155   : > { %v1277_v10 = vpop.permute.xlu1 %1276 }
 0x156   : > { %v1629_v2 = vsel %vm1603_vm12, %v4722_v20, %v1277_v10 }
 0x157   : > { %v1592_v45 = vpop.permute.xlu0 %1591 }
 0x158   : > { %v1856_v58 = vsel %vm1834_vm2, %v1823_v49, %v1592_v45 }
 0x159   : > { %3909 = vmatprep.mubr.msk.bf16.mxu0 %vm1887_vm4, %v1856_v58  ;;  %v1279_v59 = vpop.permute.xlu1 %1278 }
 0x15a   : > { %v1631_v7 = vsel %vm1603_vm12, %v4762_v53, %v1279_v59 }
 0x15b   : > { %v1594_v36 = vpop.permute.xlu0 %1593 }
 0x15c   : > { %v1858_v5 = vsel %vm1834_vm2, %v1825_v41, %v1594_v36 }
 0x15d   : > { %3910 = vmatmul.mubr.msk.bf16.gmra.mxu0 %vm1887_vm4, %v1858_v5  ;;  %v1360_v55 = vpop.permute.xlu1 %1359 }
 0x15e   : > { %v1664_v22 = vsel %vm1636_vm13, %v1631_v7, %v1360_v55 }
 0x15f   : > { %v1358_v37 = vpop.permute.xlu0 %1357 }
 0x160   : > { %v1662_v40 = vsel %vm1636_vm13, %v1629_v2, %v1358_v37 }
 0x161   : > { %v1397_v50 = vpop.permute.xlu1 %1396 }
 0x162   : > { %v1697_v38 = vsel %vm1669_vm14, %v1664_v22, %v1397_v50 }
 0x163   : > { %v1395_v8 = vpop.permute.xlu0 %1394 }
 0x164   : > { %v1695_v31 = vsel %vm1669_vm14, %v1662_v40, %v1395_v8 }
 0x165   : > { %v1444_v19 = vpop.permute.xlu1 %1443 }
 0x166   : > { %v1730_v53 = vsel %vm1702_vm15, %v1697_v38, %v1444_v19 }
 0x167   : > { %v1442_v16 = vpop.permute.xlu0 %1441 }
 0x168   : > { %v1728_v57 = vsel %vm1702_vm15, %v1695_v31, %v1442_v16 }
 0x169   : > { %v1479_v21 = vpop.permute.xlu1 %1478 }
 0x16a   : > { %v1763_v52 = vsel %vm1735_vm0, %v1730_v53, %v1479_v21 }
 0x16b   : > { %v1477_v9 = vpop.permute.xlu0 %1476 }
 0x16c   : > { %v1761_v14 = vsel %vm1735_vm0, %v1728_v57, %v1477_v9 }
 0x16d   : > { %v1516_v60 = vpop.permute.xlu1 %1515 }
 0x16e   : > { %v1796_v27 = vsel %vm1768_vm1, %v1763_v52, %v1516_v60 }
 0x16f   : > { %v1514_v0 = vpop.permute.xlu0 %1513 }
 0x170   : > { %v1794_v20 = vsel %vm1768_vm1, %v1761_v14, %v1514_v0 }
 0x171   : > { %v1563_v30 = vpop.permute.xlu1 %1562 }
 0x172   : > { %v1829_v18 = vsel %vm1801_vm3, %v1796_v27, %v1563_v30 }
 0x173   : > { %v1561_v32 = vpop.permute.xlu0 %1560 }
 0x174   : > { %v1827_v34 = vsel %vm1801_vm3, %v1794_v20, %v1561_v32 }
 0x175   : > { %v5309_v28 = vpop.permute.xlu1 %1280 }
 0x176   : > { %v1633_v7 = vsel %vm1603_vm12, %v4772_v25, %v5309_v28 }
 0x177   : > { %v1596_v23 = vpop.permute.xlu0 %1595 }
 0x178   : > { %v1860_v46 = vsel %vm1834_vm2, %v1827_v34, %v1596_v23 }
 0x179   : > { %3913 = vmatprep.mubr.msk.bf16.mxu0 %vm1887_vm4, %v1860_v46  ;;  %v1283_v3 = vpop.permute.xlu1 %1282 }
 0x17a   : > { %v1635_v30 = vsel %vm1603_vm12, %v4823_v24, %v1283_v3 }
 0x17b   : > { %v1598_v56 = vpop.permute.xlu0 %1597 }
 0x17c   : > { %v1862_v63 = vsel %vm1834_vm2, %v1829_v18, %v1598_v56 }
 0x17d   : > { %v3891_v48 = vpop.f32.mrf.mxu0  ;;  %3914 = vmatmul.mubr.msk.bf16.gmra.mxu0 %vm1887_vm4, %v1862_v63  ;;  %v1364_v15 = vpop.permute.xlu1 %1363 }
 0x17e   : > { %v3785_v29 = vpack.c.bf16 %v3891_v48, %v3891_v48  ;;  %v1668_v57 = vsel %vm1636_vm13, %v1635_v30, %v1364_v15 }
 0x17f   : > { %v1958_v44 = vpop.f32.mrf.mxu0  ;;  %v1362_v11 = vpop.permute.xlu0 %1361 }
 0x180   : > { %2216 = vst.msk [vmem:[%s5326_s24 + $0x8] sm:$0xf] %vm2213_vm8, %v3785_v29  ;;  %v3783_v6 = vpack.c.bf16 %v1958_v44, %v1958_v44  ;;  %v1666_v32 = vsel %vm1636_vm13, %v1633_v7, %v1362_v11 }
 0x181   : > { %v3892_v42 = vpop.f32.mrf.mxu0  ;;  %v1401_v43 = vpop.permute.xlu1 %1400 }
 0x182   : > { %2214 = vst.msk [vmem:[%s5326_s24] sm:$0xf] %vm2213_vm8, %v3783_v6  ;;  %v2086_v47 = vpack.c.bf16 %v3892_v42, %v3891_v48  ;;  %v3786_v39 = vpack.c.bf16 %v3892_v42, %v3892_v42  ;;  %v1701_v20 = vsel %vm1669_vm14, %v1668_v57, %v1401_v43 }
 0x183   : > { %v1961_v33 = vpop.f32.mrf.mxu0  ;;  %v1399_v1 = vpop.permute.xlu0 %1398 }
 0x184   : > { %2217 = vst.msk [vmem:[%s5326_s24 + $0xc] sm:$0xf] %vm2213_vm8, %v3786_v39  ;;  %v2248_v17 = vunpack.c.l.bf16 %v2086_v47  ;;  %v2085_v26 = vpack.c.bf16 %v1961_v33, %v1958_v44  ;;  %v3784_v13 = vpack.c.bf16 %v1961_v33, %v1961_v33  ;;  %v2249_v10 = vunpack.c.h.bf16 %v2086_v47 }
 0x185   : > { %v1448_v12 = vpop.permute.xlu1 %1447  ;;  %v1699_v14 = vsel %vm1669_vm14, %v1666_v32, %v1399_v1 }
 0x186   : > { %2215 = vst.msk [vmem:[%s5326_s24 + $0x4] sm:$0xf] %vm2213_vm8, %v3784_v13  ;;  %v2246_v4 = vunpack.c.l.bf16 %v2085_v26  ;;  %v2247_v62 = vunpack.c.h.bf16 %v2085_v26  ;;  %v2349_v49 = vmul.f32 %v2248_v17, %v2248_v17  ;;  %v2281_v41 = vsel %vm1636_vm13, %v2248_v17, 0.0 }
 0x187   : > { %v1446_v35 = vpop.permute.xlu0 %1445  ;;  %v2350_v36 = vmul.f32 %v2249_v10, %v2249_v10  ;;  %v2283_v19 = vsel %vm1636_vm13, %v2249_v10, 0.0  ;;  %v1734_v28 = vsel %vm1702_vm15, %v1701_v20, %v1448_v12 }
 0x188   : > { %v2278_v45 = vsel %vm1636_vm13, %v2246_v4, 0.0  ;;  %v2279_v51 = vsel %vm1636_vm13, %v2247_v62, 0.0  ;;  %v2347_v58 = vmul.f32 %v2246_v4, %v2246_v4  ;;  %v2348_v61 = vmul.f32 %v2247_v62, %v2247_v62 }
 0x189   : > { %v1483_v59 = vpop.permute.xlu1 %1482  ;;  %v2280_v54 = vadd.f32 %v2279_v51, %v2278_v45  ;;  %v2382_v16 = vsel %vm1636_vm13, %v2349_v49, 0.0  ;;  %v2384_v0 = vsel %vm1636_vm13, %v2350_v36, 0.0  ;;  %v1732_v38 = vsel %vm1702_vm15, %v1699_v14, %v1446_v35 }
 0x18a   : > { %v2379_v5 = vsel %vm1636_vm13, %v2347_v58, 0.0  ;;  %v2380_v55 = vsel %vm1636_vm13, %v2348_v61, 0.0  ;;  %v1767_v53 = vsel %vm1735_vm0, %v1734_v28, %v1483_v59 }
 0x18b   : > { %v1481_v37 = vpop.permute.xlu0 %1480  ;;  %v2282_v50 = vadd.f32 %v2281_v41, %v2280_v54  ;;  %v2381_v8 = vadd.f32 %v2380_v55, %v2379_v5 }
 0x18c   : > { %v1765_v34 = vsel %vm1735_vm0, %v1732_v38, %v1481_v37 }
 0x18d   : > { %v1520_v21 = vpop.permute.xlu1 %1519  ;;  %v2383_v9 = vadd.f32 %v2382_v16, %v2381_v8  ;;  %v5344_v60 = vadd.f32 %v2283_v19, %v2282_v50 }
 0x18e   : > { %v1800_v27 = vsel %vm1768_vm1, %v1767_v53, %v1520_v21 }
 0x18f   : > { %v1518_v2 = vpop.permute.xlu0 %1517  ;;  %v5349_v40 = vadd.f32 %v2384_v0, %v2383_v9 }
 0x190   : > { %v1798_v46 = vsel %vm1768_vm1, %v1765_v34, %v1518_v2 }
 0x191   : > { %v1567_v31 = vpop.permute.xlu1 %1566  ;;  %v3925_v24 = vpop.f32.mrf.mxu1 }
 0x192   : > { %v3817_v25 = vpack.c.bf16 %v3925_v24, %v3925_v24  ;;  %v1833_v48 = vsel %vm1801_vm3, %v1800_v27, %v1567_v31 }
 0x193   : > { %v1565_v22 = vpop.permute.xlu0 %1564  ;;  %v2973_v23 = vpop.f32.mrf.mxu1 }
 0x194   : > { %3230 = vst.msk [vmem:[%s5361_s27 + $0x8] sm:$0xf] %vm2213_vm8, %v3817_v25  ;;  %v3815_v3 = vpack.c.bf16 %v2973_v23, %v2973_v23  ;;  %v1831_v18 = vsel %vm1801_vm3, %v1798_v46, %v1565_v22 }
 0x195   : > { %v1602_v52 = vpop.permute.xlu1 %1601  ;;  %v3926_v63 = vpop.f32.mrf.mxu1 }
 0x196   : > { %3228 = vst.msk [vmem:[%s5361_s27] sm:$0xf] %vm2213_vm8, %v3815_v3  ;;  %v3101_v29 = vpack.c.bf16 %v3926_v63, %v3925_v24  ;;  %v3818_v44 = vpack.c.bf16 %v3926_v63, %v3926_v63  ;;  %v1866_v11 = vsel %vm1834_vm2, %v1833_v48, %v1602_v52 }
 0x197   : > { %v1600_v56 = vpop.permute.xlu0 %1599  ;;  %v2976_v6 = vpop.f32.mrf.mxu1 }
 0x198   : > { %v1864_v15 = vsel %vm1834_vm2, %v1831_v18, %v1600_v56  ;;  %3231 = vst.msk [vmem:[%s5361_s27 + $0xc] sm:$0xf] %vm2213_vm8, %v3818_v44  ;;  %v3262_v42 = vunpack.c.l.bf16 %v3101_v29  ;;  %v3263_v43 = vunpack.c.h.bf16 %v3101_v29  ;;  %v3100_v47 = vpack.c.bf16 %v2976_v6, %v2973_v23 }
 0x199   : > { %3917 = vmatprep.mubr.msk.bf16.mxu0 %vm1887_vm4, %v1864_v15  ;;  %v3816_v39 = vpack.c.bf16 %v2976_v6, %v2976_v6 }
 0x19a   : > { %3918 = vmatmul.mubr.msk.bf16.gmra.mxu0 %vm1887_vm4, %v1866_v11  ;;  %v3363_v33 = vmul.f32 %v3262_v42, %v3262_v42  ;;  %v3364_v1 = vmul.f32 %v3263_v43, %v3263_v43  ;;  %v3260_v13 = vunpack.c.l.bf16 %v3100_v47  ;;  %v3261_v12 = vunpack.c.h.bf16 %v3100_v47 }
 0x19b   : > { %3229 = vst.msk [vmem:[%s5361_s27 + $0x4] sm:$0xf] %vm2213_vm8, %v3816_v39  ;;  %v3929_v17 = vpop.f32.mrf.mxu1  ;;  %v3295_v62 = vsel %vm1636_vm13, %v3262_v42, 0.0  ;;  %v5386_v35 = vsel %vm1636_vm13, %v3263_v43, 0.0 }
 0x19c   : > { %v3821_v10 = vpack.c.bf16 %v3929_v17, %v3929_v17  ;;  %v3396_v49 = vsel %vm1636_vm13, %v3363_v33, 0.0  ;;  %v3292_v58 = vsel %vm1636_vm13, %v3260_v13, 0.0  ;;  %v3293_v61 = vsel %vm1636_vm13, %v3261_v12, 0.0 }
 0x19d   : > { %v3895_v26 = vpop.f32.mrf.mxu0  ;;  %v2989_v45 = vpop.f32.mrf.mxu1  ;;  %v3361_v59 = vmul.f32 %v3260_v13, %v3260_v13  ;;  %v3362_v54 = vmul.f32 %v3261_v12, %v3261_v12  ;;  %v5396_v36 = vsel %vm1636_vm13, %v3364_v1, 0.0  ;;  %v3294_v5 = vadd.f32 %v3293_v61, %v3292_v58 }
 0x19e   : > { %v3789_v4 = vpack.c.bf16 %v3895_v26, %v3895_v26  ;;  %3234 = vst.msk [vmem:[%s5361_s27 + $0x18] sm:$0xf] %vm2213_vm8, %v3821_v10  ;;  %v3819_v55 = vpack.c.bf16 %v2989_v45, %v2989_v45 }
 0x19f   : > { %v1974_v51 = vpop.f32.mrf.mxu0  ;;  %v3930_v37 = vpop.f32.mrf.mxu1  ;;  %v3393_v8 = vsel %vm1636_vm13, %v3361_v59, 0.0  ;;  %v3394_v19 = vsel %vm1636_vm13, %v3362_v54, 0.0  ;;  %v3296_v2 = vadd.f32 %v3295_v62, %v3294_v5 }
 0x1a0   : > { %2220 = vst.msk [vmem:[%s5326_s24 + $0x18] sm:$0xf] %vm2213_vm8, %v3789_v4  ;;  %v3787_v41 = vpack.c.bf16 %v1974_v51, %v1974_v51  ;;  %v3103_v16 = vpack.c.bf16 %v3930_v37, %v3929_v17  ;;  %v3822_v21 = vpack.c.bf16 %v3930_v37, %v3930_v37  ;;  %v3395_v30 = vadd.f32 %v3394_v19, %v3393_v8 }
 0x1a1   : > { %v3896_v50 = vpop.f32.mrf.mxu0  ;;  %3232 = vst.msk [vmem:[%s5361_s27 + $0x10] sm:$0xf] %vm2213_vm8, %v3819_v55  ;;  %v2992_v7 = vpop.f32.mrf.mxu1  ;;  %v3298_v13 = vadd.f32 %v5386_v35, %v3296_v2 }
 0x1a2   : > { %2218 = vst.msk [vmem:[%s5326_s24 + $0x10] sm:$0xf] %vm2213_vm8, %v3787_v41  ;;  %v2088_v9 = vpack.c.bf16 %v3896_v50, %v3895_v26  ;;  %v3790_v0 = vpack.c.bf16 %v3896_v50, %v3896_v50  ;;  %3235 = vst.msk [vmem:[%s5361_s27 + $0x1c] sm:$0xf] %vm2213_vm8, %v3822_v21  ;;  %v3266_v32 = vunpack.c.l.bf16 %v3103_v16  ;;  %v3267_v57 = vunpack.c.h.bf16 %v3103_v16 }
 0x1a3   : > { %v1977_v31 = vpop.f32.mrf.mxu0  ;;  %v3102_v14 = vpack.c.bf16 %v2992_v7, %v2989_v45  ;;  %v3820_v22 = vpack.c.bf16 %v2992_v7, %v2992_v7  ;;  %v3933_v28 = vpop.f32.mrf.mxu1  ;;  %v3397_v34 = vadd.f32 %v3396_v49, %v3395_v30 }
 0x1a4   : > { %2221 = vst.msk [vmem:[%s5326_s24 + $0x1c] sm:$0xf] %vm2213_vm8, %v3790_v0  ;;  %v2252_v24 = vunpack.c.l.bf16 %v2088_v9  ;;  %v2253_v20 = vunpack.c.h.bf16 %v2088_v9  ;;  %v2087_v38 = vpack.c.bf16 %v1977_v31, %v1974_v51  ;;  %v3788_v25 = vpack.c.bf16 %v1977_v31, %v1977_v31 }
 0x1a5   : > { %v3303_v23 = vsel %vm1636_vm13, %v3266_v32, 0.0  ;;  %v5410_v53 = vsel %vm1636_vm13, %v3267_v57, 0.0  ;;  %v3367_v46 = vmul.f32 %v3266_v32, %v3266_v32  ;;  %3233 = vst.msk [vmem:[%s5361_s27 + $0x14] sm:$0xf] %vm2213_vm8, %v3820_v22  ;;  %v3005_v56 = vpop.f32.mrf.mxu1  ;;  %v3368_v15 = vmul.f32 %v3267_v57, %v3267_v57 }
 0x1a6   : > { %v2289_v52 = vsel %vm1636_vm13, %v2252_v24, 0.0  ;;  %v2291_v3 = vsel %vm1636_vm13, %v2253_v20, 0.0  ;;  %v2353_v27 = vmul.f32 %v2252_v24, %v2252_v24  ;;  %v2354_v18 = vmul.f32 %v2253_v20, %v2253_v20  ;;  %2219 = vst.msk [vmem:[%s5326_s24 + $0x14] sm:$0xf] %vm2213_vm8, %v3788_v25 }
 0x1a7   : > { %v2250_v63 = vunpack.c.l.bf16 %v2087_v38  ;;  %v2251_v48 = vunpack.c.h.bf16 %v2087_v38  ;;  %v3404_v29 = vsel %vm1636_vm13, %v3367_v46, 0.0  ;;  %v3264_v6 = vunpack.c.l.bf16 %v3102_v14  ;;  %v3934_v43 = vpop.f32.mrf.mxu1 }
 0x1a8   : > { %v2390_v44 = vsel %vm1636_vm13, %v2353_v27, 0.0  ;;  %v2392_v11 = vsel %vm1636_vm13, %v2354_v18, 0.0  ;;  %v3265_v42 = vunpack.c.h.bf16 %v3102_v14  ;;  %v3406_v26 = vsel %vm1636_vm13, %v3368_v15, 0.0 }
 0x1a9   : > { %v2285_v47 = vsel %vm1636_vm13, %v2250_v63, 0.0  ;;  %v2287_v39 = vsel %vm1636_vm13, %v2251_v48, 0.0  ;;  %v2351_v33 = vmul.f32 %v2250_v63, %v2250_v63  ;;  %v2352_v1 = vmul.f32 %v2251_v48, %v2251_v48  ;;  %v3008_v10 = vpop.f32.mrf.mxu1 }
 0x1aa   : > { %v2286_v17 = vadd.f32 %v2285_v47, %v5344_v60  ;;  %v3299_v12 = vsel %vm1636_vm13, %v3264_v6, 0.0  ;;  %v3301_v49 = vsel %vm1636_vm13, %v3265_v42, 0.0  ;;  %v3365_v45 = vmul.f32 %v3264_v6, %v3264_v6 }
 0x1ab   : > { %v2386_v4 = vsel %vm1636_vm13, %v2351_v33, 0.0  ;;  %v2388_v62 = vsel %vm1636_vm13, %v2352_v1, 0.0  ;;  %v3300_v60 = vadd.f32 %v3299_v12, %v3298_v13  ;;  %v3366_v61 = vmul.f32 %v3265_v42, %v3265_v42  ;;  %v3937_v59 = vpop.f32.mrf.mxu1 }
 0x1ac   : > { %v2288_v51 = vadd.f32 %v2287_v39, %v2286_v17  ;;  %v2387_v58 = vadd.f32 %v2386_v4, %v5349_v40  ;;  %v3399_v35 = vadd.f32 %v5396_v36, %v3397_v34  ;;  %v3400_v54 = vsel %vm1636_vm13, %v3365_v45, 0.0 }
 0x1ad   : > { %v3825_v41 = vpack.c.bf16 %v3933_v28, %v3933_v28  ;;  %v3823_v5 = vpack.c.bf16 %v3005_v56, %v3005_v56  ;;  %v3302_v50 = vadd.f32 %v3301_v49, %v3300_v60  ;;  %v3402_v8 = vsel %vm1636_vm13, %v3366_v61, 0.0  ;;  %v3021_v19 = vpop.f32.mrf.mxu1 }
 0x1ae   : > { %v2290_v55 = vadd.f32 %v2289_v52, %v2288_v51  ;;  %v2389_v37 = vadd.f32 %v2388_v62, %v2387_v58  ;;  %v3401_v16 = vadd.f32 %v3400_v54, %v3399_v35  ;;  %v3105_v40 = vpack.c.bf16 %v3934_v43, %v3933_v28 }
 0x1af   : > { %3238 = vst.msk [vmem:[%s5361_s27 + $0x28] sm:$0xf] %vm2213_vm8, %v3825_v41  ;;  %3236 = vst.msk [vmem:[%s5361_s27 + $0x20] sm:$0xf] %vm2213_vm8, %v3823_v5  ;;  %v3826_v21 = vpack.c.bf16 %v3934_v43, %v3934_v43  ;;  %v3104_v36 = vpack.c.bf16 %v3008_v10, %v3005_v56  ;;  %v3304_v2 = vadd.f32 %v3303_v23, %v3302_v50  ;;  %v3938_v7 = vpop.f32.mrf.mxu1 }
 0x1b0   : > { %v2391_v9 = vadd.f32 %v2390_v44, %v2389_v37  ;;  %v5438_v0 = vadd.f32 %v2291_v3, %v2290_v55  ;;  %v3824_v30 = vpack.c.bf16 %v3008_v10, %v3008_v10  ;;  %v3403_v31 = vadd.f32 %v3402_v8, %v3401_v16 }
 0x1b1   : > { %3239 = vst.msk [vmem:[%s5361_s27 + $0x2c] sm:$0xf] %vm2213_vm8, %v3826_v21  ;;  %v3270_v32 = vunpack.c.l.bf16 %v3105_v40  ;;  %v3271_v57 = vunpack.c.h.bf16 %v3105_v40  ;;  %v3268_v14 = vunpack.c.l.bf16 %v3104_v36  ;;  %v3269_v24 = vunpack.c.h.bf16 %v3104_v36  ;;  %v3024_v25 = vpop.f32.mrf.mxu1 }
 0x1b2   : > { %v5442_v22 = vadd.f32 %v2392_v11, %v2391_v9  ;;  %3237 = vst.msk [vmem:[%s5361_s27 + $0x24] sm:$0xf] %vm2213_vm8, %v3824_v30  ;;  %v3306_v20 = vadd.f32 %v5410_v53, %v3304_v2  ;;  %v3829_v38 = vpack.c.bf16 %v3937_v59, %v3937_v59  ;;  %v3405_v28 = vadd.f32 %v3404_v29, %v3403_v31 }
 0x1b3   : > { %v3311_v34 = vsel %vm1636_vm13, %v3270_v32, 0.0  ;;  %v3371_v23 = vmul.f32 %v3270_v32, %v3270_v32  ;;  %v3313_v46 = vsel %vm1636_vm13, %v3271_v57, 0.0  ;;  %v3307_v52 = vsel %vm1636_vm13, %v3268_v14, 0.0 }
 0x1b4   : > { %v3309_v3 = vsel %vm1636_vm13, %v3269_v24, 0.0  ;;  %v3369_v27 = vmul.f32 %v3268_v14, %v3268_v14  ;;  %3242 = vst.msk [vmem:[%s5361_s27 + $0x38] sm:$0xf] %vm2213_vm8, %v3829_v38  ;;  %v3372_v18 = vmul.f32 %v3271_v57, %v3271_v57  ;;  %v3308_v56 = vadd.f32 %v3307_v52, %v3306_v20  ;;  %v3941_v11 = vpop.f32.mrf.mxu1 }
 0x1b5   : > { %v3370_v63 = vmul.f32 %v3269_v24, %v3269_v24  ;;  %v3407_v53 = vadd.f32 %v3406_v26, %v3405_v28  ;;  %v3412_v48 = vsel %vm1636_vm13, %v3371_v23, 0.0  ;;  %v3827_v29 = vpack.c.bf16 %v3021_v19, %v3021_v19 }
 0x1b6   : > { %v3408_v15 = vsel %vm1636_vm13, %v3369_v27, 0.0  ;;  %v3107_v44 = vpack.c.bf16 %v3938_v7, %v3937_v59  ;;  %v3310_v6 = vadd.f32 %v3309_v3, %v3308_v56  ;;  %v3830_v47 = vpack.c.bf16 %v3938_v7, %v3938_v7  ;;  %v3037_v26 = vpop.f32.mrf.mxu1 }
 0x1b7   : > { %v3409_v42 = vadd.f32 %v3408_v15, %v3407_v53  ;;  %v3410_v43 = vsel %vm1636_vm13, %v3370_v63, 0.0  ;;  %3240 = vst.msk [vmem:[%s5361_s27 + $0x30] sm:$0xf] %vm2213_vm8, %v3827_v29  ;;  %v3106_v1 = vpack.c.bf16 %v3024_v25, %v3021_v19  ;;  %v3828_v17 = vpack.c.bf16 %v3024_v25, %v3024_v25 }
 0x1b8   : > { %v3274_v39 = vunpack.c.l.bf16 %v3107_v44  ;;  %v3275_v33 = vunpack.c.h.bf16 %v3107_v44  ;;  %v3312_v13 = vadd.f32 %v3311_v34, %v3310_v6  ;;  %3243 = vst.msk [vmem:[%s5361_s27 + $0x3c] sm:$0xf] %vm2213_vm8, %v3830_v47  ;;  %v3833_v10 = vpack.c.bf16 %v3941_v11, %v3941_v11  ;;  %v3942_v51 = vpop.f32.mrf.mxu1 }
 0x1b9   : > { %v3411_v12 = vadd.f32 %v3410_v43, %v3409_v42  ;;  %v3831_v4 = vpack.c.bf16 %v3037_v26, %v3037_v26  ;;  %v3414_v62 = vsel %vm1636_vm13, %v3372_v18, 0.0  ;;  %3241 = vst.msk [vmem:[%s5361_s27 + $0x34] sm:$0xf] %vm2213_vm8, %v3828_v17  ;;  %v3272_v60 = vunpack.c.l.bf16 %v3106_v1 }
 0x1ba   : > { %v3319_v49 = vsel %vm1636_vm13, %v3274_v39, 0.0  ;;  %v3321_v45 = vsel %vm1636_vm13, %v3275_v33, 0.0  ;;  %v3273_v61 = vunpack.c.h.bf16 %v3106_v1  ;;  %v3314_v59 = vadd.f32 %v3313_v46, %v3312_v13  ;;  %3246 = vst.msk [vmem:[%s5361_s27 + $0x48] sm:$0xf] %vm2213_vm8, %v3833_v10  ;;  %v3040_v55 = vpop.f32.mrf.mxu1 }
 0x1bb   : > { %v3413_v58 = vadd.f32 %v3412_v48, %v3411_v12  ;;  %3244 = vst.msk [vmem:[%s5361_s27 + $0x40] sm:$0xf] %vm2213_vm8, %v3831_v4  ;;  %v3375_v35 = vmul.f32 %v3274_v39, %v3274_v39  ;;  %v3376_v54 = vmul.f32 %v3275_v33, %v3275_v33  ;;  %v3109_v41 = vpack.c.bf16 %v3942_v51, %v3941_v11 }
 0x1bc   : > { %v3834_v5 = vpack.c.bf16 %v3942_v51, %v3942_v51  ;;  %v3315_v50 = vsel %vm1636_vm13, %v3272_v60, 0.0  ;;  %v3317_v8 = vsel %vm1636_vm13, %v3273_v61, 0.0  ;;  %v3373_v19 = vmul.f32 %v3272_v60, %v3272_v60  ;;  %v5473_v2 = vpop.f32.mrf.mxu1 }
 0x1bd   : > { %v3899_v37 = vpop.f32.mrf.mxu0  ;;  %v3374_v16 = vmul.f32 %v3273_v61, %v3273_v61  ;;  %v3316_v21 = vadd.f32 %v3315_v50, %v3314_v59  ;;  %v3415_v36 = vadd.f32 %v3414_v62, %v3413_v58  ;;  %v3278_v9 = vunpack.c.l.bf16 %v3109_v41 }
 0x1be   : > { %v3793_v40 = vpack.c.bf16 %v3899_v37, %v3899_v37  ;;  %3247 = vst.msk [vmem:[%s5361_s27 + $0x4c] sm:$0xf] %vm2213_vm8, %v3834_v5  ;;  %v3416_v7 = vsel %vm1636_vm13, %v3373_v19, 0.0  ;;  %v3279_v32 = vunpack.c.h.bf16 %v3109_v41  ;;  %v3108_v57 = vpack.c.bf16 %v3040_v55, %v3037_v26  ;;  %v5480_v25 = vpop.f32.mrf.mxu1 }
 0x1bf   : > { %v1990_v30 = vpop.f32.mrf.mxu0  ;;  %v3418_v31 = vsel %vm1636_vm13, %v3374_v16, 0.0  ;;  %v3420_v24 = vsel %vm1636_vm13, %v3375_v35, 0.0  ;;  %v3318_v20 = vadd.f32 %v3317_v8, %v3316_v21  ;;  %v3417_v38 = vadd.f32 %v3416_v7, %v3415_v36 }
 0x1c0   : > { %2224 = vst.msk [vmem:[%s5326_s24 + $0x28] sm:$0xf] %vm2213_vm8, %v3793_v40  ;;  %v3791_v14 = vpack.c.bf16 %v1990_v30, %v1990_v30  ;;  %v3422_v34 = vsel %vm1636_vm13, %v3376_v54, 0.0  ;;  %v3327_v23 = vsel %vm1636_vm13, %v3278_v9, 0.0  ;;  %v3379_v46 = vmul.f32 %v3278_v9, %v3278_v9  ;;  %v3946_v63 = vpop.f32.mrf.mxu1 }
 0x1c1   : > { %v3900_v28 = vpop.f32.mrf.mxu0  ;;  %v3832_v52 = vpack.c.bf16 %v3040_v55, %v3040_v55  ;;  %v3320_v18 = vadd.f32 %v3319_v49, %v3318_v20  ;;  %v3419_v56 = vadd.f32 %v3418_v31, %v3417_v38  ;;  %v3329_v48 = vsel %vm1636_vm13, %v3279_v32, 0.0 }
 0x1c2   : > { %2222 = vst.msk [vmem:[%s5326_s24 + $0x20] sm:$0xf] %vm2213_vm8, %v3791_v14  ;;  %v2090_v3 = vpack.c.bf16 %v3900_v28, %v3899_v37  ;;  %v3794_v27 = vpack.c.bf16 %v3900_v28, %v3900_v28  ;;  %v5487_v15 = vmul.f32 %v3279_v32, %v3279_v32  ;;  %v3276_v29 = vunpack.c.l.bf16 %v3108_v57  ;;  %v3056_v47 = vpop.f32.mrf.mxu1 }
 0x1c3   : > { %v1993_v53 = vpop.f32.mrf.mxu0  ;;  %3245 = vst.msk [vmem:[%s5361_s27 + $0x44] sm:$0xf] %vm2213_vm8, %v3832_v52  ;;  %v3277_v44 = vunpack.c.h.bf16 %v3108_v57  ;;  %v3421_v39 = vadd.f32 %v3420_v24, %v3419_v56  ;;  %v3428_v33 = vsel %vm1636_vm13, %v3379_v46, 0.0  ;;  %v3322_v1 = vadd.f32 %v3321_v45, %v3320_v18 }
 0x1c4   : > { %2225 = vst.msk [vmem:[%s5326_s24 + $0x2c] sm:$0xf] %vm2213_vm8, %v3794_v27  ;;  %v2256_v11 = vunpack.c.l.bf16 %v2090_v3  ;;  %v2257_v6 = vunpack.c.h.bf16 %v2090_v3  ;;  %v2089_v42 = vpack.c.bf16 %v1993_v53, %v1990_v30  ;;  %v3792_v43 = vpack.c.bf16 %v1993_v53, %v1993_v53 }
 0x1c5   : > { %v3323_v17 = vsel %vm1636_vm13, %v3276_v29, 0.0  ;;  %v3325_v10 = vsel %vm1636_vm13, %v3277_v44, 0.0  ;;  %v5500_v4 = vpop.f32.mrf.mxu1  ;;  %v3377_v58 = vmul.f32 %v3276_v29, %v3276_v29  ;;  %v3378_v61 = vmul.f32 %v3277_v44, %v3277_v44 }
 0x1c6   : > { %v2297_v26 = vsel %vm1636_vm13, %v2256_v11, 0.0  ;;  %v2299_v13 = vsel %vm1636_vm13, %v2257_v6, 0.0  ;;  %v2357_v12 = vmul.f32 %v2256_v11, %v2256_v11  ;;  %2223 = vst.msk [vmem:[%s5326_s24 + $0x24] sm:$0xf] %vm2213_vm8, %v3792_v43  ;;  %v2254_v62 = vunpack.c.l.bf16 %v2089_v42 }
 0x1c7   : > { %v2255_v49 = vunpack.c.h.bf16 %v2089_v42  ;;  %v3324_v51 = vadd.f32 %v3323_v17, %v3322_v1  ;;  %v2358_v60 = vmul.f32 %v2257_v6, %v2257_v6  ;;  %v3423_v59 = vadd.f32 %v3422_v34, %v3421_v39  ;;  %v5503_v35 = vpop.f32.mrf.mxu1 }
 0x1c8   : > { %v2398_v45 = vsel %vm1636_vm13, %v2357_v12, 0.0  ;;  %v2293_v54 = vsel %vm1636_vm13, %v2254_v62, 0.0  ;;  %v2355_v5 = vmul.f32 %v2254_v62, %v2254_v62  ;;  %v3424_v8 = vsel %vm1636_vm13, %v3377_v58, 0.0 }
 0x1c9   : > { %v2295_v41 = vsel %vm1636_vm13, %v2255_v49, 0.0  ;;  %v2356_v55 = vmul.f32 %v2255_v49, %v2255_v49  ;;  %v2294_v37 = vadd.f32 %v2293_v54, %v5438_v0  ;;  %v3326_v50 = vadd.f32 %v3325_v10, %v3324_v51  ;;  %v3950_v16 = vpop.f32.mrf.mxu1 }
 0x1ca   : > { %v3426_v19 = vsel %vm1636_vm13, %v3378_v61, 0.0  ;;  %v2394_v40 = vsel %vm1636_vm13, %v2355_v5, 0.0  ;;  %v3425_v36 = vadd.f32 %v3424_v8, %v3423_v59  ;;  %v3837_v9 = vpack.c.bf16 %v5473_v2, %v5473_v2 }
 0x1cb   : > { %v2396_v21 = vsel %vm1636_vm13, %v2356_v55, 0.0  ;;  %v2296_v30 = vadd.f32 %v2295_v41, %v2294_v37  ;;  %v2395_v7 = vadd.f32 %v2394_v40, %v5442_v22  ;;  %v3328_v0 = vadd.f32 %v3327_v23, %v3326_v50  ;;  %v3072_v32 = vpop.f32.mrf.mxu1 }
 0x1cc   : > { %v3835_v31 = vpack.c.bf16 %v5480_v25, %v5480_v25  ;;  %v3427_v57 = vadd.f32 %v3426_v19, %v3425_v36  ;;  %3250 = vst.msk [vmem:[%s5361_s27 + $0x58] sm:$0xf] %vm2213_vm8, %v3837_v9  ;;  %v3111_v14 = vpack.c.bf16 %v3946_v63, %v5473_v2  ;;  %v3838_v24 = vpack.c.bf16 %v3946_v63, %v3946_v63 }
 0x1cd   : > { %v3110_v20 = vpack.c.bf16 %v3056_v47, %v5480_v25  ;;  %v2298_v38 = vadd.f32 %v2297_v26, %v2296_v30  ;;  %v2397_v28 = vadd.f32 %v2396_v21, %v2395_v7  ;;  %v3836_v34 = vpack.c.bf16 %v3056_v47, %v3056_v47 }
 0x1ce   : > { %3248 = vst.msk [vmem:[%s5361_s27 + $0x50] sm:$0xf] %vm2213_vm8, %v3835_v31  ;;  %v3330_v22 = vadd.f32 %v3329_v48, %v3328_v0  ;;  %v3429_v23 = vadd.f32 %v3428_v33, %v3427_v57  ;;  %3251 = vst.msk [vmem:[%s5361_s27 + $0x5c] sm:$0xf] %vm2213_vm8, %v3838_v24  ;;  %v3282_v46 = vunpack.c.l.bf16 %v3111_v14  ;;  %v3283_v52 = vunpack.c.h.bf16 %v3111_v14 }
 0x1cf   : > { %v3280_v3 = vunpack.c.l.bf16 %v3110_v20  ;;  %v2399_v27 = vadd.f32 %v2398_v45, %v2397_v28  ;;  %v5525_v18 = vadd.f32 %v2299_v13, %v2298_v38  ;;  %3249 = vst.msk [vmem:[%s5361_s27 + $0x54] sm:$0xf] %vm2213_vm8, %v3836_v34  ;;  %v3281_v2 = vunpack.c.h.bf16 %v3110_v20  ;;  %v3953_v56 = vpop.f32.mrf.mxu1 }
 0x1d0   : > { %v3841_v25 = vpack.c.bf16 %v5500_v4, %v5500_v4  ;;  %v2400_v63 = vsel %vm1636_vm13, %v2358_v60, 0.0  ;;  %v3430_v53 = vsel %vm1636_vm13, %v5487_v15, 0.0  ;;  %v3335_v48 = vsel %vm1636_vm13, %v3282_v46, 0.0 }
 0x1d1   : > { %v3383_v29 = vmul.f32 %v3282_v46, %v3282_v46  ;;  %v5535_v44 = vadd.f32 %v2400_v63, %v2399_v27  ;;  %v3331_v11 = vsel %vm1636_vm13, %v3280_v3, 0.0  ;;  %v3333_v6 = vsel %vm1636_vm13, %v3281_v2, 0.0  ;;  %v3085_v15 = vpop.f32.mrf.mxu1 }
 0x1d2   : > { %v3381_v42 = vmul.f32 %v3280_v3, %v3280_v3  ;;  %3254 = vst.msk [vmem:[%s5361_s27 + $0x68] sm:$0xf] %vm2213_vm8, %v3841_v25  ;;  %v3337_v43 = vsel %vm1636_vm13, %v3283_v52, 0.0  ;;  %v3384_v47 = vmul.f32 %v3283_v52, %v3283_v52  ;;  %v3332_v39 = vadd.f32 %v3331_v11, %v3330_v22 }
 0x1d3   : > { %v3382_v33 = vmul.f32 %v3281_v2, %v3281_v2  ;;  %v3431_v1 = vadd.f32 %v3430_v53, %v3429_v23  ;;  %v3839_v26 = vpack.c.bf16 %v5503_v35, %v5503_v35  ;;  %v3113_v13 = vpack.c.bf16 %v3950_v16, %v5500_v4  ;;  %v3954_v41 = vpop.f32.mrf.mxu1 }
 0x1d4   : > { %v3432_v17 = vsel %vm1636_vm13, %v3381_v42, 0.0  ;;  %v3334_v12 = vadd.f32 %v3333_v6, %v3332_v39  ;;  %v3842_v62 = vpack.c.bf16 %v3950_v16, %v3950_v16  ;;  %v3112_v49 = vpack.c.bf16 %v3072_v32, %v5503_v35 }
 0x1d5   : > { %v3434_v10 = vsel %vm1636_vm13, %v3382_v33, 0.0  ;;  %v3436_v51 = vsel %vm1636_vm13, %v3383_v29, 0.0  ;;  %v3433_v58 = vadd.f32 %v3432_v17, %v3431_v1  ;;  %3252 = vst.msk [vmem:[%s5361_s27 + $0x60] sm:$0xf] %vm2213_vm8, %v3839_v26  ;;  %v3286_v60 = vunpack.c.l.bf16 %v3113_v13  ;;  %v3088_v7 = vpop.f32.mrf.mxu1 }
 0x1d6   : > { %v3840_v45 = vpack.c.bf16 %v3072_v32, %v3072_v32  ;;  %v3336_v61 = vadd.f32 %v3335_v48, %v3334_v12  ;;  %3255 = vst.msk [vmem:[%s5361_s27 + $0x6c] sm:$0xf] %vm2213_vm8, %v3842_v62  ;;  %v3284_v59 = vunpack.c.l.bf16 %v3112_v49  ;;  %v3285_v4 = vunpack.c.h.bf16 %v3112_v49 }
 0x1d7   : > { %v3845_v54 = vpack.c.bf16 %v3953_v56, %v3953_v56  ;;  %v3435_v5 = vadd.f32 %v3434_v10, %v3433_v58  ;;  %v3438_v35 = vsel %vm1636_vm13, %v3384_v47, 0.0  ;;  %v3287_v55 = vunpack.c.h.bf16 %v3113_v13 }
 0x1d8   : > { %3253 = vst.msk [vmem:[%s5361_s27 + $0x64] sm:$0xf] %vm2213_vm8, %v3840_v45  ;;  %v3338_v37 = vadd.f32 %v3337_v43, %v3336_v61  ;;  %v3339_v50 = vsel %vm1636_vm13, %v3284_v59, 0.0  ;;  %v3341_v19 = vsel %vm1636_vm13, %v3285_v4, 0.0  ;;  %v3385_v16 = vmul.f32 %v3284_v59, %v3284_v59 }
 0x1d9   : > { %3258 = vst.msk [vmem:[%s5361_s27 + $0x78] sm:$0xf] %vm2213_vm8, %v3845_v54  ;;  %v3437_v8 = vadd.f32 %v3436_v51, %v3435_v5  ;;  %v3386_v40 = vmul.f32 %v3285_v4, %v3285_v4  ;;  %v3343_v21 = vsel %vm1636_vm13, %v3286_v60, 0.0  ;;  %v3387_v36 = vmul.f32 %v3286_v60, %v3286_v60 }
 0x1da   : > { %v3340_v9 = vadd.f32 %v3339_v50, %v3338_v37  ;;  %v3843_v30 = vpack.c.bf16 %v3085_v15, %v3085_v15  ;;  %v3440_v31 = vsel %vm1636_vm13, %v3385_v16, 0.0  ;;  %v3115_v32 = vpack.c.bf16 %v3954_v41, %v3953_v56 }
 0x1db   : > { %v3439_v0 = vadd.f32 %v3438_v35, %v3437_v8  ;;  %v3846_v57 = vpack.c.bf16 %v3954_v41, %v3954_v41  ;;  %v3388_v24 = vmul.f32 %v3287_v55, %v3287_v55  ;;  %v3442_v38 = vsel %vm1636_vm13, %v3386_v40, 0.0 }
 0x1dc   : > { %v3342_v20 = vadd.f32 %v3341_v19, %v3340_v9  ;;  %3256 = vst.msk [vmem:[%s5361_s27 + $0x70] sm:$0xf] %vm2213_vm8, %v3843_v30  ;;  %v3345_v34 = vsel %vm1636_vm13, %v3287_v55, 0.0  ;;  %v3114_v23 = vpack.c.bf16 %v3088_v7, %v3085_v15  ;;  %v3444_v52 = vsel %vm1636_vm13, %v3387_v36, 0.0 }
 0x1dd   : > { %v3903_v14 = vpop.f32.mrf.mxu0  ;;  %v3441_v22 = vadd.f32 %v3440_v31, %v3439_v0  ;;  %3259 = vst.msk [vmem:[%s5361_s27 + $0x7c] sm:$0xf] %vm2213_vm8, %v3846_v57  ;;  %v3290_v25 = vunpack.c.l.bf16 %v3115_v32  ;;  %v3844_v56 = vpack.c.bf16 %v3088_v7, %v3088_v7  ;;  %v3446_v53 = vsel %vm1636_vm13, %v3388_v24, 0.0 }
 0x1de   : > { %v3797_v28 = vpack.c.bf16 %v3903_v14, %v3903_v14  ;;  %v3344_v3 = vadd.f32 %v3343_v21, %v3342_v20  ;;  %v3288_v48 = vunpack.c.l.bf16 %v3114_v23  ;;  %v3289_v29 = vunpack.c.h.bf16 %v3114_v23 }
 0x1df   : > { %v2006_v46 = vpop.f32.mrf.mxu0  ;;  %v3443_v2 = vadd.f32 %v3442_v38, %v3441_v22  ;;  %v3291_v47 = vunpack.c.h.bf16 %v3115_v32  ;;  %3257 = vst.msk [vmem:[%s5361_s27 + $0x74] sm:$0xf] %vm2213_vm8, %v3844_v56  ;;  %v3391_v13 = vmul.f32 %v3290_v25, %v3290_v25  ;;  %v3351_v58 = vsel %vm1636_vm13, %v3290_v25, 0.0 }
 0x1e0   : > { %2228 = vst.msk [vmem:[%s5326_s24 + $0x38] sm:$0xf] %vm2213_vm8, %v3797_v28  ;;  %v3795_v27 = vpack.c.bf16 %v2006_v46, %v2006_v46  ;;  %v3346_v11 = vadd.f32 %v3345_v34, %v3344_v3  ;;  %v3347_v33 = vsel %vm1636_vm13, %v3288_v48, 0.0  ;;  %v3389_v15 = vmul.f32 %v3288_v48, %v3288_v48 }
 0x1e1   : > { %v3904_v63 = vpop.f32.mrf.mxu0  ;;  %v3445_v43 = vadd.f32 %v3444_v52, %v3443_v2  ;;  %v3390_v1 = vmul.f32 %v3289_v29, %v3289_v29  ;;  %v3349_v12 = vsel %vm1636_vm13, %v3289_v29, 0.0  ;;  %v3392_v60 = vmul.f32 %v3291_v47, %v3291_v47 }
 0x1e2   : > { %2226 = vst.msk [vmem:[%s5326_s24 + $0x30] sm:$0xf] %vm2213_vm8, %v3795_v27  ;;  %v2092_v6 = vpack.c.bf16 %v3904_v63, %v3903_v14  ;;  %v3798_v42 = vpack.c.bf16 %v3904_v63, %v3904_v63  ;;  %v3348_v10 = vadd.f32 %v3347_v33, %v3346_v11  ;;  %v3448_v49 = vsel %vm1636_vm13, %v3389_v15, 0.0 }
 0x1e3   : > { %v2009_v39 = vpop.f32.mrf.mxu0  ;;  %v3447_v62 = vadd.f32 %v3446_v53, %v3445_v43  ;;  %v3450_v45 = vsel %vm1636_vm13, %v3390_v1, 0.0  ;;  %v3353_v41 = vsel %vm1636_vm13, %v3291_v47, 0.0  ;;  %v3452_v5 = vsel %vm1636_vm13, %v3391_v13, 0.0 }
 0x1e4   : > { %2229 = vst.msk [vmem:[%s5326_s24 + $0x3c] sm:$0xf] %vm2213_vm8, %v3798_v42  ;;  %v2091_v17 = vpack.c.bf16 %v2009_v39, %v2006_v46  ;;  %v3796_v26 = vpack.c.bf16 %v2009_v39, %v2009_v39  ;;  %v2260_v51 = vunpack.c.l.bf16 %v2092_v6  ;;  %v3350_v4 = vadd.f32 %v3349_v12, %v3348_v10 }
 0x1e5   : > { %v3449_v54 = vadd.f32 %v3448_v49, %v3447_v62  ;;  %v2261_v35 = vunpack.c.h.bf16 %v2092_v6  ;;  %v3454_v9 = vsel %vm1636_vm13, %v3392_v60, 0.0 }
 0x1e6   : > { %2227 = vst.msk [vmem:[%s5326_s24 + $0x34] sm:$0xf] %vm2213_vm8, %v3796_v26  ;;  %v2258_v61 = vunpack.c.l.bf16 %v2091_v17  ;;  %v2259_v59 = vunpack.c.h.bf16 %v2091_v17  ;;  %v3352_v19 = vadd.f32 %v3351_v58, %v3350_v4  ;;  %v2361_v40 = vmul.f32 %v2260_v51, %v2260_v51 }
 0x1e7   : > { %v3451_v16 = vadd.f32 %v3450_v45, %v3449_v54  ;;  %v2305_v32 = vsel %vm1636_vm13, %v2260_v51, 0.0  ;;  %v2362_v57 = vmul.f32 %v2261_v35, %v2261_v35  ;;  %v2307_v28 = vsel %vm1636_vm13, %v2261_v35, 0.0 }
 0x1e8   : > { %v2301_v55 = vsel %vm1636_vm13, %v2258_v61, 0.0  ;;  %v2359_v37 = vmul.f32 %v2258_v61, %v2258_v61  ;;  %v2360_v50 = vmul.f32 %v2259_v59, %v2259_v59  ;;  %v2303_v21 = vsel %vm1636_vm13, %v2259_v59, 0.0 }
 0x1e9   : > { %v2302_v8 = vadd.f32 %v2301_v55, %v5525_v18  ;;  %v3354_v0 = vadd.f32 %v3353_v41, %v3352_v19  ;;  %v3453_v31 = vadd.f32 %v3452_v5, %v3451_v16  ;;  %v2406_v34 = vsel %vm1636_vm13, %v2361_v40, 0.0 }
 0x1ea   : > { %v2402_v36 = vsel %vm1636_vm13, %v2359_v37, 0.0  ;;  %v2404_v14 = vsel %vm1636_vm13, %v2360_v50, 0.0  ;;  %v2408_v52 = vsel %vm1636_vm13, %v2362_v57, 0.0 }
 0x1eb   : > { %v2304_v30 = vadd.f32 %v2303_v21, %v2302_v8  ;;  %v2403_v7 = vadd.f32 %v2402_v36, %v5535_v44  ;;  %v3355_v20 = vrot.slane %v3354_v0, 4  ;;  %v3455_v38 = vadd.f32 %v3454_v9, %v3453_v31 }
 0x1ed   : > { %v2306_v18 = vadd.f32 %v2305_v32, %v2304_v30  ;;  %v2405_v24 = vadd.f32 %v2404_v14, %v2403_v7  ;;  %v3356_v44 = vadd.f32 %v3355_v20, %v3354_v0  ;;  %v3456_v46 = vrot.slane %v3455_v38, 4 }
 0x1ef   : > { %v2407_v22 = vadd.f32 %v2406_v34, %v2405_v24  ;;  %v2308_v23 = vadd.f32 %v2307_v28, %v2306_v18  ;;  %v3357_v27 = vrot.slane %v3356_v44, 2  ;;  %v3457_v2 = vadd.f32 %v3456_v46, %v3455_v38 }
 0x1f1   : > { %v2409_v3 = vadd.f32 %v2408_v52, %v2407_v22  ;;  %v3358_v25 = vadd.f32 %v3357_v27, %v3356_v44  ;;  %v3458_v56 = vrot.slane %v3457_v2, 2 }
 0x1f3   : > { %v3359_v63 = vrot.slane %v3358_v25, 1  ;;  %v3459_v53 = vadd.f32 %v3458_v56, %v3457_v2 }
 0x1f5   : > { %v3360_v48 = vadd.f32 %v3359_v63, %v3358_v25  ;;  %v3460_v29 = vrot.slane %v3459_v53, 1 }
 0x1f7   : > { %v3461_v11 = vadd.f32 %v3460_v29, %v3459_v53 }
 0x1f9   : > { %v3462_v6 = vsel %vm2448_vm9, %v3360_v48, %v3461_v11 }
 0x1fa   : > { %3463 = vst.msk [vmem:[%s284_s30] sm:$0x3] %vm2450_vm10, %v3462_v6 }
 0x1fd   : > { %v3907_v42 = vpop.f32.mrf.mxu0 }
 0x1fe   : > { %v3801_v43 = vpack.c.bf16 %v3907_v42, %v3907_v42 }
 0x1ff   : > { %v2022_v47 = vpop.f32.mrf.mxu0 }
 0x200   : > { %2232 = vst.msk [vmem:[%s5326_s24 + $0x48] sm:$0xf] %vm2213_vm8, %v3801_v43  ;;  %v3799_v39 = vpack.c.bf16 %v2022_v47, %v2022_v47 }
 0x201   : > { %v3908_v33 = vpop.f32.mrf.mxu0 }
 0x202   : > { %2230 = vst.msk [vmem:[%s5326_s24 + $0x40] sm:$0xf] %vm2213_vm8, %v3799_v39  ;;  %v2094_v15 = vpack.c.bf16 %v3908_v33, %v3907_v42  ;;  %v3802_v1 = vpack.c.bf16 %v3908_v33, %v3908_v33 }
 0x203   : > { %v2025_v17 = vpop.f32.mrf.mxu0 }
 0x204   : > { %2233 = vst.msk [vmem:[%s5326_s24 + $0x4c] sm:$0xf] %vm2213_vm8, %v3802_v1  ;;  %v2093_v26 = vpack.c.bf16 %v2025_v17, %v2022_v47  ;;  %v3800_v13 = vpack.c.bf16 %v2025_v17, %v2025_v17  ;;  %v2264_v12 = vunpack.c.l.bf16 %v2094_v15  ;;  %v2265_v49 = vunpack.c.h.bf16 %v2094_v15 }
 0x206   : > { %2231 = vst.msk [vmem:[%s5326_s24 + $0x44] sm:$0xf] %vm2213_vm8, %v3800_v13  ;;  %v2262_v10 = vunpack.c.l.bf16 %v2093_v26  ;;  %v2263_v62 = vunpack.c.h.bf16 %v2093_v26  ;;  %v2365_v61 = vmul.f32 %v2264_v12, %v2264_v12  ;;  %v2313_v5 = vsel %vm1636_vm13, %v2264_v12, 0.0 }
 0x207   : > { %v2366_v35 = vmul.f32 %v2265_v49, %v2265_v49  ;;  %v2315_v8 = vsel %vm1636_vm13, %v2265_v49, 0.0 }
 0x208   : > { %v2309_v51 = vsel %vm1636_vm13, %v2262_v10, 0.0  ;;  %v2363_v58 = vmul.f32 %v2262_v10, %v2262_v10  ;;  %v2364_v60 = vmul.f32 %v2263_v62, %v2263_v62  ;;  %v2311_v59 = vsel %vm1636_vm13, %v2263_v62, 0.0 }
 0x209   : > { %v2310_v45 = vadd.f32 %v2309_v51, %v2308_v23  ;;  %v2414_v19 = vsel %vm1636_vm13, %v2365_v61, 0.0  ;;  %v2416_v21 = vsel %vm1636_vm13, %v2366_v35, 0.0 }
 0x20a   : > { %v2410_v4 = vsel %vm1636_vm13, %v2363_v58, 0.0  ;;  %v2412_v55 = vsel %vm1636_vm13, %v2364_v60, 0.0 }
 0x20b   : > { %v2312_v54 = vadd.f32 %v2311_v59, %v2310_v45  ;;  %v2411_v41 = vadd.f32 %v2410_v4, %v2409_v3 }
 0x20d   : > { %v2314_v37 = vadd.f32 %v2313_v5, %v2312_v54  ;;  %v2413_v50 = vadd.f32 %v2412_v55, %v2411_v41 }
 0x20f   : > { %v2415_v16 = vadd.f32 %v2414_v19, %v2413_v50  ;;  %v2316_v40 = vadd.f32 %v2315_v8, %v2314_v37 }
 0x211   : > { %v2417_v36 = vadd.f32 %v2416_v21, %v2415_v16 }
 0x21d   : > { %v3911_v9 = vpop.f32.mrf.mxu0 }
 0x21e   : > { %v3805_v30 = vpack.c.bf16 %v3911_v9, %v3911_v9 }
 0x21f   : > { %v2038_v7 = vpop.f32.mrf.mxu0 }
 0x220   : > { %2236 = vst.msk [vmem:[%s5326_s24 + $0x58] sm:$0xf] %vm2213_vm8, %v3805_v30  ;;  %v3803_v0 = vpack.c.bf16 %v2038_v7, %v2038_v7 }
 0x221   : > { %v3912_v31 = vpop.f32.mrf.mxu0 }
 0x222   : > { %2234 = vst.msk [vmem:[%s5326_s24 + $0x50] sm:$0xf] %vm2213_vm8, %v3803_v0  ;;  %v3806_v32 = vpack.c.bf16 %v3912_v31, %v3912_v31  ;;  %v2096_v3 = vpack.c.bf16 %v3912_v31, %v3911_v9 }
 0x223   : > { %v2041_v57 = vpop.f32.mrf.mxu0 }
 0x224   : > { %2237 = vst.msk [vmem:[%s5326_s24 + $0x5c] sm:$0xf] %vm2213_vm8, %v3806_v32  ;;  %v3804_v14 = vpack.c.bf16 %v2041_v57, %v2041_v57  ;;  %v2095_v24 = vpack.c.bf16 %v2041_v57, %v2038_v7  ;;  %v2268_v63 = vunpack.c.l.bf16 %v2096_v3  ;;  %v2269_v42 = vunpack.c.h.bf16 %v2096_v3 }
 0x226   : > { %2235 = vst.msk [vmem:[%s5326_s24 + $0x54] sm:$0xf] %vm2213_vm8, %v3804_v14  ;;  %v2266_v22 = vunpack.c.l.bf16 %v2095_v24  ;;  %v2267_v27 = vunpack.c.h.bf16 %v2095_v24  ;;  %v2369_v43 = vmul.f32 %v2268_v63, %v2268_v63  ;;  %v2321_v15 = vsel %vm1636_vm13, %v2268_v63, 0.0 }
 0x227   : > { %v2370_v17 = vmul.f32 %v2269_v42, %v2269_v42  ;;  %v2323_v10 = vsel %vm1636_vm13, %v2269_v42, 0.0 }
 0x228   : > { %v2367_v52 = vmul.f32 %v2266_v22, %v2266_v22  ;;  %v2317_v2 = vsel %vm1636_vm13, %v2266_v22, 0.0  ;;  %v2368_v53 = vmul.f32 %v2267_v27, %v2267_v27  ;;  %v2319_v11 = vsel %vm1636_vm13, %v2267_v27, 0.0 }
 0x229   : > { %v2318_v56 = vadd.f32 %v2317_v2, %v2316_v40  ;;  %v2422_v26 = vsel %vm1636_vm13, %v2369_v43, 0.0  ;;  %v2424_v60 = vsel %vm1636_vm13, %v2370_v17, 0.0 }
 0x22a   : > { %v2418_v25 = vsel %vm1636_vm13, %v2367_v52, 0.0  ;;  %v2420_v47 = vsel %vm1636_vm13, %v2368_v53, 0.0 }
 0x22b   : > { %v2419_v29 = vadd.f32 %v2418_v25, %v2417_v36  ;;  %v2320_v6 = vadd.f32 %v2319_v11, %v2318_v56 }
 0x22d   : > { %v2421_v33 = vadd.f32 %v2420_v47, %v2419_v29  ;;  %v2322_v1 = vadd.f32 %v2321_v15, %v2320_v6 }
 0x22f   : > { %v2423_v12 = vadd.f32 %v2422_v26, %v2421_v33  ;;  %v2324_v58 = vadd.f32 %v2323_v10, %v2322_v1 }
 0x231   : > { %v2425_v59 = vadd.f32 %v2424_v60, %v2423_v12 }
 0x23d   : > { %v3915_v18 = vpop.f32.mrf.mxu0 }
 0x23e   : > { %v3809_v20 = vpack.c.bf16 %v3915_v18, %v3915_v18 }
 0x23f   : > { %v2054_v38 = vpop.f32.mrf.mxu0 }
 0x240   : > { %2240 = vst.msk [vmem:[%s5326_s24 + $0x68] sm:$0xf] %vm2213_vm8, %v3809_v20  ;;  %v3807_v28 = vpack.c.bf16 %v2054_v38, %v2054_v38 }
 0x241   : > { %v3916_v34 = vpop.f32.mrf.mxu0 }
 0x242   : > { %2238 = vst.msk [vmem:[%s5326_s24 + $0x60] sm:$0xf] %vm2213_vm8, %v3807_v28  ;;  %v3810_v23 = vpack.c.bf16 %v3916_v34, %v3916_v34  ;;  %v2098_v62 = vpack.c.bf16 %v3916_v34, %v3915_v18 }
 0x243   : > { %v2057_v44 = vpop.f32.mrf.mxu0 }
 0x244   : > { %2241 = vst.msk [vmem:[%s5326_s24 + $0x6c] sm:$0xf] %vm2213_vm8, %v3810_v23  ;;  %v3808_v46 = vpack.c.bf16 %v2057_v44, %v2057_v44  ;;  %v2097_v48 = vpack.c.bf16 %v2057_v44, %v2054_v38  ;;  %v2272_v4 = vunpack.c.l.bf16 %v2098_v62  ;;  %v2273_v50 = vunpack.c.h.bf16 %v2098_v62 }
 0x246   : > { %2239 = vst.msk [vmem:[%s5326_s24 + $0x64] sm:$0xf] %vm2213_vm8, %v3808_v46  ;;  %v2270_v39 = vunpack.c.l.bf16 %v2097_v48  ;;  %v2271_v49 = vunpack.c.h.bf16 %v2097_v48  ;;  %v2373_v16 = vmul.f32 %v2272_v4, %v2272_v4  ;;  %v2329_v30 = vsel %vm1636_vm13, %v2272_v4, 0.0 }
 0x247   : > { %v2374_v31 = vmul.f32 %v2273_v50, %v2273_v50  ;;  %v2331_v20 = vsel %vm1636_vm13, %v2273_v50, 0.0 }
 0x248   : > { %v2371_v13 = vmul.f32 %v2270_v39, %v2270_v39  ;;  %v2325_v51 = vsel %vm1636_vm13, %v2270_v39, 0.0  ;;  %v2372_v54 = vmul.f32 %v2271_v49, %v2271_v49  ;;  %v2327_v55 = vsel %vm1636_vm13, %v2271_v49, 0.0 }
 0x249   : > { %v2326_v61 = vadd.f32 %v2325_v51, %v2324_v58  ;;  %v2430_v18 = vsel %vm1636_vm13, %v2373_v16, 0.0  ;;  %v2432_v22 = vsel %vm1636_vm13, %v2374_v31, 0.0 }
 0x24a   : > { %v2426_v45 = vsel %vm1636_vm13, %v2371_v13, 0.0  ;;  %v2428_v40 = vsel %vm1636_vm13, %v2372_v54, 0.0 }
 0x24b   : > { %v2427_v5 = vadd.f32 %v2426_v45, %v2425_v59  ;;  %v2328_v8 = vadd.f32 %v2327_v55, %v2326_v61 }
 0x24d   : > { %v2429_v36 = vadd.f32 %v2428_v40, %v2427_v5  ;;  %v2330_v32 = vadd.f32 %v2329_v30, %v2328_v8 }
 0x24f   : > { %v2431_v24 = vadd.f32 %v2430_v18, %v2429_v36  ;;  %v2332_v23 = vadd.f32 %v2331_v20, %v2330_v32 }
 0x251   : > { %v2433_v2 = vadd.f32 %v2432_v22, %v2431_v24 }
 0x25a   : > { %v3919_v41 = vpop.f32.mrf.mxu0 }
 0x25b   : > { %v3813_v35 = vpack.c.bf16 %v3919_v41, %v3919_v41 }
 0x25c   : > { %v2070_v37 = vpop.f32.mrf.mxu0 }
 0x25d   : > { %2244 = vst.msk [vmem:[%s5326_s24 + $0x78] sm:$0xf] %vm2213_vm8, %v3813_v35  ;;  %v3811_v19 = vpack.c.bf16 %v2070_v37, %v2070_v37 }
 0x25e   : > { %v3920_v21 = vpop.f32.mrf.mxu0 }
 0x25f   : > { %2242 = vst.msk [vmem:[%s5326_s24 + $0x70] sm:$0xf] %vm2213_vm8, %v3811_v19  ;;  %v3814_v9 = vpack.c.bf16 %v3920_v21, %v3920_v21  ;;  %v2100_v7 = vpack.c.bf16 %v3920_v21, %v3919_v41 }
 0x260   : > { %v2073_v0 = vpop.f32.mrf.mxu0 }
 0x261   : > { %2245 = vst.msk [vmem:[%s5326_s24 + $0x7c] sm:$0xf] %vm2213_vm8, %v3814_v9  ;;  %v2099_v57 = vpack.c.bf16 %v2073_v0, %v2070_v37  ;;  %v3812_v14 = vpack.c.bf16 %v2073_v0, %v2073_v0  ;;  %v2276_v38 = vunpack.c.l.bf16 %v2100_v7  ;;  %v2277_v44 = vunpack.c.h.bf16 %v2100_v7 }
 0x263   : > { %2243 = vst.msk [vmem:[%s5326_s24 + $0x74] sm:$0xf] %vm2213_vm8, %v3812_v14  ;;  %v2274_v28 = vunpack.c.l.bf16 %v2099_v57  ;;  %v2275_v34 = vunpack.c.h.bf16 %v2099_v57  ;;  %v2377_v25 = vmul.f32 %v2276_v38, %v2276_v38  ;;  %v2337_v29 = vsel %vm1636_vm13, %v2276_v38, 0.0 }
 0x264   : > { %v2378_v11 = vmul.f32 %v2277_v44, %v2277_v44  ;;  %v2339_v47 = vsel %vm1636_vm13, %v2277_v44, 0.0 }
 0x265   : > { %v2333_v46 = vsel %vm1636_vm13, %v2274_v28, 0.0  ;;  %v2375_v52 = vmul.f32 %v2274_v28, %v2274_v28  ;;  %v2376_v3 = vmul.f32 %v2275_v34, %v2275_v34  ;;  %v2335_v56 = vsel %vm1636_vm13, %v2275_v34, 0.0 }
 0x266   : > { %v2334_v27 = vadd.f32 %v2333_v46, %v2332_v23  ;;  %v2438_v39 = vsel %vm1636_vm13, %v2377_v25, 0.0  ;;  %v2440_v1 = vsel %vm1636_vm13, %v2378_v11, 0.0 }
 0x267   : > { %v2434_v63 = vsel %vm1636_vm13, %v2375_v52, 0.0  ;;  %v2436_v6 = vsel %vm1636_vm13, %v2376_v3, 0.0 }
 0x268   : > { %v2336_v53 = vadd.f32 %v2335_v56, %v2334_v27  ;;  %v2435_v48 = vadd.f32 %v2434_v63, %v2433_v2 }
 0x26a   : > { %v2338_v42 = vadd.f32 %v2337_v29, %v2336_v53  ;;  %v2437_v43 = vadd.f32 %v2436_v6, %v2435_v48 }
 0x26c   : > { %v2340_v33 = vadd.f32 %v2339_v47, %v2338_v42  ;;  %v2439_v15 = vadd.f32 %v2438_v39, %v2437_v43 }
 0x26e   : > { %v2341_v17 = vrot.slane %v2340_v33, 4  ;;  %v2441_v26 = vadd.f32 %v2440_v1, %v2439_v15 }
 0x270   : > { %v2342_v13 = vadd.f32 %v2341_v17, %v2340_v33  ;;  %v2442_v12 = vrot.slane %v2441_v26, 4 }
 0x272   : > { %v2343_v10 = vrot.slane %v2342_v13, 2  ;;  %v2443_v62 = vadd.f32 %v2442_v12, %v2441_v26 }
 0x274   : > { %v2344_v49 = vadd.f32 %v2343_v10, %v2342_v13  ;;  %v2444_v51 = vrot.slane %v2443_v62, 2 }
 0x276   : > { %v2345_v58 = vrot.slane %v2344_v49, 1  ;;  %v2445_v60 = vadd.f32 %v2444_v51, %v2443_v62 }
 0x278   : > { %v2446_v45 = vrot.slane %v2445_v60, 1  ;;  %v2346_v61 = vadd.f32 %v2345_v58, %v2344_v49 }
 0x27a   : > { %v2447_v59 = vadd.f32 %v2446_v45, %v2445_v60 }
 0x27c   : > { %v2449_v4 = vsel %vm2448_vm9, %v2346_v61, %v2447_v59 }
 0x27d   : > { %2451 = vst.msk [vmem:[%s280_s9] sm:$0x3] %vm2450_vm10, %v2449_v4 }
 0x27e PF: > { %s17_s21 = sadd.s32 1, %s4036_s21  }
 0x27f   : > { %p14_p4 = scmp.ge.s32.totalorder %s17_s21, 4  }
 0x281   :  { %16 = sbr.rel (!%p14_p4) target bundleno = 1 (0x1), region = 100 }

</bundles_post_ra>
